<compile_context>
chip_gen: v6e
topology: v6e:2x2x1
jax: 0.10.0
libtpu: 0.0.40
codegen_flags: <defaults>
</compile_context>

<pallas_src>
import numpy as np
import jax
import jax.numpy as jnp
from jax import lax
from jax.experimental import pallas as pl
from jax.experimental.pallas import tpu as pltpu

# ---------------------------------------------------------------------------
# Static network geometry (fixed by the module: 64x64 RGB input)
# ---------------------------------------------------------------------------
KH = KW = 5
H = W = 64
C_IN, C1, C2 = 3, 6, 12
H1 = H - KH + 1          # 60  conv1 output spatial size
P1 = H1 // 2             # 30  after 2x2 max-pool
H2 = P1 - KH + 1         # 26  conv2 output spatial size
P2 = H2 // 2             # 13  after 2x2 max-pool
L1 = H1 * C1             # 360 conv1 lane width   (lane = j*C1 + co)
L1P = P1 * C1            # 180 pooled conv1 lane width
L2 = H2 * C2             # 312 conv2 lane width
L2P = P2 * C2            # 156 pooled conv2 lane width
FCP = 128                # every fc dimension padded to one 128-lane register


# ---------------------------------------------------------------------------
# Fused Pallas kernel: whole network for one image per grid step
# ---------------------------------------------------------------------------
def network_kernel(x_ref, d1_ref, se1_ref, so1_ref, te1_ref, to1_ref, b1_ref,
                   d2_ref, se2_ref, so2_ref, te2_ref, to2_ref, b2_ref,
                   wf1_ref, bf1_ref, wf2_ref, bf2_ref, wo_ref, bo_ref,
                   o_ref, y1_s, p_s):
    f32 = jnp.float32

    # ---- conv1: banded matmul per (input channel, kernel row) -------------
    z1 = None
    for ci in range(C_IN):
        for kh in range(KH):
            rows = x_ref[0, ci, kh:kh + H1, :]                               # (60, 64)
            t = jnp.dot(rows, d1_ref[ci * KH + kh],
                        preferred_element_type=f32)                          # (60, 360)
            z1 = t if z1 is None else z1 + t

    # ---- 2x2 max-pool via exact 0/1 selection matmuls; bias+ReLU hoisted ---
    zr = jnp.maximum(jnp.dot(se1_ref[...], z1, preferred_element_type=f32),
                     jnp.dot(so1_ref[...], z1, preferred_element_type=f32))  # (30, 360)
    y1 = jnp.maximum(jnp.dot(zr, te1_ref[...], preferred_element_type=f32),
                     jnp.dot(zr, to1_ref[...], preferred_element_type=f32))  # (30, 180)
    y1_s[...] = jnp.maximum(y1 + b1_ref[...], 0.0)

    # ---- conv2: banded matmul per kernel row (channels interleaved) --------
    z2 = None
    for kh in range(KH):
        t = jnp.dot(y1_s[kh:kh + H2, :], d2_ref[kh],
                    preferred_element_type=f32)                              # (26, 312)
        z2 = t if z2 is None else z2 + t
    zr2 = jnp.maximum(jnp.dot(se2_ref[...], z2, preferred_element_type=f32),
                      jnp.dot(so2_ref[...], z2, preferred_element_type=f32)) # (13, 312)
    p = jnp.maximum(jnp.dot(zr2, te2_ref[...], preferred_element_type=f32),
                    jnp.dot(zr2, to2_ref[...], preferred_element_type=f32))  # (13, 156)
    p_s[...] = jnp.maximum(p + b2_ref[...], 0.0)

    # ---- fc1: weights pre-permuted, consumes the (13, 156) layout directly -
    h = bf1_ref[...]                                                          # (1, 128)
    for pi in range(P2):
        h = h + jnp.dot(p_s[pi:pi + 1, :], wf1_ref[pi],
                        preferred_element_type=f32)
    h = jnp.maximum(h, 0.0)

    # ---- fc2 -> relu -> out (zero-padded to 128 lanes; padding is exact) ---
    h = jnp.maximum(jnp.dot(h, wf2_ref[...], preferred_element_type=f32)
                    + bf2_ref[...], 0.0)
    logits = jnp.dot(h, wo_ref[...], preferred_element_type=f32) + bo_ref[...]
    o_ref[0] = jnp.broadcast_to(logits, (8, FCP)).astype(o_ref.dtype)


# ---------------------------------------------------------------------------
# One-off, exact re-packing of the PyTorch parameters for the fused kernel
# ---------------------------------------------------------------------------
def _conv1_banded(w):
    """(C1, C_IN, KH, KW) -> (C_IN*KH, W, H1*C1):
    D[ci*KH+kh][jw, j*C1+co] = w[co, ci, kh, jw-j] (0 <= jw-j < KW, else 0)."""
    cout, cin, kh_, kw_ = w.shape
    wo = W - kw_ + 1
    jj, kk, co = jnp.meshgrid(jnp.arange(wo), jnp.arange(kw_),
                              jnp.arange(cout), indexing="ij")
    rows = (jj + kk).reshape(-1)
    cols = (jj * cout + co).reshape(-1)
    mats = []
    for ci in range(cin):
        for kh in range(kh_):
            vals = w[co, ci, kh, kk].reshape(-1)
            mats.append(jnp.zeros((W, wo * cout), w.dtype).at[rows, cols].set(vals))
    return jnp.stack(mats)


def _conv2_banded(w):
    """(C2, C1, KH, KW) -> (KH, P1*C1, H2*C2):
    D[kh][jw*C1+ci, j*C2+co] = w[co, ci, kh, jw-j]."""
    cout, cin, kh_, kw_ = w.shape
    wo = P1 - kw_ + 1
    jj, kk, ci, co = jnp.meshgrid(jnp.arange(wo), jnp.arange(kw_),
                                  jnp.arange(cin), jnp.arange(cout), indexing="ij")
    rows = ((jj + kk) * cin + ci).reshape(-1)
    cols = (jj * cout + co).reshape(-1)
    mats = []
    for kh in range(kh_):
        vals = w[co, ci, kh, kk].reshape(-1)
        mats.append(jnp.zeros((P1 * cin, wo * cout), w.dtype).at[rows, cols].set(vals))
    return jnp.stack(mats)


def _pool_row_selectors(n):
    """Even/odd row selectors (n, 2n) used as exact 0/1 matmuls."""
    r = jnp.arange(n)
    base = jnp.zeros((n, 2 * n), jnp.float32)
    return base.at[r, 2 * r].set(1.0), base.at[r, 2 * r + 1].set(1.0)


def _pool_col_selectors(n, c):
    """Even/odd column-block selectors (2nc, nc); lane layout = j*c + co."""
    t, cc = jnp.meshgrid(jnp.arange(n), jnp.arange(c), indexing="ij")
    cols = (t * c + cc).reshape(-1)
    base = jnp.zeros((2 * n * c, n * c), jnp.float32)
    te = base.at[(2 * t * c + cc).reshape(-1), cols].set(1.0)
    to = base.at[((2 * t + 1) * c + cc).reshape(-1), cols].set(1.0)
    return te, to


def _pad2(w, r, c):
    return jnp.pad(w, ((0, r - w.shape[0]), (0, c - w.shape[1])))


def _pad_row(b, c):
    return jnp.pad(b, (0, c - b.shape[0])).reshape(1, c)


_WEIGHT_ORDER = ("d1", "se1", "so1", "te1", "to1", "b1c",
                 "d2", "se2", "so2", "te2", "to2", "b2c",
                 "wfc1", "bfc1", "wfc2", "bfc2", "wout", "bout")


def prepare_params(params):
    # fc1 rows re-ordered from PyTorch flatten (co, pi, pj) to (pi, pj*C2+co)
    fc1 = params["fc1_w"].reshape(C2, P2, P2, -1)
    fc1 = jnp.transpose(fc1, (1, 2, 0, 3)).reshape(P2, L2P, -1)
    fc1 = jnp.pad(fc1, ((0, 0), (0, 0), (0, FCP - fc1.shape[-1])))
    se1, so1 = _pool_row_selectors(P1)
    te1, to1 = _pool_col_selectors(P1, C1)
    se2, so2 = _pool_row_selectors(P2)
    te2, to2 = _pool_col_selectors(P2, C2)
    return {
        "d1": _conv1_banded(params["conv1_w"]),
        "se1": se1, "so1": so1, "te1": te1, "to1": to1,
        "b1c": jnp.tile(params["conv1_b"], P1).reshape(1, L1P),
        "d2": _conv2_banded(params["conv2_w"]),
        "se2": se2, "so2": so2, "te2": te2, "to2": to2,
        "b2c": jnp.tile(params["conv2_b"], P2).reshape(1, L2P),
        "wfc1": fc1,
        "bfc1": _pad_row(params["fc1_b"], FCP),
        "wfc2": _pad2(params["fc2_w"], FCP, FCP),
        "bfc2": _pad_row(params["fc2_b"], FCP),
        "wout": _pad2(params["out_w"], FCP, FCP),
        "bout": _pad_row(params["out_b"], FCP),
    }


# ---------------------------------------------------------------------------
# Forward pass: one fused pallas_call, grid over the batch
# ---------------------------------------------------------------------------
def network_forward(x_nchw, prepped):
    n = x_nchw.shape[0]

    def const_spec(a):
        zeros = (0,) * a.ndim
        return pl.BlockSpec(a.shape, lambda i: zeros)

    in_specs = [pl.BlockSpec((1, C_IN, H, W), lambda i: (i, 0, 0, 0))]
    in_specs += [const_spec(prepped[k]) for k in _WEIGHT_ORDER]

    out = pl.pallas_call(
        network_kernel,
        out_shape=jax.ShapeDtypeStruct((n, 8, FCP), jnp.float32),
        grid=(n,),
        in_specs=in_specs,
        out_specs=pl.BlockSpec((1, 8, FCP), lambda i: (i, 0, 0)),
        scratch_shapes=[pltpu.VMEM((P1, L1P), jnp.float32),
                        pltpu.VMEM((P2, L2P), jnp.float32)],
        compiler_params=pltpu.CompilerParams(
            dimension_semantics=("parallel",),
            vmem_limit_bytes=32 * 1024 * 1024),
    )(x_nchw, *(prepped[k] for k in _WEIGHT_ORDER))
    return out[:, 0, :2]


# ---------------------------------------------------------------------------
# Pure-JAX reference (mirrors the PyTorch forward exactly)
# ---------------------------------------------------------------------------
def network_forward_ref(x_nchw, params):
    dn = ("NCHW", "OIHW", "NCHW")
    hi = lax.Precision.HIGHEST
    y = lax.conv_general_dilated(x_nchw, params["conv1_w"], (1, 1), "VALID",
                                 dimension_numbers=dn, precision=hi)
    y = jnp.maximum(y + params["conv1_b"].reshape(1, -1, 1, 1), 0.0)
    y = lax.reduce_window(y, -jnp.inf, lax.max, (1, 1, 2, 2), (1, 1, 2, 2), "VALID")
    y = lax.conv_general_dilated(y, params["conv2_w"], (1, 1), "VALID",
                                 dimension_numbers=dn, precision=hi)
    y = jnp.maximum(y + params["conv2_b"].reshape(1, -1, 1, 1), 0.0)
    y = lax.reduce_window(y, -jnp.inf, lax.max, (1, 1, 2, 2), (1, 1, 2, 2), "VALID")
    y = y.reshape(y.shape[0], -1)
    y = jnp.maximum(jnp.dot(y, params["fc1_w"], precision=hi) + params["fc1_b"], 0.0)
    y = jnp.maximum(jnp.dot(y, params["fc2_w"], precision=hi) + params["fc2_b"], 0.0)
    return jnp.dot(y, params["out_w"], precision=hi) + params["out_b"]


# ---------------------------------------------------------------------------
def make_params(key):
    ks = jax.random.split(key, 10)
    f32 = jnp.float32
    return {
        "conv1_w": 0.10 * jax.random.normal(ks[0], (6, 3, 5, 5), f32),
        "conv1_b": 0.10 * jax.random.normal(ks[1], (6,), f32),
        "conv2_w": 0.10 * jax.random.normal(ks[2], (12, 6, 5, 5), f32),
        "conv2_b": 0.10 * jax.random.normal(ks[3], (12,), f32),
        # Linear weights stored as (in_features, out_features), i.e. W.T of PyTorch.
        "fc1_w": 0.02 * jax.random.normal(ks[4], (12 * 13 * 13, 120), f32),
        "fc1_b": 0.10 * jax.random.normal(ks[5], (120,), f32),
        "fc2_w": 0.05 * jax.random.normal(ks[6], (120, 60), f32),
        "fc2_b": 0.10 * jax.random.normal(ks[7], (60,), f32),
        "out_w": 0.10 * jax.random.normal(ks[8], (60, 2), f32),
        "out_b": 0.10 * jax.random.normal(ks[9], (2,), f32),
    }


if __name__ == "__main__":
    key = jax.random.PRNGKey(0)
    pkey, xkey = jax.random.split(key)
    params = make_params(pkey)
    # fc1 expects 12*13*13 features => spatial input must be 64x64 (as in the module).
    x = jax.random.normal(xkey, (2, 3, 64, 64), jnp.float32)

    prepped = prepare_params(params)          # one-off, exact weight re-packing
    out = jax.block_until_ready(network_forward(x, prepped))
    assert out.shape == (2, 2), out.shape

    ref = jax.block_until_ready(network_forward_ref(x, params))
    np.testing.assert_allclose(np.asarray(out), np.asarray(ref), rtol=2e-2, atol=2e-2)

    print("KERNEL_OK")
</pallas_src>

<mosaic_0001>
module attributes {stable_mosaic.version = 11 : i64} {
  func.func @network_kernel(%arg0: i32, %arg1: memref<1x3x64x64xf32, #tpu.memory_space<vmem>>, %arg2: memref<15x64x360xf32, #tpu.memory_space<vmem>>, %arg3: memref<30x60xf32, #tpu.memory_space<vmem>>, %arg4: memref<30x60xf32, #tpu.memory_space<vmem>>, %arg5: memref<360x180xf32, #tpu.memory_space<vmem>>, %arg6: memref<360x180xf32, #tpu.memory_space<vmem>>, %arg7: memref<1x180xf32, #tpu.memory_space<vmem>>, %arg8: memref<5x180x312xf32, #tpu.memory_space<vmem>>, %arg9: memref<13x26xf32, #tpu.memory_space<vmem>>, %arg10: memref<13x26xf32, #tpu.memory_space<vmem>>, %arg11: memref<312x156xf32, #tpu.memory_space<vmem>>, %arg12: memref<312x156xf32, #tpu.memory_space<vmem>>, %arg13: memref<1x156xf32, #tpu.memory_space<vmem>>, %arg14: memref<13x156x128xf32, #tpu.memory_space<vmem>>, %arg15: memref<1x128xf32, #tpu.memory_space<vmem>>, %arg16: memref<128x128xf32, #tpu.memory_space<vmem>>, %arg17: memref<1x128xf32, #tpu.memory_space<vmem>>, %arg18: memref<128x128xf32, #tpu.memory_space<vmem>>, %arg19: memref<1x128xf32, #tpu.memory_space<vmem>>, %arg20: memref<1x8x128xf32, #tpu.memory_space<vmem>>, %arg21: memref<30x180xf32, #tpu.memory_space<vmem>>, %arg22: memref<13x156xf32, #tpu.memory_space<vmem>>) attributes {dimension_semantics = [#tpu.dimension_semantics<parallel>], iteration_bounds = array<i64: 2>, scalar_prefetch = 0 : i64, scratch_operands = 2 : i64, tpu.core_type = #tpu.core_type<tc>, window_params = [{transform_indices = @transform_0, window_bounds = array<i64: 1, 3, 64, 64>}, {pipeline_mode = #tpu.pipeline_mode<synchronous>, transform_indices = @transform_1, window_bounds = array<i64: 15, 64, 360>}, {pipeline_mode = #tpu.pipeline_mode<synchronous>, transform_indices = @transform_2, window_bounds = array<i64: 30, 60>}, {pipeline_mode = #tpu.pipeline_mode<synchronous>, transform_indices = @transform_3, window_bounds = array<i64: 30, 60>}, {pipeline_mode = #tpu.pipeline_mode<synchronous>, transform_indices = @transform_4, window_bounds = array<i64: 360, 180>}, {pipeline_mode = #tpu.pipeline_mode<synchronous>, transform_indices = @transform_5, window_bounds = array<i64: 360, 180>}, {pipeline_mode = #tpu.pipeline_mode<synchronous>, transform_indices = @transform_6, window_bounds = array<i64: 1, 180>}, {pipeline_mode = #tpu.pipeline_mode<synchronous>, transform_indices = @transform_7, window_bounds = array<i64: 5, 180, 312>}, {pipeline_mode = #tpu.pipeline_mode<synchronous>, transform_indices = @transform_8, window_bounds = array<i64: 13, 26>}, {pipeline_mode = #tpu.pipeline_mode<synchronous>, transform_indices = @transform_9, window_bounds = array<i64: 13, 26>}, {pipeline_mode = #tpu.pipeline_mode<synchronous>, transform_indices = @transform_10, window_bounds = array<i64: 312, 156>}, {pipeline_mode = #tpu.pipeline_mode<synchronous>, transform_indices = @transform_11, window_bounds = array<i64: 312, 156>}, {pipeline_mode = #tpu.pipeline_mode<synchronous>, transform_indices = @transform_12, window_bounds = array<i64: 1, 156>}, {pipeline_mode = #tpu.pipeline_mode<synchronous>, transform_indices = @transform_13, window_bounds = array<i64: 13, 156, 128>}, {pipeline_mode = #tpu.pipeline_mode<synchronous>, transform_indices = @transform_14, window_bounds = array<i64: 1, 128>}, {pipeline_mode = #tpu.pipeline_mode<synchronous>, transform_indices = @transform_15, window_bounds = array<i64: 128, 128>}, {pipeline_mode = #tpu.pipeline_mode<synchronous>, transform_indices = @transform_16, window_bounds = array<i64: 1, 128>}, {pipeline_mode = #tpu.pipeline_mode<synchronous>, transform_indices = @transform_17, window_bounds = array<i64: 128, 128>}, {pipeline_mode = #tpu.pipeline_mode<synchronous>, transform_indices = @transform_18, window_bounds = array<i64: 1, 128>}, {transform_indices = @transform_19, window_bounds = array<i64: 1, 8, 128>}]} {
    %c0 = arith.constant 0 : index
    %c0_0 = arith.constant 0 : index
    %c0_1 = arith.constant 0 : index
    %c0_2 = arith.constant 0 : index
    %0 = vector.load %arg1[%c0, %c0_0, %c0_1, %c0_2] : memref<1x3x64x64xf32, #tpu.memory_space<vmem>>, vector<1x1x60x64xf32>
    %1 = vector.shape_cast %0 : vector<1x1x60x64xf32> to vector<60x64xf32>
    %c0_3 = arith.constant 0 : index
    %c0_4 = arith.constant 0 : index
    %c0_5 = arith.constant 0 : index
    %2 = vector.load %arg2[%c0_3, %c0_4, %c0_5] : memref<15x64x360xf32, #tpu.memory_space<vmem>>, vector<1x64x360xf32>
    %3 = vector.shape_cast %2 : vector<1x64x360xf32> to vector<64x360xf32>
    %cst = arith.constant dense<0.000000e+00> : vector<60x360xf32>
    %4 = tpu.matmul %1, %3, %cst {dimension_numbers = #tpu.dot_dimension_numbers<[1], [0], [0], [1], [0, 0, 1, 1], [], []>} : vector<60x64xf32>, vector<64x360xf32>, vector<60x360xf32> -> vector<60x360xf32>
    %c0_6 = arith.constant 0 : index
    %c0_7 = arith.constant 0 : index
    %c1 = arith.constant 1 : index
    %c0_8 = arith.constant 0 : index
    %5 = vector.load %arg1[%c0_6, %c0_7, %c1, %c0_8] : memref<1x3x64x64xf32, #tpu.memory_space<vmem>>, vector<1x1x60x64xf32>
    %6 = vector.shape_cast %5 : vector<1x1x60x64xf32> to vector<60x64xf32>
    %c1_9 = arith.constant 1 : index
    %c0_10 = arith.constant 0 : index
    %c0_11 = arith.constant 0 : index
    %7 = vector.load %arg2[%c1_9, %c0_10, %c0_11] : memref<15x64x360xf32, #tpu.memory_space<vmem>>, vector<1x64x360xf32>
    %8 = vector.shape_cast %7 : vector<1x64x360xf32> to vector<64x360xf32>
    %cst_12 = arith.constant dense<0.000000e+00> : vector<60x360xf32>
    %9 = tpu.matmul %6, %8, %cst_12 {dimension_numbers = #tpu.dot_dimension_numbers<[1], [0], [0], [1], [0, 0, 1, 1], [], []>} : vector<60x64xf32>, vector<64x360xf32>, vector<60x360xf32> -> vector<60x360xf32>
    %10 = arith.addf %4, %9 : vector<60x360xf32>
    %c0_13 = arith.constant 0 : index
    %c0_14 = arith.constant 0 : index
    %c2 = arith.constant 2 : index
    %c0_15 = arith.constant 0 : index
    %11 = vector.load %arg1[%c0_13, %c0_14, %c2, %c0_15] : memref<1x3x64x64xf32, #tpu.memory_space<vmem>>, vector<1x1x60x64xf32>
    %12 = vector.shape_cast %11 : vector<1x1x60x64xf32> to vector<60x64xf32>
    %c2_16 = arith.constant 2 : index
    %c0_17 = arith.constant 0 : index
    %c0_18 = arith.constant 0 : index
    %13 = vector.load %arg2[%c2_16, %c0_17, %c0_18] : memref<15x64x360xf32, #tpu.memory_space<vmem>>, vector<1x64x360xf32>
    %14 = vector.shape_cast %13 : vector<1x64x360xf32> to vector<64x360xf32>
    %cst_19 = arith.constant dense<0.000000e+00> : vector<60x360xf32>
    %15 = tpu.matmul %12, %14, %cst_19 {dimension_numbers = #tpu.dot_dimension_numbers<[1], [0], [0], [1], [0, 0, 1, 1], [], []>} : vector<60x64xf32>, vector<64x360xf32>, vector<60x360xf32> -> vector<60x360xf32>
    %16 = arith.addf %10, %15 : vector<60x360xf32>
    %c0_20 = arith.constant 0 : index
    %c0_21 = arith.constant 0 : index
    %c3 = arith.constant 3 : index
    %c0_22 = arith.constant 0 : index
    %17 = vector.load %arg1[%c0_20, %c0_21, %c3, %c0_22] : memref<1x3x64x64xf32, #tpu.memory_space<vmem>>, vector<1x1x60x64xf32>
    %18 = vector.shape_cast %17 : vector<1x1x60x64xf32> to vector<60x64xf32>
    %c3_23 = arith.constant 3 : index
    %c0_24 = arith.constant 0 : index
    %c0_25 = arith.constant 0 : index
    %19 = vector.load %arg2[%c3_23, %c0_24, %c0_25] : memref<15x64x360xf32, #tpu.memory_space<vmem>>, vector<1x64x360xf32>
    %20 = vector.shape_cast %19 : vector<1x64x360xf32> to vector<64x360xf32>
    %cst_26 = arith.constant dense<0.000000e+00> : vector<60x360xf32>
    %21 = tpu.matmul %18, %20, %cst_26 {dimension_numbers = #tpu.dot_dimension_numbers<[1], [0], [0], [1], [0, 0, 1, 1], [], []>} : vector<60x64xf32>, vector<64x360xf32>, vector<60x360xf32> -> vector<60x360xf32>
    %22 = arith.addf %16, %21 : vector<60x360xf32>
    %c0_27 = arith.constant 0 : index
    %c0_28 = arith.constant 0 : index
    %c4 = arith.constant 4 : index
    %c0_29 = arith.constant 0 : index
    %23 = vector.load %arg1[%c0_27, %c0_28, %c4, %c0_29] : memref<1x3x64x64xf32, #tpu.memory_space<vmem>>, vector<1x1x60x64xf32>
    %24 = vector.shape_cast %23 : vector<1x1x60x64xf32> to vector<60x64xf32>
    %c4_30 = arith.constant 4 : index
    %c0_31 = arith.constant 0 : index
    %c0_32 = arith.constant 0 : index
    %25 = vector.load %arg2[%c4_30, %c0_31, %c0_32] : memref<15x64x360xf32, #tpu.memory_space<vmem>>, vector<1x64x360xf32>
    %26 = vector.shape_cast %25 : vector<1x64x360xf32> to vector<64x360xf32>
    %cst_33 = arith.constant dense<0.000000e+00> : vector<60x360xf32>
    %27 = tpu.matmul %24, %26, %cst_33 {dimension_numbers = #tpu.dot_dimension_numbers<[1], [0], [0], [1], [0, 0, 1, 1], [], []>} : vector<60x64xf32>, vector<64x360xf32>, vector<60x360xf32> -> vector<60x360xf32>
    %28 = arith.addf %22, %27 : vector<60x360xf32>
    %c0_34 = arith.constant 0 : index
    %c1_35 = arith.constant 1 : index
    %c0_36 = arith.constant 0 : index
    %c0_37 = arith.constant 0 : index
    %29 = vector.load %arg1[%c0_34, %c1_35, %c0_36, %c0_37] : memref<1x3x64x64xf32, #tpu.memory_space<vmem>>, vector<1x1x60x64xf32>
    %30 = vector.shape_cast %29 : vector<1x1x60x64xf32> to vector<60x64xf32>
    %c5 = arith.constant 5 : index
    %c0_38 = arith.constant 0 : index
    %c0_39 = arith.constant 0 : index
    %31 = vector.load %arg2[%c5, %c0_38, %c0_39] : memref<15x64x360xf32, #tpu.memory_space<vmem>>, vector<1x64x360xf32>
    %32 = vector.shape_cast %31 : vector<1x64x360xf32> to vector<64x360xf32>
    %cst_40 = arith.constant dense<0.000000e+00> : vector<60x360xf32>
    %33 = tpu.matmul %30, %32, %cst_40 {dimension_numbers = #tpu.dot_dimension_numbers<[1], [0], [0], [1], [0, 0, 1, 1], [], []>} : vector<60x64xf32>, vector<64x360xf32>, vector<60x360xf32> -> vector<60x360xf32>
    %34 = arith.addf %28, %33 : vector<60x360xf32>
    %c0_41 = arith.constant 0 : index
    %c1_42 = arith.constant 1 : index
    %c1_43 = arith.constant 1 : index
    %c0_44 = arith.constant 0 : index
    %35 = vector.load %arg1[%c0_41, %c1_42, %c1_43, %c0_44] : memref<1x3x64x64xf32, #tpu.memory_space<vmem>>, vector<1x1x60x64xf32>
    %36 = vector.shape_cast %35 : vector<1x1x60x64xf32> to vector<60x64xf32>
    %c6 = arith.constant 6 : index
    %c0_45 = arith.constant 0 : index
    %c0_46 = arith.constant 0 : index
    %37 = vector.load %arg2[%c6, %c0_45, %c0_46] : memref<15x64x360xf32, #tpu.memory_space<vmem>>, vector<1x64x360xf32>
    %38 = vector.shape_cast %37 : vector<1x64x360xf32> to vector<64x360xf32>
    %cst_47 = arith.constant dense<0.000000e+00> : vector<60x360xf32>
    %39 = tpu.matmul %36, %38, %cst_47 {dimension_numbers = #tpu.dot_dimension_numbers<[1], [0], [0], [1], [0, 0, 1, 1], [], []>} : vector<60x64xf32>, vector<64x360xf32>, vector<60x360xf32> -> vector<60x360xf32>
    %40 = arith.addf %34, %39 : vector<60x360xf32>
    %c0_48 = arith.constant 0 : index
    %c1_49 = arith.constant 1 : index
    %c2_50 = arith.constant 2 : index
    %c0_51 = arith.constant 0 : index
    %41 = vector.load %arg1[%c0_48, %c1_49, %c2_50, %c0_51] : memref<1x3x64x64xf32, #tpu.memory_space<vmem>>, vector<1x1x60x64xf32>
    %42 = vector.shape_cast %41 : vector<1x1x60x64xf32> to vector<60x64xf32>
    %c7 = arith.constant 7 : index
    %c0_52 = arith.constant 0 : index
    %c0_53 = arith.constant 0 : index
    %43 = vector.load %arg2[%c7, %c0_52, %c0_53] : memref<15x64x360xf32, #tpu.memory_space<vmem>>, vector<1x64x360xf32>
    %44 = vector.shape_cast %43 : vector<1x64x360xf32> to vector<64x360xf32>
    %cst_54 = arith.constant dense<0.000000e+00> : vector<60x360xf32>
    %45 = tpu.matmul %42, %44, %cst_54 {dimension_numbers = #tpu.dot_dimension_numbers<[1], [0], [0], [1], [0, 0, 1, 1], [], []>} : vector<60x64xf32>, vector<64x360xf32>, vector<60x360xf32> -> vector<60x360xf32>
    %46 = arith.addf %40, %45 : vector<60x360xf32>
    %c0_55 = arith.constant 0 : index
    %c1_56 = arith.constant 1 : index
    %c3_57 = arith.constant 3 : index
    %c0_58 = arith.constant 0 : index
    %47 = vector.load %arg1[%c0_55, %c1_56, %c3_57, %c0_58] : memref<1x3x64x64xf32, #tpu.memory_space<vmem>>, vector<1x1x60x64xf32>
    %48 = vector.shape_cast %47 : vector<1x1x60x64xf32> to vector<60x64xf32>
    %c8 = arith.constant 8 : index
    %c0_59 = arith.constant 0 : index
    %c0_60 = arith.constant 0 : index
    %49 = vector.load %arg2[%c8, %c0_59, %c0_60] : memref<15x64x360xf32, #tpu.memory_space<vmem>>, vector<1x64x360xf32>
    %50 = vector.shape_cast %49 : vector<1x64x360xf32> to vector<64x360xf32>
    %cst_61 = arith.constant dense<0.000000e+00> : vector<60x360xf32>
    %51 = tpu.matmul %48, %50, %cst_61 {dimension_numbers = #tpu.dot_dimension_numbers<[1], [0], [0], [1], [0, 0, 1, 1], [], []>} : vector<60x64xf32>, vector<64x360xf32>, vector<60x360xf32> -> vector<60x360xf32>
    %52 = arith.addf %46, %51 : vector<60x360xf32>
    %c0_62 = arith.constant 0 : index
    %c1_63 = arith.constant 1 : index
    %c4_64 = arith.constant 4 : index
    %c0_65 = arith.constant 0 : index
    %53 = vector.load %arg1[%c0_62, %c1_63, %c4_64, %c0_65] : memref<1x3x64x64xf32, #tpu.memory_space<vmem>>, vector<1x1x60x64xf32>
    %54 = vector.shape_cast %53 : vector<1x1x60x64xf32> to vector<60x64xf32>
    %c9 = arith.constant 9 : index
    %c0_66 = arith.constant 0 : index
    %c0_67 = arith.constant 0 : index
    %55 = vector.load %arg2[%c9, %c0_66, %c0_67] : memref<15x64x360xf32, #tpu.memory_space<vmem>>, vector<1x64x360xf32>
    %56 = vector.shape_cast %55 : vector<1x64x360xf32> to vector<64x360xf32>
    %cst_68 = arith.constant dense<0.000000e+00> : vector<60x360xf32>
    %57 = tpu.matmul %54, %56, %cst_68 {dimension_numbers = #tpu.dot_dimension_numbers<[1], [0], [0], [1], [0, 0, 1, 1], [], []>} : vector<60x64xf32>, vector<64x360xf32>, vector<60x360xf32> -> vector<60x360xf32>
    %58 = arith.addf %52, %57 : vector<60x360xf32>
    %c0_69 = arith.constant 0 : index
    %c2_70 = arith.constant 2 : index
    %c0_71 = arith.constant 0 : index
    %c0_72 = arith.constant 0 : index
    %59 = vector.load %arg1[%c0_69, %c2_70, %c0_71, %c0_72] : memref<1x3x64x64xf32, #tpu.memory_space<vmem>>, vector<1x1x60x64xf32>
    %60 = vector.shape_cast %59 : vector<1x1x60x64xf32> to vector<60x64xf32>
    %c10 = arith.constant 10 : index
    %c0_73 = arith.constant 0 : index
    %c0_74 = arith.constant 0 : index
    %61 = vector.load %arg2[%c10, %c0_73, %c0_74] : memref<15x64x360xf32, #tpu.memory_space<vmem>>, vector<1x64x360xf32>
    %62 = vector.shape_cast %61 : vector<1x64x360xf32> to vector<64x360xf32>
    %cst_75 = arith.constant dense<0.000000e+00> : vector<60x360xf32>
    %63 = tpu.matmul %60, %62, %cst_75 {dimension_numbers = #tpu.dot_dimension_numbers<[1], [0], [0], [1], [0, 0, 1, 1], [], []>} : vector<60x64xf32>, vector<64x360xf32>, vector<60x360xf32> -> vector<60x360xf32>
    %64 = arith.addf %58, %63 : vector<60x360xf32>
    %c0_76 = arith.constant 0 : index
    %c2_77 = arith.constant 2 : index
    %c1_78 = arith.constant 1 : index
    %c0_79 = arith.constant 0 : index
    %65 = vector.load %arg1[%c0_76, %c2_77, %c1_78, %c0_79] : memref<1x3x64x64xf32, #tpu.memory_space<vmem>>, vector<1x1x60x64xf32>
    %66 = vector.shape_cast %65 : vector<1x1x60x64xf32> to vector<60x64xf32>
    %c11 = arith.constant 11 : index
    %c0_80 = arith.constant 0 : index
    %c0_81 = arith.constant 0 : index
    %67 = vector.load %arg2[%c11, %c0_80, %c0_81] : memref<15x64x360xf32, #tpu.memory_space<vmem>>, vector<1x64x360xf32>
    %68 = vector.shape_cast %67 : vector<1x64x360xf32> to vector<64x360xf32>
    %cst_82 = arith.constant dense<0.000000e+00> : vector<60x360xf32>
    %69 = tpu.matmul %66, %68, %cst_82 {dimension_numbers = #tpu.dot_dimension_numbers<[1], [0], [0], [1], [0, 0, 1, 1], [], []>} : vector<60x64xf32>, vector<64x360xf32>, vector<60x360xf32> -> vector<60x360xf32>
    %70 = arith.addf %64, %69 : vector<60x360xf32>
    %c0_83 = arith.constant 0 : index
    %c2_84 = arith.constant 2 : index
    %c2_85 = arith.constant 2 : index
    %c0_86 = arith.constant 0 : index
    %71 = vector.load %arg1[%c0_83, %c2_84, %c2_85, %c0_86] : memref<1x3x64x64xf32, #tpu.memory_space<vmem>>, vector<1x1x60x64xf32>
    %72 = vector.shape_cast %71 : vector<1x1x60x64xf32> to vector<60x64xf32>
    %c12 = arith.constant 12 : index
    %c0_87 = arith.constant 0 : index
    %c0_88 = arith.constant 0 : index
    %73 = vector.load %arg2[%c12, %c0_87, %c0_88] : memref<15x64x360xf32, #tpu.memory_space<vmem>>, vector<1x64x360xf32>
    %74 = vector.shape_cast %73 : vector<1x64x360xf32> to vector<64x360xf32>
    %cst_89 = arith.constant dense<0.000000e+00> : vector<60x360xf32>
    %75 = tpu.matmul %72, %74, %cst_89 {dimension_numbers = #tpu.dot_dimension_numbers<[1], [0], [0], [1], [0, 0, 1, 1], [], []>} : vector<60x64xf32>, vector<64x360xf32>, vector<60x360xf32> -> vector<60x360xf32>
    %76 = arith.addf %70, %75 : vector<60x360xf32>
    %c0_90 = arith.constant 0 : index
    %c2_91 = arith.constant 2 : index
    %c3_92 = arith.constant 3 : index
    %c0_93 = arith.constant 0 : index
    %77 = vector.load %arg1[%c0_90, %c2_91, %c3_92, %c0_93] : memref<1x3x64x64xf32, #tpu.memory_space<vmem>>, vector<1x1x60x64xf32>
    %78 = vector.shape_cast %77 : vector<1x1x60x64xf32> to vector<60x64xf32>
    %c13 = arith.constant 13 : index
    %c0_94 = arith.constant 0 : index
    %c0_95 = arith.constant 0 : index
    %79 = vector.load %arg2[%c13, %c0_94, %c0_95] : memref<15x64x360xf32, #tpu.memory_space<vmem>>, vector<1x64x360xf32>
    %80 = vector.shape_cast %79 : vector<1x64x360xf32> to vector<64x360xf32>
    %cst_96 = arith.constant dense<0.000000e+00> : vector<60x360xf32>
    %81 = tpu.matmul %78, %80, %cst_96 {dimension_numbers = #tpu.dot_dimension_numbers<[1], [0], [0], [1], [0, 0, 1, 1], [], []>} : vector<60x64xf32>, vector<64x360xf32>, vector<60x360xf32> -> vector<60x360xf32>
    %82 = arith.addf %76, %81 : vector<60x360xf32>
    %c0_97 = arith.constant 0 : index
    %c2_98 = arith.constant 2 : index
    %c4_99 = arith.constant 4 : index
    %c0_100 = arith.constant 0 : index
    %83 = vector.load %arg1[%c0_97, %c2_98, %c4_99, %c0_100] : memref<1x3x64x64xf32, #tpu.memory_space<vmem>>, vector<1x1x60x64xf32>
    %84 = vector.shape_cast %83 : vector<1x1x60x64xf32> to vector<60x64xf32>
    %c14 = arith.constant 14 : index
    %c0_101 = arith.constant 0 : index
    %c0_102 = arith.constant 0 : index
    %85 = vector.load %arg2[%c14, %c0_101, %c0_102] : memref<15x64x360xf32, #tpu.memory_space<vmem>>, vector<1x64x360xf32>
    %86 = vector.shape_cast %85 : vector<1x64x360xf32> to vector<64x360xf32>
    %cst_103 = arith.constant dense<0.000000e+00> : vector<60x360xf32>
    %87 = tpu.matmul %84, %86, %cst_103 {dimension_numbers = #tpu.dot_dimension_numbers<[1], [0], [0], [1], [0, 0, 1, 1], [], []>} : vector<60x64xf32>, vector<64x360xf32>, vector<60x360xf32> -> vector<60x360xf32>
    %88 = arith.addf %82, %87 : vector<60x360xf32>
    %c0_104 = arith.constant 0 : index
    %c0_105 = arith.constant 0 : index
    %89 = vector.load %arg3[%c0_104, %c0_105] : memref<30x60xf32, #tpu.memory_space<vmem>>, vector<30x60xf32>
    %cst_106 = arith.constant dense<0.000000e+00> : vector<30x360xf32>
    %90 = tpu.matmul %89, %88, %cst_106 {dimension_numbers = #tpu.dot_dimension_numbers<[1], [0], [0], [1], [0, 0, 1, 1], [], []>} : vector<30x60xf32>, vector<60x360xf32>, vector<30x360xf32> -> vector<30x360xf32>
    %c0_107 = arith.constant 0 : index
    %c0_108 = arith.constant 0 : index
    %91 = vector.load %arg4[%c0_107, %c0_108] : memref<30x60xf32, #tpu.memory_space<vmem>>, vector<30x60xf32>
    %cst_109 = arith.constant dense<0.000000e+00> : vector<30x360xf32>
    %92 = tpu.matmul %91, %88, %cst_109 {dimension_numbers = #tpu.dot_dimension_numbers<[1], [0], [0], [1], [0, 0, 1, 1], [], []>} : vector<30x60xf32>, vector<60x360xf32>, vector<30x360xf32> -> vector<30x360xf32>
    %93 = arith.maximumf %90, %92 : vector<30x360xf32>
    %c0_110 = arith.constant 0 : index
    %c0_111 = arith.constant 0 : index
    %94 = vector.load %arg5[%c0_110, %c0_111] : memref<360x180xf32, #tpu.memory_space<vmem>>, vector<360x180xf32>
    %cst_112 = arith.constant dense<0.000000e+00> : vector<30x180xf32>
    %95 = tpu.matmul %93, %94, %cst_112 {dimension_numbers = #tpu.dot_dimension_numbers<[1], [0], [0], [1], [0, 0, 1, 1], [], []>} : vector<30x360xf32>, vector<360x180xf32>, vector<30x180xf32> -> vector<30x180xf32>
    %c0_113 = arith.constant 0 : index
    %c0_114 = arith.constant 0 : index
    %96 = vector.load %arg6[%c0_113, %c0_114] : memref<360x180xf32, #tpu.memory_space<vmem>>, vector<360x180xf32>
    %cst_115 = arith.constant dense<0.000000e+00> : vector<30x180xf32>
    %97 = tpu.matmul %93, %96, %cst_115 {dimension_numbers = #tpu.dot_dimension_numbers<[1], [0], [0], [1], [0, 0, 1, 1], [], []>} : vector<30x360xf32>, vector<360x180xf32>, vector<30x180xf32> -> vector<30x180xf32>
    %98 = arith.maximumf %95, %97 : vector<30x180xf32>
    %c0_116 = arith.constant 0 : index
    %c0_117 = arith.constant 0 : index
    %99 = vector.load %arg7[%c0_116, %c0_117] : memref<1x180xf32, #tpu.memory_space<vmem>>, vector<1x180xf32>
    %100 = vector.broadcast %99 : vector<1x180xf32> to vector<30x180xf32>
    %101 = arith.addf %98, %100 : vector<30x180xf32>
    %cst_118 = arith.constant 0.000000e+00 : f32
    %102 = vector.broadcast %cst_118 : f32 to vector<30x180xf32>
    %103 = arith.maximumf %101, %102 : vector<30x180xf32>
    %c0_119 = arith.constant 0 : index
    %c0_120 = arith.constant 0 : index
    %104 = vector.load %arg21[%c0_119, %c0_120] : memref<30x180xf32, #tpu.memory_space<vmem>>, vector<30x180xf32>
    tpu.vector_store %arg21[%c0_119, %c0_120], %103 {strides = array<i32>} : memref<30x180xf32, #tpu.memory_space<vmem>>, vector<30x180xf32>,
    %c0_121 = arith.constant 0 : index
    %c0_122 = arith.constant 0 : index
    %105 = vector.load %arg21[%c0_121, %c0_122] : memref<30x180xf32, #tpu.memory_space<vmem>>, vector<26x180xf32>
    %c0_123 = arith.constant 0 : index
    %c0_124 = arith.constant 0 : index
    %c0_125 = arith.constant 0 : index
    %106 = vector.load %arg8[%c0_123, %c0_124, %c0_125] : memref<5x180x312xf32, #tpu.memory_space<vmem>>, vector<1x180x312xf32>
    %107 = vector.shape_cast %106 : vector<1x180x312xf32> to vector<180x312xf32>
    %cst_126 = arith.constant dense<0.000000e+00> : vector<26x312xf32>
    %108 = tpu.matmul %105, %107, %cst_126 {dimension_numbers = #tpu.dot_dimension_numbers<[1], [0], [0], [1], [0, 0, 1, 1], [], []>} : vector<26x180xf32>, vector<180x312xf32>, vector<26x312xf32> -> vector<26x312xf32>
    %c1_127 = arith.constant 1 : index
    %c0_128 = arith.constant 0 : index
    %109 = vector.load %arg21[%c1_127, %c0_128] : memref<30x180xf32, #tpu.memory_space<vmem>>, vector<26x180xf32>
    %c1_129 = arith.constant 1 : index
    %c0_130 = arith.constant 0 : index
    %c0_131 = arith.constant 0 : index
    %110 = vector.load %arg8[%c1_129, %c0_130, %c0_131] : memref<5x180x312xf32, #tpu.memory_space<vmem>>, vector<1x180x312xf32>
    %111 = vector.shape_cast %110 : vector<1x180x312xf32> to vector<180x312xf32>
    %cst_132 = arith.constant dense<0.000000e+00> : vector<26x312xf32>
    %112 = tpu.matmul %109, %111, %cst_132 {dimension_numbers = #tpu.dot_dimension_numbers<[1], [0], [0], [1], [0, 0, 1, 1], [], []>} : vector<26x180xf32>, vector<180x312xf32>, vector<26x312xf32> -> vector<26x312xf32>
    %113 = arith.addf %108, %112 : vector<26x312xf32>
    %c2_133 = arith.constant 2 : index
    %c0_134 = arith.constant 0 : index
    %114 = vector.load %arg21[%c2_133, %c0_134] : memref<30x180xf32, #tpu.memory_space<vmem>>, vector<26x180xf32>
    %c2_135 = arith.constant 2 : index
    %c0_136 = arith.constant 0 : index
    %c0_137 = arith.constant 0 : index
    %115 = vector.load %arg8[%c2_135, %c0_136, %c0_137] : memref<5x180x312xf32, #tpu.memory_space<vmem>>, vector<1x180x312xf32>
    %116 = vector.shape_cast %115 : vector<1x180x312xf32> to vector<180x312xf32>
    %cst_138 = arith.constant dense<0.000000e+00> : vector<26x312xf32>
    %117 = tpu.matmul %114, %116, %cst_138 {dimension_numbers = #tpu.dot_dimension_numbers<[1], [0], [0], [1], [0, 0, 1, 1], [], []>} : vector<26x180xf32>, vector<180x312xf32>, vector<26x312xf32> -> vector<26x312xf32>
    %118 = arith.addf %113, %117 : vector<26x312xf32>
    %c3_139 = arith.constant 3 : index
    %c0_140 = arith.constant 0 : index
    %119 = vector.load %arg21[%c3_139, %c0_140] : memref<30x180xf32, #tpu.memory_space<vmem>>, vector<26x180xf32>
    %c3_141 = arith.constant 3 : index
    %c0_142 = arith.constant 0 : index
    %c0_143 = arith.constant 0 : index
    %120 = vector.load %arg8[%c3_141, %c0_142, %c0_143] : memref<5x180x312xf32, #tpu.memory_space<vmem>>, vector<1x180x312xf32>
    %121 = vector.shape_cast %120 : vector<1x180x312xf32> to vector<180x312xf32>
    %cst_144 = arith.constant dense<0.000000e+00> : vector<26x312xf32>
    %122 = tpu.matmul %119, %121, %cst_144 {dimension_numbers = #tpu.dot_dimension_numbers<[1], [0], [0], [1], [0, 0, 1, 1], [], []>} : vector<26x180xf32>, vector<180x312xf32>, vector<26x312xf32> -> vector<26x312xf32>
    %123 = arith.addf %118, %122 : vector<26x312xf32>
    %c4_145 = arith.constant 4 : index
    %c0_146 = arith.constant 0 : index
    %124 = vector.load %arg21[%c4_145, %c0_146] : memref<30x180xf32, #tpu.memory_space<vmem>>, vector<26x180xf32>
    %c4_147 = arith.constant 4 : index
    %c0_148 = arith.constant 0 : index
    %c0_149 = arith.constant 0 : index
    %125 = vector.load %arg8[%c4_147, %c0_148, %c0_149] : memref<5x180x312xf32, #tpu.memory_space<vmem>>, vector<1x180x312xf32>
    %126 = vector.shape_cast %125 : vector<1x180x312xf32> to vector<180x312xf32>
    %cst_150 = arith.constant dense<0.000000e+00> : vector<26x312xf32>
    %127 = tpu.matmul %124, %126, %cst_150 {dimension_numbers = #tpu.dot_dimension_numbers<[1], [0], [0], [1], [0, 0, 1, 1], [], []>} : vector<26x180xf32>, vector<180x312xf32>, vector<26x312xf32> -> vector<26x312xf32>
    %128 = arith.addf %123, %127 : vector<26x312xf32>
    %c0_151 = arith.constant 0 : index
    %c0_152 = arith.constant 0 : index
    %129 = vector.load %arg9[%c0_151, %c0_152] : memref<13x26xf32, #tpu.memory_space<vmem>>, vector<13x26xf32>
    %cst_153 = arith.constant dense<0.000000e+00> : vector<13x312xf32>
    %130 = tpu.matmul %129, %128, %cst_153 {dimension_numbers = #tpu.dot_dimension_numbers<[1], [0], [0], [1], [0, 0, 1, 1], [], []>} : vector<13x26xf32>, vector<26x312xf32>, vector<13x312xf32> -> vector<13x312xf32>
    %c0_154 = arith.constant 0 : index
    %c0_155 = arith.constant 0 : index
    %131 = vector.load %arg10[%c0_154, %c0_155] : memref<13x26xf32, #tpu.memory_space<vmem>>, vector<13x26xf32>
    %cst_156 = arith.constant dense<0.000000e+00> : vector<13x312xf32>
    %132 = tpu.matmul %131, %128, %cst_156 {dimension_numbers = #tpu.dot_dimension_numbers<[1], [0], [0], [1], [0, 0, 1, 1], [], []>} : vector<13x26xf32>, vector<26x312xf32>, vector<13x312xf32> -> vector<13x312xf32>
    %133 = arith.maximumf %130, %132 : vector<13x312xf32>
    %c0_157 = arith.constant 0 : index
    %c0_158 = arith.constant 0 : index
    %134 = vector.load %arg11[%c0_157, %c0_158] : memref<312x156xf32, #tpu.memory_space<vmem>>, vector<312x156xf32>
    %cst_159 = arith.constant dense<0.000000e+00> : vector<13x156xf32>
    %135 = tpu.matmul %133, %134, %cst_159 {dimension_numbers = #tpu.dot_dimension_numbers<[1], [0], [0], [1], [0, 0, 1, 1], [], []>} : vector<13x312xf32>, vector<312x156xf32>, vector<13x156xf32> -> vector<13x156xf32>
    %c0_160 = arith.constant 0 : index
    %c0_161 = arith.constant 0 : index
    %136 = vector.load %arg12[%c0_160, %c0_161] : memref<312x156xf32, #tpu.memory_space<vmem>>, vector<312x156xf32>
    %cst_162 = arith.constant dense<0.000000e+00> : vector<13x156xf32>
    %137 = tpu.matmul %133, %136, %cst_162 {dimension_numbers = #tpu.dot_dimension_numbers<[1], [0], [0], [1], [0, 0, 1, 1], [], []>} : vector<13x312xf32>, vector<312x156xf32>, vector<13x156xf32> -> vector<13x156xf32>
    %138 = arith.maximumf %135, %137 : vector<13x156xf32>
    %c0_163 = arith.constant 0 : index
    %c0_164 = arith.constant 0 : index
    %139 = vector.load %arg13[%c0_163, %c0_164] : memref<1x156xf32, #tpu.memory_space<vmem>>, vector<1x156xf32>
    %140 = vector.broadcast %139 : vector<1x156xf32> to vector<13x156xf32>
    %141 = arith.addf %138, %140 : vector<13x156xf32>
    %cst_165 = arith.constant 0.000000e+00 : f32
    %142 = vector.broadcast %cst_165 : f32 to vector<13x156xf32>
    %143 = arith.maximumf %141, %142 : vector<13x156xf32>
    %c0_166 = arith.constant 0 : index
    %c0_167 = arith.constant 0 : index
    %144 = vector.load %arg22[%c0_166, %c0_167] : memref<13x156xf32, #tpu.memory_space<vmem>>, vector<13x156xf32>
    tpu.vector_store %arg22[%c0_166, %c0_167], %143 {strides = array<i32>} : memref<13x156xf32, #tpu.memory_space<vmem>>, vector<13x156xf32>,
    %c0_168 = arith.constant 0 : index
    %c0_169 = arith.constant 0 : index
    %145 = vector.load %arg15[%c0_168, %c0_169] : memref<1x128xf32, #tpu.memory_space<vmem>>, vector<1x128xf32>
    %c0_170 = arith.constant 0 : index
    %c0_171 = arith.constant 0 : index
    %146 = vector.load %arg22[%c0_170, %c0_171] : memref<13x156xf32, #tpu.memory_space<vmem>>, vector<1x156xf32>
    %c0_172 = arith.constant 0 : index
    %c0_173 = arith.constant 0 : index
    %c0_174 = arith.constant 0 : index
    %147 = vector.load %arg14[%c0_172, %c0_173, %c0_174] : memref<13x156x128xf32, #tpu.memory_space<vmem>>, vector<1x156x128xf32>
    %148 = vector.shape_cast %147 : vector<1x156x128xf32> to vector<156x128xf32>
    %cst_175 = arith.constant dense<0.000000e+00> : vector<1x128xf32>
    %149 = tpu.matmul %146, %148, %cst_175 {dimension_numbers = #tpu.dot_dimension_numbers<[1], [0], [0], [1], [0, 0, 1, 1], [], []>} : vector<1x156xf32>, vector<156x128xf32>, vector<1x128xf32> -> vector<1x128xf32>
    %150 = arith.addf %145, %149 : vector<1x128xf32>
    %c1_176 = arith.constant 1 : index
    %c0_177 = arith.constant 0 : index
    %151 = vector.load %arg22[%c1_176, %c0_177] : memref<13x156xf32, #tpu.memory_space<vmem>>, vector<1x156xf32>
    %c1_178 = arith.constant 1 : index
    %c0_179 = arith.constant 0 : index
    %c0_180 = arith.constant 0 : index
    %152 = vector.load %arg14[%c1_178, %c0_179, %c0_180] : memref<13x156x128xf32, #tpu.memory_space<vmem>>, vector<1x156x128xf32>
    %153 = vector.shape_cast %152 : vector<1x156x128xf32> to vector<156x128xf32>
    %cst_181 = arith.constant dense<0.000000e+00> : vector<1x128xf32>
    %154 = tpu.matmul %151, %153, %cst_181 {dimension_numbers = #tpu.dot_dimension_numbers<[1], [0], [0], [1], [0, 0, 1, 1], [], []>} : vector<1x156xf32>, vector<156x128xf32>, vector<1x128xf32> -> vector<1x128xf32>
    %155 = arith.addf %150, %154 : vector<1x128xf32>
    %c2_182 = arith.constant 2 : index
    %c0_183 = arith.constant 0 : index
    %156 = vector.load %arg22[%c2_182, %c0_183] : memref<13x156xf32, #tpu.memory_space<vmem>>, vector<1x156xf32>
    %c2_184 = arith.constant 2 : index
    %c0_185 = arith.constant 0 : index
    %c0_186 = arith.constant 0 : index
    %157 = vector.load %arg14[%c2_184, %c0_185, %c0_186] : memref<13x156x128xf32, #tpu.memory_space<vmem>>, vector<1x156x128xf32>
    %158 = vector.shape_cast %157 : vector<1x156x128xf32> to vector<156x128xf32>
    %cst_187 = arith.constant dense<0.000000e+00> : vector<1x128xf32>
    %159 = tpu.matmul %156, %158, %cst_187 {dimension_numbers = #tpu.dot_dimension_numbers<[1], [0], [0], [1], [0, 0, 1, 1], [], []>} : vector<1x156xf32>, vector<156x128xf32>, vector<1x128xf32> -> vector<1x128xf32>
    %160 = arith.addf %155, %159 : vector<1x128xf32>
    %c3_188 = arith.constant 3 : index
    %c0_189 = arith.constant 0 : index
    %161 = vector.load %arg22[%c3_188, %c0_189] : memref<13x156xf32, #tpu.memory_space<vmem>>, vector<1x156xf32>
    %c3_190 = arith.constant 3 : index
    %c0_191 = arith.constant 0 : index
    %c0_192 = arith.constant 0 : index
    %162 = vector.load %arg14[%c3_190, %c0_191, %c0_192] : memref<13x156x128xf32, #tpu.memory_space<vmem>>, vector<1x156x128xf32>
    %163 = vector.shape_cast %162 : vector<1x156x128xf32> to vector<156x128xf32>
    %cst_193 = arith.constant dense<0.000000e+00> : vector<1x128xf32>
    %164 = tpu.matmul %161, %163, %cst_193 {dimension_numbers = #tpu.dot_dimension_numbers<[1], [0], [0], [1], [0, 0, 1, 1], [], []>} : vector<1x156xf32>, vector<156x128xf32>, vector<1x128xf32> -> vector<1x128xf32>
    %165 = arith.addf %160, %164 : vector<1x128xf32>
    %c4_194 = arith.constant 4 : index
    %c0_195 = arith.constant 0 : index
    %166 = vector.load %arg22[%c4_194, %c0_195] : memref<13x156xf32, #tpu.memory_space<vmem>>, vector<1x156xf32>
    %c4_196 = arith.constant 4 : index
    %c0_197 = arith.constant 0 : index
    %c0_198 = arith.constant 0 : index
    %167 = vector.load %arg14[%c4_196, %c0_197, %c0_198] : memref<13x156x128xf32, #tpu.memory_space<vmem>>, vector<1x156x128xf32>
    %168 = vector.shape_cast %167 : vector<1x156x128xf32> to vector<156x128xf32>
    %cst_199 = arith.constant dense<0.000000e+00> : vector<1x128xf32>
    %169 = tpu.matmul %166, %168, %cst_199 {dimension_numbers = #tpu.dot_dimension_numbers<[1], [0], [0], [1], [0, 0, 1, 1], [], []>} : vector<1x156xf32>, vector<156x128xf32>, vector<1x128xf32> -> vector<1x128xf32>
    %170 = arith.addf %165, %169 : vector<1x128xf32>
    %c5_200 = arith.constant 5 : index
    %c0_201 = arith.constant 0 : index
    %171 = vector.load %arg22[%c5_200, %c0_201] : memref<13x156xf32, #tpu.memory_space<vmem>>, vector<1x156xf32>
    %c5_202 = arith.constant 5 : index
    %c0_203 = arith.constant 0 : index
    %c0_204 = arith.constant 0 : index
    %172 = vector.load %arg14[%c5_202, %c0_203, %c0_204] : memref<13x156x128xf32, #tpu.memory_space<vmem>>, vector<1x156x128xf32>
    %173 = vector.shape_cast %172 : vector<1x156x128xf32> to vector<156x128xf32>
    %cst_205 = arith.constant dense<0.000000e+00> : vector<1x128xf32>
    %174 = tpu.matmul %171, %173, %cst_205 {dimension_numbers = #tpu.dot_dimension_numbers<[1], [0], [0], [1], [0, 0, 1, 1], [], []>} : vector<1x156xf32>, vector<156x128xf32>, vector<1x128xf32> -> vector<1x128xf32>
    %175 = arith.addf %170, %174 : vector<1x128xf32>
    %c6_206 = arith.constant 6 : index
    %c0_207 = arith.constant 0 : index
    %176 = vector.load %arg22[%c6_206, %c0_207] : memref<13x156xf32, #tpu.memory_space<vmem>>, vector<1x156xf32>
    %c6_208 = arith.constant 6 : index
    %c0_209 = arith.constant 0 : index
    %c0_210 = arith.constant 0 : index
    %177 = vector.load %arg14[%c6_208, %c0_209, %c0_210] : memref<13x156x128xf32, #tpu.memory_space<vmem>>, vector<1x156x128xf32>
    %178 = vector.shape_cast %177 : vector<1x156x128xf32> to vector<156x128xf32>
    %cst_211 = arith.constant dense<0.000000e+00> : vector<1x128xf32>
    %179 = tpu.matmul %176, %178, %cst_211 {dimension_numbers = #tpu.dot_dimension_numbers<[1], [0], [0], [1], [0, 0, 1, 1], [], []>} : vector<1x156xf32>, vector<156x128xf32>, vector<1x128xf32> -> vector<1x128xf32>
    %180 = arith.addf %175, %179 : vector<1x128xf32>
    %c7_212 = arith.constant 7 : index
    %c0_213 = arith.constant 0 : index
    %181 = vector.load %arg22[%c7_212, %c0_213] : memref<13x156xf32, #tpu.memory_space<vmem>>, vector<1x156xf32>
    %c7_214 = arith.constant 7 : index
    %c0_215 = arith.constant 0 : index
    %c0_216 = arith.constant 0 : index
    %182 = vector.load %arg14[%c7_214, %c0_215, %c0_216] : memref<13x156x128xf32, #tpu.memory_space<vmem>>, vector<1x156x128xf32>
    %183 = vector.shape_cast %182 : vector<1x156x128xf32> to vector<156x128xf32>
    %cst_217 = arith.constant dense<0.000000e+00> : vector<1x128xf32>
    %184 = tpu.matmul %181, %183, %cst_217 {dimension_numbers = #tpu.dot_dimension_numbers<[1], [0], [0], [1], [0, 0, 1, 1], [], []>} : vector<1x156xf32>, vector<156x128xf32>, vector<1x128xf32> -> vector<1x128xf32>
    %185 = arith.addf %180, %184 : vector<1x128xf32>
    %c8_218 = arith.constant 8 : index
    %c0_219 = arith.constant 0 : index
    %186 = vector.load %arg22[%c8_218, %c0_219] : memref<13x156xf32, #tpu.memory_space<vmem>>, vector<1x156xf32>
    %c8_220 = arith.constant 8 : index
    %c0_221 = arith.constant 0 : index
    %c0_222 = arith.constant 0 : index
    %187 = vector.load %arg14[%c8_220, %c0_221, %c0_222] : memref<13x156x128xf32, #tpu.memory_space<vmem>>, vector<1x156x128xf32>
    %188 = vector.shape_cast %187 : vector<1x156x128xf32> to vector<156x128xf32>
    %cst_223 = arith.constant dense<0.000000e+00> : vector<1x128xf32>
    %189 = tpu.matmul %186, %188, %cst_223 {dimension_numbers = #tpu.dot_dimension_numbers<[1], [0], [0], [1], [0, 0, 1, 1], [], []>} : vector<1x156xf32>, vector<156x128xf32>, vector<1x128xf32> -> vector<1x128xf32>
    %190 = arith.addf %185, %189 : vector<1x128xf32>
    %c9_224 = arith.constant 9 : index
    %c0_225 = arith.constant 0 : index
    %191 = vector.load %arg22[%c9_224, %c0_225] : memref<13x156xf32, #tpu.memory_space<vmem>>, vector<1x156xf32>
    %c9_226 = arith.constant 9 : index
    %c0_227 = arith.constant 0 : index
    %c0_228 = arith.constant 0 : index
    %192 = vector.load %arg14[%c9_226, %c0_227, %c0_228] : memref<13x156x128xf32, #tpu.memory_space<vmem>>, vector<1x156x128xf32>
    %193 = vector.shape_cast %192 : vector<1x156x128xf32> to vector<156x128xf32>
    %cst_229 = arith.constant dense<0.000000e+00> : vector<1x128xf32>
    %194 = tpu.matmul %191, %193, %cst_229 {dimension_numbers = #tpu.dot_dimension_numbers<[1], [0], [0], [1], [0, 0, 1, 1], [], []>} : vector<1x156xf32>, vector<156x128xf32>, vector<1x128xf32> -> vector<1x128xf32>
    %195 = arith.addf %190, %194 : vector<1x128xf32>
    %c10_230 = arith.constant 10 : index
    %c0_231 = arith.constant 0 : index
    %196 = vector.load %arg22[%c10_230, %c0_231] : memref<13x156xf32, #tpu.memory_space<vmem>>, vector<1x156xf32>
    %c10_232 = arith.constant 10 : index
    %c0_233 = arith.constant 0 : index
    %c0_234 = arith.constant 0 : index
    %197 = vector.load %arg14[%c10_232, %c0_233, %c0_234] : memref<13x156x128xf32, #tpu.memory_space<vmem>>, vector<1x156x128xf32>
    %198 = vector.shape_cast %197 : vector<1x156x128xf32> to vector<156x128xf32>
    %cst_235 = arith.constant dense<0.000000e+00> : vector<1x128xf32>
    %199 = tpu.matmul %196, %198, %cst_235 {dimension_numbers = #tpu.dot_dimension_numbers<[1], [0], [0], [1], [0, 0, 1, 1], [], []>} : vector<1x156xf32>, vector<156x128xf32>, vector<1x128xf32> -> vector<1x128xf32>
    %200 = arith.addf %195, %199 : vector<1x128xf32>
    %c11_236 = arith.constant 11 : index
    %c0_237 = arith.constant 0 : index
    %201 = vector.load %arg22[%c11_236, %c0_237] : memref<13x156xf32, #tpu.memory_space<vmem>>, vector<1x156xf32>
    %c11_238 = arith.constant 11 : index
    %c0_239 = arith.constant 0 : index
    %c0_240 = arith.constant 0 : index
    %202 = vector.load %arg14[%c11_238, %c0_239, %c0_240] : memref<13x156x128xf32, #tpu.memory_space<vmem>>, vector<1x156x128xf32>
    %203 = vector.shape_cast %202 : vector<1x156x128xf32> to vector<156x128xf32>
    %cst_241 = arith.constant dense<0.000000e+00> : vector<1x128xf32>
    %204 = tpu.matmul %201, %203, %cst_241 {dimension_numbers = #tpu.dot_dimension_numbers<[1], [0], [0], [1], [0, 0, 1, 1], [], []>} : vector<1x156xf32>, vector<156x128xf32>, vector<1x128xf32> -> vector<1x128xf32>
    %205 = arith.addf %200, %204 : vector<1x128xf32>
    %c12_242 = arith.constant 12 : index
    %c0_243 = arith.constant 0 : index
    %206 = vector.load %arg22[%c12_242, %c0_243] : memref<13x156xf32, #tpu.memory_space<vmem>>, vector<1x156xf32>
    %c12_244 = arith.constant 12 : index
    %c0_245 = arith.constant 0 : index
    %c0_246 = arith.constant 0 : index
    %207 = vector.load %arg14[%c12_244, %c0_245, %c0_246] : memref<13x156x128xf32, #tpu.memory_space<vmem>>, vector<1x156x128xf32>
    %208 = vector.shape_cast %207 : vector<1x156x128xf32> to vector<156x128xf32>
    %cst_247 = arith.constant dense<0.000000e+00> : vector<1x128xf32>
    %209 = tpu.matmul %206, %208, %cst_247 {dimension_numbers = #tpu.dot_dimension_numbers<[1], [0], [0], [1], [0, 0, 1, 1], [], []>} : vector<1x156xf32>, vector<156x128xf32>, vector<1x128xf32> -> vector<1x128xf32>
    %210 = arith.addf %205, %209 : vector<1x128xf32>
    %cst_248 = arith.constant 0.000000e+00 : f32
    %211 = vector.broadcast %cst_248 : f32 to vector<1x128xf32>
    %212 = arith.maximumf %210, %211 : vector<1x128xf32>
    %c0_249 = arith.constant 0 : index
    %c0_250 = arith.constant 0 : index
    %213 = vector.load %arg16[%c0_249, %c0_250] : memref<128x128xf32, #tpu.memory_space<vmem>>, vector<128x128xf32>
    %cst_251 = arith.constant dense<0.000000e+00> : vector<1x128xf32>
    %214 = tpu.matmul %212, %213, %cst_251 {dimension_numbers = #tpu.dot_dimension_numbers<[1], [0], [0], [1], [0, 0, 1, 1], [], []>} : vector<1x128xf32>, vector<128x128xf32>, vector<1x128xf32> -> vector<1x128xf32>
    %c0_252 = arith.constant 0 : index
    %c0_253 = arith.constant 0 : index
    %215 = vector.load %arg17[%c0_252, %c0_253] : memref<1x128xf32, #tpu.memory_space<vmem>>, vector<1x128xf32>
    %216 = arith.addf %214, %215 : vector<1x128xf32>
    %cst_254 = arith.constant 0.000000e+00 : f32
    %217 = vector.broadcast %cst_254 : f32 to vector<1x128xf32>
    %218 = arith.maximumf %216, %217 : vector<1x128xf32>
    %c0_255 = arith.constant 0 : index
    %c0_256 = arith.constant 0 : index
    %219 = vector.load %arg18[%c0_255, %c0_256] : memref<128x128xf32, #tpu.memory_space<vmem>>, vector<128x128xf32>
    %cst_257 = arith.constant dense<0.000000e+00> : vector<1x128xf32>
    %220 = tpu.matmul %218, %219, %cst_257 {dimension_numbers = #tpu.dot_dimension_numbers<[1], [0], [0], [1], [0, 0, 1, 1], [], []>} : vector<1x128xf32>, vector<128x128xf32>, vector<1x128xf32> -> vector<1x128xf32>
    %c0_258 = arith.constant 0 : index
    %c0_259 = arith.constant 0 : index
    %221 = vector.load %arg19[%c0_258, %c0_259] : memref<1x128xf32, #tpu.memory_space<vmem>>, vector<1x128xf32>
    %222 = arith.addf %220, %221 : vector<1x128xf32>
    %223 = vector.shape_cast %222 : vector<1x128xf32> to vector<1x128xf32>
    %224 = vector.broadcast %223 : vector<1x128xf32> to vector<8x128xf32>
    %c0_260 = arith.constant 0 : index
    %c0_261 = arith.constant 0 : index
    %c0_262 = arith.constant 0 : index
    %225 = vector.load %arg20[%c0_260, %c0_261, %c0_262] : memref<1x8x128xf32, #tpu.memory_space<vmem>>, vector<1x8x128xf32>
    %226 = vector.shape_cast %225 : vector<1x8x128xf32> to vector<8x128xf32>
    %227 = vector.shape_cast %224 : vector<8x128xf32> to vector<1x8x128xf32>
    tpu.vector_store %arg20[%c0_260, %c0_261, %c0_262], %227 {strides = array<i32>} : memref<1x8x128xf32, #tpu.memory_space<vmem>>, vector<1x8x128xf32>,
    return
  }
  func.func @transform_0(%arg0: i32) -> (i32, i32, i32, i32) {
    %c0_i32 = arith.constant 0 : i32
    %c0_i32_0 = arith.constant 0 : i32
    %c0_i32_1 = arith.constant 0 : i32
    %c0_i32_2 = arith.constant 0 : i32
    return %arg0, %c0_i32, %c0_i32_0, %c0_i32_1 : i32, i32, i32, i32
  }
  func.func @transform_1(%arg0: i32) -> (i32, i32, i32) {
    %c0_i32 = arith.constant 0 : i32
    %c0_i32_0 = arith.constant 0 : i32
    %c0_i32_1 = arith.constant 0 : i32
    %c0_i32_2 = arith.constant 0 : i32
    return %c0_i32, %c0_i32_0, %c0_i32_1 : i32, i32, i32
  }
  func.func @transform_2(%arg0: i32) -> (i32, i32) {
    %c0_i32 = arith.constant 0 : i32
    %c0_i32_0 = arith.constant 0 : i32
    %c0_i32_1 = arith.constant 0 : i32
    return %c0_i32, %c0_i32_0 : i32, i32
  }
  func.func @transform_3(%arg0: i32) -> (i32, i32) {
    %c0_i32 = arith.constant 0 : i32
    %c0_i32_0 = arith.constant 0 : i32
    %c0_i32_1 = arith.constant 0 : i32
    return %c0_i32, %c0_i32_0 : i32, i32
  }
  func.func @transform_4(%arg0: i32) -> (i32, i32) {
    %c0_i32 = arith.constant 0 : i32
    %c0_i32_0 = arith.constant 0 : i32
    %c0_i32_1 = arith.constant 0 : i32
    return %c0_i32, %c0_i32_0 : i32, i32
  }
  func.func @transform_5(%arg0: i32) -> (i32, i32) {
    %c0_i32 = arith.constant 0 : i32
    %c0_i32_0 = arith.constant 0 : i32
    %c0_i32_1 = arith.constant 0 : i32
    return %c0_i32, %c0_i32_0 : i32, i32
  }
  func.func @transform_6(%arg0: i32) -> (i32, i32) {
    %c0_i32 = arith.constant 0 : i32
    %c0_i32_0 = arith.constant 0 : i32
    %c0_i32_1 = arith.constant 0 : i32
    return %c0_i32, %c0_i32_0 : i32, i32
  }
  func.func @transform_7(%arg0: i32) -> (i32, i32, i32) {
    %c0_i32 = arith.constant 0 : i32
    %c0_i32_0 = arith.constant 0 : i32
    %c0_i32_1 = arith.constant 0 : i32
    %c0_i32_2 = arith.constant 0 : i32
    return %c0_i32, %c0_i32_0, %c0_i32_1 : i32, i32, i32
  }
  func.func @transform_8(%arg0: i32) -> (i32, i32) {
    %c0_i32 = arith.constant 0 : i32
    %c0_i32_0 = arith.constant 0 : i32
    %c0_i32_1 = arith.constant 0 : i32
    return %c0_i32, %c0_i32_0 : i32, i32
  }
  func.func @transform_9(%arg0: i32) -> (i32, i32) {
    %c0_i32 = arith.constant 0 : i32
    %c0_i32_0 = arith.constant 0 : i32
    %c0_i32_1 = arith.constant 0 : i32
    return %c0_i32, %c0_i32_0 : i32, i32
  }
  func.func @transform_10(%arg0: i32) -> (i32, i32) {
    %c0_i32 = arith.constant 0 : i32
    %c0_i32_0 = arith.constant 0 : i32
    %c0_i32_1 = arith.constant 0 : i32
    return %c0_i32, %c0_i32_0 : i32, i32
  }
  func.func @transform_11(%arg0: i32) -> (i32, i32) {
    %c0_i32 = arith.constant 0 : i32
    %c0_i32_0 = arith.constant 0 : i32
    %c0_i32_1 = arith.constant 0 : i32
    return %c0_i32, %c0_i32_0 : i32, i32
  }
  func.func @transform_12(%arg0: i32) -> (i32, i32) {
    %c0_i32 = arith.constant 0 : i32
    %c0_i32_0 = arith.constant 0 : i32
    %c0_i32_1 = arith.constant 0 : i32
    return %c0_i32, %c0_i32_0 : i32, i32
  }
  func.func @transform_13(%arg0: i32) -> (i32, i32, i32) {
    %c0_i32 = arith.constant 0 : i32
    %c0_i32_0 = arith.constant 0 : i32
    %c0_i32_1 = arith.constant 0 : i32
    %c0_i32_2 = arith.constant 0 : i32
    return %c0_i32, %c0_i32_0, %c0_i32_1 : i32, i32, i32
  }
  func.func @transform_14(%arg0: i32) -> (i32, i32) {
    %c0_i32 = arith.constant 0 : i32
    %c0_i32_0 = arith.constant 0 : i32
    %c0_i32_1 = arith.constant 0 : i32
    return %c0_i32, %c0_i32_0 : i32, i32
  }
  func.func @transform_15(%arg0: i32) -> (i32, i32) {
    %c0_i32 = arith.constant 0 : i32
    %c0_i32_0 = arith.constant 0 : i32
    %c0_i32_1 = arith.constant 0 : i32
    return %c0_i32, %c0_i32_0 : i32, i32
  }
  func.func @transform_16(%arg0: i32) -> (i32, i32) {
    %c0_i32 = arith.constant 0 : i32
    %c0_i32_0 = arith.constant 0 : i32
    %c0_i32_1 = arith.constant 0 : i32
    return %c0_i32, %c0_i32_0 : i32, i32
  }
  func.func @transform_17(%arg0: i32) -> (i32, i32) {
    %c0_i32 = arith.constant 0 : i32
    %c0_i32_0 = arith.constant 0 : i32
    %c0_i32_1 = arith.constant 0 : i32
    return %c0_i32, %c0_i32_0 : i32, i32
  }
  func.func @transform_18(%arg0: i32) -> (i32, i32) {
    %c0_i32 = arith.constant 0 : i32
    %c0_i32_0 = arith.constant 0 : i32
    %c0_i32_1 = arith.constant 0 : i32
    return %c0_i32, %c0_i32_0 : i32, i32
  }
  func.func @transform_19(%arg0: i32) -> (i32, i32, i32) {
    %c0_i32 = arith.constant 0 : i32
    %c0_i32_0 = arith.constant 0 : i32
    %c0_i32_1 = arith.constant 0 : i32
    return %arg0, %c0_i32, %c0_i32_0 : i32, i32, i32
  }
}

</mosaic_0001>

<bundles_post_ra>
// kernel: tpu_custom_call.1
= control target key start
LH: loop header
LB: loop body
LE: loop exit
PB: predicated region body
PF: predicated region fallthrough
CT: control target
= control target key end

     0   :  { %s16811_s0 = inlined_call_operand.vmem [shape: f32[2,3,64,64], index: 0, kind: input, shape index: {}]   ;;  %s16812_s1 = inlined_call_operand.vmem [shape: f32[15,64,360], index: 1, kind: input, shape index: {}]   ;;  %s16813_s2 = inlined_call_operand.vmem [shape: f32[30,60], index: 2, kind: input, shape index: {}]   ;;  %s16814_s3 = inlined_call_operand.vmem [shape: f32[30,60], index: 3, kind: input, shape index: {}]   ;;  %s16815_s4 = inlined_call_operand.vmem [shape: f32[360,180], index: 4, kind: input, shape index: {}]   ;;  %s16816_s5 = inlined_call_operand.vmem [shape: f32[360,180], index: 5, kind: input, shape index: {}]   ;;  %s16817_s6 = inlined_call_operand.vmem [shape: f32[1,180], index: 6, kind: input, shape index: {}]   ;;  %s16818_s7 = inlined_call_operand.hbm [shape: f32[5,180,312], index: 7, kind: input, shape index: {}]   ;;  %s16819_s8 = inlined_call_operand.vmem [shape: f32[13,26], index: 8, kind: input, shape index: {}]   ;;  %s16820_s9 = inlined_call_operand.vmem [shape: f32[13,26], index: 9, kind: input, shape index: {}]   ;;  %s16821_s10 = inlined_call_operand.vmem [shape: f32[312,156], index: 10, kind: input, shape index: {}]   ;;  %s16822_s11 = inlined_call_operand.vmem [shape: f32[312,156], index: 11, kind: input, shape index: {}]   ;;  %s16823_s12 = inlined_call_operand.vmem [shape: f32[1,156], index: 12, kind: input, shape index: {}]   ;;  %s16824_s13 = inlined_call_operand.hbm [shape: f32[13,156,128], index: 13, kind: input, shape index: {}]   ;;  %s16825_s14 = inlined_call_operand.vmem [shape: f32[1,128], index: 14, kind: input, shape index: {}]   ;;  %s16826_s15 = inlined_call_operand.vmem [shape: f32[128,128], index: 15, kind: input, shape index: {}]   ;;  %s16827_s16 = inlined_call_operand.vmem [shape: f32[1,128], index: 16, kind: input, shape index: {}]   ;;  %s16828_s17 = inlined_call_operand.vmem [shape: f32[128,128], index: 17, kind: input, shape index: {}]   ;;  %s16829_s18 = inlined_call_operand.vmem [shape: f32[1,128], index: 18, kind: input, shape index: {}]   ;;  %s16830_s19 = inlined_call_operand.hbm [shape: f32[2,8,128], index: 19, kind: output, shape index: {}]  }
   0x1   :  { %16849 = sst [smem:[#allocation138_spill]] %s16811_s0 }
   0x2   :  { %16850 = sst [smem:[#allocation139_spill]] %s16812_s1 }
   0x3   :  { %16851 = sst [smem:[#allocation140_spill]] %s16813_s2 }
   0x4   :  { %16852 = sst [smem:[#allocation141_spill]] %s16814_s3 }
   0x5   :  { %16853 = sst [smem:[#allocation142_spill]] %s16815_s4 }
   0x6   :  { %16854 = sst [smem:[#allocation143_spill]] %s16816_s5 }
   0x7   :  { %16855 = sst [smem:[#allocation144_spill]] %s16830_s19 }
   0x8   :  { %24 = vsyncpa [#allocation5], 0 }
   0x9   :  { %25 = vsyncpa [#allocation8], 0 }
   0xa   :  { %26 = vsyncpa [#allocation6], 0 }
   0xb   :  { %28 = vsyncpa [#allocation6 + $0x1], 0  ;;  %s12024_s0 = smov 0   ;;  %s12026_s30 = smov 0  }
   0xc   :  { %s12028_s20 = smov 0   ;;  %s12030_s21 = smov 0  }
   0xd LB: > { %16856 = sst [smem:[#allocation13_spill]] %s11901_s0  ;;  %s12045_s1 = sadd.s32 4294967295, %s11913_s21   ;;  %s11913_s21 = sphi %s12030_s21, %s17124_s21   ;;  %s11909_s20 = sphi %s12028_s20, %s17126_s20   ;;  %s11905_s30 = sphi %s12026_s30, %s17128_s30   ;;  %s11901_s0 = sphi %s12024_s0, %s17127_s0  }
   0xe   : > { %16857 = sst [smem:[#allocation14_spill]] %s11909_s20  ;;  %s10059_s22 = sadd.s32 4294967294, %s11913_s21  }
   0xf   : > { %16858 = sst [smem:[#allocation15_spill]] %s11913_s21  ;;  %s12049_s2 = sadd.s32 1, %s11913_s21  }
  0x10   : > { %16859 = sst [smem:[#allocation16_spill]] %s12049_s2  ;;  %s445_s23 = sadd.s32 1, %s11909_s20 }
  0x11   : > { %s442_s24 = ssub.s32 %s11913_s21, %s12049_s2  ;;  %p455_p0 = scmp.ne.s32.totalorder %s11909_s20, %s11905_s30 }
  0x12   : > { %p443_p1 = scmp.eq.s32.totalorder %s442_s24, 0  ;;  %p456_p2 = scmp.eq.s32.totalorder %s12045_s1, 1 }
  0x13   : > { %p461_p3 = scmp.ne.s32.totalorder %s11905_s30, %s11901_s0  ;;  %p462_p4 = scmp.eq.s32.totalorder %s10059_s22, 1 }
  0x14   : > { %s12060_s25 = scalar_select %p443_p1, %s11909_s20, %s445_s23  }
  0x15   : > { %p12062_p5 = por %p456_p2, %p455_p0  ;;  %p12066_p6 = por %p462_p4, %p461_p3 }
  0x16   : > { %16860 = sst [smem:[#allocation17_spill]] %s12060_s25  ;;  %p10060_p7 = scmp.ge.s32.totalorder %s11913_s21, 1 }
  0x17   : > { %s16862_s26 = scalar_select %p12066_p6, 1, 0 }
  0x18   : > { %p469_p8 = scmp.lt.s32.totalorder %s11913_s21, 3  ;;  %p16838_p9 = scmp.eq.s32.totalorder %s12045_s1, 0 }
  0x19   : > { %16863 = sst [smem:[#allocation18_spill]] %s16862_s26  ;;  %s11915_s28 = smov [#allocation4]  }
  0x1a   : > { %p12073_p10 = pnand %p10060_p7, %p469_p8  ;;  %s499_s29 = sshll.u32 %s11915_s28, 4  ;;  %s500_s29 = int_to_ptr.vmem [resolvable:$true] %s499_s29 }
  0x1b   : > { %s11916_s23 = smov [#allocation7]   ;;  %s11804_s25 = scalar_lea.vmem %s500_s29, 44160 }
  0x1c   : > { %p11735_p11 = pneg %p12073_p10  ;;  %s527_s24 = sshll.u32 %s11916_s23, 4  ;;  %s528_s24 = int_to_ptr.vmem [resolvable:$true] %s527_s24 }
  0x1d   : > { %p11805_p0 = scmp.ne.s32.totalorder %s500_s29, %s11804_s25  ;;  %p11812_p3 = scmp.lt.s32.totalorder %s500_s29, %s500_s29 }
  0x1e   : > { %p12081_p12 = pnand %p16838_p9, %p11735_p11  ;;  %p11813_p4 = scmp.lt.s32.totalorder %s11804_s25, %s11804_s25 }
  0x20   : > { %p11795_p13 = pneg %p12081_p12  ;;  %p11814_p7 = por %p11813_p4, %p11812_p3 }
  0x22   : > { %p11807_p1 = pnand %p11805_p0, %p11795_p13 }
  0x24   : > { %p11808_p2 = pneg %p11807_p1 }
  0x26   : > { %p11815_p8 = pnand %p11814_p7, %p11808_p2 }
  0x28   : > { %11818 = shalt.err (!%p11815_p8)
}
  0x29   : > { %s11917_s28 = smov 384   ;;  %s11918_s20 = smov 24  }
  0x2a   : > { %11738 = dma.hbm_to_vmem [thread:$0]  (!%p12081_p12), %s16818_s7, 44160, %s500_s29, [#allocation5], %s11917_s28, %s11917_s28, %s11918_s20  }
  0x2b   : > { %s11830_s26 = scalar_lea.vmem %s528_s24, 33280  ;;  %p11838_p9 = scmp.lt.s32.totalorder %s528_s24, %s528_s24 }
  0x2c   : > { %p11831_p11 = scmp.ne.s32.totalorder %s528_s24, %s11830_s26  ;;  %p11839_p6 = scmp.lt.s32.totalorder %s11830_s26, %s11830_s26 }
  0x2e   : > { %p11833_p0 = pnand %p11831_p11, %p11795_p13  ;;  %p11840_p3 = por %p11839_p6, %p11838_p9 }
  0x30   : > { %p11834_p1 = pneg %p11833_p0 }
  0x32   : > { %p11841_p2 = pnand %p11840_p3, %p11834_p1 }
  0x34   : > { %11844 = shalt.err (!%p11841_p2)
}
  0x35   : > { %s11919_s25 = smov 128   ;;  %s11920_s0 = smov 8  }
  0x36   : > { %11741 = dma.hbm_to_vmem [thread:$0]  (!%p12081_p12), %s16824_s13, 33280, %s528_s24, [#allocation8], %s11919_s25, %s11919_s25, %s11920_s0  }
  0x37   : > { %566 = sbr.rel (%p12073_p10) target bundleno = 2934 (0xb76), region = 96 }
  0x3c   : > { %p16866_p4 = scmp.eq.s32.totalorder %s12045_s1, 0 }
  0x3e   : > { %11888 = dma.done.wait (%p16866_p4), [#allocation5], 44160   ;;  %p16867_p13 = pmov %p16866_p4 }
  0x3f   : > { %p16868_p6 = pmov %p16866_p4 }
  0x40   : > { %11890 = vsyncadd (%p16867_p13), [#allocation5], 4294923136 }
  0x41   : > { %11892 = dma.done.wait (%p16868_p6), [#allocation8], 33280   ;;  %p16869_p9 = pmov %p16866_p4 }
  0x42   : > { %v16842_v0 = vmov 0.0   ;;  %p626_p12 = scmp.lt.s32.totalorder %s12045_s1, 1  ;;  %s16870_s20 = sld [smem:[#allocation139_spill]]  ;;  %vm696_vm0 = vcmask 523264   ;;  %vm5074_vm1 = vcmask 490496   ;;  %vm5087_vm2 = vcmask 1043456  }
  0x43   : > { %11894 = vsyncadd (%p16869_p9), [#allocation8], 4294934016  ;;  %785 = vmatprep.mubr.f32.mxu0 %v16842_v0  ;;  %s16872_s0 = sld [smem:[#allocation138_spill]]  ;;  %vm5563_vm3 = vcmask 850944   ;;  %vm6059_vm4 = vcmask 424960   ;;  %vm6066_vm5 = vcmask 422912  }
  0x44   : > { %s12145_s22 = scalar_select %p626_p12, %s12045_s1, 1  ;;  %vm6227_vm6 = vcmask 1046528   ;;  %vm6708_vm7 = vcmask 1045504   ;;  %vm7008_vm8 = vcmask 1044480   ;;  %vm7538_vm9 = vcmask 1041408  }
  0x45   : > { %s16948_s25 = sld [smem:[#allocation140_spill]]  ;;  %vm7531_vm10 = vcmask 211968   ;;  %vm7944_vm11 = vcmask 457728   ;;  %vm8362_vm12 = vcmask 228352   ;;  %vm8365_vm13 = vcmask 225280   ;;  %s623_s29 = sand.u32 1, %s11905_s30  }
  0x46   : > { %s11724_s28 = smul.u32 192, %s12145_s22  ;;  %s17114_s4 = sld [smem:[#allocation142_spill]]  ;;  %vm11922_vm14 = vmmov 0  }
  0x47   : > { %s17116_s5 = sld [smem:[#allocation143_spill]]  ;;  %s10067_s24 = sshll.u32 %s623_s29, 3 }
  0x48   : > { %s16871_s2 = smov %s16870_s20  ;;  %v10091_v1 = vld [vmem:[%s16870_s20 + $0x170] sm:$0xff]  ;;  %s10855_s19 = sshll.u32 %s12045_s1, 7 }
  0x49   : > { %v10092_v2 = vld [vmem:[%s16871_s2 + $0x178] sm:$0xff]  ;;  %v10090_v3 = vld [vmem:[%s16871_s2 + $0x168] sm:$0xff]  ;;  %737 = vmatprep.subr.mxu0 %v10091_v1  ;;  %v10089_v5 = vld [vmem:[%s16871_s2 + $0x160] sm:$0xff]  ;;  %s12187_s20 = scalar_lea.vmem %s16872_s0, %s11724_s28  ;;  %s17111_s28 = sld [smem:[#allocation141_spill]] }
  0x4a   : > { %11168 = vmatprep.subr.mxu1 %v10092_v2  ;;  %v10088_v4 = vld [vmem:[%s16871_s2 + $0x158] sm:$0xff]  ;;  %v10087_v6 = vld [vmem:[%s16871_s2 + $0x150] sm:$0xff]  ;;  %738 = vmatpush1.msra.mxu0 %v10090_v3  ;;  %v10085_v7 = vld [vmem:[%s16871_s2 + $0x140] sm:$0xff]  ;;  %s625_s0 = scalar_lea.vmem [#allocation9], %s10067_s24  ;;  %s17119_s27 = sld [smem:[#allocation144_spill]] }
  0x4b   : > { %11169 = vmatpush3.msra.mxu1 %v10092_v2  ;;  %v10086_v8 = vld [vmem:[%s16871_s2 + $0x148] sm:$0xff]  ;;  %739 = vmatprep.subr.mxu0 %v10088_v4  ;;  %v10084_v9 = vld [vmem:[%s16871_s2 + $0x138] sm:$0xff]  ;;  %v10083_v11 = vld [vmem:[%s16871_s2 + $0x130] sm:$0xff]  ;;  %s9978_s21 = sshll.u32 %s625_s0, 4  ;;  %s9979_s21 = int_to_ptr.vmem [resolvable:$true] %s9978_s21 }
  0x4c   : > { %11170 = vmatprep.subr.mxu1 %v10089_v5  ;;  %740 = vmatpush1.msra.mxu0 %v10087_v6  ;;  %v10082_v10 = vld [vmem:[%s16871_s2 + $0x128] sm:$0xff]  ;;  %v10081_v12 = vld [vmem:[%s16871_s2 + $0x120] sm:$0xff]  ;;  %v10079_v13 = vld [vmem:[%s16871_s2 + $0x110] sm:$0xff] }
  0x4d   : > { %11171 = vmatpush3.msra.mxu1 %v10089_v5  ;;  %741 = vmatprep.subr.mxu0 %v10085_v7  ;;  %v10080_v14 = vld [vmem:[%s16871_s2 + $0x118] sm:$0xff]  ;;  %v10078_v15 = vld [vmem:[%s16871_s2 + $0x108] sm:$0xff]  ;;  %v10077_v17 = vld [vmem:[%s16871_s2 + $0x100] sm:$0xff] }
  0x4e   : > { %11172 = vmatprep.subr.mxu1 %v10086_v8  ;;  %742 = vmatpush1.msra.mxu0 %v10084_v9  ;;  %v10076_v16 = vld [vmem:[%s16871_s2 + $0xf8] sm:$0xff]  ;;  %v10075_v18 = vld [vmem:[%s16871_s2 + $0xf0] sm:$0xff]  ;;  %v10073_v19 = vld [vmem:[%s16871_s2 + $0xe0] sm:$0xff] }
  0x4f   : > { %11173 = vmatpush3.msra.mxu1 %v10086_v8  ;;  %743 = vmatprep.subr.mxu0 %v10082_v10  ;;  %v10074_v20 = vld [vmem:[%s16871_s2 + $0xe8] sm:$0xff]  ;;  %v10072_v21 = vld [vmem:[%s16871_s2 + $0xd8] sm:$0xff]  ;;  %v10071_v23 = vld [vmem:[%s16871_s2 + $0xd0] sm:$0xff] }
  0x50   : > { %11174 = vmatprep.subr.mxu1 %v10083_v11  ;;  %744 = vmatpush1.msra.mxu0 %v10081_v12  ;;  %v10070_v22 = vld [vmem:[%s16871_s2 + $0xc8] sm:$0xff]  ;;  %v10069_v24 = vld [vmem:[%s16871_s2 + $0xc0] sm:$0xff]  ;;  %v661_v27 = vld [vmem:[%s16871_s2 + $0xb0] sm:$0xff] }
  0x51   : > { %11175 = vmatpush3.msra.mxu1 %v10083_v11  ;;  %745 = vmatprep.subr.mxu0 %v10079_v13  ;;  %v663_v25 = vld [vmem:[%s12187_s20 + $0x1] sm:$0xff]  ;;  %v664_v26 = vld [vmem:[%s12187_s20 + $0x9] sm:$0xff]  ;;  %v658_v29 = vld [vmem:[%s16871_s2 + $0x98] sm:$0xff] }
  0x52   : > { %11176 = vmatprep.subr.mxu1 %v10080_v14  ;;  %746 = vmatpush1.msra.mxu0 %v10078_v15  ;;  %v660_v28 = vld [vmem:[%s16871_s2 + $0xa8] sm:$0xff]  ;;  %v665_v30 = vld [vmem:[%s12187_s20 + $0x11] sm:$0xff]  ;;  %v666_v32 = vld [vmem:[%s12187_s20 + $0x19] sm:$0xff] }
  0x53   : > { %11177 = vmatpush3.msra.mxu1 %v10080_v14  ;;  %747 = vmatprep.subr.mxu0 %v10076_v16  ;;  %v657_v31 = vld [vmem:[%s16871_s2 + $0x90] sm:$0xff]  ;;  %v655_v33 = vld [vmem:[%s16871_s2 + $0x80] sm:$0xff]  ;;  %v654_v34 = vld [vmem:[%s16871_s2 + $0x78] sm:$0xff] }
  0x54   : > { %11178 = vmatprep.subr.mxu1 %v10077_v17  ;;  %748 = vmatpush1.msra.mxu0 %v10075_v18  ;;  %v652_v35 = vld [vmem:[%s16871_s2 + $0x68] sm:$0xff]  ;;  %v651_v37 = vld [vmem:[%s16871_s2 + $0x60] sm:$0xff]  ;;  %v649_v39 = vld [vmem:[%s16871_s2 + $0x50] sm:$0xff] }
  0x55   : > { %11179 = vmatpush3.msra.mxu1 %v10077_v17  ;;  %749 = vmatprep.subr.mxu0 %v10073_v19  ;;  %v667_v36 = vld [vmem:[%s12187_s20 + $0x21] sm:$0xff]  ;;  %v668_v38 = vld [vmem:[%s12187_s20 + $0x29] sm:$0xff]  ;;  %v646_v41 = vld [vmem:[%s16871_s2 + $0x38] sm:$0xff] }
  0x56   : > { %11180 = vmatprep.subr.mxu1 %v10074_v20  ;;  %750 = vmatpush1.msra.mxu0 %v10072_v21  ;;  %v648_v40 = vld [vmem:[%s16871_s2 + $0x48] sm:$0xff]  ;;  %v669_v42 = vld [vmem:[%s12187_s20 + $0x31] sm:$0xff]  ;;  %v670_v44 = vld [vmem:[%s12187_s20 + $0x39] sm:$0xf] }
  0x57   : > { %11181 = vmatpush3.msra.mxu1 %v10074_v20  ;;  %751 = vmatprep.subr.mxu0 %v10070_v22  ;;  %v645_v43 = vld [vmem:[%s16871_s2 + $0x30] sm:$0xff]  ;;  %v643_v45 = vld [vmem:[%s16871_s2 + $0x20] sm:$0xff]  ;;  %v642_v46 = vld [vmem:[%s16871_s2 + $0x18] sm:$0xff] }
  0x58   : > { %11182 = vmatprep.subr.mxu1 %v10071_v23  ;;  %752 = vmatpush1.msra.mxu0 %v10069_v24  ;;  %v640_v47 = vld [vmem:[%s16871_s2 + $0x8] sm:$0xff]  ;;  %v639_v48 = vld [vmem:[%s16871_s2] sm:$0xff]  ;;  %v662_v50 = vld [vmem:[%s16871_s2 + $0xb8] sm:$0xff] }
  0x59   : > { %11183 = vmatpush3.msra.mxu1 %v10071_v23  ;;  %11184 = vmatprep.mubr.msk.f32.mxu1 %vm696_vm0, %v663_v25  ;;  %v631_v49 = vld [vmem:[%s12187_s20] sm:$0xff]  ;;  %v10148_v52 = vld [vmem:[%s16871_s2 + $0x238] sm:$0xff]  ;;  %v632_v53 = vld [vmem:[%s12187_s20 + $0x8] sm:$0xff] }
  0x5a   : > { %10093 = vmatmul.mubr.msk.f32.vlgmr.msra.gmra.mxu0 %vm696_vm0, %v663_v25  ;;  %11185 = vmatmul.mubr.msk.f32.vlgmr.msra.gmra.mxu1 %vm696_vm0, %v664_v26  ;;  %v659_v51 = vld [vmem:[%s16871_s2 + $0xa0] sm:$0xff]  ;;  %v656_v54 = vld [vmem:[%s16871_s2 + $0x88] sm:$0xff]  ;;  %v653_v55 = vld [vmem:[%s16871_s2 + $0x70] sm:$0xff] }
  0x5b   : > { %979 = vmatprep.subr.mxu1 %v661_v27  ;;  %791 = vmatprep.mubr.f32.mxu0 %v16842_v0  ;;  %v633_v56 = vld [vmem:[%s12187_s20 + $0x10] sm:$0xff]  ;;  %v650_v57 = vld [vmem:[%s16871_s2 + $0x58] sm:$0xff]  ;;  %v647_v58 = vld [vmem:[%s16871_s2 + $0x40] sm:$0xff] }
  0x5c   : > { %980 = vmatpush1.msra.mxu1 %v660_v28  ;;  %11187 = vmatprep.mubr.msk.f32.mxu1 %vm696_vm0, %v665_v30  ;;  %v634_v59 = vld [vmem:[%s12187_s20 + $0x18] sm:$0xff]  ;;  %v644_v60 = vld [vmem:[%s16871_s2 + $0x28] sm:$0xff]  ;;  %v641_v61 = vld [vmem:[%s16871_s2 + $0x10] sm:$0xff] }
  0x5d   : > { %981 = vmatprep.subr.mxu1 %v658_v29  ;;  %11196 = vmatprep.subr.mxu0 %v662_v50  ;;  %v635_v62 = vld [vmem:[%s12187_s20 + $0x20] sm:$0xff]  ;;  %v10147_v63 = vld [vmem:[%s16871_s2 + $0x230] sm:$0xff]  ;;  %v10146_v1 = vld [vmem:[%s16871_s2 + $0x228] sm:$0xff] }
  0x5e   : > { %982 = vmatpush1.msra.mxu1 %v657_v31  ;;  %10094 = vmatmul.mubr.msk.f32.gmra.mxu0 %vm696_vm0, %v664_v26  ;;  %v10145_v2 = vld [vmem:[%s16871_s2 + $0x220] sm:$0xff]  ;;  %v10144_v3 = vld [vmem:[%s16871_s2 + $0x218] sm:$0xff]  ;;  %v10143_v4 = vld [vmem:[%s16871_s2 + $0x210] sm:$0xff] }
  0x5f   : > { %11188 = vmatmul.mubr.msk.f32.gmra.mxu1 %vm696_vm0, %v666_v32  ;;  %983 = vmatprep.subr.mxu1 %v655_v33  ;;  %v636_v5 = vld [vmem:[%s12187_s20 + $0x28] sm:$0xff]  ;;  %v10141_v6 = vld [vmem:[%s16871_s2 + $0x200] sm:$0xff]  ;;  %v10140_v8 = vld [vmem:[%s16871_s2 + $0x1f8] sm:$0xff] }
  0x60   : > { %984 = vmatpush1.msra.mxu1 %v654_v34  ;;  %797 = vmatprep.mubr.f32.mxu0 %v16842_v0  ;;  %v10142_v7 = vld [vmem:[%s16871_s2 + $0x208] sm:$0xff]  ;;  %v10139_v10 = vld [vmem:[%s16871_s2 + $0x1f0] sm:$0xff]  ;;  %v10137_v11 = vld [vmem:[%s16871_s2 + $0x1e0] sm:$0xff] }
  0x61   : > { %985 = vmatprep.subr.mxu1 %v652_v35  ;;  %11190 = vmatprep.mubr.msk.f32.mxu1 %vm696_vm0, %v667_v36  ;;  %v10138_v9 = vld [vmem:[%s16871_s2 + $0x1e8] sm:$0xff]  ;;  %v637_v12 = vld [vmem:[%s12187_s20 + $0x30] sm:$0xff]  ;;  %v10136_v14 = vld [vmem:[%s16871_s2 + $0x1d8] sm:$0xff] }
  0x62   : > { %986 = vmatpush1.msra.mxu1 %v651_v37  ;;  %10095 = vmatmul.mubr.msk.f32.gmra.mxu0 %vm696_vm0, %v665_v30  ;;  %v10135_v13 = vld [vmem:[%s16871_s2 + $0x1d0] sm:$0xff]  ;;  %v10134_v15 = vld [vmem:[%s16871_s2 + $0x1c8] sm:$0xff]  ;;  %v10132_v16 = vld [vmem:[%s16871_s2 + $0x1b8] sm:$0xff] }
  0x63   : > { %11191 = vmatmul.mubr.msk.f32.gmra.mxu1 %vm696_vm0, %v668_v38  ;;  %987 = vmatprep.subr.mxu1 %v649_v39  ;;  %v10133_v17 = vld [vmem:[%s16871_s2 + $0x1c0] sm:$0xff]  ;;  %v10131_v18 = vld [vmem:[%s16871_s2 + $0x1b0] sm:$0xff]  ;;  %v638_v19 = vld [vmem:[%s12187_s20 + $0x38] sm:$0xf] }
  0x64   : > { %988 = vmatpush1.msra.mxu1 %v648_v40  ;;  %803 = vmatprep.mubr.f32.mxu0 %v16842_v0  ;;  %v10129_v20 = vld [vmem:[%s16871_s2 + $0x1a0] sm:$0xff]  ;;  %v10130_v21 = vld [vmem:[%s16871_s2 + $0x1a8] sm:$0xff]  ;;  %v10128_v22 = vld [vmem:[%s16871_s2 + $0x198] sm:$0xff] }
  0x65   : > { %989 = vmatprep.subr.mxu1 %v646_v41  ;;  %11193 = vmatprep.mubr.msk.f32.mxu1 %vm696_vm0, %v669_v42  ;;  %v10126_v23 = vld [vmem:[%s16871_s2 + $0x188] sm:$0xff]  ;;  %v10127_v24 = vld [vmem:[%s16871_s2 + $0x190] sm:$0xff]  ;;  %v10125_v25 = vld [vmem:[%s16871_s2 + $0x180] sm:$0xff] }
  0x66   : > { %990 = vmatpush1.msra.mxu1 %v645_v43  ;;  %10096 = vmatmul.mubr.msk.f32.gmra.mxu0 %vm696_vm0, %v666_v32  ;;  %v1181_v26 = vld [vmem:[%s12187_s20 + $0x2] sm:$0xff]  ;;  %v1182_v27 = vld [vmem:[%s12187_s20 + $0xa] sm:$0xff]  ;;  %v10184_v30 = vld [vmem:[%s16871_s2 + $0x2d8] sm:$0xff] }
  0x67   : > { %11194 = vmatmul.mubr.msk.f32.gmra.mxu1 %vm696_vm0, %v670_v44  ;;  %991 = vmatprep.subr.mxu1 %v643_v45  ;;  %v10187_v28 = vld [vmem:[%s16871_s2 + $0x2f0] sm:$0xff]  ;;  %v10186_v29 = vld [vmem:[%s16871_s2 + $0x2e8] sm:$0xff]  ;;  %v1184_v33 = vld [vmem:[%s12187_s20 + $0x1a] sm:$0xff] }
  0x68   : > { %992 = vmatpush1.msra.mxu1 %v642_v46  ;;  %809 = vmatprep.mubr.f32.mxu0 %v16842_v0  ;;  %v1183_v31 = vld [vmem:[%s12187_s20 + $0x12] sm:$0xff]  ;;  %v10181_v34 = vld [vmem:[%s16871_s2 + $0x2c0] sm:$0xff]  ;;  %v1186_v39 = vld [vmem:[%s12187_s20 + $0x2a] sm:$0xff] }
  0x69   : > { %993 = vmatprep.subr.mxu1 %v640_v47  ;;  %1027 = vmatprep.mubr.f32.mxu1 %v16842_v0  ;;  %v10183_v32 = vld [vmem:[%s16871_s2 + $0x2d0] sm:$0xff]  ;;  %v10180_v35 = vld [vmem:[%s16871_s2 + $0x2b8] sm:$0xff]  ;;  %v1185_v37 = vld [vmem:[%s12187_s20 + $0x22] sm:$0xff] }
  0x6a   : > { %994 = vmatpush1.msra.mxu1 %v639_v48  ;;  %10097 = vmatmul.mubr.msk.f32.gmra.mxu0 %vm696_vm0, %v667_v36  ;;  %v10178_v36 = vld [vmem:[%s16871_s2 + $0x2a8] sm:$0xff]  ;;  %v10175_v40 = vld [vmem:[%s16871_s2 + $0x290] sm:$0xff]  ;;  %v1188_v45 = vld [vmem:[%s12187_s20 + $0x3a] sm:$0xf] }
  0x6b   : > { %10109 = vmatmul.mubr.msk.f32.vlgmr.msra.gmra.mxu1 %vm696_vm0, %v631_v49  ;;  %11197 = vmatpush3.msra.mxu0 %v662_v50  ;;  %v10174_v41 = vld [vmem:[%s16871_s2 + $0x288] sm:$0xff]  ;;  %v1187_v43 = vld [vmem:[%s12187_s20 + $0x32] sm:$0xff]  ;;  %v10169_v46 = vld [vmem:[%s16871_s2 + $0x260] sm:$0xff] }
  0x6c   : > { %815 = vmatprep.mubr.f32.mxu0 %v16842_v0  ;;  %11198 = vmatprep.subr.mxu0 %v659_v51  ;;  %v10168_v47 = vld [vmem:[%s16871_s2 + $0x258] sm:$0xff]  ;;  %v10166_v48 = vld [vmem:[%s16871_s2 + $0x248] sm:$0xff] }
  0x6d   : > { %1033 = vmatprep.mubr.f32.mxu1 %v16842_v0  ;;  %11199 = vmatpush3.msra.mxu0 %v659_v51  ;;  %v1480_v50 = vld [vmem:[%s12187_s20 + $0x3] sm:$0xff]  ;;  %v10188_v51 = vld [vmem:[%s16871_s2 + $0x2f8] sm:$0xff] }
  0x6e   : > { %11224 = vmatprep.subr.mxu1 %v10148_v52  ;;  %10098 = vmatmul.mubr.msk.f32.gmra.mxu0 %vm696_vm0, %v668_v38  ;;  %v10177_v38 = vld [vmem:[%s16871_s2 + $0x2a0] sm:$0xff] }
  0x6f   : > { %10110 = vmatmul.mubr.msk.f32.gmra.mxu1 %vm696_vm0, %v632_v53  ;;  %11200 = vmatprep.subr.mxu0 %v656_v54 }
  0x70   : > { %821 = vmatprep.mubr.f32.mxu0 %v16842_v0  ;;  %11201 = vmatpush3.msra.mxu0 %v656_v54  ;;  %v1481_v54 = vld [vmem:[%s12187_s20 + $0xb] sm:$0xff] }
  0x71   : > { %1039 = vmatprep.mubr.f32.mxu1 %v16842_v0  ;;  %11202 = vmatprep.subr.mxu0 %v653_v55 }
  0x72   : > { %11225 = vmatpush3.msra.mxu1 %v10148_v52  ;;  %11203 = vmatpush3.msra.mxu0 %v653_v55  ;;  %v10185_v52 = vld [vmem:[%s16871_s2 + $0x2e0] sm:$0xff]  ;;  %v10182_v55 = vld [vmem:[%s16871_s2 + $0x2c8] sm:$0xff] }
  0x73   : > { %10111 = vmatmul.mubr.msk.f32.gmra.mxu1 %vm696_vm0, %v633_v56  ;;  %10099 = vmatmul.mubr.msk.f32.gmra.mxu0 %vm696_vm0, %v669_v42  ;;  %v10172_v42 = vld [vmem:[%s16871_s2 + $0x278] sm:$0xff] }
  0x74   : > { %11204 = vmatprep.subr.mxu0 %v650_v57  ;;  %827 = vmatprep.mubr.f32.mxu0 %v16842_v0 }
  0x75   : > { %11205 = vmatpush3.msra.mxu0 %v650_v57  ;;  %1045 = vmatprep.mubr.f32.mxu1 %v16842_v0  ;;  %v1482_v57 = vld [vmem:[%s12187_s20 + $0x13] sm:$0xff] }
  0x76   : > { %11206 = vmatprep.subr.mxu0 %v647_v58  ;;  %11226 = vmatprep.subr.mxu1 %v10145_v2 }
  0x77   : > { %11207 = vmatpush3.msra.mxu0 %v647_v58  ;;  %10112 = vmatmul.mubr.msk.f32.gmra.mxu1 %vm696_vm0, %v634_v59  ;;  %v10176_v58 = vld [vmem:[%s16871_s2 + $0x298] sm:$0xff] }
  0x78   : > { %10100 = vmatmul.mubr.msk.f32.gmra.mxu0 %vm696_vm0, %v670_v44  ;;  %11208 = vmatprep.subr.mxu0 %v644_v60  ;;  %v10171_v44 = vld [vmem:[%s16871_s2 + $0x270] sm:$0xff] }
  0x79   : > { %11209 = vmatpush3.msra.mxu0 %v644_v60  ;;  %1051 = vmatprep.mubr.f32.mxu1 %v16842_v0  ;;  %v1483_v60 = vld [vmem:[%s12187_s20 + $0x1b] sm:$0xff] }
  0x7a   : > { %11210 = vmatprep.subr.mxu0 %v641_v61  ;;  %11212 = vmatprep.mubr.msk.f32.mxu0 %vm696_vm0, %v631_v49  ;;  %v10165_v49 = vld [vmem:[%s16871_s2 + $0x240] sm:$0xff] }
  0x7b   : > { %11211 = vmatpush3.msra.mxu0 %v641_v61  ;;  %10113 = vmatmul.mubr.msk.f32.gmra.mxu1 %vm696_vm0, %v635_v62  ;;  %v10170_v61 = vld [vmem:[%s16871_s2 + $0x268] sm:$0xff] }
  0x7c   : > { %11213 = vmatmul.mubr.msk.f32.vlgmr.msra.gmra.mxu0 %vm696_vm0, %v632_v53  ;;  %1254 = vmatprep.subr.mxu0 %v10147_v63  ;;  %v10228_v53 = vld [vmem:[%s16871_s2 + $0x3b8] sm:$0xff]  ;;  %v1484_v63 = vld [vmem:[%s12187_s20 + $0x23] sm:$0xff] }
  0x7d   : > { %1255 = vmatpush1.msra.mxu0 %v10146_v1  ;;  %1057 = vmatprep.mubr.f32.mxu1 %v16842_v0  ;;  %v10227_v1 = vld [vmem:[%s16871_s2 + $0x3b0] sm:$0xff] }
  0x7e   : > { %1256 = vmatprep.subr.mxu0 %v10144_v3  ;;  %11215 = vmatprep.mubr.msk.f32.mxu0 %vm696_vm0, %v633_v56  ;;  %v10179_v56 = vld [vmem:[%s16871_s2 + $0x2b0] sm:$0xff]  ;;  %v10225_v3 = vld [vmem:[%s16871_s2 + $0x3a0] sm:$0xff] }
  0x7f   : > { %1257 = vmatpush1.msra.mxu0 %v10143_v4  ;;  %11227 = vmatpush3.msra.mxu1 %v10145_v2  ;;  %v10226_v2 = vld [vmem:[%s16871_s2 + $0x3a8] sm:$0xff]  ;;  %v10224_v4 = vld [vmem:[%s16871_s2 + $0x398] sm:$0xff] }
  0x80   : > { %11216 = vmatmul.mubr.msk.f32.gmra.mxu0 %vm696_vm0, %v634_v59  ;;  %10114 = vmatmul.mubr.msk.f32.gmra.mxu1 %vm696_vm0, %v636_v5  ;;  %v10173_v59 = vld [vmem:[%s16871_s2 + $0x280] sm:$0xff] }
  0x81   : > { %1258 = vmatprep.subr.mxu0 %v10141_v6  ;;  %11228 = vmatprep.subr.mxu1 %v10142_v7  ;;  %v1485_v6 = vld [vmem:[%s12187_s20 + $0x2b] sm:$0xff] }
  0x82   : > { %1259 = vmatpush1.msra.mxu0 %v10140_v8  ;;  %11229 = vmatpush3.msra.mxu1 %v10142_v7  ;;  %v10221_v7 = vld [vmem:[%s16871_s2 + $0x380] sm:$0xff]  ;;  %v10222_v8 = vld [vmem:[%s16871_s2 + $0x388] sm:$0xff] }
  0x83   : > { %1260 = vmatprep.subr.mxu0 %v10138_v9  ;;  %11230 = vmatprep.subr.mxu1 %v10139_v10  ;;  %v10220_v9 = vld [vmem:[%s16871_s2 + $0x378] sm:$0xff] }
  0x84   : > { %1063 = vmatprep.mubr.f32.mxu1 %v16842_v0  ;;  %11218 = vmatprep.mubr.msk.f32.mxu0 %vm696_vm0, %v635_v62  ;;  %v10167_v62 = vld [vmem:[%s16871_s2 + $0x250] sm:$0xff] }
  0x85   : > { %1261 = vmatpush1.msra.mxu0 %v10137_v11  ;;  %11231 = vmatpush3.msra.mxu1 %v10139_v10  ;;  %v10218_v10 = vld [vmem:[%s16871_s2 + $0x368] sm:$0xff]  ;;  %v10219_v11 = vld [vmem:[%s16871_s2 + $0x370] sm:$0xff] }
  0x86   : > { %11219 = vmatmul.mubr.msk.f32.gmra.mxu0 %vm696_vm0, %v636_v5  ;;  %10115 = vmatmul.mubr.msk.f32.gmra.mxu1 %vm696_vm0, %v637_v12  ;;  %v10223_v5 = vld [vmem:[%s16871_s2 + $0x390] sm:$0xff] }
  0x87   : > { %1262 = vmatprep.subr.mxu0 %v10135_v13  ;;  %11232 = vmatprep.subr.mxu1 %v10136_v14  ;;  %v1486_v13 = vld [vmem:[%s12187_s20 + $0x33] sm:$0xff] }
  0x88   : > { %1263 = vmatpush1.msra.mxu0 %v10134_v15  ;;  %11233 = vmatpush3.msra.mxu1 %v10136_v14  ;;  %v10215_v14 = vld [vmem:[%s16871_s2 + $0x350] sm:$0xff]  ;;  %v10216_v15 = vld [vmem:[%s16871_s2 + $0x358] sm:$0xff] }
  0x89   : > { %1264 = vmatprep.subr.mxu0 %v10132_v16  ;;  %11234 = vmatprep.subr.mxu1 %v10133_v17  ;;  %v10214_v16 = vld [vmem:[%s16871_s2 + $0x348] sm:$0xff] }
  0x8a   : > { %1069 = vmatprep.mubr.f32.mxu1 %v16842_v0  ;;  %11221 = vmatprep.mubr.msk.f32.mxu0 %vm696_vm0, %v637_v12  ;;  %v10217_v12 = vld [vmem:[%s16871_s2 + $0x360] sm:$0xff] }
  0x8b   : > { %1265 = vmatpush1.msra.mxu0 %v10131_v18  ;;  %11235 = vmatpush3.msra.mxu1 %v10133_v17  ;;  %v10212_v17 = vld [vmem:[%s16871_s2 + $0x338] sm:$0xff]  ;;  %v10213_v18 = vld [vmem:[%s16871_s2 + $0x340] sm:$0xff] }
  0x8c   : > { %11222 = vmatmul.mubr.msk.f32.gmra.mxu0 %vm696_vm0, %v638_v19  ;;  %10116 = vmatmul.mubr.msk.f32.gmra.mxu1 %vm696_vm0, %v638_v19  ;;  %v10211_v19 = vld [vmem:[%s16871_s2 + $0x330] sm:$0xff] }
  0x8d   : > { %1266 = vmatprep.subr.mxu0 %v10129_v20  ;;  %11236 = vmatprep.subr.mxu1 %v10130_v21  ;;  %v1487_v20 = vld [vmem:[%s12187_s20 + $0x3b] sm:$0xf] }
  0x8e   : > { %1267 = vmatpush1.msra.mxu0 %v10128_v22  ;;  %11237 = vmatpush3.msra.mxu1 %v10130_v21  ;;  %v10209_v21 = vld [vmem:[%s16871_s2 + $0x320] sm:$0xff]  ;;  %v10210_v22 = vld [vmem:[%s16871_s2 + $0x328] sm:$0xff] }
  0x8f   : > { %1268 = vmatprep.subr.mxu0 %v10126_v23  ;;  %11238 = vmatprep.subr.mxu1 %v10127_v24  ;;  %v10208_v23 = vld [vmem:[%s16871_s2 + $0x318] sm:$0xff] }
  0x90   : > { %1269 = vmatpush1.msra.mxu0 %v10125_v25  ;;  %1302 = vmatprep.mubr.f32.mxu0 %v16842_v0  ;;  %v10207_v25 = vld [vmem:[%s16871_s2 + $0x310] sm:$0xff] }
  0x91   : > { %11239 = vmatpush3.msra.mxu1 %v10127_v24  ;;  %11240 = vmatprep.mubr.msk.f32.mxu1 %vm696_vm0, %v1181_v26  ;;  %v10206_v24 = vld [vmem:[%s16871_s2 + $0x308] sm:$0xff] }
  0x92   : > { %10149 = vmatmul.mubr.msk.f32.vlgmr.msra.gmra.mxu0 %vm696_vm0, %v1181_v26  ;;  %11241 = vmatmul.mubr.msk.f32.vlgmr.msra.gmra.mxu1 %vm696_vm0, %v1182_v27  ;;  %v10205_v26 = vld [vmem:[%s16871_s2 + $0x300] sm:$0xff] }
  0x93   : > { %1553 = vmatprep.subr.mxu1 %v10187_v28  ;;  %1308 = vmatprep.mubr.f32.mxu0 %v16842_v0  ;;  %v1780_v28 = vld [vmem:[%s12187_s20 + $0xc] sm:$0xff] }
  0x94   : > { %1554 = vmatpush1.msra.mxu1 %v10186_v29  ;;  %11243 = vmatprep.mubr.msk.f32.mxu1 %vm696_vm0, %v1183_v31  ;;  %v10275_v29 = vld [vmem:[%s16871_s2 + $0x470] sm:$0xff] }
  0x95   : > { %1555 = vmatprep.subr.mxu1 %v10184_v30  ;;  %11252 = vmatprep.subr.mxu0 %v10188_v51  ;;  %v10274_v30 = vld [vmem:[%s16871_s2 + $0x468] sm:$0xff] }
  0x96   : > { %1556 = vmatpush1.msra.mxu1 %v10183_v32  ;;  %10150 = vmatmul.mubr.msk.f32.gmra.mxu0 %vm696_vm0, %v1182_v27  ;;  %v1779_v27 = vld [vmem:[%s12187_s20 + $0x4] sm:$0xff]  ;;  %v1781_v32 = vld [vmem:[%s12187_s20 + $0x14] sm:$0xff] }
  0x97   : > { %11244 = vmatmul.mubr.msk.f32.gmra.mxu1 %vm696_vm0, %v1184_v33  ;;  %1557 = vmatprep.subr.mxu1 %v10181_v34  ;;  %v1782_v34 = vld [vmem:[%s12187_s20 + $0x1c] sm:$0xff] }
  0x98   : > { %1558 = vmatpush1.msra.mxu1 %v10180_v35  ;;  %1314 = vmatprep.mubr.f32.mxu0 %v16842_v0  ;;  %v10269_v35 = vld [vmem:[%s16871_s2 + $0x440] sm:$0xff] }
  0x99   : > { %1559 = vmatprep.subr.mxu1 %v10178_v36  ;;  %11246 = vmatprep.mubr.msk.f32.mxu1 %vm696_vm0, %v1185_v37  ;;  %v10268_v36 = vld [vmem:[%s16871_s2 + $0x438] sm:$0xff] }
  0x9a   : > { %1560 = vmatpush1.msra.mxu1 %v10177_v38  ;;  %10151 = vmatmul.mubr.msk.f32.gmra.mxu0 %vm696_vm0, %v1183_v31  ;;  %v10272_v31 = vld [vmem:[%s16871_s2 + $0x458] sm:$0xff]  ;;  %v1783_v38 = vld [vmem:[%s12187_s20 + $0x24] sm:$0xff] }
  0x9b   : > { %11247 = vmatmul.mubr.msk.f32.gmra.mxu1 %vm696_vm0, %v1186_v39  ;;  %1561 = vmatprep.subr.mxu1 %v10175_v40  ;;  %v1784_v40 = vld [vmem:[%s12187_s20 + $0x2c] sm:$0xff] }
  0x9c   : > { %1562 = vmatpush1.msra.mxu1 %v10174_v41  ;;  %1320 = vmatprep.mubr.f32.mxu0 %v16842_v0  ;;  %v10263_v41 = vld [vmem:[%s16871_s2 + $0x410] sm:$0xff] }
  0x9d   : > { %1563 = vmatprep.subr.mxu1 %v10172_v42  ;;  %11249 = vmatprep.mubr.msk.f32.mxu1 %vm696_vm0, %v1187_v43  ;;  %v10262_v42 = vld [vmem:[%s16871_s2 + $0x408] sm:$0xff] }
  0x9e   : > { %1564 = vmatpush1.msra.mxu1 %v10171_v44  ;;  %10152 = vmatmul.mubr.msk.f32.gmra.mxu0 %vm696_vm0, %v1184_v33  ;;  %v10271_v33 = vld [vmem:[%s16871_s2 + $0x450] sm:$0xff] }
  0x9f   : > { %11250 = vmatmul.mubr.msk.f32.gmra.mxu1 %vm696_vm0, %v1188_v45  ;;  %1565 = vmatprep.subr.mxu1 %v10169_v46  ;;  %v1785_v44 = vld [vmem:[%s12187_s20 + $0x34] sm:$0xff]  ;;  %v1786_v46 = vld [vmem:[%s12187_s20 + $0x3c] sm:$0xf] }
  0xa0   : > { %1566 = vmatpush1.msra.mxu1 %v10168_v47  ;;  %1326 = vmatprep.mubr.f32.mxu0 %v16842_v0  ;;  %v10257_v47 = vld [vmem:[%s16871_s2 + $0x3e0] sm:$0xff] }
  0xa1   : > { %1567 = vmatprep.subr.mxu1 %v10166_v48  ;;  %1601 = vmatprep.mubr.f32.mxu1 %v16842_v0  ;;  %v10256_v48 = vld [vmem:[%s16871_s2 + $0x3d8] sm:$0xff] }
  0xa2   : > { %1568 = vmatpush1.msra.mxu1 %v10165_v49  ;;  %10153 = vmatmul.mubr.msk.f32.gmra.mxu0 %vm696_vm0, %v1185_v37  ;;  %v10266_v37 = vld [vmem:[%s16871_s2 + $0x428] sm:$0xff] }
  0xa3   : > { %10189 = vmatmul.mubr.msk.f32.vlgmr.msra.gmra.mxu1 %vm696_vm0, %v1480_v50  ;;  %11253 = vmatpush3.msra.mxu0 %v10188_v51  ;;  %v10254_v49 = vld [vmem:[%s16871_s2 + $0x3c8] sm:$0xff]  ;;  %v10245_v51 = vld [vmem:[%s12187_s20 + $0x40] sm:$0xff] }
  0xa4   : > { %1332 = vmatprep.mubr.f32.mxu0 %v16842_v0  ;;  %11254 = vmatprep.subr.mxu0 %v10185_v52 }
  0xa5   : > { %1607 = vmatprep.mubr.f32.mxu1 %v16842_v0  ;;  %11255 = vmatpush3.msra.mxu0 %v10185_v52  ;;  %v10276_v52 = vld [vmem:[%s16871_s2 + $0x478] sm:$0xff] }
  0xa6   : > { %11280 = vmatprep.subr.mxu1 %v10228_v53  ;;  %10154 = vmatmul.mubr.msk.f32.gmra.mxu0 %vm696_vm0, %v1186_v39  ;;  %v10265_v39 = vld [vmem:[%s16871_s2 + $0x420] sm:$0xff] }
  0xa7   : > { %10190 = vmatmul.mubr.msk.f32.gmra.mxu1 %vm696_vm0, %v1481_v54  ;;  %11256 = vmatprep.subr.mxu0 %v10182_v55 }
  0xa8   : > { %1338 = vmatprep.mubr.f32.mxu0 %v16842_v0  ;;  %11257 = vmatpush3.msra.mxu0 %v10182_v55  ;;  %v10246_v55 = vld [vmem:[%s12187_s20 + $0x48] sm:$0xff] }
  0xa9   : > { %1613 = vmatprep.mubr.f32.mxu1 %v16842_v0  ;;  %11258 = vmatprep.subr.mxu0 %v10179_v56 }
  0xaa   : > { %11281 = vmatpush3.msra.mxu1 %v10228_v53  ;;  %11259 = vmatpush3.msra.mxu0 %v10179_v56  ;;  %v10273_v53 = vld [vmem:[%s16871_s2 + $0x460] sm:$0xff]  ;;  %v10270_v56 = vld [vmem:[%s16871_s2 + $0x448] sm:$0xff] }
  0xab   : > { %10191 = vmatmul.mubr.msk.f32.gmra.mxu1 %vm696_vm0, %v1482_v57  ;;  %10155 = vmatmul.mubr.msk.f32.gmra.mxu0 %vm696_vm0, %v1187_v43  ;;  %v10260_v43 = vld [vmem:[%s16871_s2 + $0x3f8] sm:$0xff] }
  0xac   : > { %11260 = vmatprep.subr.mxu0 %v10176_v58  ;;  %1344 = vmatprep.mubr.f32.mxu0 %v16842_v0 }
  0xad   : > { %11261 = vmatpush3.msra.mxu0 %v10176_v58  ;;  %1619 = vmatprep.mubr.f32.mxu1 %v16842_v0  ;;  %v10247_v58 = vld [vmem:[%s12187_s20 + $0x50] sm:$0xff] }
  0xae   : > { %11262 = vmatprep.subr.mxu0 %v10173_v59  ;;  %11282 = vmatprep.subr.mxu1 %v10225_v3 }
  0xaf   : > { %11263 = vmatpush3.msra.mxu0 %v10173_v59  ;;  %10192 = vmatmul.mubr.msk.f32.gmra.mxu1 %vm696_vm0, %v1483_v60  ;;  %v10264_v59 = vld [vmem:[%s16871_s2 + $0x418] sm:$0xff] }
  0xb0   : > { %10156 = vmatmul.mubr.msk.f32.gmra.mxu0 %vm696_vm0, %v1188_v45  ;;  %11264 = vmatprep.subr.mxu0 %v10170_v61  ;;  %v10259_v45 = vld [vmem:[%s16871_s2 + $0x3f0] sm:$0xff] }
  0xb1   : > { %11265 = vmatpush3.msra.mxu0 %v10170_v61  ;;  %1625 = vmatprep.mubr.f32.mxu1 %v16842_v0  ;;  %v10248_v61 = vld [vmem:[%s12187_s20 + $0x58] sm:$0xff] }
  0xb2   : > { %11266 = vmatprep.subr.mxu0 %v10167_v62  ;;  %11268 = vmatprep.mubr.msk.f32.mxu0 %vm696_vm0, %v1480_v50  ;;  %v10253_v50 = vld [vmem:[%s16871_s2 + $0x3c0] sm:$0xff] }
  0xb3   : > { %11267 = vmatpush3.msra.mxu0 %v10167_v62  ;;  %10193 = vmatmul.mubr.msk.f32.gmra.mxu1 %vm696_vm0, %v1484_v63  ;;  %v10258_v62 = vld [vmem:[%s16871_s2 + $0x3e8] sm:$0xff] }
  0xb4   : > { %11269 = vmatmul.mubr.msk.f32.vlgmr.msra.gmra.mxu0 %vm696_vm0, %v1481_v54  ;;  %1852 = vmatprep.subr.mxu0 %v10227_v1  ;;  %v10324_v54 = vld [vmem:[%s16871_s2 + $0x538] sm:$0xff]  ;;  %v10249_v1 = vld [vmem:[%s12187_s20 + $0x60] sm:$0xff] }
  0xb5   : > { %1853 = vmatpush1.msra.mxu0 %v10226_v2  ;;  %1631 = vmatprep.mubr.f32.mxu1 %v16842_v0  ;;  %v10323_v2 = vld [vmem:[%s16871_s2 + $0x530] sm:$0xff] }
  0xb6   : > { %1854 = vmatprep.subr.mxu0 %v10224_v4  ;;  %11271 = vmatprep.mubr.msk.f32.mxu0 %vm696_vm0, %v1482_v57  ;;  %v10267_v57 = vld [vmem:[%s16871_s2 + $0x430] sm:$0xff]  ;;  %v10321_v4 = vld [vmem:[%s16871_s2 + $0x520] sm:$0xff] }
  0xb7   : > { %1855 = vmatpush1.msra.mxu0 %v10223_v5  ;;  %11283 = vmatpush3.msra.mxu1 %v10225_v3  ;;  %v10322_v3 = vld [vmem:[%s16871_s2 + $0x528] sm:$0xff]  ;;  %v10320_v5 = vld [vmem:[%s16871_s2 + $0x518] sm:$0xff] }
  0xb8   : > { %11272 = vmatmul.mubr.msk.f32.gmra.mxu0 %vm696_vm0, %v1483_v60  ;;  %10194 = vmatmul.mubr.msk.f32.gmra.mxu1 %vm696_vm0, %v1485_v6  ;;  %v10261_v60 = vld [vmem:[%s16871_s2 + $0x400] sm:$0xff] }
  0xb9   : > { %1856 = vmatprep.subr.mxu0 %v10221_v7  ;;  %11284 = vmatprep.subr.mxu1 %v10222_v8  ;;  %v10250_v7 = vld [vmem:[%s12187_s20 + $0x68] sm:$0xff] }
  0xba   : > { %1857 = vmatpush1.msra.mxu0 %v10220_v9  ;;  %11285 = vmatpush3.msra.mxu1 %v10222_v8  ;;  %v10317_v8 = vld [vmem:[%s16871_s2 + $0x500] sm:$0xff]  ;;  %v10318_v9 = vld [vmem:[%s16871_s2 + $0x508] sm:$0xff] }
  0xbb   : > { %1858 = vmatprep.subr.mxu0 %v10218_v10  ;;  %11286 = vmatprep.subr.mxu1 %v10219_v11  ;;  %v10316_v10 = vld [vmem:[%s16871_s2 + $0x4f8] sm:$0xff] }
  0xbc   : > { %1637 = vmatprep.mubr.f32.mxu1 %v16842_v0  ;;  %11274 = vmatprep.mubr.msk.f32.mxu0 %vm696_vm0, %v1484_v63  ;;  %v10255_v63 = vld [vmem:[%s16871_s2 + $0x3d0] sm:$0xff] }
  0xbd   : > { %1859 = vmatpush1.msra.mxu0 %v10217_v12  ;;  %11287 = vmatpush3.msra.mxu1 %v10219_v11  ;;  %v10314_v11 = vld [vmem:[%s16871_s2 + $0x4e8] sm:$0xff]  ;;  %v10315_v12 = vld [vmem:[%s16871_s2 + $0x4f0] sm:$0xff] }
  0xbe   : > { %11275 = vmatmul.mubr.msk.f32.gmra.mxu0 %vm696_vm0, %v1485_v6  ;;  %10195 = vmatmul.mubr.msk.f32.gmra.mxu1 %vm696_vm0, %v1486_v13  ;;  %v10319_v6 = vld [vmem:[%s16871_s2 + $0x510] sm:$0xff] }
  0xbf   : > { %1860 = vmatprep.subr.mxu0 %v10215_v14  ;;  %11288 = vmatprep.subr.mxu1 %v10216_v15  ;;  %v10251_v14 = vld [vmem:[%s12187_s20 + $0x70] sm:$0xff] }
  0xc0   : > { %1861 = vmatpush1.msra.mxu0 %v10214_v16  ;;  %11289 = vmatpush3.msra.mxu1 %v10216_v15  ;;  %v10311_v15 = vld [vmem:[%s16871_s2 + $0x4d0] sm:$0xff]  ;;  %v10312_v16 = vld [vmem:[%s16871_s2 + $0x4d8] sm:$0xff] }
  0xc1   : > { %1862 = vmatprep.subr.mxu0 %v10212_v17  ;;  %11290 = vmatprep.subr.mxu1 %v10213_v18  ;;  %v10310_v17 = vld [vmem:[%s16871_s2 + $0x4c8] sm:$0xff] }
  0xc2   : > { %1643 = vmatprep.mubr.f32.mxu1 %v16842_v0  ;;  %11277 = vmatprep.mubr.msk.f32.mxu0 %vm696_vm0, %v1486_v13  ;;  %v10313_v13 = vld [vmem:[%s16871_s2 + $0x4e0] sm:$0xff] }
  0xc3   : > { %1863 = vmatpush1.msra.mxu0 %v10211_v19  ;;  %11291 = vmatpush3.msra.mxu1 %v10213_v18  ;;  %v10308_v18 = vld [vmem:[%s16871_s2 + $0x4b8] sm:$0xff]  ;;  %v10309_v19 = vld [vmem:[%s16871_s2 + $0x4c0] sm:$0xff] }
  0xc4   : > { %11278 = vmatmul.mubr.msk.f32.gmra.mxu0 %vm696_vm0, %v1487_v20  ;;  %10196 = vmatmul.mubr.msk.f32.gmra.mxu1 %vm696_vm0, %v1487_v20  ;;  %v10307_v20 = vld [vmem:[%s16871_s2 + $0x4b0] sm:$0xff] }
  0xc5   : > { %1864 = vmatprep.subr.mxu0 %v10209_v21  ;;  %11292 = vmatprep.subr.mxu1 %v10210_v22  ;;  %v10252_v21 = vld [vmem:[%s12187_s20 + $0x78] sm:$0xf] }
  0xc6   : > { %1865 = vmatpush1.msra.mxu0 %v10208_v23  ;;  %11293 = vmatpush3.msra.mxu1 %v10210_v22  ;;  %v10305_v22 = vld [vmem:[%s16871_s2 + $0x4a0] sm:$0xff]  ;;  %v10306_v23 = vld [vmem:[%s16871_s2 + $0x4a8] sm:$0xff] }
  0xc7   : > { %1866 = vmatprep.subr.mxu0 %v10206_v24  ;;  %11294 = vmatprep.subr.mxu1 %v10207_v25  ;;  %v10304_v24 = vld [vmem:[%s16871_s2 + $0x498] sm:$0xff] }
  0xc8   : > { %1867 = vmatpush1.msra.mxu0 %v10205_v26  ;;  %1900 = vmatprep.mubr.f32.mxu0 %v16842_v0  ;;  %v10303_v26 = vld [vmem:[%s16871_s2 + $0x490] sm:$0xff] }
  0xc9   : > { %11295 = vmatpush3.msra.mxu1 %v10207_v25  ;;  %11296 = vmatprep.mubr.msk.f32.mxu1 %vm696_vm0, %v1779_v27  ;;  %v10302_v25 = vld [vmem:[%s16871_s2 + $0x488] sm:$0xff] }
  0xca   : > { %10229 = vmatmul.mubr.msk.f32.vlgmr.msra.gmra.mxu0 %vm696_vm0, %v1779_v27  ;;  %11297 = vmatmul.mubr.msk.f32.vlgmr.msra.gmra.mxu1 %vm696_vm0, %v1780_v28  ;;  %v10301_v27 = vld [vmem:[%s16871_s2 + $0x480] sm:$0xff] }
  0xcb   : > { %2152 = vmatprep.subr.mxu1 %v10275_v29  ;;  %1906 = vmatprep.mubr.f32.mxu0 %v16842_v0  ;;  %v10294_v29 = vld [vmem:[%s12187_s20 + $0x49] sm:$0xff] }
  0xcc   : > { %2153 = vmatpush1.msra.mxu1 %v10274_v30  ;;  %11299 = vmatprep.mubr.msk.f32.mxu1 %vm696_vm0, %v1781_v32  ;;  %v10371_v30 = vld [vmem:[%s16871_s2 + $0x5f0] sm:$0xff] }
  0xcd   : > { %2154 = vmatprep.subr.mxu1 %v10272_v31  ;;  %11308 = vmatprep.subr.mxu0 %v10276_v52  ;;  %v10370_v31 = vld [vmem:[%s16871_s2 + $0x5e8] sm:$0xff] }
  0xce   : > { %2155 = vmatpush1.msra.mxu1 %v10271_v33  ;;  %10230 = vmatmul.mubr.msk.f32.gmra.mxu0 %vm696_vm0, %v1780_v28  ;;  %v10293_v28 = vld [vmem:[%s12187_s20 + $0x41] sm:$0xff]  ;;  %v10295_v33 = vld [vmem:[%s12187_s20 + $0x51] sm:$0xff] }
  0xcf   : > { %11300 = vmatmul.mubr.msk.f32.gmra.mxu1 %vm696_vm0, %v1782_v34  ;;  %2156 = vmatprep.subr.mxu1 %v10269_v35  ;;  %v10296_v35 = vld [vmem:[%s12187_s20 + $0x59] sm:$0xff] }
  0xd0   : > { %2157 = vmatpush1.msra.mxu1 %v10268_v36  ;;  %1912 = vmatprep.mubr.f32.mxu0 %v16842_v0  ;;  %v10365_v36 = vld [vmem:[%s16871_s2 + $0x5c0] sm:$0xff] }
  0xd1   : > { %2158 = vmatprep.subr.mxu1 %v10266_v37  ;;  %11302 = vmatprep.mubr.msk.f32.mxu1 %vm696_vm0, %v1783_v38  ;;  %v10364_v37 = vld [vmem:[%s16871_s2 + $0x5b8] sm:$0xff] }
  0xd2   : > { %2159 = vmatpush1.msra.mxu1 %v10265_v39  ;;  %10231 = vmatmul.mubr.msk.f32.gmra.mxu0 %vm696_vm0, %v1781_v32  ;;  %v10368_v32 = vld [vmem:[%s16871_s2 + $0x5d8] sm:$0xff]  ;;  %v10297_v39 = vld [vmem:[%s12187_s20 + $0x61] sm:$0xff] }
  0xd3   : > { %11303 = vmatmul.mubr.msk.f32.gmra.mxu1 %vm696_vm0, %v1784_v40  ;;  %2160 = vmatprep.subr.mxu1 %v10263_v41  ;;  %v10298_v41 = vld [vmem:[%s12187_s20 + $0x69] sm:$0xff] }
  0xd4   : > { %2161 = vmatpush1.msra.mxu1 %v10262_v42  ;;  %1918 = vmatprep.mubr.f32.mxu0 %v16842_v0  ;;  %v10359_v42 = vld [vmem:[%s16871_s2 + $0x590] sm:$0xff] }
  0xd5   : > { %2162 = vmatprep.subr.mxu1 %v10260_v43  ;;  %11305 = vmatprep.mubr.msk.f32.mxu1 %vm696_vm0, %v1785_v44  ;;  %v10358_v43 = vld [vmem:[%s16871_s2 + $0x588] sm:$0xff] }
  0xd6   : > { %2163 = vmatpush1.msra.mxu1 %v10259_v45  ;;  %10232 = vmatmul.mubr.msk.f32.gmra.mxu0 %vm696_vm0, %v1782_v34  ;;  %v10367_v34 = vld [vmem:[%s16871_s2 + $0x5d0] sm:$0xff] }
  0xd7   : > { %11306 = vmatmul.mubr.msk.f32.gmra.mxu1 %vm696_vm0, %v1786_v46  ;;  %2164 = vmatprep.subr.mxu1 %v10257_v47  ;;  %v10299_v45 = vld [vmem:[%s12187_s20 + $0x71] sm:$0xff]  ;;  %v10300_v47 = vld [vmem:[%s12187_s20 + $0x79] sm:$0xf] }
  0xd8   : > { %2165 = vmatpush1.msra.mxu1 %v10256_v48  ;;  %1924 = vmatprep.mubr.f32.mxu0 %v16842_v0  ;;  %v10353_v48 = vld [vmem:[%s16871_s2 + $0x560] sm:$0xff] }
  0xd9   : > { %2166 = vmatprep.subr.mxu1 %v10254_v49  ;;  %2200 = vmatprep.mubr.f32.mxu1 %v16842_v0  ;;  %v10352_v49 = vld [vmem:[%s16871_s2 + $0x558] sm:$0xff] }
  0xda   : > { %2167 = vmatpush1.msra.mxu1 %v10253_v50  ;;  %10233 = vmatmul.mubr.msk.f32.gmra.mxu0 %vm696_vm0, %v1783_v38  ;;  %v10362_v38 = vld [vmem:[%s16871_s2 + $0x5a8] sm:$0xff] }
  0xdb   : > { %10277 = vmatmul.mubr.msk.f32.vlgmr.msra.gmra.mxu1 %vm696_vm0, %v10245_v51  ;;  %11309 = vmatpush3.msra.mxu0 %v10276_v52  ;;  %v10350_v50 = vld [vmem:[%s16871_s2 + $0x548] sm:$0xff] }
  0xdc   : > { %1930 = vmatprep.mubr.f32.mxu0 %v16842_v0  ;;  %11310 = vmatprep.subr.mxu0 %v10273_v53  ;;  %v10341_v52 = vld [vmem:[%s12187_s20 + $0x42] sm:$0xff] }
  0xdd   : > { %2206 = vmatprep.mubr.f32.mxu1 %v16842_v0  ;;  %11311 = vmatpush3.msra.mxu0 %v10273_v53  ;;  %v10372_v53 = vld [vmem:[%s16871_s2 + $0x5f8] sm:$0xff] }
  0xde   : > { %11336 = vmatprep.subr.mxu1 %v10324_v54  ;;  %10234 = vmatmul.mubr.msk.f32.gmra.mxu0 %vm696_vm0, %v1784_v40  ;;  %v10361_v40 = vld [vmem:[%s16871_s2 + $0x5a0] sm:$0xff] }
  0xdf   : > { %10278 = vmatmul.mubr.msk.f32.gmra.mxu1 %vm696_vm0, %v10246_v55  ;;  %11312 = vmatprep.subr.mxu0 %v10270_v56 }
  0xe0   : > { %1936 = vmatprep.mubr.f32.mxu0 %v16842_v0  ;;  %11313 = vmatpush3.msra.mxu0 %v10270_v56  ;;  %v10342_v56 = vld [vmem:[%s12187_s20 + $0x4a] sm:$0xff] }
  0xe1   : > { %2212 = vmatprep.mubr.f32.mxu1 %v16842_v0  ;;  %11314 = vmatprep.subr.mxu0 %v10267_v57 }
  0xe2   : > { %11337 = vmatpush3.msra.mxu1 %v10324_v54  ;;  %11315 = vmatpush3.msra.mxu0 %v10267_v57  ;;  %v10369_v54 = vld [vmem:[%s16871_s2 + $0x5e0] sm:$0xff]  ;;  %v10366_v57 = vld [vmem:[%s16871_s2 + $0x5c8] sm:$0xff] }
  0xe3   : > { %10279 = vmatmul.mubr.msk.f32.gmra.mxu1 %vm696_vm0, %v10247_v58  ;;  %10235 = vmatmul.mubr.msk.f32.gmra.mxu0 %vm696_vm0, %v1785_v44  ;;  %v10356_v44 = vld [vmem:[%s16871_s2 + $0x578] sm:$0xff] }
  0xe4   : > { %11316 = vmatprep.subr.mxu0 %v10264_v59  ;;  %1942 = vmatprep.mubr.f32.mxu0 %v16842_v0 }
  0xe5   : > { %11317 = vmatpush3.msra.mxu0 %v10264_v59  ;;  %2218 = vmatprep.mubr.f32.mxu1 %v16842_v0  ;;  %v10343_v59 = vld [vmem:[%s12187_s20 + $0x52] sm:$0xff] }
  0xe6   : > { %11318 = vmatprep.subr.mxu0 %v10261_v60  ;;  %11338 = vmatprep.subr.mxu1 %v10321_v4 }
  0xe7   : > { %11319 = vmatpush3.msra.mxu0 %v10261_v60  ;;  %10280 = vmatmul.mubr.msk.f32.gmra.mxu1 %vm696_vm0, %v10248_v61  ;;  %v10360_v60 = vld [vmem:[%s16871_s2 + $0x598] sm:$0xff] }
  0xe8   : > { %10236 = vmatmul.mubr.msk.f32.gmra.mxu0 %vm696_vm0, %v1786_v46  ;;  %11320 = vmatprep.subr.mxu0 %v10258_v62  ;;  %v10355_v46 = vld [vmem:[%s16871_s2 + $0x570] sm:$0xff] }
  0xe9   : > { %11321 = vmatpush3.msra.mxu0 %v10258_v62  ;;  %2224 = vmatprep.mubr.f32.mxu1 %v16842_v0  ;;  %v10357_v62 = vld [vmem:[%s16871_s2 + $0x580] sm:$0xff] }
  0xea   : > { %11322 = vmatprep.subr.mxu0 %v10255_v63  ;;  %11324 = vmatprep.mubr.msk.f32.mxu0 %vm696_vm0, %v10245_v51  ;;  %v10349_v51 = vld [vmem:[%s16871_s2 + $0x540] sm:$0xff] }
  0xeb   : > { %11323 = vmatpush3.msra.mxu0 %v10255_v63  ;;  %10281 = vmatmul.mubr.msk.f32.gmra.mxu1 %vm696_vm0, %v10249_v1 }
  0xec   : > { %11325 = vmatmul.mubr.msk.f32.vlgmr.msra.gmra.mxu0 %vm696_vm0, %v10246_v55  ;;  %2451 = vmatprep.subr.mxu0 %v10323_v2  ;;  %v10420_v55 = vld [vmem:[%s16871_s2 + $0x6b8] sm:$0xff] }
  0xed   : > { %2452 = vmatpush1.msra.mxu0 %v10322_v3  ;;  %2230 = vmatprep.mubr.f32.mxu1 %v16842_v0  ;;  %v10354_v3 = vld [vmem:[%s16871_s2 + $0x568] sm:$0xff] }
  0xee   : > { %2453 = vmatprep.subr.mxu0 %v10320_v5  ;;  %11327 = vmatprep.mubr.msk.f32.mxu0 %vm696_vm0, %v10247_v58  ;;  %v10363_v58 = vld [vmem:[%s16871_s2 + $0x5b0] sm:$0xff] }
  0xef   : > { %2454 = vmatpush1.msra.mxu0 %v10319_v6  ;;  %11339 = vmatpush3.msra.mxu1 %v10321_v4  ;;  %v10351_v6 = vld [vmem:[%s16871_s2 + $0x550] sm:$0xff] }
  0xf0   : > { %11328 = vmatmul.mubr.msk.f32.gmra.mxu0 %vm696_vm0, %v10248_v61  ;;  %10282 = vmatmul.mubr.msk.f32.gmra.mxu1 %vm696_vm0, %v10250_v7 }
  0xf1   : > { %2455 = vmatprep.subr.mxu0 %v10317_v8  ;;  %11340 = vmatprep.subr.mxu1 %v10318_v9  ;;  %v10345_v8 = vld [vmem:[%s12187_s20 + $0x62] sm:$0xff] }
  0xf2   : > { %2456 = vmatpush1.msra.mxu0 %v10316_v10  ;;  %11341 = vmatpush3.msra.mxu1 %v10318_v9  ;;  %v10419_v10 = vld [vmem:[%s16871_s2 + $0x6b0] sm:$0xff] }
  0xf3   : > { %2457 = vmatprep.subr.mxu0 %v10314_v11  ;;  %11342 = vmatprep.subr.mxu1 %v10315_v12 }
  0xf4   : > { %2236 = vmatprep.mubr.f32.mxu1 %v16842_v0  ;;  %11330 = vmatprep.mubr.msk.f32.mxu0 %vm696_vm0, %v10249_v1  ;;  %v10344_v1 = vld [vmem:[%s12187_s20 + $0x5a] sm:$0xff] }
  0xf5   : > { %2458 = vmatpush1.msra.mxu0 %v10313_v13  ;;  %11343 = vmatpush3.msra.mxu1 %v10315_v12  ;;  %v10418_v12 = vld [vmem:[%s16871_s2 + $0x6a8] sm:$0xff]  ;;  %v10417_v13 = vld [vmem:[%s16871_s2 + $0x6a0] sm:$0xff] }
  0xf6   : > { %11331 = vmatmul.mubr.msk.f32.gmra.mxu0 %vm696_vm0, %v10250_v7  ;;  %10283 = vmatmul.mubr.msk.f32.gmra.mxu1 %vm696_vm0, %v10251_v14 }
  0xf7   : > { %2459 = vmatprep.subr.mxu0 %v10311_v15  ;;  %11344 = vmatprep.subr.mxu1 %v10312_v16  ;;  %v10416_v15 = vld [vmem:[%s16871_s2 + $0x698] sm:$0xff] }
  0xf8   : > { %2460 = vmatpush1.msra.mxu0 %v10310_v17  ;;  %11345 = vmatpush3.msra.mxu1 %v10312_v16  ;;  %v10415_v17 = vld [vmem:[%s16871_s2 + $0x690] sm:$0xff] }
  0xf9   : > { %2461 = vmatprep.subr.mxu0 %v10308_v18  ;;  %11346 = vmatprep.subr.mxu1 %v10309_v19 }
  0xfa   : > { %2242 = vmatprep.mubr.f32.mxu1 %v16842_v0  ;;  %11333 = vmatprep.mubr.msk.f32.mxu0 %vm696_vm0, %v10251_v14 }
  0xfb   : > { %2462 = vmatpush1.msra.mxu0 %v10307_v20  ;;  %11347 = vmatpush3.msra.mxu1 %v10309_v19  ;;  %v10346_v20 = vld [vmem:[%s12187_s20 + $0x6a] sm:$0xff] }
  0xfc   : > { %11334 = vmatmul.mubr.msk.f32.gmra.mxu0 %vm696_vm0, %v10252_v21  ;;  %10284 = vmatmul.mubr.msk.f32.gmra.mxu1 %vm696_vm0, %v10252_v21  ;;  %v10413_v21 = vld [vmem:[%s16871_s2 + $0x680] sm:$0xff] }
  0xfd   : > { %2463 = vmatprep.subr.mxu0 %v10305_v22  ;;  %11348 = vmatprep.subr.mxu1 %v10306_v23 }
  0xfe   : > { %2464 = vmatpush1.msra.mxu0 %v10304_v24  ;;  %11349 = vmatpush3.msra.mxu1 %v10306_v23  ;;  %v10414_v23 = vld [vmem:[%s16871_s2 + $0x688] sm:$0xff]  ;;  %v10412_v24 = vld [vmem:[%s16871_s2 + $0x678] sm:$0xff] }
  0xff   : > { %2465 = vmatprep.subr.mxu0 %v10302_v25  ;;  %11350 = vmatprep.subr.mxu1 %v10303_v26 }
 0x100   : > { %2466 = vmatpush1.msra.mxu0 %v10301_v27  ;;  %2499 = vmatprep.mubr.f32.mxu0 %v16842_v0 }
 0x101   : > { %11351 = vmatpush3.msra.mxu1 %v10303_v26  ;;  %11352 = vmatprep.mubr.msk.f32.mxu1 %vm696_vm0, %v10293_v28  ;;  %v10410_v26 = vld [vmem:[%s16871_s2 + $0x668] sm:$0xff] }
 0x102   : > { %10325 = vmatmul.mubr.msk.f32.vlgmr.msra.gmra.mxu0 %vm696_vm0, %v10293_v28  ;;  %11353 = vmatmul.mubr.msk.f32.vlgmr.msra.gmra.mxu1 %vm696_vm0, %v10294_v29  ;;  %v10411_v28 = vld [vmem:[%s16871_s2 + $0x670] sm:$0xff] }
 0x103   : > { %2750 = vmatprep.subr.mxu1 %v10371_v30  ;;  %2505 = vmatprep.mubr.f32.mxu0 %v16842_v0  ;;  %v10409_v30 = vld [vmem:[%s16871_s2 + $0x660] sm:$0xff] }
 0x104   : > { %2751 = vmatpush1.msra.mxu1 %v10370_v31  ;;  %11355 = vmatprep.mubr.msk.f32.mxu1 %vm696_vm0, %v10295_v33 }
 0x105   : > { %2752 = vmatprep.subr.mxu1 %v10368_v32  ;;  %11364 = vmatprep.subr.mxu0 %v10372_v53 }
 0x106   : > { %2753 = vmatpush1.msra.mxu1 %v10367_v34  ;;  %10326 = vmatmul.mubr.msk.f32.gmra.mxu0 %vm696_vm0, %v10294_v29  ;;  %v10407_v34 = vld [vmem:[%s16871_s2 + $0x650] sm:$0xff] }
 0x107   : > { %11356 = vmatmul.mubr.msk.f32.gmra.mxu1 %vm696_vm0, %v10296_v35  ;;  %2754 = vmatprep.subr.mxu1 %v10365_v36 }
 0x108   : > { %2755 = vmatpush1.msra.mxu1 %v10364_v37  ;;  %2511 = vmatprep.mubr.f32.mxu0 %v16842_v0  ;;  %v10408_v37 = vld [vmem:[%s16871_s2 + $0x658] sm:$0xff] }
 0x109   : > { %2756 = vmatprep.subr.mxu1 %v10362_v38  ;;  %11358 = vmatprep.mubr.msk.f32.mxu1 %vm696_vm0, %v10297_v39  ;;  %v10406_v38 = vld [vmem:[%s16871_s2 + $0x648] sm:$0xff] }
 0x10a   : > { %2757 = vmatpush1.msra.mxu1 %v10361_v40  ;;  %10327 = vmatmul.mubr.msk.f32.gmra.mxu0 %vm696_vm0, %v10295_v33  ;;  %v10347_v33 = vld [vmem:[%s12187_s20 + $0x72] sm:$0xff] }
 0x10b   : > { %11359 = vmatmul.mubr.msk.f32.gmra.mxu1 %vm696_vm0, %v10298_v41  ;;  %2758 = vmatprep.subr.mxu1 %v10359_v42  ;;  %v10404_v40 = vld [vmem:[%s16871_s2 + $0x638] sm:$0xff] }
 0x10c   : > { %2759 = vmatpush1.msra.mxu1 %v10358_v43  ;;  %2517 = vmatprep.mubr.f32.mxu0 %v16842_v0 }
 0x10d   : > { %2760 = vmatprep.subr.mxu1 %v10356_v44  ;;  %11361 = vmatprep.mubr.msk.f32.mxu1 %vm696_vm0, %v10299_v45  ;;  %v10403_v44 = vld [vmem:[%s16871_s2 + $0x630] sm:$0xff] }
 0x10e   : > { %2761 = vmatpush1.msra.mxu1 %v10355_v46  ;;  %10328 = vmatmul.mubr.msk.f32.gmra.mxu0 %vm696_vm0, %v10296_v35  ;;  %v10348_v46 = vld [vmem:[%s12187_s20 + $0x7a] sm:$0xf] }
 0x10f   : > { %11362 = vmatmul.mubr.msk.f32.gmra.mxu1 %vm696_vm0, %v10300_v47  ;;  %2762 = vmatprep.subr.mxu1 %v10353_v48 }
 0x110   : > { %2763 = vmatpush1.msra.mxu1 %v10352_v49  ;;  %2523 = vmatprep.mubr.f32.mxu0 %v16842_v0  ;;  %v10401_v49 = vld [vmem:[%s16871_s2 + $0x620] sm:$0xff] }
 0x111   : > { %2764 = vmatprep.subr.mxu1 %v10350_v50  ;;  %2798 = vmatprep.mubr.f32.mxu1 %v16842_v0  ;;  %v10402_v50 = vld [vmem:[%s16871_s2 + $0x628] sm:$0xff] }
 0x112   : > { %2765 = vmatpush1.msra.mxu1 %v10349_v51  ;;  %10329 = vmatmul.mubr.msk.f32.gmra.mxu0 %vm696_vm0, %v10297_v39  ;;  %v10400_v51 = vld [vmem:[%s16871_s2 + $0x618] sm:$0xff] }
 0x113   : > { %10373 = vmatmul.mubr.msk.f32.vlgmr.msra.gmra.mxu1 %vm696_vm0, %v10341_v52  ;;  %11365 = vmatpush3.msra.mxu0 %v10372_v53  ;;  %v10398_v53 = vld [vmem:[%s16871_s2 + $0x608] sm:$0xff] }
 0x114   : > { %2529 = vmatprep.mubr.f32.mxu0 %v16842_v0  ;;  %11366 = vmatprep.subr.mxu0 %v10369_v54 }
 0x115   : > { %2804 = vmatprep.mubr.f32.mxu1 %v16842_v0  ;;  %11367 = vmatpush3.msra.mxu0 %v10369_v54 }
 0x116   : > { %11392 = vmatprep.subr.mxu1 %v10420_v55  ;;  %10330 = vmatmul.mubr.msk.f32.gmra.mxu0 %vm696_vm0, %v10298_v41  ;;  %v10405_v41 = vld [vmem:[%s16871_s2 + $0x640] sm:$0xff] }
 0x117   : > { %10374 = vmatmul.mubr.msk.f32.gmra.mxu1 %vm696_vm0, %v10342_v56  ;;  %11368 = vmatprep.subr.mxu0 %v10366_v57 }
 0x118   : > { %2535 = vmatprep.mubr.f32.mxu0 %v16842_v0  ;;  %11369 = vmatpush3.msra.mxu0 %v10366_v57  ;;  %v10397_v57 = vld [vmem:[%s16871_s2 + $0x600] sm:$0xff] }
 0x119   : > { %2810 = vmatprep.mubr.f32.mxu1 %v16842_v0  ;;  %11370 = vmatprep.subr.mxu0 %v10363_v58 }
 0x11a   : > { %11393 = vmatpush3.msra.mxu1 %v10420_v55  ;;  %v12924_v61 = vpop.f32.mrf.mxu0  ;;  %11371 = vmatpush3.msra.mxu0 %v10363_v58  ;;  %v12930_v63 = vpop.f32.mrf.mxu1 }
 0x11b   : > { %10375 = vmatmul.mubr.msk.f32.gmra.mxu1 %vm696_vm0, %v10343_v59  ;;  %10331 = vmatmul.mubr.msk.f32.gmra.mxu0 %vm696_vm0, %v10299_v45 }
 0x11c   : > { %11372 = vmatprep.subr.mxu0 %v10360_v60  ;;  %v12934_v2 = vpop.f32.mrf.mxu0  ;;  %2541 = vmatprep.mubr.f32.mxu0 %v16842_v0  ;;  %v12940_v4 = vpop.f32.mrf.mxu1 }
 0x11d   : > { %11373 = vmatpush3.msra.mxu0 %v10360_v60  ;;  %2816 = vmatprep.mubr.f32.mxu1 %v16842_v0  ;;  %v10389_v60 = vld [vmem:[%s12187_s20 + $0x43] sm:$0xff] }
 0x11e   : > { %11374 = vmatprep.subr.mxu0 %v10357_v62  ;;  %v12943_v5 = vpop.f32.mrf.mxu0  ;;  %11394 = vmatprep.subr.mxu1 %v10417_v13 }
 0x11f   : > { %11375 = vmatpush3.msra.mxu0 %v10357_v62  ;;  %10376 = vmatmul.mubr.msk.f32.gmra.mxu1 %vm696_vm0, %v10344_v1  ;;  %v12949_v7 = vpop.f32.mrf.mxu1  ;;  %v10390_v62 = vld [vmem:[%s12187_s20 + $0x4b] sm:$0xff] }
 0x120   : > { %10332 = vmatmul.mubr.msk.f32.gmra.mxu0 %vm696_vm0, %v10300_v47  ;;  %11376 = vmatprep.subr.mxu0 %v10354_v3  ;;  %v12953_v9 = vpop.f32.mrf.mxu0 }
 0x121   : > { %11377 = vmatpush3.msra.mxu0 %v10354_v3  ;;  %2822 = vmatprep.mubr.f32.mxu1 %v16842_v0  ;;  %v12959_v11 = vpop.f32.mrf.mxu1 }
 0x122   : > { %11378 = vmatprep.subr.mxu0 %v10351_v6  ;;  %11380 = vmatprep.mubr.msk.f32.mxu0 %vm696_vm0, %v10341_v52  ;;  %v12968_v14 = vpop.f32.mrf.mxu0 }
 0x123   : > { %11379 = vmatpush3.msra.mxu0 %v10351_v6  ;;  %10377 = vmatmul.mubr.msk.f32.gmra.mxu1 %vm696_vm0, %v10345_v8  ;;  %v12974_v16 = vpop.f32.mrf.mxu1  ;;  %v10466_v6 = vld [vmem:[%s16871_s2 + $0x768] sm:$0xff] }
 0x124   : > { %11381 = vmatmul.mubr.msk.f32.vlgmr.msra.gmra.mxu0 %vm696_vm0, %v10342_v56  ;;  %3049 = vmatprep.subr.mxu0 %v10419_v10  ;;  %v12980_v18 = vpop.f32.mrf.mxu0  ;;  %v10399_v56 = vld [vmem:[%s16871_s2 + $0x610] sm:$0xff]  ;;  %v10464_v10 = vld [vmem:[%s16871_s2 + $0x758] sm:$0xff] }
 0x125   : > { %3050 = vmatpush1.msra.mxu0 %v10418_v12  ;;  %v12982_v19 = vpop.f32.mrf.mxu1  ;;  %2828 = vmatprep.mubr.f32.mxu1 %v16842_v0  ;;  %v10391_v12 = vld [vmem:[%s12187_s20 + $0x53] sm:$0xff] }
 0x126   : > { %3051 = vmatprep.subr.mxu0 %v10416_v15  ;;  %v12989_v22 = vpop.f32.mrf.mxu0  ;;  %11383 = vmatprep.mubr.msk.f32.mxu0 %vm696_vm0, %v10343_v59 }
 0x127   : > { %3052 = vmatpush1.msra.mxu0 %v10415_v17  ;;  %v12998_v25 = vpop.f32.mrf.mxu1  ;;  %11395 = vmatpush3.msra.mxu1 %v10417_v13  ;;  %v10392_v17 = vld [vmem:[%s12187_s20 + $0x5b] sm:$0xff] }
 0x128   : > { %11384 = vmatmul.mubr.msk.f32.gmra.mxu0 %vm696_vm0, %v10344_v1  ;;  %v13004_v27 = vpop.f32.mrf.mxu0  ;;  %10378 = vmatmul.mubr.msk.f32.gmra.mxu1 %vm696_vm0, %v10346_v20  ;;  %v10467_v1 = vld [vmem:[%s16871_s2 + $0x770] sm:$0xff] }
 0x129   : > { %3053 = vmatprep.subr.mxu0 %v10413_v21  ;;  %v13010_v29 = vpop.f32.mrf.mxu1  ;;  %11396 = vmatprep.subr.mxu1 %v10414_v23 }
 0x12a   : > { %3054 = vmatpush1.msra.mxu0 %v10412_v24  ;;  %v13015_v31 = vpop.f32.mrf.mxu0  ;;  %11397 = vmatpush3.msra.mxu1 %v10414_v23  ;;  %v10460_v23 = vld [vmem:[%s16871_s2 + $0x738] sm:$0xff] }
 0x12b   : > { %3055 = vmatprep.subr.mxu0 %v10410_v26  ;;  %v1029_v32 = vpop.f32.mrf.mxu1  ;;  %11398 = vmatprep.subr.mxu1 %v10411_v28 }
 0x12c   : > { %2834 = vmatprep.mubr.f32.mxu1 %v16842_v0  ;;  %v13023_v35 = vadd.f32 %v1029_v32, %v12924_v61  ;;  %v13025_v36 = vpop.f32.mrf.mxu0  ;;  %11386 = vmatprep.mubr.msk.f32.mxu0 %vm696_vm0, %v10345_v8  ;;  %v10394_v32 = vld [vmem:[%s12187_s20 + $0x6b] sm:$0xff] }
 0x12d   : > { %3056 = vmatpush1.msra.mxu0 %v10409_v30  ;;  %v13034_v39 = vpop.f32.mrf.mxu1  ;;  %11399 = vmatpush3.msra.mxu1 %v10411_v28  ;;  %v10458_v28 = vld [vmem:[%s16871_s2 + $0x728] sm:$0xff] }
 0x12e   : > { %11387 = vmatmul.mubr.msk.f32.gmra.mxu0 %vm696_vm0, %v10346_v20  ;;  %10379 = vmatmul.mubr.msk.f32.gmra.mxu1 %vm696_vm0, %v10347_v33  ;;  %v13044_v42 = vpop.f32.mrf.mxu0  ;;  %v10461_v20 = vld [vmem:[%s16871_s2 + $0x740] sm:$0xff] }
 0x12f   : > { %3057 = vmatprep.subr.mxu0 %v10407_v34  ;;  %v1035_v43 = vpop.f32.mrf.mxu1  ;;  %11400 = vmatprep.subr.mxu1 %v10408_v37  ;;  %v10393_v30 = vld [vmem:[%s12187_s20 + $0x63] sm:$0xff] }
 0x130   : > { %3058 = vmatpush1.msra.mxu0 %v10406_v38  ;;  %v13050_v45 = vadd.f32 %v1035_v43, %v12943_v5  ;;  %11401 = vmatpush3.msra.mxu1 %v10408_v37  ;;  %v13053_v47 = vpop.f32.mrf.mxu0  ;;  %v10454_v37 = vld [vmem:[%s16871_s2 + $0x708] sm:$0xff]  ;;  %v13161_v43 = vld [vmem:[%s12187_s20 + $0x73] sm:$0xff] }
 0x131   : > { %3059 = vmatprep.subr.mxu0 %v10404_v40  ;;  %v13055_v48 = vpop.f32.mrf.mxu1  ;;  %11402 = vmatprep.subr.mxu1 %v10405_v41 }
 0x132   : > { %2840 = vmatprep.mubr.f32.mxu1 %v16842_v0  ;;  %11389 = vmatprep.mubr.msk.f32.mxu0 %vm696_vm0, %v10347_v33  ;;  %v10455_v33 = vld [vmem:[%s16871_s2 + $0x710] sm:$0xff] }
 0x133   : > { %3060 = vmatpush1.msra.mxu0 %v10403_v44  ;;  %v1041_v52 = vpop.f32.mrf.mxu1  ;;  %11403 = vmatpush3.msra.mxu1 %v10405_v41  ;;  %v13072_v54 = vpop.f32.mrf.mxu0  ;;  %v10452_v41 = vld [vmem:[%s16871_s2 + $0x6f8] sm:$0xff] }
 0x134   : > { %11390 = vmatmul.mubr.msk.f32.gmra.mxu0 %vm696_vm0, %v10348_v46  ;;  %v13075_v55 = vadd.f32 %v1041_v52, %v12968_v14  ;;  %10380 = vmatmul.mubr.msk.f32.gmra.mxu1 %vm696_vm0, %v10348_v46  ;;  %v10463_v14 = vld [vmem:[%s16871_s2 + $0x750] sm:$0xff]  ;;  %v10446_v52 = vld [vmem:[%s16871_s2 + $0x6c8] sm:$0xff] }
 0x135   : > { %3061 = vmatprep.subr.mxu0 %v10401_v49  ;;  %v13084_v58 = vpop.f32.mrf.mxu1  ;;  %11404 = vmatprep.subr.mxu1 %v10402_v50  ;;  %v13086_v59 = vpop.f32.mrf.mxu0 }
 0x136   : > { %3062 = vmatpush1.msra.mxu0 %v10400_v51  ;;  %11405 = vmatpush3.msra.mxu1 %v10402_v50  ;;  %v13176_v50 = vld [vmem:[%s12187_s20 + $0x7b] sm:$0xf] }
 0x137   : > { %3063 = vmatprep.subr.mxu0 %v10398_v53  ;;  %v1047_v61 = vpop.f32.mrf.mxu1  ;;  %11406 = vmatprep.subr.mxu1 %v10399_v56  ;;  %v10448_v51 = vld [vmem:[%s16871_s2 + $0x6d8] sm:$0xff] }
 0x138   : > { %3064 = vmatpush1.msra.mxu0 %v10397_v57  ;;  %v13093_v3 = vpop.f32.mrf.mxu0  ;;  %v13096_v5 = vadd.f32 %v1047_v61, %v12989_v22  ;;  %3097 = vmatprep.mubr.f32.mxu0 %v16842_v0  ;;  %v13200_v61 = vld [vmem:[%s12187_s20 + $0x44] sm:$0xff] }
 0x139   : > { %11407 = vmatpush3.msra.mxu1 %v10399_v56  ;;  %v13102_v8 = vpop.f32.mrf.mxu1  ;;  %11408 = vmatprep.mubr.msk.f32.mxu1 %vm696_vm0, %v10389_v60  ;;  %v10445_v56 = vld [vmem:[%s16871_s2 + $0x6c0] sm:$0xff] }
 0x13a   : > { %10421 = vmatmul.mubr.msk.f32.vlgmr.msra.gmra.mxu0 %vm696_vm0, %v10389_v60  ;;  %v13110_v13 = vpop.f32.mrf.mxu0  ;;  %11409 = vmatmul.mubr.msk.f32.vlgmr.msra.gmra.mxu1 %vm696_vm0, %v10390_v62 }
 0x13b   : > { %3348 = vmatprep.subr.mxu1 %v10467_v1  ;;  %v1053_v15 = vpop.f32.mrf.mxu1  ;;  %3103 = vmatprep.mubr.f32.mxu0 %v16842_v0 }
 0x13c   : > { %3349 = vmatpush1.msra.mxu1 %v10466_v6  ;;  %v13122_v21 = vadd.f32 %v1053_v15, %v13015_v31  ;;  %v11214_v22 = vpop.f32.mrf.mxu0  ;;  %11411 = vmatprep.mubr.msk.f32.mxu1 %vm696_vm0, %v10391_v12  ;;  %v10462_v15 = vld [vmem:[%s16871_s2 + $0x748] sm:$0xff] }
 0x13d   : > { %3350 = vmatprep.subr.mxu1 %v10464_v10  ;;  %v13129_v24 = vadd.f32 %v11214_v22, %v12930_v63  ;;  %v13131_v26 = vpop.f32.mrf.mxu1  ;;  %v10457_v63 = vld [vmem:[%s16871_s2 + $0x720] sm:$0xff] }
 0x13e   : > { %3351 = vmatpush1.msra.mxu1 %v10463_v14  ;;  %10422 = vmatmul.mubr.msk.f32.gmra.mxu0 %vm696_vm0, %v10390_v62  ;;  %v13138_v31 = vpop.f32.mrf.mxu0  ;;  %v10468_v62 = vld [vmem:[%s16871_s2 + $0x778] sm:$0xff]  ;;  %v10465_v10 = vld [vmem:[%s16871_s2 + $0x760] sm:$0xff] }
 0x13f   : > { %11412 = vmatmul.mubr.msk.f32.gmra.mxu1 %vm696_vm0, %v10392_v17  ;;  %3352 = vmatprep.subr.mxu1 %v10461_v20 }
 0x140   : > { %3353 = vmatpush1.msra.mxu1 %v10460_v23  ;;  %3109 = vmatprep.mubr.f32.mxu0 %v16842_v0  ;;  %v11217_v34 = vpop.f32.mrf.mxu0  ;;  %v1059_v38 = vpop.f32.mrf.mxu1 }
 0x141   : > { %3354 = vmatprep.subr.mxu1 %v10458_v28  ;;  %11414 = vmatprep.mubr.msk.f32.mxu1 %vm696_vm0, %v10393_v30  ;;  %v13154_v40 = vadd.f32 %v11217_v34, %v12949_v7  ;;  %v13164_v44 = vadd.f32 %v1059_v38, %v13044_v42  ;;  %v10451_v7 = vld [vmem:[%s16871_s2 + $0x6f0] sm:$0xff]  ;;  %v10449_v42 = vld [vmem:[%s16871_s2 + $0x6e0] sm:$0xff] }
 0x142   : > { %3355 = vmatpush1.msra.mxu1 %v10457_v63  ;;  %10423 = vmatmul.mubr.msk.f32.gmra.mxu0 %vm696_vm0, %v10391_v12  ;;  %v13166_v46 = vpop.f32.mrf.mxu0  ;;  %v13172_v49 = vpop.f32.mrf.mxu1  ;;  %v13224_v12 = vld [vmem:[%s12187_s20 + $0x4c] sm:$0xff]  ;;  %v10440_v38 = vld [vmem:[%s12187_s20 + $0x5c] sm:$0xff] }
 0x143   : > { %11415 = vmatmul.mubr.msk.f32.gmra.mxu1 %vm696_vm0, %v10394_v32  ;;  %3356 = vmatprep.subr.mxu1 %v10455_v33  ;;  %v10459_v28 = vld [vmem:[%s16871_s2 + $0x730] sm:$0xff]  ;;  %v10453_v33 = vld [vmem:[%s16871_s2 + $0x700] sm:$0xff] }
 0x144   : > { %3357 = vmatpush1.msra.mxu1 %v10454_v37  ;;  %3115 = vmatprep.mubr.f32.mxu0 %v16842_v0 }
 0x145   : > { %3358 = vmatprep.subr.mxu1 %v10452_v41  ;;  %11417 = vmatprep.mubr.msk.f32.mxu1 %vm696_vm0, %v13161_v43 }
 0x146   : > { %3359 = vmatpush1.msra.mxu1 %v10451_v7  ;;  %10424 = vmatmul.mubr.msk.f32.gmra.mxu0 %vm696_vm0, %v10392_v17  ;;  %v11220_v53 = vpop.f32.mrf.mxu0  ;;  %v1065_v57 = vpop.f32.mrf.mxu1 }
 0x147   : > { %11418 = vmatmul.mubr.msk.f32.gmra.mxu1 %vm696_vm0, %v13176_v50  ;;  %3360 = vmatprep.subr.mxu1 %v10449_v42  ;;  %v13196_v60 = vadd.f32 %v11220_v53, %v12974_v16  ;;  %v13206_v1 = vadd.f32 %v1065_v57, %v13072_v54  ;;  %v10516_v54 = vld [vmem:[%s16871_s2 + $0x838] sm:$0xff]  ;;  %v10441_v53 = vld [vmem:[%s12187_s20 + $0x64] sm:$0xff] }
 0x148   : > { %3361 = vmatpush1.msra.mxu1 %v10448_v51  ;;  %3121 = vmatprep.mubr.f32.mxu0 %v16842_v0  ;;  %v13208_v6 = vpop.f32.mrf.mxu0  ;;  %v13211_v16 = vpop.f32.mrf.mxu1 }
 0x149   : > { %3362 = vmatprep.subr.mxu1 %v10446_v52  ;;  %3396 = vmatprep.mubr.f32.mxu1 %v16842_v0 }
 0x14a   : > { %3363 = vmatpush1.msra.mxu1 %v10445_v56  ;;  %10425 = vmatmul.mubr.msk.f32.gmra.mxu0 %vm696_vm0, %v10393_v30  ;;  %v1153_v56 = vadd.f32 %v13166_v46, %v12959_v11  ;;  %v10514_v11 = vld [vmem:[%s16871_s2 + $0x828] sm:$0xff] }
 0x14b   : > { %10469 = vmatmul.mubr.msk.f32.vlgmr.msra.gmra.mxu1 %vm696_vm0, %v13200_v61  ;;  %11420 = vmatprep.subr.mxu0 %v10468_v62 }
 0x14c   : > { %11421 = vmatpush3.msra.mxu0 %v10468_v62  ;;  %3127 = vmatprep.mubr.f32.mxu0 %v16842_v0  ;;  %v11223_v14 = vpop.f32.mrf.mxu0  ;;  %v1071_v17 = vpop.f32.mrf.mxu1 }
 0x14d   : > { %11422 = vmatprep.subr.mxu0 %v10465_v10  ;;  %3402 = vmatprep.mubr.f32.mxu1 %v16842_v0  ;;  %v13231_v20 = vadd.f32 %v11223_v14, %v12998_v25  ;;  %v13234_v22 = vadd.f32 %v1071_v17, %v13093_v3  ;;  %v13248_v25 = vld [vmem:[%s12187_s20 + $0x54] sm:$0xff] }
 0x14e   : > { %11423 = vmatpush3.msra.mxu0 %v10465_v10  ;;  %11448 = vmatprep.subr.mxu1 %v10516_v54  ;;  %v13236_v23 = vpop.f32.mrf.mxu0  ;;  %v13244_v30 = vpop.f32.mrf.mxu1  ;;  %v10456_v3 = vld [vmem:[%s16871_s2 + $0x718] sm:$0xff]  ;;  %v10511_v14 = vld [vmem:[%s16871_s2 + $0x810] sm:$0xff] }
 0x14f   : > { %10426 = vmatmul.mubr.msk.f32.gmra.mxu0 %vm696_vm0, %v10394_v32  ;;  %10470 = vmatmul.mubr.msk.f32.gmra.mxu1 %vm696_vm0, %v13224_v12  ;;  %v1032_v32 = vadd.f32 %v13034_v39, %v12934_v2  ;;  %v1143_v2 = vadd.f32 %v13138_v31, %v12940_v4  ;;  %v10447_v31 = vld [vmem:[%s16871_s2 + $0x6d0] sm:$0xff]  ;;  %v10512_v10 = vld [vmem:[%s16871_s2 + $0x818] sm:$0xff] }
 0x150   : > { %11424 = vmatprep.subr.mxu0 %v10462_v15  ;;  %3133 = vmatprep.mubr.f32.mxu0 %v16842_v0 }
 0x151   : > { %11425 = vmatpush3.msra.mxu0 %v10462_v15  ;;  %3408 = vmatprep.mubr.f32.mxu1 %v16842_v0 }
 0x152   : > { %11426 = vmatprep.subr.mxu0 %v10459_v28  ;;  %11449 = vmatpush3.msra.mxu1 %v10516_v54  ;;  %v1304_v63 = vpop.f32.mrf.mxu0  ;;  %v11242_v37 = vpop.f32.mrf.mxu1 }
 0x153   : > { %11427 = vmatpush3.msra.mxu0 %v10459_v28  ;;  %10471 = vmatmul.mubr.msk.f32.gmra.mxu1 %vm696_vm0, %v13248_v25  ;;  %v13262_v34 = vadd.f32 %v1304_v63, %v13023_v35  ;;  %v13270_v39 = vadd.f32 %v11242_v37, %v13129_v24  ;;  %v10450_v35 = vld [vmem:[%s16871_s2 + $0x6e8] sm:$0xff]  ;;  %v1038_v24 = vadd.f32 %v13055_v48, %v12953_v9  ;;  %v10508_v63 = vld [vmem:[%s16871_s2 + $0x7f8] sm:$0xff] }
 0x154   : > { %10427 = vmatmul.mubr.msk.f32.gmra.mxu0 %vm696_vm0, %v13161_v43  ;;  %11428 = vmatprep.subr.mxu0 %v10456_v3  ;;  %v1306_v41 = vpop.f32.mrf.mxu0  ;;  %v1417_v43 = vpop.f32.mrf.mxu1 }
 0x155   : > { %11429 = vmatpush3.msra.mxu0 %v10456_v3  ;;  %3139 = vmatprep.mubr.f32.mxu0 %v16842_v0  ;;  %v13276_v7 = vadd.f32 %v1306_v41, %v1032_v32  ;;  %v13279_v42 = vadd.f32 %v1417_v43, %v1143_v2 }
 0x156   : > { %11430 = vmatprep.subr.mxu0 %v10453_v33  ;;  %3414 = vmatprep.mubr.f32.mxu1 %v16842_v0  ;;  %v1310_v4 = vpop.f32.mrf.mxu0 }
 0x157   : > { %11431 = vmatpush3.msra.mxu0 %v10453_v33  ;;  %10472 = vmatmul.mubr.msk.f32.gmra.mxu1 %vm696_vm0, %v10440_v38  ;;  %v13288_v51 = vadd.f32 %v1310_v4, %v13050_v45  ;;  %v11245_v52 = vpop.f32.mrf.mxu1  ;;  %v10515_v45 = vld [vmem:[%s16871_s2 + $0x830] sm:$0xff] }
 0x158   : > { %10428 = vmatmul.mubr.msk.f32.gmra.mxu0 %vm696_vm0, %v13176_v50  ;;  %11432 = vmatprep.subr.mxu0 %v10450_v35  ;;  %v13296_v9 = vadd.f32 %v11245_v52, %v13154_v40  ;;  %v1312_v48 = vpop.f32.mrf.mxu0  ;;  %v10513_v40 = vld [vmem:[%s16871_s2 + $0x820] sm:$0xff]  ;;  %v10443_v4 = vld [vmem:[%s12187_s20 + $0x74] sm:$0xff] }
 0x159   : > { %11433 = vmatpush3.msra.mxu0 %v10450_v35  ;;  %3420 = vmatprep.mubr.f32.mxu1 %v16842_v0  ;;  %v13302_v57 = vadd.f32 %v1312_v48, %v1038_v24  ;;  %v1427_v62 = vpop.f32.mrf.mxu1  ;;  %v10503_v24 = vld [vmem:[%s16871_s2 + $0x7d0] sm:$0xff] }
 0x15a   : > { %11434 = vmatprep.subr.mxu0 %v10447_v31  ;;  %11436 = vmatprep.mubr.msk.f32.mxu0 %vm696_vm0, %v13200_v61  ;;  %v13312_v46 = vadd.f32 %v1427_v62, %v1153_v56  ;;  %v1316_v50 = vpop.f32.mrf.mxu0  ;;  %v10502_v56 = vld [vmem:[%s16871_s2 + $0x7c8] sm:$0xff] }
 0x15b   : > { %11435 = vmatpush3.msra.mxu0 %v10447_v31  ;;  %10473 = vmatmul.mubr.msk.f32.gmra.mxu1 %vm696_vm0, %v10441_v53  ;;  %v13319_v61 = vadd.f32 %v1316_v50, %v13075_v55  ;;  %v11248_v54 = vpop.f32.mrf.mxu1  ;;  %v10442_v55 = vld [vmem:[%s12187_s20 + $0x6c] sm:$0xff] }
 0x15c   : > { %11437 = vmatmul.mubr.msk.f32.vlgmr.msra.gmra.mxu0 %vm696_vm0, %v13224_v12  ;;  %3648 = vmatprep.subr.mxu0 %v10515_v45  ;;  %v13327_v15 = vadd.f32 %v11248_v54, %v13196_v60  ;;  %v13329_v17 = vpop.f32.mrf.mxu0  ;;  %v10509_v12 = vld [vmem:[%s16871_s2 + $0x800] sm:$0xff]  ;;  %v10510_v60 = vld [vmem:[%s16871_s2 + $0x808] sm:$0xff] }
 0x15d   : > { %3649 = vmatpush1.msra.mxu0 %v10514_v11  ;;  %11450 = vmatprep.subr.mxu1 %v10513_v40  ;;  %v13331_v28 = vpop.f32.mrf.mxu1  ;;  %v10499_v11 = vld [vmem:[%s16871_s2 + $0x7b0] sm:$0xff] }
 0x15e   : > { %3650 = vmatprep.subr.mxu0 %v10512_v10  ;;  %3426 = vmatprep.mubr.f32.mxu1 %v16842_v0  ;;  %v1322_v3 = vpop.f32.mrf.mxu0  ;;  %v10444_v10 = vld [vmem:[%s12187_s20 + $0x7c] sm:$0xf] }
 0x15f   : > { %11439 = vmatprep.mubr.msk.f32.mxu0 %vm696_vm0, %v13248_v25  ;;  %3651 = vmatpush1.msra.mxu0 %v10511_v14  ;;  %v13347_v32 = vadd.f32 %v1322_v3, %v13096_v5  ;;  %v11251_v33 = vpop.f32.mrf.mxu1  ;;  %v10506_v25 = vld [vmem:[%s16871_s2 + $0x7e8] sm:$0xff]  ;;  %v10507_v5 = vld [vmem:[%s16871_s2 + $0x7f0] sm:$0xff] }
 0x160   : > { %11451 = vmatpush3.msra.mxu1 %v10513_v40  ;;  %11440 = vmatmul.mubr.msk.f32.gmra.mxu0 %vm696_vm0, %v10440_v38  ;;  %v13354_v37 = vadd.f32 %v11251_v33, %v13231_v20  ;;  %v13356_v2 = vpop.f32.mrf.mxu0  ;;  %v10505_v38 = vld [vmem:[%s16871_s2 + $0x7e0] sm:$0xff]  ;;  %v10494_v3 = vld [vmem:[%s16871_s2 + $0x788] sm:$0xff]  ;;  %v10495_v33 = vld [vmem:[%s16871_s2 + $0x790] sm:$0xff] }
 0x161   : > { %10474 = vmatmul.mubr.msk.f32.gmra.mxu1 %vm696_vm0, %v10442_v55  ;;  %3652 = vmatprep.subr.mxu0 %v10509_v12  ;;  %v13362_v41 = vpop.f32.mrf.mxu1 }
 0x162   : > { %11452 = vmatprep.subr.mxu1 %v10510_v60  ;;  %3653 = vmatpush1.msra.mxu0 %v10508_v63  ;;  %v1328_v20 = vpop.f32.mrf.mxu0 }
 0x163   : > { %11453 = vmatpush3.msra.mxu1 %v10510_v60  ;;  %3654 = vmatprep.subr.mxu0 %v10506_v25  ;;  %v13368_v35 = vadd.f32 %v1328_v20, %v13122_v21  ;;  %v1603_v43 = vpop.f32.mrf.mxu1  ;;  %v10504_v21 = vld [vmem:[%s16871_s2 + $0x7d8] sm:$0xff]  ;;  %v10493_v25 = vld [vmem:[%s16871_s2 + $0x780] sm:$0xff] }
 0x164   : > { %11454 = vmatprep.subr.mxu1 %v10507_v5  ;;  %3432 = vmatprep.mubr.f32.mxu1 %v16842_v0  ;;  %v13376_v31 = vadd.f32 %v1603_v43, %v13262_v34  ;;  %v13378_v52 = vpop.f32.mrf.mxu0  ;;  %v10500_v34 = vld [vmem:[%s16871_s2 + $0x7b8] sm:$0xff]  ;;  %v10485_v20 = vld [vmem:[%s12187_s20 + $0x80] sm:$0xff] }
 0x165   : > { %11442 = vmatprep.mubr.msk.f32.mxu0 %vm696_vm0, %v10441_v53  ;;  %3655 = vmatpush1.msra.mxu0 %v10505_v38  ;;  %v13387_v48 = vpop.f32.mrf.mxu1  ;;  %v10501_v53 = vld [vmem:[%s16871_s2 + $0x7c0] sm:$0xff] }
 0x166   : > { %11455 = vmatpush3.msra.mxu1 %v10507_v5  ;;  %11443 = vmatmul.mubr.msk.f32.gmra.mxu0 %vm696_vm0, %v10442_v55  ;;  %v1334_v45 = vpop.f32.mrf.mxu0  ;;  %v10497_v55 = vld [vmem:[%s16871_s2 + $0x7a0] sm:$0xff] }
 0x167   : > { %10475 = vmatmul.mubr.msk.f32.gmra.mxu1 %vm696_vm0, %v10443_v4  ;;  %3656 = vmatprep.subr.mxu0 %v10503_v24  ;;  %v1609_v62 = vpop.f32.mrf.mxu1  ;;  %v13401_v40 = vadd.f32 %v1334_v45, %v13164_v44  ;;  %v10498_v44 = vld [vmem:[%s16871_s2 + $0x7a8] sm:$0xff]  ;;  %v10563_v24 = vld [vmem:[%s16871_s2 + $0x8f0] sm:$0xff] }
 0x168   : > { %11456 = vmatprep.subr.mxu1 %v10504_v21  ;;  %3657 = vmatpush1.msra.mxu0 %v10502_v56  ;;  %v13404_v50 = vadd.f32 %v1609_v62, %v13288_v51  ;;  %v13407_v54 = vpop.f32.mrf.mxu0  ;;  %v10496_v51 = vld [vmem:[%s16871_s2 + $0x798] sm:$0xff]  ;;  %v10562_v56 = vld [vmem:[%s16871_s2 + $0x8e8] sm:$0xff]  ;;  %v10487_v45 = vld [vmem:[%s12187_s20 + $0x90] sm:$0xff] }
 0x169   : > { %11457 = vmatpush3.msra.mxu1 %v10504_v21  ;;  %3658 = vmatprep.subr.mxu0 %v10500_v34  ;;  %v13409_v14 = vpop.f32.mrf.mxu1 }
 0x16a   : > { %11458 = vmatprep.subr.mxu1 %v10501_v53  ;;  %3438 = vmatprep.mubr.f32.mxu1 %v16842_v0 }
 0x16b   : > { %11445 = vmatprep.mubr.msk.f32.mxu0 %vm696_vm0, %v10443_v4  ;;  %3659 = vmatpush1.msra.mxu0 %v10499_v11  ;;  %v1615_v12 = vpop.f32.mrf.mxu1  ;;  %v1340_v60 = vpop.f32.mrf.mxu0  ;;  %v10486_v4 = vld [vmem:[%s12187_s20 + $0x88] sm:$0xff] }
 0x16c   : > { %11459 = vmatpush3.msra.mxu1 %v10501_v53  ;;  %11446 = vmatmul.mubr.msk.f32.gmra.mxu0 %vm696_vm0, %v10444_v10  ;;  %v13427_v63 = vadd.f32 %v1615_v12, %v13319_v61  ;;  %v13437_v5 = vadd.f32 %v1340_v60, %v13206_v1  ;;  %v10556_v12 = vld [vmem:[%s16871_s2 + $0x8b8] sm:$0xff] }
 0x16d   : > { %10476 = vmatmul.mubr.msk.f32.gmra.mxu1 %vm696_vm0, %v10444_v10  ;;  %3660 = vmatprep.subr.mxu0 %v10497_v55  ;;  %v13439_v38 = vpop.f32.mrf.mxu1  ;;  %v13441_v61 = vpop.f32.mrf.mxu0  ;;  %v10488_v10 = vld [vmem:[%s12187_s20 + $0x98] sm:$0xff]  ;;  %v10557_v55 = vld [vmem:[%s16871_s2 + $0x8c0] sm:$0xff] }
 0x16e   : > { %11460 = vmatprep.subr.mxu1 %v10498_v44  ;;  %3661 = vmatpush1.msra.mxu0 %v10496_v51 }
 0x16f   : > { %11461 = vmatpush3.msra.mxu1 %v10498_v44  ;;  %3662 = vmatprep.subr.mxu0 %v10494_v3  ;;  %v1621_v43 = vpop.f32.mrf.mxu1 }
 0x170   : > { %11462 = vmatprep.subr.mxu1 %v10495_v33  ;;  %3663 = vmatpush1.msra.mxu0 %v10493_v25  ;;  %v1346_v1 = vpop.f32.mrf.mxu0  ;;  %v13449_v21 = vadd.f32 %v1621_v43, %v13347_v32  ;;  %v10560_v32 = vld [vmem:[%s16871_s2 + $0x8d8] sm:$0xff]  ;;  %v10551_v43 = vld [vmem:[%s16871_s2 + $0x890] sm:$0xff] }
 0x171   : > { %3696 = vmatprep.mubr.f32.mxu0 %v16842_v0  ;;  %11463 = vmatpush3.msra.mxu1 %v10495_v33  ;;  %v13456_v34 = vadd.f32 %v1346_v1, %v13234_v22  ;;  %v13458_v53 = vpop.f32.mrf.mxu1  ;;  %v10559_v22 = vld [vmem:[%s16871_s2 + $0x8d0] sm:$0xff]  ;;  %v10489_v33 = vld [vmem:[%s12187_s20 + $0xa0] sm:$0xff] }
 0x172   : > { %11464 = vmatprep.mubr.msk.f32.mxu1 %vm696_vm0, %v10485_v20  ;;  %10517 = vmatmul.mubr.msk.f32.vlgmr.msra.gmra.mxu0 %vm696_vm0, %v10485_v20  ;;  %v13466_v62 = vpop.f32.mrf.mxu0  ;;  %v13502_v20 = vld [vmem:[%s12187_s20 + $0xa8] sm:$0xff] }
 0x173   : > { %11465 = vmatmul.mubr.msk.f32.vlgmr.msra.gmra.mxu1 %vm696_vm0, %v10486_v4  ;;  %3947 = vmatprep.subr.mxu1 %v10563_v24  ;;  %v1627_v11 = vpop.f32.mrf.mxu1  ;;  %v10550_v24 = vld [vmem:[%s16871_s2 + $0x888] sm:$0xff] }
 0x174   : > { %3948 = vmatpush1.msra.mxu1 %v10562_v56  ;;  %3702 = vmatprep.mubr.f32.mxu0 %v16842_v0  ;;  %v13478_v44 = vadd.f32 %v1627_v11, %v13368_v35  ;;  %v11270_v51 = vpop.f32.mrf.mxu0  ;;  %v10554_v35 = vld [vmem:[%s16871_s2 + $0x8a8] sm:$0xff] }
 0x175   : > { %3949 = vmatprep.subr.mxu1 %v10560_v32  ;;  %11467 = vmatprep.mubr.msk.f32.mxu1 %vm696_vm0, %v10487_v45  ;;  %v13485_v3 = vadd.f32 %v11270_v51, %v13270_v39  ;;  %v13487_v60 = vpop.f32.mrf.mxu1  ;;  %v10553_v39 = vld [vmem:[%s16871_s2 + $0x8a0] sm:$0xff]  ;;  %v10548_v32 = vld [vmem:[%s16871_s2 + $0x878] sm:$0xff] }
 0x176   : > { %3950 = vmatpush1.msra.mxu1 %v10559_v22  ;;  %10518 = vmatmul.mubr.msk.f32.gmra.mxu0 %vm696_vm0, %v10486_v4  ;;  %v13494_v25 = vpop.f32.mrf.mxu0  ;;  %v13519_v22 = vld [vmem:[%s12187_s20 + $0xb0] sm:$0xff]  ;;  %v13535_v51 = vld [vmem:[%s12187_s20 + $0xb8] sm:$0xf] }
 0x177   : > { %11468 = vmatmul.mubr.msk.f32.gmra.mxu1 %vm696_vm0, %v10488_v10  ;;  %3951 = vmatprep.subr.mxu1 %v10557_v55 }
 0x178   : > { %3952 = vmatpush1.msra.mxu1 %v10556_v12  ;;  %3708 = vmatprep.mubr.f32.mxu0 %v16842_v0  ;;  %v11273_v4 = vpop.f32.mrf.mxu0  ;;  %v1633_v1 = vpop.f32.mrf.mxu1  ;;  %v10544_v12 = vld [vmem:[%s16871_s2 + $0x858] sm:$0xff] }
 0x179   : > { %3953 = vmatprep.subr.mxu1 %v10554_v35  ;;  %11470 = vmatprep.mubr.msk.f32.mxu1 %vm696_vm0, %v10489_v33  ;;  %v13512_v56 = vadd.f32 %v11273_v4, %v13296_v9  ;;  %v13522_v11 = vadd.f32 %v1633_v1, %v13401_v40  ;;  %v10547_v9 = vld [vmem:[%s16871_s2 + $0x870] sm:$0xff]  ;;  %v10545_v40 = vld [vmem:[%s16871_s2 + $0x860] sm:$0xff]  ;;  %v10542_v35 = vld [vmem:[%s16871_s2 + $0x848] sm:$0xff] }
 0x17a   : > { %3954 = vmatpush1.msra.mxu1 %v10553_v39  ;;  %10519 = vmatmul.mubr.msk.f32.gmra.mxu0 %vm696_vm0, %v10487_v45  ;;  %v13524_v55 = vpop.f32.mrf.mxu0  ;;  %v13531_v45 = vpop.f32.mrf.mxu1  ;;  %v10564_v1 = vld [vmem:[%s16871_s2 + $0x8f8] sm:$0xff] }
 0x17b   : > { %11471 = vmatmul.mubr.msk.f32.gmra.mxu1 %vm696_vm0, %v13502_v20  ;;  %3955 = vmatprep.subr.mxu1 %v10551_v43  ;;  %v10541_v43 = vld [vmem:[%s16871_s2 + $0x840] sm:$0xff] }
 0x17c   : > { %3956 = vmatpush1.msra.mxu1 %v10550_v24  ;;  %3714 = vmatprep.mubr.f32.mxu0 %v16842_v0 }
 0x17d   : > { %3957 = vmatprep.subr.mxu1 %v10548_v32  ;;  %11473 = vmatprep.mubr.msk.f32.mxu1 %vm696_vm0, %v13519_v22 }
 0x17e   : > { %3958 = vmatpush1.msra.mxu1 %v10547_v9  ;;  %10520 = vmatmul.mubr.msk.f32.gmra.mxu0 %vm696_vm0, %v10488_v10  ;;  %v11276_v39 = vpop.f32.mrf.mxu0  ;;  %v1639_v4 = vpop.f32.mrf.mxu1  ;;  %v13559_v10 = vld [vmem:[%s12187_s20 + $0x81] sm:$0xff] }
 0x17f   : > { %11474 = vmatmul.mubr.msk.f32.gmra.mxu1 %vm696_vm0, %v13535_v51  ;;  %3959 = vmatprep.subr.mxu1 %v10545_v40  ;;  %v13555_v24 = vadd.f32 %v11276_v39, %v13327_v15  ;;  %v13565_v32 = vadd.f32 %v1639_v4, %v13437_v5  ;;  %v10561_v40 = vld [vmem:[%s16871_s2 + $0x8e0] sm:$0xff]  ;;  %v10612_v5 = vld [vmem:[%s16871_s2 + $0x9b8] sm:$0xff]  ;;  %v10558_v39 = vld [vmem:[%s16871_s2 + $0x8c8] sm:$0xff] }
 0x180   : > { %3960 = vmatpush1.msra.mxu1 %v10544_v12  ;;  %3720 = vmatprep.mubr.f32.mxu0 %v16842_v0  ;;  %v13567_v9 = vpop.f32.mrf.mxu0  ;;  %v13570_v15 = vpop.f32.mrf.mxu1  ;;  %v1074_v12 = vadd.f32 %v13244_v30, %v13110_v13 }
 0x181   : > { %3961 = vmatprep.subr.mxu1 %v10542_v35  ;;  %3995 = vmatprep.mubr.f32.mxu1 %v16842_v0  ;;  %v13585_v35 = vld [vmem:[%s12187_s20 + $0x89] sm:$0xff] }
 0x182   : > { %3962 = vmatpush1.msra.mxu1 %v10541_v43  ;;  %10521 = vmatmul.mubr.msk.f32.gmra.mxu0 %vm696_vm0, %v10489_v33  ;;  %v1478_v13 = vadd.f32 %v13466_v62, %v1074_v12  ;;  %v13609_v62 = vld [vmem:[%s12187_s20 + $0x91] sm:$0xff]  ;;  %v1756_v12 = vadd.f32 %v13387_v48, %v13276_v7  ;;  %v1757_v7 = vadd.f32 %v13494_v25, %v13279_v42 }
 0x183   : > { %10565 = vmatmul.mubr.msk.f32.vlgmr.msra.gmra.mxu1 %vm696_vm0, %v13559_v10  ;;  %11476 = vmatprep.subr.mxu0 %v10564_v1  ;;  %v10543_v25 = vld [vmem:[%s16871_s2 + $0x850] sm:$0xff] }
 0x184   : > { %11477 = vmatpush3.msra.mxu0 %v10564_v1  ;;  %3726 = vmatprep.mubr.f32.mxu0 %v16842_v0  ;;  %v11279_v33 = vpop.f32.mrf.mxu0  ;;  %v1645_v43 = vpop.f32.mrf.mxu1 }
 0x185   : > { %11478 = vmatprep.subr.mxu0 %v10561_v40  ;;  %4001 = vmatprep.mubr.f32.mxu1 %v16842_v0  ;;  %v13592_v4 = vadd.f32 %v11279_v33, %v13354_v37  ;;  %v13596_v30 = vadd.f32 %v1645_v43, %v13456_v34  ;;  %v10555_v37 = vld [vmem:[%s16871_s2 + $0x8b0] sm:$0xff] }
 0x186   : > { %11479 = vmatpush3.msra.mxu0 %v10561_v40  ;;  %11504 = vmatprep.subr.mxu1 %v10612_v5  ;;  %v13598_v1 = vpop.f32.mrf.mxu0  ;;  %v1647_v33 = vpop.f32.mrf.mxu1 }
 0x187   : > { %10522 = vmatmul.mubr.msk.f32.gmra.mxu0 %vm696_vm0, %v13502_v20  ;;  %10566 = vmatmul.mubr.msk.f32.gmra.mxu1 %vm696_vm0, %v13585_v35  ;;  %v13611_v34 = vadd.f32 %v1647_v33, %v1478_v13  ;;  %v10552_v20 = vld [vmem:[%s16871_s2 + $0x898] sm:$0xff] }
 0x188   : > { %11480 = vmatprep.subr.mxu0 %v10558_v39  ;;  %3732 = vmatprep.mubr.f32.mxu0 %v16842_v0 }
 0x189   : > { %16873 = vst [vmem:[#allocation19_spill] sm:$0xff] %v13611_v34  ;;  %11481 = vmatpush3.msra.mxu0 %v10558_v39  ;;  %4007 = vmatprep.mubr.f32.mxu1 %v16842_v0  ;;  %v10549_v39 = vld [vmem:[%s16871_s2 + $0x880] sm:$0xff] }
 0x18a   : > { %11482 = vmatprep.subr.mxu0 %v10555_v37  ;;  %11505 = vmatpush3.msra.mxu1 %v10612_v5  ;;  %v1902_v40 = vpop.f32.mrf.mxu0  ;;  %v11298_v13 = vpop.f32.mrf.mxu1  ;;  %v10536_v5 = vld [vmem:[%s12187_s20 + $0x99] sm:$0xff] }
 0x18b   : > { %11483 = vmatpush3.msra.mxu0 %v10555_v37  ;;  %10567 = vmatmul.mubr.msk.f32.gmra.mxu1 %vm696_vm0, %v13609_v62  ;;  %v13625_v43 = vadd.f32 %v1902_v40, %v13376_v31  ;;  %v13633_v48 = vadd.f32 %v11298_v13, %v13485_v3  ;;  %v10546_v31 = vld [vmem:[%s16871_s2 + $0x868] sm:$0xff]  ;;  %v1759_v3 = vadd.f32 %v13409_v14, %v13302_v57 }
 0x18c   : > { %10523 = vmatmul.mubr.msk.f32.gmra.mxu0 %vm696_vm0, %v13519_v22  ;;  %11484 = vmatprep.subr.mxu0 %v10552_v20  ;;  %v1904_v37 = vpop.f32.mrf.mxu0  ;;  %v2015_v22 = vpop.f32.mrf.mxu1  ;;  %v10537_v13 = vld [vmem:[%s12187_s20 + $0xa1] sm:$0xff] }
 0x18d   : > { %11485 = vmatpush3.msra.mxu0 %v10552_v20  ;;  %3738 = vmatprep.mubr.f32.mxu0 %v16842_v0  ;;  %v13639_v33 = vadd.f32 %v1904_v37, %v1756_v12  ;;  %v13642_v40 = vadd.f32 %v2015_v22, %v1757_v7  ;;  %v1763_v7 = vadd.f32 %v13524_v55, %v13312_v46  ;;  %v10610_v46 = vld [vmem:[%s16871_s2 + $0x9a8] sm:$0xff] }
 0x18e   : > { %11486 = vmatprep.subr.mxu0 %v10549_v39  ;;  %4013 = vmatprep.mubr.f32.mxu1 %v16842_v0  ;;  %v1908_v42 = vpop.f32.mrf.mxu0 }
 0x18f   : > { %16874 = vst [vmem:[#allocation20_spill] sm:$0xff] %v13639_v33  ;;  %16875 = vst [vmem:[#allocation21_spill] sm:$0xff] %v13642_v40  ;;  %11487 = vmatpush3.msra.mxu0 %v10549_v39  ;;  %10568 = vmatmul.mubr.msk.f32.gmra.mxu1 %vm696_vm0, %v10536_v5  ;;  %v13651_v20 = vadd.f32 %v1908_v42, %v13404_v50  ;;  %v11301_v12 = vpop.f32.mrf.mxu1  ;;  %v10611_v50 = vld [vmem:[%s16871_s2 + $0x9b0] sm:$0xff]  ;;  %v16883_v40 = vmov 0.0  }
 0x190   : > { %10524 = vmatmul.mubr.msk.f32.gmra.mxu0 %vm696_vm0, %v13535_v51  ;;  %11488 = vmatprep.subr.mxu0 %v10546_v31  ;;  %v13659_v57 = vadd.f32 %v11301_v12, %v13512_v56  ;;  %v1910_v14 = vpop.f32.mrf.mxu0  ;;  %v10609_v56 = vld [vmem:[%s16871_s2 + $0x9a0] sm:$0xff]  ;;  %v10607_v42 = vld [vmem:[%s16871_s2 + $0x990] sm:$0xff] }
 0x191   : > { %11489 = vmatpush3.msra.mxu0 %v10546_v31  ;;  %4019 = vmatprep.mubr.f32.mxu1 %v16842_v0  ;;  %v13665_v39 = vadd.f32 %v1910_v14, %v1759_v3  ;;  %v2025_v37 = vpop.f32.mrf.mxu1  ;;  %v10608_v31 = vld [vmem:[%s16871_s2 + $0x998] sm:$0xff] }
 0x192   : > { %11490 = vmatprep.subr.mxu0 %v10543_v25  ;;  %11492 = vmatprep.mubr.msk.f32.mxu0 %vm696_vm0, %v13559_v10  ;;  %v13675_v55 = vadd.f32 %v2025_v37, %v1763_v7  ;;  %v1914_v51 = vpop.f32.mrf.mxu0  ;;  %v10604_v14 = vld [vmem:[%s16871_s2 + $0x978] sm:$0xff] }
 0x193   : > { %16876 = vst [vmem:[#allocation22_spill] sm:$0xff] %v13665_v39  ;;  %11491 = vmatpush3.msra.mxu0 %v10543_v25  ;;  %10569 = vmatmul.mubr.msk.f32.gmra.mxu1 %vm696_vm0, %v10537_v13  ;;  %v13682_v10 = vadd.f32 %v1914_v51, %v13427_v63  ;;  %v11304_v22 = vpop.f32.mrf.mxu1  ;;  %v10538_v63 = vld [vmem:[%s12187_s20 + $0xa9] sm:$0xff] }
 0x194   : > { %16877 = vst [vmem:[#allocation23_spill] sm:$0xff] %v13675_v55  ;;  %11493 = vmatmul.mubr.msk.f32.vlgmr.msra.gmra.mxu0 %vm696_vm0, %v13585_v35  ;;  %4246 = vmatprep.subr.mxu0 %v10611_v50  ;;  %v13690_v3 = vadd.f32 %v11304_v22, %v13555_v24  ;;  %v13692_v25 = vpop.f32.mrf.mxu0  ;;  %v10605_v35 = vld [vmem:[%s16871_s2 + $0x980] sm:$0xff]  ;;  %v10606_v24 = vld [vmem:[%s16871_s2 + $0x988] sm:$0xff]  ;;  %v10659_v55 = vld [vmem:[%s16871_s2 + $0xa70] sm:$0xff] }
 0x195   : > { %4247 = vmatpush1.msra.mxu0 %v10610_v46  ;;  %11506 = vmatprep.subr.mxu1 %v10609_v56  ;;  %v13694_v12 = vpop.f32.mrf.mxu1  ;;  %v10651_v39 = vld [vmem:[%s16871_s2 + $0xa30] sm:$0xff] }
 0x196   : > { %4248 = vmatprep.subr.mxu0 %v10608_v31  ;;  %4025 = vmatprep.mubr.f32.mxu1 %v16842_v0  ;;  %v1920_v7 = vpop.f32.mrf.mxu0 }
 0x197   : > { %11495 = vmatprep.mubr.msk.f32.mxu0 %vm696_vm0, %v13609_v62  ;;  %4249 = vmatpush1.msra.mxu0 %v10607_v42  ;;  %v13710_v50 = vadd.f32 %v1920_v7, %v13449_v21  ;;  %v11307_v37 = vpop.f32.mrf.mxu1  ;;  %v10602_v62 = vld [vmem:[%s16871_s2 + $0x968] sm:$0xff]  ;;  %v10603_v21 = vld [vmem:[%s16871_s2 + $0x970] sm:$0xff] }
 0x198   : > { %11507 = vmatpush3.msra.mxu1 %v10609_v56  ;;  %11496 = vmatmul.mubr.msk.f32.gmra.mxu0 %vm696_vm0, %v10536_v5  ;;  %v13717_v46 = vadd.f32 %v11307_v37, %v13592_v4  ;;  %v13719_v51 = vpop.f32.mrf.mxu0  ;;  %v10601_v5 = vld [vmem:[%s16871_s2 + $0x960] sm:$0xff]  ;;  %v10539_v42 = vld [vmem:[%s12187_s20 + $0xb1] sm:$0xff] }
 0x199   : > { %16878 = vst [vmem:[#allocation24_spill] sm:$0xff] %v13719_v51  ;;  %10570 = vmatmul.mubr.msk.f32.gmra.mxu1 %vm696_vm0, %v10538_v63  ;;  %4250 = vmatprep.subr.mxu0 %v10605_v35  ;;  %v13725_v56 = vpop.f32.mrf.mxu1  ;;  %v10599_v35 = vld [vmem:[%s16871_s2 + $0x950] sm:$0xff] }
 0x19a   : > { %11508 = vmatprep.subr.mxu1 %v10606_v24  ;;  %4251 = vmatpush1.msra.mxu0 %v10604_v14  ;;  %v1926_v4 = vpop.f32.mrf.mxu0 }
 0x19b   : > { %11509 = vmatpush3.msra.mxu1 %v10606_v24  ;;  %4252 = vmatprep.subr.mxu0 %v10602_v62  ;;  %v13731_v31 = vadd.f32 %v1926_v4, %v13478_v44  ;;  %v2202_v22 = vpop.f32.mrf.mxu1  ;;  %v10600_v44 = vld [vmem:[%s16871_s2 + $0x958] sm:$0xff]  ;;  %v10598_v24 = vld [vmem:[%s16871_s2 + $0x948] sm:$0xff] }
 0x19c   : > { %11510 = vmatprep.subr.mxu1 %v10603_v21  ;;  %4031 = vmatprep.mubr.f32.mxu1 %v16842_v0  ;;  %v13739_v7 = vadd.f32 %v2202_v22, %v13625_v43  ;;  %v13741_v14 = vpop.f32.mrf.mxu0  ;;  %v10596_v43 = vld [vmem:[%s16871_s2 + $0x938] sm:$0xff] }
 0x19d   : > { %16879 = vst [vmem:[#allocation25_spill] sm:$0xff] %v13741_v14  ;;  %11498 = vmatprep.mubr.msk.f32.mxu0 %vm696_vm0, %v10537_v13  ;;  %4253 = vmatpush1.msra.mxu0 %v10601_v5  ;;  %v13750_v37 = vpop.f32.mrf.mxu1  ;;  %v10597_v13 = vld [vmem:[%s16871_s2 + $0x940] sm:$0xff]  ;;  %v10540_v22 = vld [vmem:[%s12187_s20 + $0xb9] sm:$0xf] }
 0x19e   : > { %16880 = vst [vmem:[#allocation26_spill] sm:$0xff] %v13750_v37  ;;  %11511 = vmatpush3.msra.mxu1 %v10603_v21  ;;  %11499 = vmatmul.mubr.msk.f32.gmra.mxu0 %vm696_vm0, %v10538_v63  ;;  %v1932_v62 = vpop.f32.mrf.mxu0  ;;  %v10595_v21 = vld [vmem:[%s16871_s2 + $0x930] sm:$0xff] }
 0x19f   : > { %10571 = vmatmul.mubr.msk.f32.gmra.mxu1 %vm696_vm0, %v10539_v42  ;;  %4254 = vmatprep.subr.mxu0 %v10599_v35  ;;  %v2208_v5 = vpop.f32.mrf.mxu1  ;;  %v13764_v63 = vadd.f32 %v1932_v62, %v13522_v11  ;;  %v10594_v11 = vld [vmem:[%s16871_s2 + $0x928] sm:$0xff] }
 0x1a0   : > { %11512 = vmatprep.subr.mxu1 %v10600_v44  ;;  %4255 = vmatpush1.msra.mxu0 %v10598_v24  ;;  %v13767_v4 = vadd.f32 %v2208_v5, %v13651_v20  ;;  %v13770_v35 = vpop.f32.mrf.mxu0  ;;  %v10593_v24 = vld [vmem:[%s16871_s2 + $0x920] sm:$0xff]  ;;  %v10592_v20 = vld [vmem:[%s16871_s2 + $0x918] sm:$0xff]  ;;  %v10591_v5 = vld [vmem:[%s16871_s2 + $0x910] sm:$0xff] }
 0x1a1   : > { %11513 = vmatpush3.msra.mxu1 %v10600_v44  ;;  %4256 = vmatprep.subr.mxu0 %v10596_v43  ;;  %16881 = vst [vmem:[#allocation27_spill] sm:$0xff] %v13770_v35  ;;  %v13772_v0 = vpop.f32.mrf.mxu1  ;;  %v10590_v43 = vld [vmem:[%s16871_s2 + $0x908] sm:$0xff] }
 0x1a2   : > { %16882 = vst [vmem:[#allocation28_spill] sm:$0xff] %v13772_v0  ;;  %11514 = vmatprep.subr.mxu1 %v10597_v13  ;;  %4037 = vmatprep.mubr.f32.mxu1 %v16883_v40 }
 0x1a3   : > { %11501 = vmatprep.mubr.msk.f32.mxu0 %vm696_vm0, %v10539_v42  ;;  %4257 = vmatpush1.msra.mxu0 %v10595_v21  ;;  %v2214_v44 = vpop.f32.mrf.mxu1  ;;  %v1938_v62 = vpop.f32.mrf.mxu0 }
 0x1a4   : > { %11515 = vmatpush3.msra.mxu1 %v10597_v13  ;;  %11502 = vmatmul.mubr.msk.f32.gmra.mxu0 %vm696_vm0, %v10540_v22  ;;  %v13790_v42 = vadd.f32 %v2214_v44, %v13682_v10  ;;  %v10589_v13 = vld [vmem:[%s16871_s2 + $0x900] sm:$0xff]  ;;  %v13800_v21 = vadd.f32 %v1938_v62, %v13565_v32  ;;  %v10582_v44 = vld [vmem:[%s12187_s20 + $0x8a] sm:$0xff] }
 0x1a5   : > { %10572 = vmatmul.mubr.msk.f32.gmra.mxu1 %vm696_vm0, %v10540_v22  ;;  %4258 = vmatprep.subr.mxu0 %v10593_v24  ;;  %v13802_v34 = vpop.f32.mrf.mxu1  ;;  %v13804_v10 = vpop.f32.mrf.mxu0  ;;  %v10581_v22 = vld [vmem:[%s12187_s20 + $0x82] sm:$0xff] }
 0x1a6   : > { %16884 = vst [vmem:[#allocation29_spill] sm:$0xff] %v13802_v34  ;;  %11516 = vmatprep.subr.mxu1 %v10594_v11  ;;  %4259 = vmatpush1.msra.mxu0 %v10592_v20  ;;  %16885 = vst [vmem:[#allocation30_spill] sm:$0xff] %v13804_v10  ;;  %v13880_v10 = vld [vmem:[%s12187_s20 + $0xb2] sm:$0xff] }
 0x1a7   : > { %11517 = vmatpush3.msra.mxu1 %v10594_v11  ;;  %4260 = vmatprep.subr.mxu0 %v10590_v43  ;;  %v2220_v24 = vpop.f32.mrf.mxu1  ;;  %v10658_v11 = vld [vmem:[%s16871_s2 + $0xa68] sm:$0xff] }
 0x1a8   : > { %11518 = vmatprep.subr.mxu1 %v10591_v5  ;;  %4261 = vmatpush1.msra.mxu0 %v10589_v13  ;;  %v1944_v32 = vpop.f32.mrf.mxu0  ;;  %v13812_v62 = vadd.f32 %v2220_v24, %v13710_v50  ;;  %v10656_v50 = vld [vmem:[%s16871_s2 + $0xa58] sm:$0xff] }
 0x1a9   : > { %4294 = vmatprep.mubr.f32.mxu0 %v16883_v40  ;;  %11519 = vmatpush3.msra.mxu1 %v10591_v5  ;;  %v13819_v20 = vadd.f32 %v1944_v32, %v13596_v30  ;;  %v13821_v43 = vpop.f32.mrf.mxu1  ;;  %v10583_v13 = vld [vmem:[%s12187_s20 + $0x92] sm:$0xff]  ;;  %v10653_v32 = vld [vmem:[%s16871_s2 + $0xa40] sm:$0xff] }
 0x1aa   : > { %16886 = vst [vmem:[#allocation31_spill] sm:$0xff] %v13821_v43  ;;  %11520 = vmatprep.mubr.msk.f32.mxu1 %vm696_vm0, %v10581_v22  ;;  %10613 = vmatmul.mubr.msk.f32.vlgmr.msra.gmra.mxu0 %vm696_vm0, %v10581_v22  ;;  %v13829_v24 = vpop.f32.mrf.mxu0  ;;  %v10655_v30 = vld [vmem:[%s16871_s2 + $0xa50] sm:$0xff]  ;;  %v10584_v22 = vld [vmem:[%s12187_s20 + $0x9a] sm:$0xff] }
 0x1ab   : > { %16887 = vst [vmem:[#allocation32_spill] sm:$0xff] %v13829_v24  ;;  %11521 = vmatmul.mubr.msk.f32.vlgmr.msra.gmra.mxu1 %vm696_vm0, %v10582_v44  ;;  %4545 = vmatprep.subr.mxu1 %v10659_v55  ;;  %v2226_v5 = vpop.f32.mrf.mxu1  ;;  %v10652_v55 = vld [vmem:[%s16871_s2 + $0xa38] sm:$0xff] }
 0x1ac   : > { %4546 = vmatpush1.msra.mxu1 %v10658_v11  ;;  %4300 = vmatprep.mubr.f32.mxu0 %v16883_v40  ;;  %v13841_v43 = vadd.f32 %v2226_v5, %v13731_v31  ;;  %v11326_v24 = vpop.f32.mrf.mxu0  ;;  %v10650_v31 = vld [vmem:[%s16871_s2 + $0xa28] sm:$0xff] }
 0x1ad   : > { %4547 = vmatprep.subr.mxu1 %v10656_v50  ;;  %11523 = vmatprep.mubr.msk.f32.mxu1 %vm696_vm0, %v10583_v13  ;;  %v13848_v11 = vadd.f32 %v11326_v24, %v13633_v48  ;;  %v13850_v34 = vpop.f32.mrf.mxu1  ;;  %v10585_v5 = vld [vmem:[%s12187_s20 + $0xa2] sm:$0xff]  ;;  %v10586_v24 = vld [vmem:[%s12187_s20 + $0xaa] sm:$0xff] }
 0x1ae   : > { %16888 = vst [vmem:[#allocation33_spill] sm:$0xff] %v13850_v34  ;;  %4548 = vmatpush1.msra.mxu1 %v10655_v30  ;;  %10614 = vmatmul.mubr.msk.f32.gmra.mxu0 %vm696_vm0, %v10582_v44  ;;  %v13857_v50 = vpop.f32.mrf.mxu0  ;;  %v10649_v48 = vld [vmem:[%s16871_s2 + $0xa20] sm:$0xff]  ;;  %v10647_v44 = vld [vmem:[%s16871_s2 + $0xa10] sm:$0xff] }
 0x1af   : > { %16889 = vst [vmem:[#allocation34_spill] sm:$0xff] %v13857_v50  ;;  %11524 = vmatmul.mubr.msk.f32.gmra.mxu1 %vm696_vm0, %v10584_v22  ;;  %4549 = vmatprep.subr.mxu1 %v10653_v32  ;;  %v10646_v32 = vld [vmem:[%s16871_s2 + $0xa08] sm:$0xff] }
 0x1b0   : > { %4550 = vmatpush1.msra.mxu1 %v10652_v55  ;;  %4306 = vmatprep.mubr.f32.mxu0 %v16883_v40  ;;  %v11329_v30 = vpop.f32.mrf.mxu0  ;;  %v2232_v50 = vpop.f32.mrf.mxu1  ;;  %v10644_v55 = vld [vmem:[%s16871_s2 + $0x9f8] sm:$0xff] }
 0x1b1   : > { %4551 = vmatprep.subr.mxu1 %v10650_v31  ;;  %11526 = vmatprep.mubr.msk.f32.mxu1 %vm696_vm0, %v10585_v5  ;;  %v13873_v34 = vadd.f32 %v11329_v30, %v13659_v57  ;;  %v13883_v31 = vadd.f32 %v2232_v50, %v13764_v63  ;;  %v10643_v57 = vld [vmem:[%s16871_s2 + $0x9f0] sm:$0xff]  ;;  %v10641_v63 = vld [vmem:[%s16871_s2 + $0x9e0] sm:$0xff]  ;;  %v10640_v50 = vld [vmem:[%s16871_s2 + $0x9d8] sm:$0xff] }
 0x1b2   : > { %4552 = vmatpush1.msra.mxu1 %v10649_v48  ;;  %10615 = vmatmul.mubr.msk.f32.gmra.mxu0 %vm696_vm0, %v10583_v13  ;;  %v13885_v0 = vpop.f32.mrf.mxu0  ;;  %v13891_v48 = vpop.f32.mrf.mxu1  ;;  %v13895_v13 = vld [vmem:[%s12187_s20 + $0xba] sm:$0xf] }
 0x1b3   : > { %16890 = vst [vmem:[#allocation35_spill] sm:$0xff] %v13885_v0  ;;  %11527 = vmatmul.mubr.msk.f32.gmra.mxu1 %vm696_vm0, %v10586_v24  ;;  %4553 = vmatprep.subr.mxu1 %v10647_v44  ;;  %16891 = vst [vmem:[#allocation36_spill] sm:$0xff] %v13891_v48  ;;  %v10638_v44 = vld [vmem:[%s16871_s2 + $0x9c8] sm:$0xff] }
 0x1b4   : > { %4554 = vmatpush1.msra.mxu1 %v10646_v32  ;;  %4312 = vmatprep.mubr.f32.mxu0 %v16883_v40  ;;  %v10637_v32 = vld [vmem:[%s16871_s2 + $0x9c0] sm:$0xff] }
 0x1b5   : > { %4555 = vmatprep.subr.mxu1 %v10644_v55  ;;  %11529 = vmatprep.mubr.msk.f32.mxu1 %vm696_vm0, %v13880_v10 }
 0x1b6   : > { %4556 = vmatpush1.msra.mxu1 %v10643_v57  ;;  %10616 = vmatmul.mubr.msk.f32.gmra.mxu0 %vm696_vm0, %v10584_v22  ;;  %v11332_v30 = vpop.f32.mrf.mxu0  ;;  %v2238_v55 = vpop.f32.mrf.mxu1  ;;  %v13919_v22 = vld [vmem:[%s12187_s20 + $0x83] sm:$0xff]  ;;  %v10660_v57 = vld [vmem:[%s16871_s2 + $0xa78] sm:$0xff] }
 0x1b7   : > { %11530 = vmatmul.mubr.msk.f32.gmra.mxu1 %vm696_vm0, %v13895_v13  ;;  %4557 = vmatprep.subr.mxu1 %v10641_v63  ;;  %v13915_v48 = vadd.f32 %v11332_v30, %v13690_v3  ;;  %v13925_v63 = vadd.f32 %v2238_v55, %v13800_v21  ;;  %v10708_v21 = vld [vmem:[%s16871_s2 + $0xb38] sm:$0xff] }
 0x1b8   : > { %4558 = vmatpush1.msra.mxu1 %v10640_v50  ;;  %4318 = vmatprep.mubr.f32.mxu0 %v16883_v40  ;;  %v13927_v0 = vpop.f32.mrf.mxu0  ;;  %v13930_v3 = vpop.f32.mrf.mxu1  ;;  %v10657_v50 = vld [vmem:[%s16871_s2 + $0xa60] sm:$0xff] }
 0x1b9   : > { %4559 = vmatprep.subr.mxu1 %v10638_v44  ;;  %4593 = vmatprep.mubr.f32.mxu1 %v16883_v40  ;;  %16892 = vst [vmem:[#allocation37_spill] sm:$0xff] %v13930_v3  ;;  %v13943_v44 = vld [vmem:[%s12187_s20 + $0x8b] sm:$0xff] }
 0x1ba   : > { %4560 = vmatpush1.msra.mxu1 %v10637_v32  ;;  %10617 = vmatmul.mubr.msk.f32.gmra.mxu0 %vm696_vm0, %v10585_v5  ;;  %v10654_v5 = vld [vmem:[%s16871_s2 + $0xa48] sm:$0xff] }
 0x1bb   : > { %10661 = vmatmul.mubr.msk.f32.vlgmr.msra.gmra.mxu1 %vm696_vm0, %v13919_v22  ;;  %11532 = vmatprep.subr.mxu0 %v10660_v57 }
 0x1bc   : > { %11533 = vmatpush3.msra.mxu0 %v10660_v57  ;;  %4324 = vmatprep.mubr.f32.mxu0 %v16883_v40  ;;  %v11335_v30 = vpop.f32.mrf.mxu0  ;;  %v2244_v32 = vpop.f32.mrf.mxu1 }
 0x1bd   : > { %11534 = vmatprep.subr.mxu0 %v10657_v50  ;;  %4599 = vmatprep.mubr.f32.mxu1 %v16883_v40  ;;  %v13950_v55 = vadd.f32 %v11335_v30, %v13717_v46  ;;  %v13953_v57 = vadd.f32 %v2244_v32, %v13819_v20  ;;  %v10631_v46 = vld [vmem:[%s12187_s20 + $0x93] sm:$0xff]  ;;  %v10632_v32 = vld [vmem:[%s12187_s20 + $0x9b] sm:$0xff] }
 0x1be   : > { %11535 = vmatpush3.msra.mxu0 %v10657_v50  ;;  %11560 = vmatprep.subr.mxu1 %v10708_v21  ;;  %v13955_v3 = vpop.f32.mrf.mxu0  ;;  %v13963_v35 = vpop.f32.mrf.mxu1  ;;  %v10648_v20 = vld [vmem:[%s16871_s2 + $0xa18] sm:$0xff]  ;;  %v10645_v50 = vld [vmem:[%s16871_s2 + $0xa00] sm:$0xff] }
 0x1bf   : > { %10618 = vmatmul.mubr.msk.f32.gmra.mxu0 %vm696_vm0, %v10586_v24  ;;  %10662 = vmatmul.mubr.msk.f32.gmra.mxu1 %vm696_vm0, %v13943_v44  ;;  %16893 = vst [vmem:[#allocation38_spill] sm:$0xff] %v13963_v35 }
 0x1c0   : > { %11536 = vmatprep.subr.mxu0 %v10654_v5  ;;  %4330 = vmatprep.mubr.f32.mxu0 %v16883_v40 }
 0x1c1   : > { %11537 = vmatpush3.msra.mxu0 %v10654_v5  ;;  %4605 = vmatprep.mubr.f32.mxu1 %v16883_v40 }
 0x1c2   : > { %11538 = vmatprep.subr.mxu0 %v10651_v39  ;;  %11561 = vmatpush3.msra.mxu1 %v10708_v21  ;;  %v2501_v24 = vpop.f32.mrf.mxu0  ;;  %v11354_v5 = vpop.f32.mrf.mxu1 }
 0x1c3   : > { %11539 = vmatpush3.msra.mxu0 %v10651_v39  ;;  %10663 = vmatmul.mubr.msk.f32.gmra.mxu1 %vm696_vm0, %v10631_v46  ;;  %v13976_v30 = vadd.f32 %v2501_v24, %v13739_v7  ;;  %v13982_v35 = vadd.f32 %v11354_v5, %v13848_v11  ;;  %v10642_v7 = vld [vmem:[%s16871_s2 + $0x9e8] sm:$0xff]  ;;  %v10639_v11 = vld [vmem:[%s16871_s2 + $0x9d0] sm:$0xff] }
 0x1c4   : > { %10619 = vmatmul.mubr.msk.f32.gmra.mxu0 %vm696_vm0, %v13880_v10  ;;  %11540 = vmatprep.subr.mxu0 %v10648_v20  ;;  %v13984_v39 = vpop.f32.mrf.mxu0  ;;  %v13990_v21 = vpop.f32.mrf.mxu1  ;;  %v10633_v5 = vld [vmem:[%s12187_s20 + $0xa3] sm:$0xff] }
 0x1c5   : > { %16894 = vst [vmem:[#allocation39_spill] sm:$0xff] %v13984_v39  ;;  %11541 = vmatpush3.msra.mxu0 %v10648_v20  ;;  %4336 = vmatprep.mubr.f32.mxu0 %v16883_v40  ;;  %16895 = vst [vmem:[#allocation40_spill] sm:$0xff] %v13990_v21 }
 0x1c6   : > { %11542 = vmatprep.subr.mxu0 %v10645_v50  ;;  %4611 = vmatprep.mubr.f32.mxu1 %v16883_v40  ;;  %v2507_v10 = vpop.f32.mrf.mxu0 }
 0x1c7   : > { %11543 = vmatpush3.msra.mxu0 %v10645_v50  ;;  %10664 = vmatmul.mubr.msk.f32.gmra.mxu1 %vm696_vm0, %v10632_v32  ;;  %v13998_v20 = vadd.f32 %v2507_v10, %v13767_v4  ;;  %v11357_v24 = vpop.f32.mrf.mxu1  ;;  %v10707_v50 = vld [vmem:[%s16871_s2 + $0xb30] sm:$0xff]  ;;  %v10704_v10 = vld [vmem:[%s16871_s2 + $0xb18] sm:$0xff] }
 0x1c8   : > { %10620 = vmatmul.mubr.msk.f32.gmra.mxu0 %vm696_vm0, %v13895_v13  ;;  %11544 = vmatprep.subr.mxu0 %v10642_v7  ;;  %v14004_v21 = vadd.f32 %v11357_v24, %v13873_v34  ;;  %v14006_v39 = vpop.f32.mrf.mxu0  ;;  %v10706_v34 = vld [vmem:[%s16871_s2 + $0xb28] sm:$0xff]  ;;  %v10705_v13 = vld [vmem:[%s16871_s2 + $0xb20] sm:$0xff] }
 0x1c9   : > { %16896 = vst [vmem:[#allocation41_spill] sm:$0xff] %v14006_v39  ;;  %11545 = vmatpush3.msra.mxu0 %v10642_v7  ;;  %4617 = vmatprep.mubr.f32.mxu1 %v16883_v40  ;;  %v14012_v4 = vpop.f32.mrf.mxu1  ;;  %v10703_v39 = vld [vmem:[%s16871_s2 + $0xb10] sm:$0xff] }
 0x1ca   : > { %16897 = vst [vmem:[#allocation42_spill] sm:$0xff] %v14012_v4  ;;  %11546 = vmatprep.subr.mxu0 %v10639_v11  ;;  %11548 = vmatprep.mubr.msk.f32.mxu0 %vm696_vm0, %v13919_v22  ;;  %v2513_v7 = vpop.f32.mrf.mxu0 }
 0x1cb   : > { %11547 = vmatpush3.msra.mxu0 %v10639_v11  ;;  %10665 = vmatmul.mubr.msk.f32.gmra.mxu1 %vm696_vm0, %v10633_v5  ;;  %v14027_v24 = vadd.f32 %v2513_v7, %v13790_v42  ;;  %v11360_v22 = vpop.f32.mrf.mxu1  ;;  %v10634_v42 = vld [vmem:[%s12187_s20 + $0xab] sm:$0xff] }
 0x1cc   : > { %11549 = vmatmul.mubr.msk.f32.vlgmr.msra.gmra.mxu0 %vm696_vm0, %v13943_v44  ;;  %4844 = vmatprep.subr.mxu0 %v10707_v50  ;;  %v14035_v11 = vadd.f32 %v11360_v22, %v13915_v48  ;;  %v14037_v4 = vpop.f32.mrf.mxu0  ;;  %v10701_v44 = vld [vmem:[%s16871_s2 + $0xb00] sm:$0xff]  ;;  %v10702_v48 = vld [vmem:[%s16871_s2 + $0xb08] sm:$0xff] }
 0x1cd   : > { %16898 = vst [vmem:[#allocation43_spill] sm:$0xff] %v14037_v4  ;;  %4845 = vmatpush1.msra.mxu0 %v10706_v34  ;;  %11562 = vmatprep.subr.mxu1 %v10705_v13  ;;  %v14039_v37 = vpop.f32.mrf.mxu1  ;;  %v10700_v34 = vld [vmem:[%s16871_s2 + $0xaf8] sm:$0xff] }
 0x1ce   : > { %16899 = vst [vmem:[#allocation44_spill] sm:$0xff] %v14039_v37  ;;  %4846 = vmatprep.subr.mxu0 %v10704_v10  ;;  %4623 = vmatprep.mubr.f32.mxu1 %v16883_v40  ;;  %v2519_v50 = vpop.f32.mrf.mxu0 }
 0x1cf   : > { %11551 = vmatprep.mubr.msk.f32.mxu0 %vm696_vm0, %v10631_v46  ;;  %4847 = vmatpush1.msra.mxu0 %v10703_v39  ;;  %v14054_v7 = vadd.f32 %v2519_v50, %v13812_v62  ;;  %v11363_v10 = vpop.f32.mrf.mxu1  ;;  %v10698_v46 = vld [vmem:[%s16871_s2 + $0xae8] sm:$0xff]  ;;  %v10699_v62 = vld [vmem:[%s16871_s2 + $0xaf0] sm:$0xff] }
 0x1d0   : > { %11563 = vmatpush3.msra.mxu1 %v10705_v13  ;;  %11552 = vmatmul.mubr.msk.f32.gmra.mxu0 %vm696_vm0, %v10632_v32  ;;  %v14061_v39 = vadd.f32 %v11363_v10, %v13950_v55  ;;  %v14063_v22 = vpop.f32.mrf.mxu0  ;;  %v10697_v32 = vld [vmem:[%s16871_s2 + $0xae0] sm:$0xff] }
 0x1d1   : > { %16900 = vst [vmem:[#allocation45_spill] sm:$0xff] %v14063_v22  ;;  %10666 = vmatmul.mubr.msk.f32.gmra.mxu1 %vm696_vm0, %v10634_v42  ;;  %4848 = vmatprep.subr.mxu0 %v10701_v44  ;;  %v14069_v13 = vpop.f32.mrf.mxu1  ;;  %v10635_v44 = vld [vmem:[%s12187_s20 + $0xb3] sm:$0xff] }
 0x1d2   : > { %11564 = vmatprep.subr.mxu1 %v10702_v48  ;;  %4849 = vmatpush1.msra.mxu0 %v10700_v34  ;;  %v2525_v55 = vpop.f32.mrf.mxu0  ;;  %v10695_v22 = vld [vmem:[%s16871_s2 + $0xad0] sm:$0xff] }
 0x1d3   : > { %11565 = vmatpush3.msra.mxu1 %v10702_v48  ;;  %4850 = vmatprep.subr.mxu0 %v10698_v46  ;;  %v14075_v50 = vadd.f32 %v2525_v55, %v13841_v43  ;;  %v2800_v10 = vpop.f32.mrf.mxu1  ;;  %v10696_v43 = vld [vmem:[%s16871_s2 + $0xad8] sm:$0xff]  ;;  %v10694_v48 = vld [vmem:[%s16871_s2 + $0xac8] sm:$0xff] }
 0x1d4   : > { %11566 = vmatprep.subr.mxu1 %v10699_v62  ;;  %4629 = vmatprep.mubr.f32.mxu1 %v16883_v40  ;;  %v14083_v34 = vadd.f32 %v2800_v10, %v13976_v30  ;;  %v14085_v4 = vpop.f32.mrf.mxu0  ;;  %v10692_v30 = vld [vmem:[%s16871_s2 + $0xab8] sm:$0xff] }
 0x1d5   : > { %16901 = vst [vmem:[#allocation46_spill] sm:$0xff] %v14085_v4  ;;  %11554 = vmatprep.mubr.msk.f32.mxu0 %vm696_vm0, %v10633_v5  ;;  %4851 = vmatpush1.msra.mxu0 %v10697_v32  ;;  %v14094_v46 = vpop.f32.mrf.mxu1  ;;  %v10693_v5 = vld [vmem:[%s16871_s2 + $0xac0] sm:$0xff] }
 0x1d6   : > { %16902 = vst [vmem:[#allocation47_spill] sm:$0xff] %v14094_v46  ;;  %11567 = vmatpush3.msra.mxu1 %v10699_v62  ;;  %11555 = vmatmul.mubr.msk.f32.gmra.mxu0 %vm696_vm0, %v10634_v42  ;;  %v2531_v32 = vpop.f32.mrf.mxu0  ;;  %v10691_v62 = vld [vmem:[%s16871_s2 + $0xab0] sm:$0xff] }
 0x1d7   : > { %10667 = vmatmul.mubr.msk.f32.gmra.mxu1 %vm696_vm0, %v10635_v44  ;;  %4852 = vmatprep.subr.mxu0 %v10695_v22  ;;  %v2806_v55 = vpop.f32.mrf.mxu1  ;;  %v14108_v42 = vadd.f32 %v2531_v32, %v13883_v31  ;;  %v10636_v22 = vld [vmem:[%s12187_s20 + $0xbb] sm:$0xf]  ;;  %v10690_v31 = vld [vmem:[%s16871_s2 + $0xaa8] sm:$0xff] }
 0x1d8   : > { %11568 = vmatprep.subr.mxu1 %v10696_v43  ;;  %4853 = vmatpush1.msra.mxu0 %v10694_v48  ;;  %v14111_v10 = vadd.f32 %v2806_v55, %v13998_v20  ;;  %v14114_v46 = vpop.f32.mrf.mxu0  ;;  %v10689_v48 = vld [vmem:[%s16871_s2 + $0xaa0] sm:$0xff]  ;;  %v10688_v20 = vld [vmem:[%s16871_s2 + $0xa98] sm:$0xff]  ;;  %v10687_v55 = vld [vmem:[%s16871_s2 + $0xa90] sm:$0xff] }
 0x1d9   : > { %11569 = vmatpush3.msra.mxu1 %v10696_v43  ;;  %4854 = vmatprep.subr.mxu0 %v10692_v30  ;;  %16903 = vst [vmem:[#allocation48_spill] sm:$0xff] %v14114_v46  ;;  %v14116_v4 = vpop.f32.mrf.mxu1  ;;  %v10686_v30 = vld [vmem:[%s16871_s2 + $0xa88] sm:$0xff] }
 0x1da   : > { %16904 = vst [vmem:[#allocation49_spill] sm:$0xff] %v14116_v4  ;;  %11570 = vmatprep.subr.mxu1 %v10693_v5  ;;  %4635 = vmatprep.mubr.f32.mxu1 %v16883_v40 }
 0x1db   : > { %11557 = vmatprep.mubr.msk.f32.mxu0 %vm696_vm0, %v10635_v44  ;;  %4855 = vmatpush1.msra.mxu0 %v10691_v62  ;;  %v2812_v43 = vpop.f32.mrf.mxu1  ;;  %v2537_v32 = vpop.f32.mrf.mxu0 }
 0x1dc   : > { %11571 = vmatpush3.msra.mxu1 %v10693_v5  ;;  %11558 = vmatmul.mubr.msk.f32.gmra.mxu0 %vm696_vm0, %v10636_v22  ;;  %v14134_v44 = vadd.f32 %v2812_v43, %v14027_v24  ;;  %v10685_v5 = vld [vmem:[%s16871_s2 + $0xa80] sm:$0xff]  ;;  %v2671_v62 = vadd.f32 %v2537_v32, %v13925_v63  ;;  %v10678_v43 = vld [vmem:[%s12187_s20 + $0x8c] sm:$0xff]  ;;  %v10679_v63 = vld [vmem:[%s12187_s20 + $0x94] sm:$0xff]  ;;  %s9976_s2 = scalar_lea.hbm %s17119_s27, %s10855_s19 }
 0x1dd   : > { %10668 = vmatmul.mubr.msk.f32.gmra.mxu1 %vm696_vm0, %v10636_v22  ;;  %4856 = vmatprep.subr.mxu0 %v10689_v48  ;;  %v14144_v4 = vpop.f32.mrf.mxu1  ;;  %v14146_v24 = vpop.f32.mrf.mxu0  ;;  %v10677_v22 = vld [vmem:[%s12187_s20 + $0x84] sm:$0xff] }
 0x1de   : > { %16905 = vst [vmem:[#allocation50_spill] sm:$0xff] %v14144_v4  ;;  %11572 = vmatprep.subr.mxu1 %v10690_v31  ;;  %4857 = vmatpush1.msra.mxu0 %v10688_v20  ;;  %16906 = vst [vmem:[#allocation51_spill] sm:$0xff] %v14146_v24 }
 0x1df   : > { %11573 = vmatpush3.msra.mxu1 %v10690_v31  ;;  %4858 = vmatprep.subr.mxu0 %v10686_v30  ;;  %v2818_v48 = vpop.f32.mrf.mxu1  ;;  %v10680_v30 = vld [vmem:[%s12187_s20 + $0x9c] sm:$0xff] }
 0x1e0   : > { %11574 = vmatprep.subr.mxu1 %v10687_v55  ;;  %4859 = vmatpush1.msra.mxu0 %v10685_v5  ;;  %v2543_v46 = vpop.f32.mrf.mxu0  ;;  %v14151_v37 = vadd.f32 %v2818_v48, %v14054_v7 }
 0x1e1   : > { %4892 = vmatprep.mubr.f32.mxu0 %v16883_v40  ;;  %11575 = vmatpush3.msra.mxu1 %v10687_v55  ;;  %v2674_v20 = vadd.f32 %v2543_v46, %v13953_v57  ;;  %v14156_v32 = vpop.f32.mrf.mxu1  ;;  %v10681_v55 = vld [vmem:[%s12187_s20 + $0xa4] sm:$0xff] }
 0x1e2   : > { %16907 = vst [vmem:[#allocation52_spill] sm:$0xff] %v14156_v32  ;;  %11576 = vmatprep.mubr.msk.f32.mxu1 %vm696_vm0, %v10677_v22  ;;  %10709 = vmatmul.mubr.msk.f32.vlgmr.msra.gmra.mxu0 %vm696_vm0, %v10677_v22  ;;  %v14160_v31 = vpop.f32.mrf.mxu0  ;;  %v10682_v32 = vld [vmem:[%s12187_s20 + $0xac] sm:$0xff] }
 0x1e3   : > { %16908 = vst [vmem:[#allocation53_spill] sm:$0xff] %v14160_v31  ;;  %11577 = vmatmul.mubr.msk.f32.vlgmr.msra.gmra.mxu1 %vm696_vm0, %v10678_v43  ;;  %4898 = vmatprep.mubr.f32.mxu0 %v16883_v40  ;;  %v2824_v7 = vpop.f32.mrf.mxu1 }
 0x1e4   : > { %11579 = vmatprep.mubr.msk.f32.mxu1 %vm696_vm0, %v10679_v63  ;;  %v14167_v57 = vadd.f32 %v2824_v7, %v14075_v50  ;;  %v11382_v46 = vpop.f32.mrf.mxu0  ;;  %v10683_v7 = vld [vmem:[%s12187_s20 + $0xb4] sm:$0xff] }
 0x1e5   : > { %v2957_v5 = vadd.f32 %v11382_v46, %v13982_v35  ;;  %v14171_v22 = vpop.f32.mrf.mxu1 }
 0x1e6   : > { %16909 = vst [vmem:[#allocation54_spill] sm:$0xff] %v14171_v22  ;;  %10710 = vmatmul.mubr.msk.f32.gmra.mxu0 %vm696_vm0, %v10678_v43  ;;  %v14174_v48 = vpop.f32.mrf.mxu0  ;;  %v10684_v22 = vld [vmem:[%s12187_s20 + $0xbc] sm:$0xf]  ;;  %s11923_s20 = smov [#allocation9]  }
 0x1e7   : > { %16910 = vst [vmem:[#allocation55_spill] sm:$0xff] %v14174_v48  ;;  %11580 = vmatmul.mubr.msk.f32.gmra.mxu1 %vm696_vm0, %v10680_v30  ;;  %4904 = vmatprep.mubr.f32.mxu0 %v16883_v40  ;;  %s11849_s1 = sshll.u32 %s11923_s20, 4  ;;  %s11850_s1 = int_to_ptr.vmem [resolvable:$false] %s11849_s1 }
 0x1e8   : > { %11582 = vmatprep.mubr.msk.f32.mxu1 %vm696_vm0, %v10681_v55  ;;  %v11385_v50 = vpop.f32.mrf.mxu0  ;;  %v2830_v24 = vpop.f32.mrf.mxu1  ;;  %s11851_s24 = scalar_lea.vmem %s11850_s1, 256  ;;  %p11852_p11 = scmp.lt.s32.totalorder %s9979_s21, %s11850_s1 }
 0x1e9   : > { %v2963_v31 = vadd.f32 %v11385_v50, %v14004_v21  ;;  %v2967_v35 = vadd.f32 %v2830_v24, %v14108_v42 }
 0x1ea   : > { %10711 = vmatmul.mubr.msk.f32.gmra.mxu0 %vm696_vm0, %v10679_v63  ;;  %v14184_v43 = vpop.f32.mrf.mxu0  ;;  %v14188_v46 = vpop.f32.mrf.mxu1 }
 0x1eb   : > { %16911 = vst [vmem:[#allocation56_spill] sm:$0xff] %v14184_v43  ;;  %11583 = vmatmul.mubr.msk.f32.gmra.mxu1 %vm696_vm0, %v10682_v32  ;;  %4910 = vmatprep.mubr.f32.mxu0 %v16883_v40  ;;  %16912 = vst [vmem:[#allocation57_spill] sm:$0xff] %v14188_v46 }
 0x1ec   : > { %11585 = vmatprep.mubr.msk.f32.mxu1 %vm696_vm0, %v10683_v7 }
 0x1ee   : > { %10712 = vmatmul.mubr.msk.f32.gmra.mxu0 %vm696_vm0, %v10680_v30  ;;  %v11388_v4 = vpop.f32.mrf.mxu0  ;;  %v2836_v21 = vpop.f32.mrf.mxu1 }
 0x1ef   : > { %11586 = vmatmul.mubr.msk.f32.gmra.mxu1 %vm696_vm0, %v10684_v22  ;;  %4916 = vmatprep.mubr.f32.mxu0 %v16883_v40  ;;  %v2969_v42 = vadd.f32 %v11388_v4, %v14035_v11  ;;  %v2970_v24 = vadd.f32 %v2836_v21, %v2671_v62 }
 0x1f0   : > { %v14196_v63 = vpop.f32.mrf.mxu0  ;;  %5161 = vmatprep.mubr.f32.mxu1 %v16883_v40  ;;  %v14199_v50 = vpop.f32.mrf.mxu1 }
 0x1f1   : > { %16913 = vst [vmem:[#allocation58_spill] sm:$0xff] %v14196_v63  ;;  %16914 = vst [vmem:[#allocation59_spill] sm:$0xff] %v14199_v50 }
 0x1f2   : > { %10713 = vmatmul.mubr.msk.f32.gmra.mxu0 %vm696_vm0, %v10681_v55 }
 0x1f3   : > { %4922 = vmatprep.mubr.f32.mxu0 %v16883_v40 }
 0x1f4   : > { %v11391_v30 = vpop.f32.mrf.mxu0  ;;  %v2842_v46 = vpop.f32.mrf.mxu1 }
 0x1f5   : > { %v2975_v48 = vadd.f32 %v11391_v30, %v14061_v39  ;;  %v2973_v43 = vadd.f32 %v2842_v46, %v2674_v20 }
 0x1f6   : > { %10714 = vmatmul.mubr.msk.f32.gmra.mxu0 %vm696_vm0, %v10682_v32  ;;  %v14205_v33 = vpop.f32.mrf.mxu0  ;;  %v14208_v4 = vpop.f32.mrf.mxu1 }
 0x1f7   : > { %4928 = vmatprep.mubr.f32.mxu0 %v16883_v40  ;;  %16915 = vst [vmem:[#allocation60_spill] sm:$0xff] %v14208_v4 }
 0x1fa   : > { %10715 = vmatmul.mubr.msk.f32.gmra.mxu0 %vm696_vm0, %v10683_v7  ;;  %v3099_v11 = vpop.f32.mrf.mxu0  ;;  %v11410_v55 = vpop.f32.mrf.mxu1 }
 0x1fb   : > { %4934 = vmatprep.mubr.f32.mxu0 %v16883_v40  ;;  %v3251_v62 = vadd.f32 %v3099_v11, %v14083_v34  ;;  %v3256_v21 = vadd.f32 %v11410_v55, %v2957_v5 }
 0x1fc   : > { %v14213_v50 = vpop.f32.mrf.mxu0  ;;  %v14215_v39 = vpop.f32.mrf.mxu1 }
 0x1fd   : > { %16916 = vst [vmem:[#allocation61_spill] sm:$0xff] %v14213_v50  ;;  %16917 = vst [vmem:[#allocation62_spill] sm:$0xff] %v14215_v39 }
 0x1fe   : > { %10716 = vmatmul.mubr.msk.f32.gmra.mxu0 %vm696_vm0, %v10684_v22  ;;  %v3105_v20 = vpop.f32.mrf.mxu0 }
 0x1ff   : > { %v3254_v32 = vadd.f32 %v3105_v20, %v14111_v10  ;;  %v11413_v46 = vpop.f32.mrf.mxu1 }
 0x200   : > { %v3262_v30 = vadd.f32 %v11413_v46, %v2963_v31  ;;  %v14219_v4 = vpop.f32.mrf.mxu0 }
 0x201   : > { %16918 = vst [vmem:[#allocation63_spill] sm:$0xff] %v14219_v4  ;;  %v14221_v7 = vpop.f32.mrf.mxu1 }
 0x202   : > { %16919 = vst [vmem:[#allocation64_spill] sm:$0xff] %v14221_v7  ;;  %v3111_v40 = vpop.f32.mrf.mxu0 }
 0x203   : > { %v3257_v34 = vadd.f32 %v3111_v40, %v14134_v44  ;;  %v11416_v11 = vpop.f32.mrf.mxu1 }
 0x204   : > { %v3268_v5 = vadd.f32 %v11416_v11, %v2969_v42  ;;  %v14224_v55 = vpop.f32.mrf.mxu0 }
 0x205   : > { %16920 = vst [vmem:[#allocation65_spill] sm:$0xff] %v14224_v55  ;;  %v14226_v50 = vpop.f32.mrf.mxu1 }
 0x206   : > { %16921 = vst [vmem:[#allocation66_spill] sm:$0xff] %v14226_v50  ;;  %v3117_v39 = vpop.f32.mrf.mxu0 }
 0x207   : > { %v3260_v22 = vadd.f32 %v3117_v39, %v14151_v37  ;;  %v11419_v63 = vpop.f32.mrf.mxu1 }
 0x208   : > { %v3274_v10 = vadd.f32 %v11419_v63, %v2975_v48  ;;  %v14229_v20 = vpop.f32.mrf.mxu0 }
 0x209   : > { %16922 = vst [vmem:[#allocation67_spill] sm:$0xff] %v14229_v20  ;;  %v14231_v31 = vpop.f32.mrf.mxu1 }
 0x20a   : > { %16923 = vst [vmem:[#allocation68_spill] sm:$0xff] %v14231_v31  ;;  %v3123_v46 = vpop.f32.mrf.mxu0 }
 0x20b   : > { %v3263_v4 = vadd.f32 %v3123_v46, %v14167_v57  ;;  %v3398_v7 = vpop.f32.mrf.mxu1 }
 0x20c   : > { %v3550_v40 = vadd.f32 %v3398_v7, %v3251_v62  ;;  %v14234_v44 = vpop.f32.mrf.mxu0 }
 0x20d   : > { %16924 = vst [vmem:[#allocation69_spill] sm:$0xff] %v14234_v44  ;;  %v14236_v42 = vpop.f32.mrf.mxu1 }
 0x20e   : > { %16925 = vst [vmem:[#allocation70_spill] sm:$0xff] %v14236_v42 }
 0x20f   : > { %v3129_v11 = vpop.f32.mrf.mxu0  ;;  %v3404_v55 = vpop.f32.mrf.mxu1 }
 0x210   : > { %v3266_v50 = vadd.f32 %v3129_v11, %v2967_v35  ;;  %v3553_v14 = vadd.f32 %v3404_v55, %v3254_v32 }
 0x211   : > { %v14238_v37 = vpop.f32.mrf.mxu0  ;;  %v14240_v48 = vpop.f32.mrf.mxu1 }
 0x212   : > { %16926 = vst [vmem:[#allocation71_spill] sm:$0xff] %v14238_v37  ;;  %16927 = vst [vmem:[#allocation72_spill] sm:$0xff] %v14240_v48 }
 0x213   : > { %v3410_v63 = vpop.f32.mrf.mxu1 }
 0x214   : > { %v3135_v39 = vpop.f32.mrf.mxu0  ;;  %v3556_v20 = vadd.f32 %v3410_v63, %v3257_v34 }
 0x215   : > { %v3269_v31 = vadd.f32 %v3135_v39, %v2970_v24  ;;  %v14242_v51 = vpop.f32.mrf.mxu1 }
 0x216   : > { %16928 = vst [vmem:[#allocation73_spill] sm:$0xff] %v14242_v51  ;;  %v14244_v57 = vpop.f32.mrf.mxu0 }
 0x217   : > { %16929 = vst [vmem:[#allocation74_spill] sm:$0xff] %v14244_v57  ;;  %v3416_v62 = vpop.f32.mrf.mxu1 }
 0x218   : > { %v3141_v7 = vpop.f32.mrf.mxu0  ;;  %v3559_v46 = vadd.f32 %v3416_v62, %v3260_v22 }
 0x219   : > { %v3272_v42 = vadd.f32 %v3141_v7, %v2973_v43  ;;  %v14246_v44 = vpop.f32.mrf.mxu1 }
 0x21a   : > { %16930 = vst [vmem:[#allocation75_spill] sm:$0xff] %v14246_v44  ;;  %v14248_v35 = vpop.f32.mrf.mxu0 }
 0x21b   : > { %16931 = vst [vmem:[#allocation76_spill] sm:$0xff] %v14248_v35  ;;  %v3422_v32 = vpop.f32.mrf.mxu1 }
 0x21c   : > { %v3562_v55 = vadd.f32 %v3422_v32, %v3263_v4  ;;  %v11438_v11 = vpop.f32.mrf.mxu0 }
 0x21d   : > { %v3555_v48 = vadd.f32 %v11438_v11, %v3256_v21  ;;  %v14250_v37 = vpop.f32.mrf.mxu1 }
 0x21e   : > { %16932 = vst [vmem:[#allocation77_spill] sm:$0xff] %v14250_v37  ;;  %v14252_v34 = vpop.f32.mrf.mxu0 }
 0x21f   : > { %16933 = vst [vmem:[#allocation78_spill] sm:$0xff] %v14252_v34 }
 0x220   : > { %v11441_v24 = vpop.f32.mrf.mxu0 }
 0x221   : > { %v3428_v63 = vpop.f32.mrf.mxu1  ;;  %v3561_v39 = vadd.f32 %v11441_v24, %v3262_v30 }
 0x222   : > { %v3565_v51 = vadd.f32 %v3428_v63, %v3266_v50  ;;  %v14254_v57 = vpop.f32.mrf.mxu0 }
 0x223   : > { %16934 = vst [vmem:[#allocation79_spill] sm:$0xff] %v14254_v57  ;;  %v14256_v22 = vpop.f32.mrf.mxu1 }
 0x224   : > { %16935 = vst [vmem:[#allocation80_spill] sm:$0xff] %v14256_v22 }
 0x226   : > { %v11444_v43 = vpop.f32.mrf.mxu0 }
 0x227   : > { %v3434_v62 = vpop.f32.mrf.mxu1  ;;  %v3567_v7 = vadd.f32 %v11444_v43, %v3268_v5 }
 0x228   : > { %v3568_v44 = vadd.f32 %v3434_v62, %v3269_v31  ;;  %v14258_v35 = vpop.f32.mrf.mxu0 }
 0x229   : > { %16936 = vst [vmem:[#allocation81_spill] sm:$0xff] %v14258_v35  ;;  %v14260_v4 = vpop.f32.mrf.mxu1 }
 0x22a   : > { %16937 = vst [vmem:[#allocation82_spill] sm:$0xff] %v14260_v4 }
 0x22c   : > { %v11447_v21 = vpop.f32.mrf.mxu0 }
 0x22d   : > { %v3440_v32 = vpop.f32.mrf.mxu1  ;;  %v3573_v11 = vadd.f32 %v11447_v21, %v3274_v10 }
 0x22e   : > { %v3571_v37 = vadd.f32 %v3440_v32, %v3272_v42  ;;  %v14262_v34 = vpop.f32.mrf.mxu0 }
 0x22f   : > { %16938 = vst [vmem:[#allocation83_spill] sm:$0xff] %v14262_v34  ;;  %v14264_v30 = vpop.f32.mrf.mxu1 }
 0x230   : > { %16939 = vst [vmem:[#allocation84_spill] sm:$0xff] %v14264_v30 }
 0x232   : > { %v3698_v50 = vpop.f32.mrf.mxu0 }
 0x233   : > { %v3850_v24 = vadd.f32 %v3698_v50, %v3550_v40  ;;  %v11466_v63 = vpop.f32.mrf.mxu1 }
 0x234   : > { %v3855_v22 = vadd.f32 %v11466_v63, %v3555_v48  ;;  %v14266_v57 = vpop.f32.mrf.mxu0 }
 0x235   : > { %16940 = vst [vmem:[#allocation85_spill] sm:$0xff] %v14266_v57  ;;  %v14268_v5 = vpop.f32.mrf.mxu1 }
 0x236   : > { %16941 = vst [vmem:[#allocation86_spill] sm:$0xff] %v14268_v5  ;;  %v3704_v31 = vpop.f32.mrf.mxu0 }
 0x237   : > { %v3853_v43 = vadd.f32 %v3704_v31, %v3553_v14  ;;  %v11469_v62 = vpop.f32.mrf.mxu1 }
 0x238   : > { %v3861_v4 = vadd.f32 %v11469_v62, %v3561_v39  ;;  %v14270_v35 = vpop.f32.mrf.mxu0  ;;  %v14285_v39 = vld [vmem:[%s16948_s25] sm:$0xff] }
 0x239   : > { %16942 = vst [vmem:[#allocation87_spill] sm:$0xff] %v14270_v35  ;;  %v14272_v10 = vpop.f32.mrf.mxu1  ;;  %16949 = vst [vmem:[#allocation93_spill] sm:$0xff] %v14285_v39  ;;  %11604 = vmatprep.mubr.msk.f32.mxu0 %vm5074_vm1, %v14285_v39 }
 0x23a   : > { %16943 = vst [vmem:[#allocation88_spill] sm:$0xff] %v14272_v10  ;;  %v3710_v42 = vpop.f32.mrf.mxu0 }
 0x23b   : > { %v3856_v21 = vadd.f32 %v3710_v42, %v3556_v20  ;;  %v11472_v32 = vpop.f32.mrf.mxu1 }
 0x23c   : > { %v3867_v30 = vadd.f32 %v11472_v32, %v3567_v7  ;;  %v14274_v34 = vpop.f32.mrf.mxu0 }
 0x23d   : > { %16944 = vst [vmem:[#allocation89_spill] sm:$0xff] %v14274_v34  ;;  %v14276_v40 = vpop.f32.mrf.mxu1 }
 0x23e   : > { %16945 = vst [vmem:[#allocation90_spill] sm:$0xff] %v14276_v40  ;;  %v3716_v48 = vpop.f32.mrf.mxu0 }
 0x23f   : > { %v3859_v50 = vadd.f32 %v3716_v48, %v3559_v46  ;;  %v11475_v63 = vpop.f32.mrf.mxu1 }
 0x240   : > { %v14278_v57 = vadd.f32 %v11475_v63, %v3573_v11  ;;  %v14280_v14 = vpop.f32.mrf.mxu0 }
 0x241   : > { %16947 = vst [vmem:[#allocation92_spill] sm:$0xff] %v14280_v14  ;;  %v14287_v20 = vpop.f32.mrf.mxu1 }
 0x242   : > { %16946 = vst [vmem:[#allocation91_spill] sm:$0xff] %v14278_v57  ;;  %v3722_v7 = vpop.f32.mrf.mxu0 }
 0x243   : > { %v3862_v31 = vadd.f32 %v3722_v7, %v3562_v55  ;;  %v3997_v62 = vpop.f32.mrf.mxu1 }
 0x244   : > { %v4149_v46 = vadd.f32 %v3997_v62, %v3850_v24  ;;  %v14291_v42 = vpop.f32.mrf.mxu0 }
 0x245   : > { %16950 = vst [vmem:[#allocation94_spill] sm:$0xff] %v14291_v42  ;;  %v14293_v11 = vpop.f32.mrf.mxu1 }
 0x246   : > { %16951 = vst [vmem:[#allocation95_spill] sm:$0xff] %v14293_v11 }
 0x247   : > { %v3728_v32 = vpop.f32.mrf.mxu0  ;;  %v4003_v48 = vpop.f32.mrf.mxu1 }
 0x248   : > { %v3865_v63 = vadd.f32 %v3728_v32, %v3565_v51  ;;  %v4152_v34 = vadd.f32 %v4003_v48, %v3853_v43 }
 0x249   : > { %v14295_v35 = vpop.f32.mrf.mxu0  ;;  %v14297_v14 = vpop.f32.mrf.mxu1 }
 0x24a   : > { %16952 = vst [vmem:[#allocation96_spill] sm:$0xff] %v14295_v35  ;;  %16953 = vst [vmem:[#allocation97_spill] sm:$0xff] %v14297_v14 }
 0x24b   : > { %v4009_v5 = vpop.f32.mrf.mxu1 }
 0x24c   : > { %v3734_v10 = vpop.f32.mrf.mxu0  ;;  %v4155_v40 = vadd.f32 %v4009_v5, %v3856_v21 }
 0x24d   : > { %v3868_v39 = vadd.f32 %v3734_v10, %v3568_v44  ;;  %v14299_v57 = vpop.f32.mrf.mxu1 }
 0x24e   : > { %16954 = vst [vmem:[#allocation98_spill] sm:$0xff] %v14299_v57  ;;  %v14301_v55 = vpop.f32.mrf.mxu0 }
 0x24f   : > { %16955 = vst [vmem:[#allocation99_spill] sm:$0xff] %v14301_v55  ;;  %v4015_v24 = vpop.f32.mrf.mxu1 }
 0x250   : > { %v3740_v7 = vpop.f32.mrf.mxu0  ;;  %v4158_v62 = vadd.f32 %v4015_v24, %v3859_v50 }
 0x251   : > { %v3871_v11 = vadd.f32 %v3740_v7, %v3571_v37  ;;  %v14303_v42 = vpop.f32.mrf.mxu1 }
 0x252   : > { %16956 = vst [vmem:[#allocation100_spill] sm:$0xff] %v14303_v42  ;;  %v14305_v51 = vpop.f32.mrf.mxu0 }
 0x253   : > { %16957 = vst [vmem:[#allocation101_spill] sm:$0xff] %v14305_v51  ;;  %v4021_v43 = vpop.f32.mrf.mxu1 }
 0x254   : > { %v4161_v32 = vadd.f32 %v4021_v43, %v3862_v31  ;;  %v11494_v48 = vpop.f32.mrf.mxu0 }
 0x255   : > { %v4154_v14 = vadd.f32 %v11494_v48, %v3855_v22  ;;  %v14307_v35 = vpop.f32.mrf.mxu1 }
 0x256   : > { %16958 = vst [vmem:[#allocation102_spill] sm:$0xff] %v14307_v35  ;;  %v14309_v5 = vpop.f32.mrf.mxu0 }
 0x258   : > { %v11497_v44 = vpop.f32.mrf.mxu0 }
 0x259   : > { %v4027_v10 = vpop.f32.mrf.mxu1  ;;  %v14311_v21 = vadd.f32 %v11497_v44, %v3861_v4 }
 0x25a   : > { %v14313_v57 = vadd.f32 %v4027_v10, %v3865_v63  ;;  %v14315_v50 = vpop.f32.mrf.mxu0 }
 0x25b   : > { %v14317_v37 = vpop.f32.mrf.mxu1 }
 0x25c   : > { %16959 = vst [vmem:[#allocation103_spill] sm:$0xff] %v14313_v57  ;;  %16960 = vst [vmem:[#allocation104_spill] sm:$0xff] %v14317_v37 }
 0x25e   : > { %v11500_v24 = vpop.f32.mrf.mxu0 }
 0x25f   : > { %v4033_v7 = vpop.f32.mrf.mxu1  ;;  %v14319_v42 = vadd.f32 %v11500_v24, %v3867_v30 }
 0x260   : > { %v14321_v31 = vadd.f32 %v4033_v7, %v3868_v39  ;;  %v14323_v22 = vpop.f32.mrf.mxu0 }
 0x261   : > { %v14325_v43 = vpop.f32.mrf.mxu1 }
 0x262   : > { %16961 = vst [vmem:[#allocation105_spill] sm:$0xff] %v14321_v31  ;;  %16962 = vst [vmem:[#allocation106_spill] sm:$0xff] %v14325_v43 }
 0x264   : > { %v14327_v48 = vpop.f32.mrf.mxu0 }
 0x265   : > { %v4039_v4 = vpop.f32.mrf.mxu1 }
 0x266   : > { %v14329_v44 = vadd.f32 %v4039_v4, %v3871_v11  ;;  %v14331_v63 = vpop.f32.mrf.mxu0 }
 0x267   : > { %v14333_v10 = vpop.f32.mrf.mxu1 }
 0x268   : > { %16963 = vst [vmem:[#allocation107_spill] sm:$0xff] %v14329_v44  ;;  %16964 = vst [vmem:[#allocation108_spill] sm:$0xff] %v14333_v10 }
 0x26a   : > { %v4296_v57 = vpop.f32.mrf.mxu0 }
 0x26b   : > { %v4448_v35 = vadd.f32 %v4296_v57, %v4149_v46  ;;  %v11522_v37 = vpop.f32.mrf.mxu1 }
 0x26c   : > { %v14335_v30 = vadd.f32 %v11522_v37, %v4154_v14  ;;  %v14337_v39 = vpop.f32.mrf.mxu0 }
 0x26d   : > { %16966 = vst [vmem:[#allocation110_spill] sm:$0xff] %v14337_v39  ;;  %v14339_v24 = vpop.f32.mrf.mxu1 }
 0x26e   : > { %16965 = vst [vmem:[#allocation109_spill] sm:$0xff] %v14335_v30  ;;  %16967 = vst [vmem:[#allocation111_spill] sm:$0xff] %v14339_v24  ;;  %v4302_v7 = vpop.f32.mrf.mxu0 }
 0x26f   : > { %v4451_v31 = vadd.f32 %v4302_v7, %v4152_v34  ;;  %v14341_v43 = vpop.f32.mrf.mxu1 }
 0x270   : > { %v14343_v55 = vpop.f32.mrf.mxu0 }
 0x271   : > { %16968 = vst [vmem:[#allocation112_spill] sm:$0xff] %v14343_v55  ;;  %v14345_v11 = vpop.f32.mrf.mxu1 }
 0x272   : > { %v4308_v4 = vpop.f32.mrf.mxu0 }
 0x273   : > { %v14347_v44 = vadd.f32 %v4308_v4, %v4155_v40  ;;  %v14349_v10 = vpop.f32.mrf.mxu1 }
 0x274   : > { %v14351_v57 = vpop.f32.mrf.mxu0 }
 0x275   : > { %16969 = vst [vmem:[#allocation113_spill] sm:$0xff] %v14347_v44  ;;  %16970 = vst [vmem:[#allocation114_spill] sm:$0xff] %v14351_v57  ;;  %v14353_v14 = vpop.f32.mrf.mxu1 }
 0x276   : > { %v4314_v46 = vpop.f32.mrf.mxu0 }
 0x277   : > { %v14355_v37 = vadd.f32 %v4314_v46, %v4158_v62  ;;  %v14357_v39 = vpop.f32.mrf.mxu1 }
 0x278   : > { %v14359_v34 = vpop.f32.mrf.mxu0 }
 0x279   : > { %16971 = vst [vmem:[#allocation115_spill] sm:$0xff] %v14355_v37  ;;  %16972 = vst [vmem:[#allocation116_spill] sm:$0xff] %v14359_v34  ;;  %v14361_v7 = vpop.f32.mrf.mxu1 }
 0x27a   : > { %v4320_v55 = vpop.f32.mrf.mxu0 }
 0x27b   : > { %v14363_v30 = vadd.f32 %v4320_v55, %v4161_v32  ;;  %v4595_v40 = vpop.f32.mrf.mxu1 }
 0x27c   : > { %v14365_v4 = vadd.f32 %v4595_v40, %v4448_v35  ;;  %v14367_v44 = vpop.f32.mrf.mxu0 }
 0x27d   : > { %16973 = vst [vmem:[#allocation117_spill] sm:$0xff] %v14363_v30  ;;  %16975 = vst [vmem:[#allocation119_spill] sm:$0xff] %v14367_v44  ;;  %v14369_v57 = vpop.f32.mrf.mxu1 }
 0x27e   : > { %16974 = vst [vmem:[#allocation118_spill] sm:$0xff] %v14365_v4  ;;  %16976 = vst [vmem:[#allocation120_spill] sm:$0xff] %v14369_v57 }
 0x27f   : > { %v14371_v24 = vpop.f32.mrf.mxu0  ;;  %v4601_v62 = vpop.f32.mrf.mxu1 }
 0x280   : > { %16977 = vst [vmem:[#allocation121_spill] sm:$0xff] %v14371_v24  ;;  %v14373_v46 = vadd.f32 %v4601_v62, %v4451_v31 }
 0x281   : > { %v14375_v37 = vpop.f32.mrf.mxu0  ;;  %v14377_v34 = vpop.f32.mrf.mxu1 }
 0x282   : > { %16978 = vst [vmem:[#allocation122_spill] sm:$0xff] %v14373_v46  ;;  %16979 = vst [vmem:[#allocation123_spill] sm:$0xff] %v14375_v37 }
 0x283   : > { %16980 = vst [vmem:[#allocation124_spill] sm:$0xff] %v14377_v34  ;;  %v14379_v51 = vpop.f32.mrf.mxu1 }
 0x284   : > { %16981 = vst [vmem:[#allocation125_spill] sm:$0xff] %v14379_v51  ;;  %v14381_v55 = vpop.f32.mrf.mxu0 }
 0x285   : > { %16982 = vst [vmem:[#allocation126_spill] sm:$0xff] %v14381_v55  ;;  %v14383_v32 = vpop.f32.mrf.mxu1 }
 0x286   : > { %16983 = vst [vmem:[#allocation127_spill] sm:$0xff] %v14383_v32  ;;  %v14385_v35 = vpop.f32.mrf.mxu0 }
 0x287   : > { %16984 = vst [vmem:[#allocation128_spill] sm:$0xff] %v14385_v35  ;;  %v14387_v40 = vpop.f32.mrf.mxu1 }
 0x288   : > { %16985 = vst [vmem:[#allocation129_spill] sm:$0xff] %v14387_v40  ;;  %v14389_v4 = vpop.f32.mrf.mxu0 }
 0x289   : > { %16986 = vst [vmem:[#allocation130_spill] sm:$0xff] %v14389_v4  ;;  %v14391_v57 = vpop.f32.mrf.mxu1 }
 0x28a   : > { %16987 = vst [vmem:[#allocation131_spill] sm:$0xff] %v14391_v57  ;;  %v14393_v31 = vpop.f32.mrf.mxu0 }
 0x28b   : > { %16988 = vst [vmem:[#allocation132_spill] sm:$0xff] %v14393_v31  ;;  %v14395_v62 = vpop.f32.mrf.mxu1 }
 0x28c   : > { %16989 = vst [vmem:[#allocation133_spill] sm:$0xff] %v14395_v62  ;;  %v14397_v46 = vpop.f32.mrf.mxu0  ;;  %v1173_v62 = vadd.f32 %v13236_v23, %v13010_v29  ;;  %v1044_v23 = vadd.f32 %v13084_v58, %v12980_v18 }
 0x28d   : > { %v14399_v34 = vpop.f32.mrf.mxu1 }
 0x28e   : > { %16990 = vst [vmem:[#allocation134_spill] sm:$0xff] %v14399_v34  ;;  %v14401_v51 = vpop.f32.mrf.mxu0  ;;  %v1476_v55 = vadd.f32 %v13362_v41, %v1173_v62  ;;  %v1050_v41 = vadd.f32 %v13102_v8, %v13004_v27  ;;  %v1463_v18 = vadd.f32 %v13329_v17, %v1044_v23 }
 0x290   : > { %v14403_v30 = vpop.f32.mrf.mxu0  ;;  %v1775_v35 = vadd.f32 %v13598_v1, %v1476_v55  ;;  %v1062_v1 = vadd.f32 %v13172_v49, %v13053_v47  ;;  %v1068_v55 = vadd.f32 %v13211_v16, %v13086_v59  ;;  %v1466_v58 = vadd.f32 %v13356_v2, %v1050_v41 }
 0x291   : > { %v14405_v32 = vpop.f32.mrf.mxu1 }
 0x292   : > { %16991 = vst [vmem:[#allocation135_spill] sm:$0xff] %v14405_v32  ;;  %v14407_v44 = vpop.f32.mrf.mxu0  ;;  %v1163_v32 = vadd.f32 %v13208_v6, %v12982_v19  ;;  %v2074_v31 = vadd.f32 %v13725_v56, %v1775_v35  ;;  %v1056_v19 = vadd.f32 %v13131_v26, %v13025_v36  ;;  %v1472_v36 = vadd.f32 %v13407_v54, %v1062_v1  ;;  %v16997_v35 = vld [vmem:[#allocation26_spill] sm:$0xff]  ;;  %v17002_v1 = vld [vmem:[#allocation28_spill] sm:$0xff] }
 0x293   : > { %v14409_v40 = vpop.f32.mrf.mxu1  ;;  %v1475_v49 = vadd.f32 %v13441_v61, %v1068_v55  ;;  %v1765_v59 = vadd.f32 %v13458_v53, %v1466_v58  ;;  %v17004_v55 = vld [vmem:[#allocation29_spill] sm:$0xff]  ;;  %v17005_v58 = vld [vmem:[#allocation23_spill] sm:$0xff] }
 0x294   : > { %16992 = vst [vmem:[#allocation136_spill] sm:$0xff] %v14409_v40  ;;  %v2374_v56 = vadd.f32 %v13955_v3, %v2074_v31  ;;  %v1469_v27 = vadd.f32 %v13378_v52, %v1056_v19  ;;  %v1771_v2 = vadd.f32 %v13531_v45, %v1472_v36  ;;  %v16998_v45 = vld [vmem:[#allocation27_spill] sm:$0xff] }
 0x295   : > { %v1774_v3 = vadd.f32 %v13570_v15, %v1475_v49  ;;  %v17001_v15 = vld [vmem:[#allocation22_spill] sm:$0xff]  ;;  %v17008_v49 = vld [vmem:[#allocation32_spill] sm:$0xff] }
 0x296   : > { %v14411_v24 = vpop.f32.mrf.mxu0  ;;  %v2673_v26 = vadd.f32 %v14069_v13, %v2374_v56  ;;  %v1768_v16 = vadd.f32 %v13487_v60, %v1469_v27  ;;  %v16994_v13 = vld [vmem:[#allocation24_spill] sm:$0xff]  ;;  %v2070_v62 = vadd.f32 %v16998_v45, %v1771_v2  ;;  %v17006_v27 = vld [vmem:[#allocation35_spill] sm:$0xff]  ;;  %v17010_v2 = vld [vmem:[#allocation58_spill] sm:$0xff] }
 0x297   : > { %v14413_v57 = vpop.f32.mrf.mxu1  ;;  %v16996_v60 = vld [vmem:[#allocation20_spill] sm:$0xff]  ;;  %v2362_v36 = vadd.f32 %v17006_v27, %v17005_v58 }
 0x298   : > { %16993 = vst [vmem:[#allocation137_spill] sm:$0xff] %v14413_v57  ;;  %v14417_v37 = vpop.f32.mrf.mxu0  ;;  %v1470_v57 = vadd.f32 %v13331_v28, %v1163_v32  ;;  %v2972_v54 = vadd.f32 %v14205_v33, %v2673_v26  ;;  %v2355_v31 = vadd.f32 %v16997_v35, %v16996_v60  ;;  %v17000_v33 = vld [vmem:[#allocation68_spill] sm:$0xff]  ;;  %v17007_v26 = vld [vmem:[#allocation19_spill] sm:$0xff]  ;;  %v17012_v60 = vld [vmem:[#allocation33_spill] sm:$0xff] }
 0x299   : > { %v14419_v34 = vpop.f32.mrf.mxu1  ;;  %v17013_v35 = vld [vmem:[#allocation21_spill] sm:$0xff] }
 0x29a   : > { %v1769_v28 = vadd.f32 %v13567_v9, %v1470_v57  ;;  %v1762_v9 = vadd.f32 %v13439_v38, %v1463_v18  ;;  %v2064_v38 = vadd.f32 %v16994_v13, %v1765_v59  ;;  %v16995_v57 = vld [vmem:[#allocation25_spill] sm:$0xff]  ;;  %v3271_v41 = vadd.f32 %v17000_v33, %v2972_v54  ;;  %v17009_v59 = vld [vmem:[#allocation31_spill] sm:$0xff] }
 0x29b   : > { %v2067_v53 = vadd.f32 %v16995_v57, %v1768_v16  ;;  %v17011_v54 = vld [vmem:[#allocation83_spill] sm:$0xff] }
 0x29c   : > { %v14425_v4 = vpop.f32.mrf.mxu0  ;;  %v2068_v8 = vadd.f32 %v13694_v12, %v1769_v28  ;;  %v2061_v61 = vadd.f32 %v13692_v25, %v1762_v9  ;;  %v2358_v25 = vadd.f32 %v17002_v1, %v17001_v15  ;;  %v17003_v28 = vld [vmem:[#allocation30_spill] sm:$0xff]  ;;  %v2076_v9 = vadd.f32 %v17008_v49, %v17007_v26 }
 0x29d   : > { %v14427_v40 = vpop.f32.mrf.mxu1  ;;  %v2073_v56 = vadd.f32 %v17003_v28, %v1774_v3  ;;  %v2364_v16 = vadd.f32 %v17009_v59, %v2064_v38  ;;  %v3570_v13 = vadd.f32 %v17011_v54, %v3271_v41  ;;  %v2367_v3 = vadd.f32 %v17012_v60, %v2067_v53  ;;  %v17016_v15 = vld [vmem:[#allocation42_spill] sm:$0xff]  ;;  %v17019_v41 = vld [vmem:[#allocation91_spill] sm:$0xff] }
 0x29e   : > { %v14431_v29 = vpop.f32.mrf.mxu0  ;;  %v2368_v52 = vadd.f32 %v13927_v0, %v2068_v8  ;;  %v16999_v0 = vld [vmem:[#allocation44_spill] sm:$0xff]  ;;  %v2361_v18 = vadd.f32 %v17004_v55, %v2061_v61  ;;  %v17014_v61 = vld [vmem:[#allocation34_spill] sm:$0xff]  ;;  %v2661_v1 = vadd.f32 %v17016_v15, %v2362_v36  ;;  %v17017_v55 = vld [vmem:[#allocation37_spill] sm:$0xff]  ;;  %v4172_v26 = vadd.f32 %v14327_v48, %v17019_v41 }
 0x29f   : > { %v14439_v6 = vpop.f32.mrf.mxu1  ;;  %v2356_v45 = vadd.f32 %v17014_v61, %v17013_v35  ;;  %v2373_v58 = vadd.f32 %v17017_v55, %v2073_v56  ;;  %v17018_v38 = vld [vmem:[#allocation66_spill] sm:$0xff]  ;;  %v17023_v36 = vld [vmem:[#allocation56_spill] sm:$0xff]  ;;  %v17025_v15 = vld [vmem:[#allocation81_spill] sm:$0xff] }
 0x2a0   : > { %v2667_v23 = vadd.f32 %v16999_v0, %v2368_v52  ;;  %v17015_v0 = vld [vmem:[#allocation36_spill] sm:$0xff]  ;;  %v17020_v53 = vld [vmem:[#allocation38_spill] sm:$0xff]  ;;  %v2960_v35 = vadd.f32 %v17023_v36, %v2661_v1  ;;  %v17026_v55 = vld [vmem:[#allocation43_spill] sm:$0xff] }
 0x2a1   : > { %v2370_v33 = vadd.f32 %v17015_v0, %v2070_v62  ;;  %v2376_v59 = vadd.f32 %v17020_v53, %v2076_v9  ;;  %v17022_v62 = vld [vmem:[#allocation40_spill] sm:$0xff]  ;;  %v17024_v0 = vld [vmem:[#allocation41_spill] sm:$0xff] }
 0x2a2   : > { %v14453_v47 = vpop.f32.mrf.mxu0  ;;  %v2966_v52 = vadd.f32 %v17010_v2, %v2667_v23  ;;  %v3870_v23 = vadd.f32 %v14287_v20, %v3570_v13  ;;  %v17021_v2 = vld [vmem:[#allocation39_spill] sm:$0xff]  ;;  %v2655_v60 = vadd.f32 %v17022_v62, %v2356_v45  ;;  %v2657_v56 = vadd.f32 %v17024_v0, %v2358_v25  ;;  %v17027_v9 = vld [vmem:[#allocation45_spill] sm:$0xff]  ;;  %v17029_v45 = vld [vmem:[#allocation64_spill] sm:$0xff] }
 0x2a3   : > { %v14459_v17 = vpop.f32.mrf.mxu1  ;;  %v2654_v54 = vadd.f32 %v17021_v2, %v2355_v31  ;;  %v4471_v13 = vadd.f32 %v14357_v39, %v4172_v26  ;;  %v2663_v41 = vadd.f32 %v17027_v9, %v2364_v16  ;;  %v17028_v31 = vld [vmem:[#allocation46_spill] sm:$0xff]  ;;  %v3259_v2 = vadd.f32 %v17029_v45, %v2960_v35  ;;  %v17030_v62 = vld [vmem:[#allocation47_spill] sm:$0xff] }
 0x2a4   : > { %v14464_v12 = vpop.f32.mrf.mxu0  ;;  %v3265_v27 = vadd.f32 %v17018_v38, %v2966_v52  ;;  %v4169_v20 = vadd.f32 %v14331_v63, %v3870_v23  ;;  %v2660_v38 = vadd.f32 %v17026_v55, %v2361_v18  ;;  %v2666_v53 = vadd.f32 %v17028_v31, %v2367_v3  ;;  %v17031_v25 = vld [vmem:[#allocation90_spill] sm:$0xff]  ;;  %v17032_v23 = vld [vmem:[#allocation48_spill] sm:$0xff]  ;;  %v17033_v18 = vld [vmem:[#allocation55_spill] sm:$0xff] }
 0x2a5   : > { %v14470_v32 = vpop.f32.mrf.mxu1  ;;  %v2953_v36 = vadd.f32 %v17030_v62, %v2654_v54  ;;  %v4770_v63 = vadd.f32 %v14425_v4, %v4471_v13  ;;  %v2669_v26 = vadd.f32 %v17032_v23, %v2370_v33  ;;  %v17034_v16 = vld [vmem:[#allocation79_spill] sm:$0xff]  ;;  %v4465_v54 = vadd.f32 %v14349_v10, %v14319_v42  ;;  %v17036_v33 = vld [vmem:[#allocation50_spill] sm:$0xff] }
 0x2a6   : > { %v14477_v19 = vpop.f32.mrf.mxu0  ;;  %v3564_v52 = vadd.f32 %v17025_v15, %v3265_v27  ;;  %v4468_v27 = vadd.f32 %v14361_v7, %v4169_v20  ;;  %v2954_v15 = vadd.f32 %v17033_v18, %v2655_v60  ;;  %v3558_v55 = vadd.f32 %v17034_v16, %v3259_v2  ;;  %v17035_v20 = vld [vmem:[#allocation49_spill] sm:$0xff]  ;;  %v17038_v45 = vld [vmem:[#allocation62_spill] sm:$0xff] }
 0x2a7   : > { %v14485_v8 = vpop.f32.mrf.mxu1  ;;  %v2956_v13 = vadd.f32 %v17035_v20, %v2657_v56  ;;  %v2959_v9 = vadd.f32 %v17036_v33, %v2660_v38  ;;  %v17037_v60 = vld [vmem:[#allocation53_spill] sm:$0xff]  ;;  %v4764_v42 = vadd.f32 %v14411_v24, %v4465_v54  ;;  %v17040_v56 = vld [vmem:[#allocation51_spill] sm:$0xff]  ;;  %v17043_v18 = vld [vmem:[#allocation78_spill] sm:$0xff] }
 0x2a8   : > { %v14492_v57 = vpop.f32.mrf.mxu0  ;;  %v3864_v0 = vadd.f32 %v17031_v25, %v3564_v52  ;;  %v4767_v52 = vadd.f32 %v14431_v29, %v4468_v27  ;;  %v2675_v31 = vadd.f32 %v17037_v60, %v2376_v59  ;;  %v3253_v2 = vadd.f32 %v17038_v45, %v2954_v15  ;;  %v17039_v25 = vld [vmem:[#allocation88_spill] sm:$0xff]  ;;  %v17050_v45 = vld [vmem:[#allocation63_spill] sm:$0xff] }
 0x2a9   : > { %v14499_v28 = vpop.f32.mrf.mxu1  ;;  %v2672_v38 = vadd.f32 %v17040_v56, %v2373_v58  ;;  %v17041_v27 = vld [vmem:[#allocation52_spill] sm:$0xff] }
 0x2aa   : > { %v14506_v49 = vpop.f32.mrf.mxu0  ;;  %v4163_v35 = vadd.f32 %v14323_v22, %v3864_v0  ;;  %v3858_v22 = vadd.f32 %v17039_v25, %v3558_v55  ;;  %v2962_v59 = vadd.f32 %v17041_v27, %v2663_v41  ;;  %v3552_v15 = vadd.f32 %v17043_v18, %v3253_v2  ;;  %v17044_v41 = vld [vmem:[#allocation54_spill] sm:$0xff]  ;;  %v17047_v33 = vld [vmem:[#allocation76_spill] sm:$0xff]  ;;  %v17055_v27 = vld [vmem:[#allocation71_spill] sm:$0xff] }
 0x2ab   : > { %v11584_v61 = vpop.f32.mrf.mxu1  ;;  %v3255_v2 = vadd.f32 %v17050_v45, %v2956_v13  ;;  %v17054_v13 = vld [vmem:[#allocation67_spill] sm:$0xff]  ;;  %v17067_v45 = vld [vmem:[#allocation77_spill] sm:$0xff] }
 0x2ac   : > { %v14516_v48 = vpop.f32.mrf.mxu0  ;;  %v4462_v0 = vadd.f32 %v14353_v14, %v4163_v35  ;;  %v4157_v24 = vadd.f32 %v14315_v50, %v3858_v22  ;;  %v4459_v14 = vadd.f32 %v14341_v43, %v14311_v21  ;;  %v14562_v55 = vadd.f32 %v11584_v61, %v4764_v42  ;;  %v17045_v35 = vld [vmem:[#allocation57_spill] sm:$0xff]  ;;  %v17048_v50 = vld [vmem:[#allocation86_spill] sm:$0xff]  ;;  %v17052_v22 = vld [vmem:[#allocation84_spill] sm:$0xff] }
 0x2ad   : > { %v5027_v1 = vpop.f32.mrf.mxu1  ;;  %v2968_v54 = vadd.f32 %v17045_v35, %v2669_v26  ;;  %v3852_v21 = vadd.f32 %v17048_v50, %v3552_v15  ;;  %v17053_v42 = vld [vmem:[#allocation65_spill] sm:$0xff]  ;;  %v17061_v35 = vld [vmem:[#allocation70_spill] sm:$0xff]  ;;  %v17064_v50 = vld [vmem:[#allocation108_spill] sm:$0xff] }
 0x2ae   : > { %v14526_v39 = vpop.f32.mrf.mxu0  ;;  %v4761_v16 = vadd.f32 %v14417_v37, %v4462_v0  ;;  %v4456_v43 = vadd.f32 %v14345_v11, %v4157_v24  ;;  %v4758_v37 = vadd.f32 %v14403_v30, %v4459_v14  ;;  %v3258_v11 = vadd.f32 %v17053_v42, %v2959_v9  ;;  %v17057_v15 = vld [vmem:[#allocation101_spill] sm:$0xff] }
 0x2af   : > { %v11587_v3 = vpop.f32.mrf.mxu1  ;;  %v4151_v30 = vadd.f32 %v14309_v5, %v3852_v21  ;;  %v17058_v5 = vld [vmem:[#allocation69_spill] sm:$0xff]  ;;  %v17065_v21 = vld [vmem:[#allocation72_spill] sm:$0xff] }
 0x2b0   : > { %v14535_v7 = vadd.f32 %v11587_v3, %v4770_v63  ;;  %v14537_v4 = vpop.f32.mrf.mxu0  ;;  %v17042_v63 = vld [vmem:[#allocation60_spill] sm:$0xff]  ;;  %v2965_v3 = vadd.f32 %v17044_v41, %v2666_v53  ;;  %v14575_v61 = vadd.f32 %v5027_v1, %v4761_v16  ;;  %v17049_v53 = vld [vmem:[#allocation61_spill] sm:$0xff]  ;;  %v4755_v1 = vadd.f32 %v14407_v44, %v4456_v43  ;;  %v17059_v44 = vld [vmem:[#allocation111_spill] sm:$0xff] }
 0x2b1   : > { %v5037_v62 = vpop.f32.mrf.mxu1  ;;  %v2974_v23 = vadd.f32 %v17042_v63, %v2675_v31  ;;  %v3252_v26 = vadd.f32 %v17049_v53, %v2953_v36  ;;  %v14589_v56 = vadd.f32 %v14485_v8, %v4758_v37  ;;  %v3267_v63 = vadd.f32 %v17055_v27, %v2968_v54  ;;  %v17060_v8 = vld [vmem:[#allocation109_spill] sm:$0xff]  ;;  %v17073_v27 = vld [vmem:[#allocation107_spill] sm:$0xff] }
 0x2b2   : > { %v14546_v10 = vadd.f32 %v5037_v62, %v4767_v52  ;;  %11588 = vmatprep.subr.msk.mxu0 %vm5087_vm2, %v14535_v7  ;;  %v14550_v29 = vpop.f32.mrf.mxu0  ;;  %v17046_v52 = vld [vmem:[#allocation59_spill] sm:$0xff]  ;;  %v17051_v62 = vld [vmem:[#allocation74_spill] sm:$0xff]  ;;  %v3264_v9 = vadd.f32 %v17058_v5, %v2965_v3  ;;  %v4450_v14 = vadd.f32 %v17059_v44, %v4151_v30  ;;  %v4752_v16 = vadd.f32 %v14397_v46, %v17060_v8  ;;  %v17070_v30 = vld [vmem:[#allocation132_spill] sm:$0xff] }
 0x2b3   : > { %11589 = vmatpush3.msk.msra.mxu0 %vm5087_vm2, %v14535_v7  ;;  %v2971_v20 = vadd.f32 %v17046_v52, %v2672_v38  ;;  %v3273_v60 = vadd.f32 %v17047_v33, %v2974_v23  ;;  %v3261_v38 = vadd.f32 %v17054_v13, %v2962_v59  ;;  %v17056_v23 = vld [vmem:[#allocation82_spill] sm:$0xff]  ;;  %v14604_v41 = vadd.f32 %v14499_v28, %v4755_v1  ;;  %v17062_v52 = vld [vmem:[#allocation80_spill] sm:$0xff]  ;;  %v17063_v33 = vld [vmem:[#allocation99_spill] sm:$0xff] }
 0x2b4   : > { %11590 = vmatprep.subr.mxu0 %v14546_v10  ;;  %v14565_v58 = vpop.f32.mrf.mxu0  ;;  %v14608_v54 = vadd.f32 %v17061_v35, %v3252_v26  ;;  %v3554_v43 = vadd.f32 %v17065_v21, %v3255_v2  ;;  %v17066_v46 = vld [vmem:[#allocation75_spill] sm:$0xff]  ;;  %v4749_v28 = vadd.f32 %v14401_v51, %v4450_v14  ;;  %v14618_v53 = vadd.f32 %v14459_v17, %v4752_v16  ;;  %v17071_v2 = vld [vmem:[#allocation73_spill] sm:$0xff]  ;;  %v17074_v17 = vld [vmem:[#allocation130_spill] sm:$0xff] }
 0x2b5   : > { %11591 = vmatpush3.msra.mxu0 %v14546_v10  ;;  %v3270_v25 = vadd.f32 %v17051_v62, %v2971_v20  ;;  %v3572_v0 = vadd.f32 %v17052_v22, %v3273_v60  ;;  %v3566_v20 = vadd.f32 %v17062_v52, %v3267_v63  ;;  %v3560_v37 = vadd.f32 %v17066_v46, %v3261_v38  ;;  %v17072_v38 = vld [vmem:[#allocation92_spill] sm:$0xff]  ;;  %v17083_v46 = vld [vmem:[#allocation123_spill] sm:$0xff] }
 0x2b6   : > { %11592 = vmatprep.subr.mxu0 %v14562_v55  ;;  %v14578_v31 = vpop.f32.mrf.mxu0  ;;  %v3563_v62 = vadd.f32 %v17067_v45, %v3264_v9  ;;  %v3557_v13 = vadd.f32 %v17071_v2, %v3258_v11  ;;  %v4469_v63 = vadd.f32 %v17074_v17, %v17073_v27  ;;  %v17076_v5 = vld [vmem:[#allocation104_spill] sm:$0xff]  ;;  %v14642_v11 = vld [vmem:[%s16948_s25 + $0x8] sm:$0xff]  ;;  %v17090_v27 = vld [vmem:[#allocation135_spill] sm:$0xff] }
 0x2b7   : > { %11593 = vmatpush3.msra.mxu0 %v14562_v55  ;;  %v3569_v18 = vadd.f32 %v17056_v23, %v3270_v25  ;;  %v3872_v24 = vadd.f32 %v17057_v15, %v3572_v0  ;;  %v17068_v25 = vld [vmem:[#allocation96_spill] sm:$0xff]  ;;  %v17069_v0 = vld [vmem:[#allocation106_spill] sm:$0xff]  ;;  %v3860_v51 = vadd.f32 %v17072_v38, %v3560_v37  ;;  %v14631_v23 = vadd.f32 %v14470_v32, %v4749_v28  ;;  %v17078_v32 = vld [vmem:[#allocation87_spill] sm:$0xff] }
 0x2b8   : > { %11594 = vmatprep.subr.mxu0 %v14575_v61  ;;  %v14592_v36 = vpop.f32.mrf.mxu0  ;;  %v3866_v22 = vadd.f32 %v17068_v25, %v3566_v20  ;;  %v17075_v15 = vld [vmem:[#allocation94_spill] sm:$0xff]  ;;  %v17077_v44 = vld [vmem:[#allocation128_spill] sm:$0xff]  ;;  %v3854_v16 = vadd.f32 %v17078_v32, %v3554_v43  ;;  %v17080_v20 = vld [vmem:[#allocation105_spill] sm:$0xff] }
 0x2b9   : > { %11595 = vmatpush3.msra.mxu0 %v14575_v61  ;;  %v3869_v60 = vadd.f32 %v17063_v33, %v3569_v18  ;;  %v4171_v3 = vadd.f32 %v17064_v50, %v3872_v24  ;;  %v3863_v24 = vadd.f32 %v17075_v15, %v3563_v62  ;;  %v17079_v35 = vld [vmem:[#allocation100_spill] sm:$0xff]  ;;  %v17081_v33 = vld [vmem:[#allocation126_spill] sm:$0xff]  ;;  %v4768_v50 = vadd.f32 %v14427_v40, %v4469_v63  ;;  %v17084_v43 = vld [vmem:[#allocation103_spill] sm:$0xff] }
 0x2ba   : > { %11596 = vmatprep.subr.mxu0 %v14589_v56  ;;  %v4930_v59 = vpop.f32.mrf.mxu0  ;;  %v4165_v9 = vadd.f32 %v17076_v5, %v3866_v22  ;;  %v4159_v52 = vadd.f32 %v17079_v35, %v3860_v51  ;;  %v17085_v62 = vld [vmem:[#allocation121_spill] sm:$0xff]  ;;  %v17087_v40 = vld [vmem:[#allocation119_spill] sm:$0xff]  ;;  %v17092_v15 = vld [vmem:[#allocation134_spill] sm:$0xff] }
 0x2bb   : > { %11597 = vmatpush3.msra.mxu0 %v14589_v56  ;;  %v4168_v42 = vadd.f32 %v17069_v0, %v3869_v60  ;;  %v4470_v1 = vadd.f32 %v17070_v30, %v4171_v3  ;;  %v4466_v60 = vadd.f32 %v17081_v33, %v17080_v20  ;;  %v4463_v25 = vadd.f32 %v17085_v62, %v17084_v43  ;;  %v17086_v22 = vld [vmem:[#allocation137_spill] sm:$0xff]  ;;  %v17099_v33 = vld [vmem:[#allocation115_spill] sm:$0xff]  ;;  %v17107_v62 = vld [vmem:[#allocation124_spill] sm:$0xff] }
 0x2bc   : > { %11598 = vmatprep.subr.mxu0 %v14604_v41  ;;  %v4932_v26 = vpop.f32.mrf.mxu0  ;;  %v4464_v37 = vadd.f32 %v17083_v46, %v4165_v9  ;;  %v17089_v38 = vld [vmem:[#allocation89_spill] sm:$0xff] }
 0x2bd   : > { %11599 = vmatpush3.msra.mxu0 %v14604_v41  ;;  %v4467_v14 = vadd.f32 %v17077_v44, %v4168_v42  ;;  %v4769_v8 = vadd.f32 %v14439_v6, %v4470_v1  ;;  %v17082_v6 = vld [vmem:[#allocation102_spill] sm:$0xff]  ;;  %v4765_v0 = vadd.f32 %v17086_v22, %v4466_v60  ;;  %v3857_v51 = vadd.f32 %v17089_v38, %v3557_v13  ;;  %v17095_v9 = vld [vmem:[#allocation133_spill] sm:$0xff] }
 0x2be   : > { %11600 = vmatprep.subr.mxu0 %v14618_v53  ;;  %v4936_v18 = vpop.f32.mrf.mxu0  ;;  %v4162_v21 = vadd.f32 %v17082_v6, %v3863_v24  ;;  %v4762_v17 = vadd.f32 %v17090_v27, %v4463_v25  ;;  %v17093_v13 = vld [vmem:[#allocation98_spill] sm:$0xff] }
 0x2bf   : > { %11601 = vmatpush3.msra.mxu0 %v14618_v53  ;;  %v4766_v28 = vadd.f32 %v14419_v34, %v4467_v14  ;;  %v14659_v42 = vadd.f32 %v4936_v18, %v4768_v50  ;;  %v17088_v34 = vld [vmem:[#allocation136_spill] sm:$0xff]  ;;  %v14675_v63 = vadd.f32 %v4930_v59, %v4765_v0  ;;  %v4156_v5 = vadd.f32 %v17093_v13, %v3857_v51  ;;  %v17094_v59 = vld [vmem:[#allocation117_spill] sm:$0xff]  ;;  %v17108_v0 = vld [vmem:[#allocation110_spill] sm:$0xff] }
 0x2c0   : > { %11602 = vmatprep.subr.mxu0 %v14631_v23  ;;  %v4938_v3 = vpop.f32.mrf.mxu0  ;;  %v4461_v30 = vadd.f32 %v17087_v40, %v4162_v21  ;;  %v4763_v1 = vadd.f32 %v17088_v34, %v4464_v37  ;;  %v17091_v18 = vld [vmem:[#allocation116_spill] sm:$0xff]  ;;  %v4759_v44 = vadd.f32 %v17095_v9, %v17094_v59  ;;  %v14691_v14 = vadd.f32 %v14578_v31, %v4762_v17  ;;  %v17100_v31 = vld [vmem:[#allocation129_spill] sm:$0xff]  ;;  %v17103_v21 = vld [vmem:[#allocation127_spill] sm:$0xff] }
 0x2c1   : > { %v14653_v45 = vadd.f32 %v4938_v3, %v4769_v8  ;;  %11603 = vmatpush3.msra.mxu0 %v14631_v23  ;;  %v14667_v2 = vadd.f32 %v4932_v26, %v4766_v28  ;;  %v4458_v26 = vadd.f32 %v17091_v18, %v4159_v52  ;;  %v17096_v8 = vld [vmem:[#allocation97_spill] sm:$0xff]  ;;  %v17098_v52 = vld [vmem:[#allocation114_spill] sm:$0xff]  ;;  %v4756_v60 = vadd.f32 %v17100_v31, %v17099_v33  ;;  %v17109_v34 = vld [vmem:[#allocation120_spill] sm:$0xff] }
 0x2c2   : > { %11610 = vmatprep.subr.msk.mxu0 %vm5087_vm2, %v14535_v7  ;;  %11605 = vmatmul.mubr.msk.f32.vlgmr.msra.gmra.mxu0 %vm5074_vm1, %v14642_v11  ;;  %v4760_v24 = vadd.f32 %v17092_v15, %v4461_v30  ;;  %v4153_v32 = vadd.f32 %v17096_v8, %v3854_v16  ;;  %v4455_v20 = vadd.f32 %v17098_v52, %v4156_v5  ;;  %v17101_v16 = vld [vmem:[#allocation85_spill] sm:$0xff]  ;;  %v17110_v38 = vld [vmem:[#allocation122_spill] sm:$0xff]  ;;  %v5557_v17 = vld [vmem:[%s17114_s4 + $0x2a0] sm:$0xff] }
 0x2c3   : > { %11611 = vmatpush3.msk.msra.mxu0 %vm5087_vm2, %v14535_v7  ;;  %10725 = vmatprep.subr.msk.mxu1 %vm5087_vm2, %v14653_v45  ;;  %v14683_v7 = vadd.f32 %v14592_v36, %v4763_v1  ;;  %v17097_v36 = vld [vmem:[#allocation131_spill] sm:$0xff]  ;;  %v14706_v50 = vadd.f32 %v14550_v29, %v4759_v44  ;;  %v5055_v29 = vadd.f32 %v14526_v39, %v4756_v60  ;;  %v17105_v28 = vld [vmem:[#allocation113_spill] sm:$0xff]  ;;  %v17112_v51 = vld [vmem:[#allocation118_spill] sm:$0xff] }
 0x2c4   : > { %11612 = vmatprep.subr.mxu0 %v14546_v10  ;;  %10726 = vmatpush1.msk.msra.mxu1 %vm5087_vm2, %v14659_v42  ;;  %v4757_v35 = vadd.f32 %v17097_v36, %v4458_v26  ;;  %v4754_v46 = vadd.f32 %v17103_v21, %v4455_v20  ;;  %v5073_v39 = vld [vmem:[%s16948_s25 + $0x18] sm:$0x3f]  ;;  %v5046_v27 = vadd.f32 %v14453_v47, %v17112_v51  ;;  %v5562_v47 = vld [vmem:[%s17114_s4 + $0x2c8] sm:$0xff]  ;;  %v5503_v26 = vld [vmem:[%s17114_s4 + $0xf0] sm:$0xff] }
 0x2c5   : > { %11613 = vmatpush3.msra.mxu0 %v14546_v10  ;;  %5115 = vmatprep.subr.mxu1 %v14667_v2  ;;  %v14698_v10 = vadd.f32 %v14565_v58, %v4760_v24  ;;  %v3851_v58 = vadd.f32 %v17101_v16, %v14608_v54  ;;  %v5072_v54 = vld [vmem:[%s16948_s25 + $0x10] sm:$0xff]  ;;  %v5504_v18 = vld [vmem:[%s17114_s4 + $0xf8] sm:$0xff]  ;;  %v5502_v15 = vld [vmem:[%s17114_s4 + $0xe8] sm:$0xff] }
 0x2c6   : > { %11614 = vmatprep.subr.mxu0 %v14562_v55  ;;  %5116 = vmatpush1.msra.mxu1 %v14675_v63  ;;  %v14713_v3 = vadd.f32 %v14537_v4, %v4757_v35  ;;  %v17104_v4 = vld [vmem:[#allocation95_spill] sm:$0xff]  ;;  %v5053_v22 = vadd.f32 %v14516_v48, %v4754_v46  ;;  %v5049_v48 = vadd.f32 %v14477_v19, %v17110_v38  ;;  %v14760_v19 = vld [vmem:[%s17111_s28 + $0x10] sm:$0xff]  ;;  %v5554_v13 = vld [vmem:[%s17114_s4 + $0x288] sm:$0xff] }
 0x2c7   : > { %11615 = vmatpush3.msra.mxu0 %v14562_v55  ;;  %5117 = vmatprep.subr.mxu1 %v14683_v7  ;;  %v17102_v55 = vld [vmem:[#allocation112_spill] sm:$0xff]  ;;  %v4150_v37 = vadd.f32 %v17104_v4, %v3851_v58  ;;  %v5555_v24 = vld [vmem:[%s17114_s4 + $0x290] sm:$0xff]  ;;  %v5500_v5 = vld [vmem:[%s17114_s4 + $0xd8] sm:$0xff] }
 0x2c8   : > { %11616 = vmatprep.subr.mxu0 %v14575_v61  ;;  %5118 = vmatpush1.msra.mxu1 %v14691_v14  ;;  %v4452_v6 = vadd.f32 %v17102_v55, %v4153_v32  ;;  %v5499_v59 = vld [vmem:[%s17114_s4 + $0xd0] sm:$0xff]  ;;  %v5498_v9 = vld [vmem:[%s17114_s4 + $0xc8] sm:$0xff]  ;;  %v5553_v44 = vld [vmem:[%s17114_s4 + $0x280] sm:$0xff] }
 0x2c9   : > { %11617 = vmatpush3.msra.mxu0 %v14575_v61  ;;  %5119 = vmatprep.subr.mxu1 %v14698_v10  ;;  %v17106_v61 = vld [vmem:[#allocation125_spill] sm:$0xff]  ;;  %v4449_v40 = vadd.f32 %v17108_v0, %v4150_v37  ;;  %v5552_v8 = vld [vmem:[%s17114_s4 + $0x278] sm:$0xff]  ;;  %v5495_v36 = vld [vmem:[%s17114_s4 + $0xb0] sm:$0xff] }
 0x2ca   : > { %11618 = vmatprep.subr.mxu0 %v14589_v56  ;;  %5120 = vmatpush1.msra.mxu1 %v14706_v50  ;;  %v4753_v43 = vadd.f32 %v17106_v61, %v17105_v28  ;;  %v4751_v25 = vadd.f32 %v17107_v62, %v4452_v6  ;;  %v5496_v32 = vld [vmem:[%s17114_s4 + $0xb8] sm:$0xff]  ;;  %v5494_v35 = vld [vmem:[%s17114_s4 + $0xa8] sm:$0xff]  ;;  %v5493_v52 = vld [vmem:[%s17114_s4 + $0xa0] sm:$0xff] }
 0x2cb   : > { %11619 = vmatpush3.msra.mxu0 %v14589_v56  ;;  %5121 = vmatprep.subr.mxu1 %v14713_v3  ;;  %v4748_v1 = vadd.f32 %v17109_v34, %v4449_v40  ;;  %v5550_v20 = vld [vmem:[%s17114_s4 + $0x268] sm:$0xff]  ;;  %v5492_v33 = vld [vmem:[%s17114_s4 + $0x98] sm:$0xff]  ;;  %v5491_v31 = vld [vmem:[%s17114_s4 + $0x90] sm:$0xff] }
 0x2cc   : > { %11620 = vmatprep.subr.mxu0 %v14604_v41  ;;  %5122 = vmatpush1.msra.mxu1 %v5055_v29  ;;  %v5052_v30 = vadd.f32 %v14506_v49, %v4753_v43  ;;  %v5050_v56 = vadd.f32 %v14492_v57, %v4751_v25  ;;  %v5271_v49 = vld [vmem:[%s17111_s28] sm:$0xff]  ;;  %v14753_v57 = vld [vmem:[%s17111_s28 + $0x8] sm:$0xff]  ;;  %v5488_v16 = vld [vmem:[%s17114_s4 + $0x78] sm:$0xff] }
 0x2cd   : > { %11607 = vmatprep.mubr.msk.f32.mxu0 %vm5074_vm1, %v5072_v54  ;;  %11621 = vmatpush3.msra.mxu0 %v14604_v41  ;;  %v5047_v41 = vadd.f32 %v14464_v12, %v4748_v1  ;;  %v14773_v12 = vld [vmem:[%s17111_s28 + $0x18] sm:$0x3f]  ;;  %v5490_v60 = vld [vmem:[%s17114_s4 + $0x88] sm:$0xff]  ;;  %v5487_v58 = vld [vmem:[%s17114_s4 + $0x70] sm:$0xff] }
 0x2ce   : > { %5123 = vmatprep.subr.mxu1 %v5053_v22  ;;  %11608 = vmatmul.mubr.msk.f32.gmra.mxu0 %vm5074_vm1, %v5073_v39  ;;  %v5485_v55 = vld [vmem:[%s17114_s4 + $0x60] sm:$0xff]  ;;  %v5484_v6 = vld [vmem:[%s17114_s4 + $0x58] sm:$0xff]  ;;  %v5483_v21 = vld [vmem:[%s17114_s4 + $0x50] sm:$0xff] }
 0x2cf   : > { %11622 = vmatprep.subr.mxu0 %v14618_v53  ;;  %5124 = vmatpush1.msra.mxu1 %v5052_v30  ;;  %v5482_v46 = vld [vmem:[%s17114_s4 + $0x48] sm:$0xff]  ;;  %v5479_v4 = vld [vmem:[%s17114_s4 + $0x30] sm:$0xff]  ;;  %v5477_v28 = vld [vmem:[%s17114_s4 + $0x20] sm:$0xff] }
 0x2d0   : > { %11623 = vmatpush3.msra.mxu0 %v14618_v53  ;;  %5125 = vmatprep.subr.mxu1 %v5050_v56  ;;  %v17113_v53 = vld [vmem:[#allocation93_spill] sm:$0xff]  ;;  %v5476_v61 = vld [vmem:[%s17114_s4 + $0x18] sm:$0xff]  ;;  %v5475_v43 = vld [vmem:[%s17114_s4 + $0x10] sm:$0xff] }
 0x2d1   : > { %11624 = vmatprep.subr.mxu0 %v14631_v23  ;;  %5126 = vmatpush1.msra.mxu1 %v5049_v48  ;;  %v5478_v37 = vld [vmem:[%s17114_s4 + $0x28] sm:$0xff]  ;;  %v5473_v62 = vld [vmem:[%s17114_s4] sm:$0xff]  ;;  %v5536_v25 = vld [vmem:[%s17114_s4 + $0x1f8] sm:$0xff] }
 0x2d2   : > { %11625 = vmatpush3.msra.mxu0 %v14631_v23  ;;  %11626 = vmatprep.mubr.msk.f32.mxu0 %vm5074_vm1, %v5271_v49  ;;  %v17115_v23 = vmov 0.0   ;;  %v5535_v0 = vld [vmem:[%s17114_s4 + $0x1f0] sm:$0xff]  ;;  %v5548_v40 = vld [vmem:[%s17114_s4 + $0x258] sm:$0xff]  ;;  %v5533_v34 = vld [vmem:[%s17114_s4 + $0x1e0] sm:$0xff] }
 0x2d3   : > { %5127 = vmatprep.subr.mxu1 %v5047_v41  ;;  %11627 = vmatmul.mubr.msk.f32.vlgmr.msra.gmra.mxu0 %vm5074_vm1, %v14753_v57  ;;  %v5546_v1 = vld [vmem:[%s17114_s4 + $0x248] sm:$0xff]  ;;  %v5545_v38 = vld [vmem:[%s17114_s4 + $0x240] sm:$0xff] }
 0x2d4   : > { %5128 = vmatpush1.msra.mxu1 %v5046_v27  ;;  %11629 = vmatprep.mubr.msk.f32.mxu0 %vm5074_vm1, %v14760_v19  ;;  %v5529_v51 = vld [vmem:[%s17114_s4 + $0x1c0] sm:$0xff] }
 0x2d5   : > { %10727 = vmatmul.mubr.msk.f32.vlgmr.msra.gmra.mxu1 %vm5074_vm1, %v17113_v53  ;;  %10736 = vmatprep.subr.msk.mxu1 %vm5087_vm2, %v14653_v45  ;;  %v5561_v45 = vld [vmem:[%s17114_s4 + $0x2c0] sm:$0xff] }
 0x2d6   : > { %10737 = vmatpush1.msk.msra.mxu1 %vm5087_vm2, %v14659_v42  ;;  %5167 = vmatprep.mubr.f32.mxu1 %v17115_v23  ;;  %v5560_v42 = vld [vmem:[%s17114_s4 + $0x2b8] sm:$0xff]  ;;  %v5541_v53 = vld [vmem:[%s17114_s4 + $0x220] sm:$0xff] }
 0x2d7   : > { %5305 = vmatprep.subr.mxu1 %v14667_v2  ;;  %11630 = vmatmul.mubr.msk.f32.gmra.mxu0 %vm5074_vm1, %v14773_v12  ;;  %v5558_v2 = vld [vmem:[%s17114_s4 + $0x2a8] sm:$0xff] }
 0x2d8   : > { %5306 = vmatpush1.msra.mxu1 %v14675_v63  ;;  %5671 = vmatprep.subr.mxu0 %v5562_v47  ;;  %v5556_v63 = vld [vmem:[%s17114_s4 + $0x298] sm:$0xff]  ;;  %v5527_v47 = vld [vmem:[%s17114_s4 + $0x1b0] sm:$0xff] }
 0x2d9   : > { %10728 = vmatmul.mubr.msk.f32.gmra.mxu1 %vm5074_vm1, %v14642_v11  ;;  %5307 = vmatprep.subr.mxu1 %v14683_v7  ;;  %v5559_v11 = vld [vmem:[%s17114_s4 + $0x2b0] sm:$0xff]  ;;  %v5501_v7 = vld [vmem:[%s17114_s4 + $0xe0] sm:$0xff] }
 0x2da   : > { %5308 = vmatpush1.msra.mxu1 %v14691_v14  ;;  %5173 = vmatprep.mubr.f32.mxu1 %v17115_v23  ;;  %v5497_v14 = vld [vmem:[%s17114_s4 + $0xc0] sm:$0xff] }
 0x2db   : > { %5309 = vmatprep.subr.mxu1 %v14698_v10  ;;  %5672 = vmatpush1.msra.mxu0 %v5561_v45  ;;  %v5551_v10 = vld [vmem:[%s17114_s4 + $0x270] sm:$0xff]  ;;  %v5540_v45 = vld [vmem:[%s17114_s4 + $0x218] sm:$0xff] }
 0x2dc   : > { %5310 = vmatpush1.msra.mxu1 %v14706_v50  ;;  %5673 = vmatprep.subr.mxu0 %v5560_v42  ;;  %v5489_v50 = vld [vmem:[%s17114_s4 + $0x80] sm:$0xff]  ;;  %v5526_v42 = vld [vmem:[%s17114_s4 + $0x1a8] sm:$0xff] }
 0x2dd   : > { %10729 = vmatmul.mubr.msk.f32.gmra.mxu1 %vm5074_vm1, %v5072_v54  ;;  %5311 = vmatprep.subr.mxu1 %v14713_v3  ;;  %v5486_v3 = vld [vmem:[%s17114_s4 + $0x68] sm:$0xff]  ;;  %v5480_v54 = vld [vmem:[%s17114_s4 + $0x38] sm:$0xff] }
 0x2de   : > { %5312 = vmatpush1.msra.mxu1 %v5055_v29  ;;  %5179 = vmatprep.mubr.f32.mxu1 %v17115_v23  ;;  %v5481_v29 = vld [vmem:[%s17114_s4 + $0x40] sm:$0xff] }
 0x2df   : > { %5313 = vmatprep.subr.mxu1 %v5053_v22  ;;  %5674 = vmatpush1.msra.mxu0 %v5559_v11  ;;  %v5549_v22 = vld [vmem:[%s17114_s4 + $0x260] sm:$0xff]  ;;  %v5539_v11 = vld [vmem:[%s17114_s4 + $0x210] sm:$0xff] }
 0x2e0   : > { %5314 = vmatpush1.msra.mxu1 %v5052_v30  ;;  %5675 = vmatprep.subr.mxu0 %v5558_v2  ;;  %v5534_v30 = vld [vmem:[%s17114_s4 + $0x1e8] sm:$0xff]  ;;  %v5525_v2 = vld [vmem:[%s17114_s4 + $0x1a0] sm:$0xff] }
 0x2e1   : > { %10730 = vmatmul.mubr.msk.f32.gmra.mxu1 %vm5074_vm1, %v5073_v39  ;;  %5315 = vmatprep.subr.mxu1 %v5050_v56  ;;  %v5474_v39 = vld [vmem:[%s17114_s4 + $0x8] sm:$0xff]  ;;  %v5547_v56 = vld [vmem:[%s17114_s4 + $0x250] sm:$0xff] }
 0x2e2   : > { %5316 = vmatpush1.msra.mxu1 %v5049_v48  ;;  %5351 = vmatprep.mubr.f32.mxu1 %v17115_v23  ;;  %v5532_v48 = vld [vmem:[%s17114_s4 + $0x1d8] sm:$0xff] }
 0x2e3   : > { %5317 = vmatprep.subr.mxu1 %v5047_v41  ;;  %5676 = vmatpush1.msra.mxu0 %v5557_v17  ;;  %v5530_v41 = vld [vmem:[%s17114_s4 + $0x1c8] sm:$0xff] }
 0x2e4   : > { %5318 = vmatpush1.msra.mxu1 %v5046_v27  ;;  %5677 = vmatprep.subr.mxu0 %v5556_v63  ;;  %v5542_v27 = vld [vmem:[%s17114_s4 + $0x228] sm:$0xff]  ;;  %v5524_v63 = vld [vmem:[%s17114_s4 + $0x198] sm:$0xff] }
 0x2e5   : > { %10738 = vmatmul.mubr.msk.f32.vlgmr.msra.gmra.mxu1 %vm5074_vm1, %v5271_v49  ;;  %5576 = vmatprep.subr.mxu1 %v5504_v18  ;;  %v5531_v49 = vld [vmem:[%s17114_s4 + $0x1d0] sm:$0xff]  ;;  %v5538_v17 = vld [vmem:[%s17114_s4 + $0x208] sm:$0xff]  ;;  %v5537_v18 = vld [vmem:[%s17114_s4 + $0x200] sm:$0xff] }
 0x2e6   : > { %5357 = vmatprep.mubr.f32.mxu1 %v17115_v23  ;;  %5577 = vmatpush1.msra.mxu1 %v5503_v26  ;;  %v5523_v26 = vld [vmem:[%s17114_s4 + $0x190] sm:$0xff] }
 0x2e7   : > { %5578 = vmatprep.subr.mxu1 %v5502_v15  ;;  %5678 = vmatpush1.msra.mxu0 %v5555_v24  ;;  %v5785_v15 = vld [vmem:[%s17116_s5 + $0xf8] sm:$0xff]  ;;  %v5522_v24 = vld [vmem:[%s17114_s4 + $0x188] sm:$0xff] }
 0x2e8   : > { %5579 = vmatpush1.msra.mxu1 %v5501_v7  ;;  %5679 = vmatprep.subr.mxu0 %v5554_v13  ;;  %v5521_v7 = vld [vmem:[%s17114_s4 + $0x180] sm:$0xff]  ;;  %v5520_v13 = vld [vmem:[%s17114_s4 + $0x178] sm:$0xff] }
 0x2e9   : > { %10739 = vmatmul.mubr.msk.f32.gmra.mxu1 %vm5074_vm1, %v14753_v57  ;;  %5580 = vmatprep.subr.mxu1 %v5500_v5  ;;  %v5544_v57 = vld [vmem:[%s17114_s4 + $0x238] sm:$0xff]  ;;  %v5519_v5 = vld [vmem:[%s17114_s4 + $0x170] sm:$0xff] }
 0x2ea   : > { %5363 = vmatprep.mubr.f32.mxu1 %v17115_v23  ;;  %5581 = vmatpush1.msra.mxu1 %v5499_v59  ;;  %v5518_v59 = vld [vmem:[%s17114_s4 + $0x168] sm:$0xff] }
 0x2eb   : > { %5582 = vmatprep.subr.mxu1 %v5498_v9  ;;  %5680 = vmatpush1.msra.mxu0 %v5553_v44  ;;  %v5517_v9 = vld [vmem:[%s17114_s4 + $0x160] sm:$0xff]  ;;  %v5516_v44 = vld [vmem:[%s17114_s4 + $0x158] sm:$0xff] }
 0x2ec   : > { %5583 = vmatpush1.msra.mxu1 %v5497_v14  ;;  %5681 = vmatprep.subr.mxu0 %v5552_v8  ;;  %v5515_v14 = vld [vmem:[%s17114_s4 + $0x150] sm:$0xff]  ;;  %v5514_v8 = vld [vmem:[%s17114_s4 + $0x148] sm:$0xff] }
 0x2ed   : > { %10740 = vmatmul.mubr.msk.f32.gmra.mxu1 %vm5074_vm1, %v14760_v19  ;;  %5584 = vmatprep.subr.mxu1 %v5496_v32  ;;  %v5543_v19 = vld [vmem:[%s17114_s4 + $0x230] sm:$0xff]  ;;  %v5513_v32 = vld [vmem:[%s17114_s4 + $0x140] sm:$0xff] }
 0x2ee   : > { %5369 = vmatprep.mubr.f32.mxu1 %v17115_v23  ;;  %5585 = vmatpush1.msra.mxu1 %v5495_v36  ;;  %v5512_v36 = vld [vmem:[%s17114_s4 + $0x138] sm:$0xff] }
 0x2ef   : > { %5586 = vmatprep.subr.mxu1 %v5494_v35  ;;  %5682 = vmatpush1.msra.mxu0 %v5551_v10  ;;  %v5511_v35 = vld [vmem:[%s17114_s4 + $0x130] sm:$0xff]  ;;  %v5510_v10 = vld [vmem:[%s17114_s4 + $0x128] sm:$0xff] }
 0x2f0   : > { %5587 = vmatpush1.msra.mxu1 %v5493_v52  ;;  %5683 = vmatprep.subr.mxu0 %v5550_v20  ;;  %v5509_v52 = vld [vmem:[%s17114_s4 + $0x120] sm:$0xff]  ;;  %v5508_v20 = vld [vmem:[%s17114_s4 + $0x118] sm:$0xff] }
 0x2f1   : > { %10741 = vmatmul.mubr.msk.f32.gmra.mxu1 %vm5074_vm1, %v14773_v12  ;;  %5588 = vmatprep.subr.mxu1 %v5492_v33  ;;  %v5528_v12 = vld [vmem:[%s17114_s4 + $0x1b8] sm:$0xff]  ;;  %v5507_v33 = vld [vmem:[%s17114_s4 + $0x110] sm:$0xff] }
 0x2f2   : > { %5589 = vmatpush1.msra.mxu1 %v5491_v31  ;;  %5729 = vmatprep.mubr.f32.mxu0 %v17115_v23  ;;  %v5506_v31 = vld [vmem:[%s17114_s4 + $0x108] sm:$0xff] }
 0x2f3   : > { %5590 = vmatprep.subr.mxu1 %v5490_v60  ;;  %5684 = vmatpush1.msra.mxu0 %v5549_v22  ;;  %v5505_v60 = vld [vmem:[%s17114_s4 + $0x100] sm:$0xff]  ;;  %s9965_s4 = scalar_lea.sflag [#allocation6], %s623_s29 }
 0x2f4   : > { %5591 = vmatpush1.msra.mxu1 %v5489_v50  ;;  %5685 = vmatprep.subr.mxu0 %v5548_v40  ;;  %v5843_v50 = vld [vmem:[%s17116_s5 + $0x2c8] sm:$0xff] }
 0x2f5   : > { %5592 = vmatprep.subr.mxu1 %v5488_v16  ;;  %5686 = vmatpush1.msra.mxu0 %v5547_v56  ;;  %v5779_v40 = vld [vmem:[%s17116_s5 + $0xc8] sm:$0xff] }
 0x2f6   : > { %5593 = vmatpush1.msra.mxu1 %v5487_v58  ;;  %5687 = vmatprep.subr.mxu0 %v5546_v1 }
 0x2f7   : > { %5594 = vmatprep.subr.mxu1 %v5486_v3  ;;  %5688 = vmatpush1.msra.mxu0 %v5545_v38  ;;  %v5776_v38 = vld [vmem:[%s17116_s5 + $0xb0] sm:$0xff] }
 0x2f8   : > { %5595 = vmatpush1.msra.mxu1 %v5485_v55  ;;  %5689 = vmatprep.subr.mxu0 %v5544_v57  ;;  %v5774_v57 = vld [vmem:[%s17116_s5 + $0xa0] sm:$0xff] }
 0x2f9   : > { %5596 = vmatprep.subr.mxu1 %v5484_v6  ;;  %5690 = vmatpush1.msra.mxu0 %v5543_v19  ;;  %v5773_v19 = vld [vmem:[%s17116_s5 + $0x98] sm:$0xff] }
 0x2fa   : > { %5597 = vmatpush1.msra.mxu1 %v5483_v21  ;;  %5691 = vmatprep.subr.mxu0 %v5542_v27  ;;  %v5772_v27 = vld [vmem:[%s17116_s5 + $0x90] sm:$0xff] }
 0x2fb   : > { %5598 = vmatprep.subr.mxu1 %v5482_v46  ;;  %5692 = vmatpush1.msra.mxu0 %v5541_v53  ;;  %v5771_v53 = vld [vmem:[%s17116_s5 + $0x88] sm:$0xff] }
 0x2fc   : > { %5599 = vmatpush1.msra.mxu1 %v5481_v29  ;;  %5693 = vmatprep.subr.mxu0 %v5540_v45 }
 0x2fd   : > { %5600 = vmatprep.subr.mxu1 %v5480_v54  ;;  %5694 = vmatpush1.msra.mxu0 %v5539_v11  ;;  %v5784_v54 = vld [vmem:[%s17116_s5 + $0xf0] sm:$0xff] }
 0x2fe   : > { %5601 = vmatpush1.msra.mxu1 %v5479_v4  ;;  %5695 = vmatprep.subr.mxu0 %v5538_v17  ;;  %v5768_v11 = vld [vmem:[%s17116_s5 + $0x70] sm:$0xff] }
 0x2ff   : > { %5602 = vmatprep.subr.mxu1 %v5478_v37  ;;  %5696 = vmatpush1.msra.mxu0 %v5537_v18 }
 0x300   : > { %5603 = vmatpush1.msra.mxu1 %v5477_v28  ;;  %5844 = vmatprep.subr.mxu0 %v5785_v15  ;;  %v5783_v28 = vld [vmem:[%s17116_s5 + $0xe8] sm:$0xff] }
 0x301   : > { %5604 = vmatprep.subr.mxu1 %v5476_v61  ;;  %v5782_v61 = vld [vmem:[%s17116_s5 + $0xe0] sm:$0xff] }
 0x302   : > { %5605 = vmatpush1.msra.mxu1 %v5475_v43 }
 0x303   : > { %5606 = vmatprep.subr.mxu1 %v5474_v39  ;;  %v5781_v39 = vld [vmem:[%s17116_s5 + $0xd8] sm:$0xff] }
 0x304   : > { %5607 = vmatpush1.msra.mxu1 %v5473_v62 }
 0x305   : > { %5608 = vmatprep.subr.mxu1 %v5536_v25  ;;  %v5780_v25 = vld [vmem:[%s17116_s5 + $0xd0] sm:$0xff] }
 0x306   : > { %5609 = vmatpush2.msra.mxu1 %v5535_v0 }
 0x307   : > { %5610 = vmatprep.subr.mxu1 %v5534_v30  ;;  %v5778_v30 = vld [vmem:[%s17116_s5 + $0xc0] sm:$0xff] }
 0x308   : > { %5611 = vmatpush2.msra.mxu1 %v5533_v34  ;;  %v5777_v34 = vld [vmem:[%s17116_s5 + $0xb8] sm:$0xff] }
 0x309   : > { %5612 = vmatprep.subr.mxu1 %v5532_v48 }
 0x30a   : > { %5613 = vmatpush2.msra.mxu1 %v5531_v49  ;;  %v5775_v49 = vld [vmem:[%s17116_s5 + $0xa8] sm:$0xff] }
 0x30b   : > { %5614 = vmatprep.subr.mxu1 %v5530_v41 }
 0x30c   : > { %5615 = vmatpush2.msra.mxu1 %v5529_v51 }
 0x30d   : > { %5616 = vmatprep.subr.mxu1 %v5528_v12 }
 0x30e   : > { %5617 = vmatpush2.msra.mxu1 %v5527_v47  ;;  %v5770_v47 = vld [vmem:[%s17116_s5 + $0x80] sm:$0xff] }
 0x30f   : > { %5618 = vmatprep.subr.mxu1 %v5526_v42  ;;  %v5769_v42 = vld [vmem:[%s17116_s5 + $0x78] sm:$0xff] }
 0x310   : > { %5619 = vmatpush2.msra.mxu1 %v5525_v2 }
 0x311   : > { %5620 = vmatprep.subr.mxu1 %v5524_v63  ;;  %v5767_v63 = vld [vmem:[%s17116_s5 + $0x68] sm:$0xff] }
 0x312   : > { %5621 = vmatpush2.msra.mxu1 %v5523_v26  ;;  %v5766_v26 = vld [vmem:[%s17116_s5 + $0x60] sm:$0xff] }
 0x313   : > { %5622 = vmatprep.subr.mxu1 %v5522_v24  ;;  %v5765_v24 = vld [vmem:[%s17116_s5 + $0x58] sm:$0xff] }
 0x314   : > { %5623 = vmatpush2.msra.mxu1 %v5521_v7  ;;  %v5842_v7 = vld [vmem:[%s17116_s5 + $0x2c0] sm:$0xff] }
 0x315   : > { %5624 = vmatprep.subr.mxu1 %v5520_v13  ;;  %v5764_v13 = vld [vmem:[%s17116_s5 + $0x50] sm:$0xff] }
 0x316   : > { %5625 = vmatpush2.msra.mxu1 %v5519_v5  ;;  %v5841_v5 = vld [vmem:[%s17116_s5 + $0x2b8] sm:$0xff] }
 0x317   : > { %5626 = vmatprep.subr.mxu1 %v5518_v59 }
 0x318   : > { %5627 = vmatpush2.msra.mxu1 %v5517_v9  ;;  %v5763_v9 = vld [vmem:[%s17116_s5 + $0x48] sm:$0xff] }
 0x319   : > { %5628 = vmatprep.subr.mxu1 %v5516_v44  ;;  %v5840_v44 = vld [vmem:[%s17116_s5 + $0x2b0] sm:$0xff] }
 0x31a   : > { %5629 = vmatpush2.msra.mxu1 %v5515_v14 }
 0x31b   : > { %5630 = vmatprep.subr.mxu1 %v5514_v8 }
 0x31c   : > { %5631 = vmatpush2.msra.mxu1 %v5513_v32  ;;  %v5762_v32 = vld [vmem:[%s17116_s5 + $0x40] sm:$0xff] }
 0x31d   : > { %5632 = vmatprep.subr.mxu1 %v5512_v36 }
 0x31e   : > { %5633 = vmatpush2.msra.mxu1 %v5511_v35  ;;  %v5839_v35 = vld [vmem:[%s17116_s5 + $0x2a8] sm:$0xff] }
 0x31f   : > { %5634 = vmatprep.subr.mxu1 %v5510_v10  ;;  %v5761_v10 = vld [vmem:[%s17116_s5 + $0x38] sm:$0xff] }
 0x320   : > { %5635 = vmatpush2.msra.mxu1 %v5509_v52  ;;  %v5838_v52 = vld [vmem:[%s17116_s5 + $0x2a0] sm:$0xff] }
 0x321   : > { %5636 = vmatprep.subr.mxu1 %v5508_v20 }
 0x322   : > { %5637 = vmatpush2.msra.mxu1 %v5507_v33  ;;  %v5760_v33 = vld [vmem:[%s17116_s5 + $0x30] sm:$0xff] }
 0x323   : > { %5638 = vmatprep.subr.mxu1 %v5506_v31  ;;  %v5837_v31 = vld [vmem:[%s17116_s5 + $0x298] sm:$0xff] }
 0x324   : > { %5639 = vmatpush2.msra.mxu1 %v5505_v60 }
 0x325   : > { %5939 = vmatprep.subr.mxu1 %v5843_v50  ;;  %v5759_v50 = vld [vmem:[%s17116_s5 + $0x28] sm:$0xff] }
 0x382   : > { %v11606_v16 = vpop.f32.mrf.mxu0 }
 0x384   : > { %v5252_v58 = vpop.f32.mrf.mxu0 }
 0x38e   : > { %v11609_v3 = vpop.f32.mrf.mxu0 }
 0x390   : > { %v5262_v55 = vpop.f32.mrf.mxu0 }
 0x393   : > { %v11628_v6 = vpop.f32.mrf.mxu0 }
 0x394   : > { %v15104_v62 = vmax.f32 %v11606_v16, %v11628_v6  ;;  %v5836_v16 = vld [vmem:[%s17116_s5 + $0x290] sm:$0xff]  ;;  %v5835_v6 = vld [vmem:[%s17116_s5 + $0x288] sm:$0xff] }
 0x395   : > { %v5163_v21 = vpop.f32.mrf.mxu1  ;;  %v5442_v46 = vpop.f32.mrf.mxu0 }
 0x396   : > { %v15085_v29 = vmax.f32 %v5252_v58, %v5442_v46  ;;  %v5757_v46 = vld [vmem:[%s17116_s5 + $0x18] sm:$0xff] }
 0x397   : > { %v5165_v4 = vpop.f32.mrf.mxu1  ;;  %v11631_v37 = vpop.f32.mrf.mxu0 }
 0x398   : > { %10747 = vmatmul.mubr.msk.f32.vlgmr.msra.gmra.mxu0 %vm5563_vm3, %v15085_v29  ;;  %v15142_v51 = vmax.f32 %v11609_v3, %v11631_v37 }
 0x399   : > { %5845 = vmatpush1.msra.mxu0 %v5784_v54  ;;  %v15098_v43 = vpop.f32.mrf.mxu1  ;;  %5735 = vmatprep.mubr.f32.mxu0 %v17115_v23  ;;  %v5452_v22 = vpop.f32.mrf.mxu0  ;;  %v5834_v54 = vld [vmem:[%s17116_s5 + $0x280] sm:$0xff] }
 0x39a   : > { %5846 = vmatprep.subr.mxu0 %v5783_v28  ;;  %v15123_v1 = vmax.f32 %v5262_v55, %v5452_v22  ;;  %v5758_v55 = vld [vmem:[%s17116_s5 + $0x20] sm:$0xff]  ;;  %v5833_v28 = vld [vmem:[%s17116_s5 + $0x278] sm:$0xff]  ;;  %v5831_v22 = vld [vmem:[%s17116_s5 + $0x268] sm:$0xff] }
 0x39b   : > { %5847 = vmatpush1.msra.mxu0 %v5782_v61  ;;  %v5171_v0 = vpop.f32.mrf.mxu1  ;;  %v5755_v61 = vld [vmem:[%s17116_s5 + $0x8] sm:$0xff] }
 0x39c   : > { %5848 = vmatprep.subr.mxu0 %v5781_v39  ;;  %10748 = vmatmul.mubr.msk.f32.gmra.mxu0 %vm5563_vm3, %v15104_v62 }
 0x39d   : > { %5849 = vmatpush1.msra.mxu0 %v5780_v25  ;;  %v15117_v56 = vpop.f32.mrf.mxu1  ;;  %5741 = vmatprep.mubr.f32.mxu0 %v17115_v23  ;;  %v5754_v25 = vld [vmem:[%s17116_s5] sm:$0xff] }
 0x39e   : > { %5850 = vmatprep.subr.mxu0 %v5779_v40  ;;  %v5830_v40 = vld [vmem:[%s17116_s5 + $0x260] sm:$0xff] }
 0x39f   : > { %5851 = vmatpush1.msra.mxu0 %v5778_v30  ;;  %v5177_v48 = vpop.f32.mrf.mxu1  ;;  %v5816_v30 = vld [vmem:[%s17116_s5 + $0x1f0] sm:$0xff] }
 0x3a0   : > { %5852 = vmatprep.subr.mxu0 %v5777_v34  ;;  %10749 = vmatmul.mubr.msk.f32.gmra.mxu0 %vm5563_vm3, %v15123_v1  ;;  %v5815_v34 = vld [vmem:[%s17116_s5 + $0x1e8] sm:$0xff] }
 0x3a1   : > { %5853 = vmatpush1.msra.mxu0 %v5776_v38  ;;  %v15136_v41 = vpop.f32.mrf.mxu1  ;;  %5747 = vmatprep.mubr.f32.mxu0 %v17115_v23  ;;  %v5828_v38 = vld [vmem:[%s17116_s5 + $0x250] sm:$0xff] }
 0x3a2   : > { %5854 = vmatprep.subr.mxu0 %v5775_v49  ;;  %v5827_v49 = vld [vmem:[%s17116_s5 + $0x248] sm:$0xff] }
 0x3a3   : > { %5855 = vmatpush1.msra.mxu0 %v5774_v57  ;;  %v15147_v12 = vpop.f32.mrf.mxu1  ;;  %v5813_v57 = vld [vmem:[%s17116_s5 + $0x1d8] sm:$0xff] }
 0x3a4   : > { %5856 = vmatprep.subr.mxu0 %v5773_v19  ;;  %10750 = vmatmul.mubr.msk.f32.gmra.mxu0 %vm5563_vm3, %v15142_v51  ;;  %v5812_v19 = vld [vmem:[%s17116_s5 + $0x1d0] sm:$0xff] }
 0x3a5   : > { %5857 = vmatpush1.msra.mxu0 %v5772_v27  ;;  %v5353_v45 = vpop.f32.mrf.mxu1  ;;  %v5825_v27 = vld [vmem:[%s17116_s5 + $0x238] sm:$0xff] }
 0x3a6   : > { %5858 = vmatprep.subr.mxu0 %v5771_v53  ;;  %v15163_v2 = vmax.f32 %v5163_v21, %v5353_v45  ;;  %v5824_v53 = vld [vmem:[%s17116_s5 + $0x230] sm:$0xff]  ;;  %v5823_v45 = vld [vmem:[%s17116_s5 + $0x228] sm:$0xff] }
 0x3a7   : > { %5859 = vmatpush1.msra.mxu0 %v5770_v47  ;;  %v5355_v17 = vpop.f32.mrf.mxu1  ;;  %v5810_v47 = vld [vmem:[%s17116_s5 + $0x1c0] sm:$0xff] }
 0x3a8   : > { %v5462_v18 = vmax.f32 %v5165_v4, %v5355_v17  ;;  %5860 = vmatprep.subr.mxu0 %v5769_v42  ;;  %v5756_v4 = vld [vmem:[%s17116_s5 + $0x10] sm:$0xff]  ;;  %v5809_v42 = vld [vmem:[%s17116_s5 + $0x1b8] sm:$0xff] }
 0x3a9   : > { %5861 = vmatpush1.msra.mxu0 %v5768_v11  ;;  %v5359_v15 = vpop.f32.mrf.mxu1  ;;  %v5822_v11 = vld [vmem:[%s17116_s5 + $0x220] sm:$0xff]  ;;  %v5808_v17 = vld [vmem:[%s17116_s5 + $0x1b0] sm:$0xff] }
 0x3aa   : > { %5862 = vmatprep.subr.mxu0 %v5767_v63  ;;  %5640 = vmatprep.mubr.f32.mxu1 %v5462_v18  ;;  %v15191_v14 = vmax.f32 %v15098_v43, %v5359_v15  ;;  %v5832_v43 = vld [vmem:[%s17116_s5 + $0x270] sm:$0xff]  ;;  %v5821_v63 = vld [vmem:[%s17116_s5 + $0x218] sm:$0xff]  ;;  %v5806_v15 = vld [vmem:[%s17116_s5 + $0x1a0] sm:$0xff] }
 0x3ab   : > { %5863 = vmatpush1.msra.mxu0 %v5766_v26  ;;  %v5361_v59 = vpop.f32.mrf.mxu1  ;;  %5641 = vmatmul.mubr.f32.vlgmr.msra.gmra.mxu1 %v15163_v2  ;;  %v5820_v26 = vld [vmem:[%s17116_s5 + $0x210] sm:$0xff] }
 0x3ac   : > { %v15193_v8 = vmax.f32 %v5171_v0, %v5361_v59  ;;  %5864 = vmatprep.subr.mxu0 %v5765_v24  ;;  %5940 = vmatpush1.msra.mxu1 %v5842_v7  ;;  %v5817_v0 = vld [vmem:[%s17116_s5 + $0x1f8] sm:$0xff]  ;;  %v5819_v24 = vld [vmem:[%s17116_s5 + $0x208] sm:$0xff] }
 0x3ad   : > { %5865 = vmatpush1.msra.mxu0 %v5764_v13  ;;  %5941 = vmatprep.subr.mxu1 %v5841_v5  ;;  %v5365_v36 = vpop.f32.mrf.mxu1  ;;  %v5805_v7 = vld [vmem:[%s17116_s5 + $0x198] sm:$0xff]  ;;  %v5818_v13 = vld [vmem:[%s17116_s5 + $0x200] sm:$0xff]  ;;  %v5804_v5 = vld [vmem:[%s17116_s5 + $0x190] sm:$0xff] }
 0x3ae   : > { %5866 = vmatprep.subr.mxu0 %v5763_v9  ;;  %5942 = vmatpush1.msra.mxu1 %v5840_v44  ;;  %v15224_v58 = vmax.f32 %v15117_v56, %v5365_v36  ;;  %v5829_v56 = vld [vmem:[%s17116_s5 + $0x258] sm:$0xff]  ;;  %v5803_v59 = vld [vmem:[%s17116_s5 + $0x188] sm:$0xff]  ;;  %v5802_v9 = vld [vmem:[%s17116_s5 + $0x180] sm:$0xff] }
 0x3af   : > { %5646 = vmatprep.mubr.f32.mxu1 %v15193_v8  ;;  %5867 = vmatpush1.msra.mxu0 %v5762_v32  ;;  %v5367_v20 = vpop.f32.mrf.mxu1  ;;  %v5801_v44 = vld [vmem:[%s17116_s5 + $0x178] sm:$0xff]  ;;  %v5800_v32 = vld [vmem:[%s17116_s5 + $0x170] sm:$0xff]  ;;  %v5799_v36 = vld [vmem:[%s17116_s5 + $0x168] sm:$0xff] }
 0x3b0   : > { %5943 = vmatprep.subr.mxu1 %v5839_v35  ;;  %v15214_v60 = vmax.f32 %v5177_v48, %v5367_v20  ;;  %5647 = vmatmul.mubr.f32.gmra.mxu1 %v15191_v14  ;;  %v5814_v48 = vld [vmem:[%s17116_s5 + $0x1e0] sm:$0xff]  ;;  %v5797_v35 = vld [vmem:[%s17116_s5 + $0x158] sm:$0xff] }
 0x3b1   : > { %5868 = vmatprep.subr.mxu0 %v5761_v10  ;;  %5944 = vmatpush1.msra.mxu1 %v5838_v52  ;;  %v5371_v3 = vpop.f32.mrf.mxu1  ;;  %v5796_v10 = vld [vmem:[%s17116_s5 + $0x150] sm:$0xff]  ;;  %v5795_v52 = vld [vmem:[%s17116_s5 + $0x148] sm:$0xff]  ;;  %v5793_v20 = vld [vmem:[%s17116_s5 + $0x138] sm:$0xff] }
 0x3b2   : > { %5869 = vmatpush1.msra.mxu0 %v5760_v33  ;;  %5945 = vmatprep.subr.mxu1 %v5837_v31  ;;  %v15256_v39 = vmax.f32 %v15136_v41, %v5371_v3  ;;  %v5826_v41 = vld [vmem:[%s17116_s5 + $0x240] sm:$0xff]  ;;  %v5792_v33 = vld [vmem:[%s17116_s5 + $0x130] sm:$0xff]  ;;  %v5791_v31 = vld [vmem:[%s17116_s5 + $0x128] sm:$0xff] }
 0x3b3   : > { %5870 = vmatprep.subr.mxu0 %v5759_v50  ;;  %5946 = vmatpush1.msra.mxu1 %v5836_v16  ;;  %v5373_v21 = vpop.f32.mrf.mxu1  ;;  %v5789_v50 = vld [vmem:[%s17116_s5 + $0x118] sm:$0xff]  ;;  %v5788_v16 = vld [vmem:[%s17116_s5 + $0x110] sm:$0xff]  ;;  %v5787_v3 = vld [vmem:[%s17116_s5 + $0x108] sm:$0xff] }
 0x3b4   : > { %5652 = vmatprep.mubr.f32.mxu1 %v15214_v60  ;;  %5871 = vmatpush1.msra.mxu0 %v5758_v55  ;;  %v15243_v37 = vmax.f32 %v15147_v12, %v5373_v21  ;;  %v5811_v12 = vld [vmem:[%s17116_s5 + $0x1c8] sm:$0xff]  ;;  %v5786_v55 = vld [vmem:[%s17116_s5 + $0x100] sm:$0xff] }
 0x3b5   : > { %5947 = vmatprep.subr.mxu1 %v5835_v6  ;;  %5653 = vmatmul.mubr.f32.gmra.mxu1 %v15224_v58  ;;  %v6195_v6 = vld [vmem:[#allocation4 + $0x390] sm:$0xff]  ;;  %v6197_v21 = vld [vmem:[#allocation4 + $0x3a0] sm:$0xff] }
 0x3b6   : > { %5872 = vmatprep.subr.mxu0 %v5757_v46  ;;  %5908 = vmatprep.mubr.f32.mxu0 %v5462_v18  ;;  %v5807_v18 = vld [vmem:[%s17116_s5 + $0x1a8] sm:$0xff]  ;;  %v6193_v46 = vld [vmem:[#allocation4 + $0x380] sm:$0xff] }
 0x3b7   : > { %5948 = vmatpush1.msra.mxu1 %v5834_v54  ;;  %5873 = vmatpush1.msra.mxu0 %v5756_v4  ;;  %v6187_v54 = vld [vmem:[#allocation4 + $0x350] sm:$0xff]  ;;  %v6186_v4 = vld [vmem:[#allocation4 + $0x348] sm:$0xff] }
 0x3b8   : > { %5949 = vmatprep.subr.mxu1 %v5833_v28  ;;  %5874 = vmatprep.subr.mxu0 %v5755_v61  ;;  %v6184_v28 = vld [vmem:[#allocation4 + $0x338] sm:$0xff]  ;;  %v6183_v61 = vld [vmem:[#allocation4 + $0x330] sm:$0xff] }
 0x3b9   : > { %5950 = vmatpush1.msra.mxu1 %v5832_v43  ;;  %5658 = vmatprep.mubr.f32.mxu1 %v15243_v37  ;;  %v6185_v43 = vld [vmem:[#allocation4 + $0x340] sm:$0xff] }
 0x3ba   : > { %5875 = vmatpush1.msra.mxu0 %v5754_v25  ;;  %5951 = vmatprep.subr.mxu1 %v5831_v22  ;;  %v6180_v25 = vld [vmem:[#allocation4 + $0x318] sm:$0xff]  ;;  %v6182_v22 = vld [vmem:[#allocation4 + $0x328] sm:$0xff] }
 0x3bb   : > { %5659 = vmatmul.mubr.f32.gmra.mxu1 %v15256_v39  ;;  %5876 = vmatprep.subr.mxu0 %v5817_v0  ;;  %v6178_v0 = vld [vmem:[#allocation4 + $0x308] sm:$0xff] }
 0x3bc   : > { %5952 = vmatpush1.msra.mxu1 %v5830_v40  ;;  %5877 = vmatpush2.msra.mxu0 %v5816_v30  ;;  %v6177_v40 = vld [vmem:[#allocation4 + $0x300] sm:$0xff]  ;;  %v6179_v30 = vld [vmem:[#allocation4 + $0x310] sm:$0xff] }
 0x3bd   : > { %5953 = vmatprep.subr.mxu1 %v5829_v56  ;;  %5878 = vmatprep.subr.mxu0 %v5815_v34  ;;  %v6175_v56 = vld [vmem:[#allocation4 + $0x2f0] sm:$0xff]  ;;  %v6174_v34 = vld [vmem:[#allocation4 + $0x2e8] sm:$0xff] }
 0x3be   : > { %5954 = vmatpush1.msra.mxu1 %v5828_v38  ;;  %5879 = vmatpush2.msra.mxu0 %v5814_v48  ;;  %v6176_v38 = vld [vmem:[#allocation4 + $0x2f8] sm:$0xff] }
 0x3bf   : > { %5955 = vmatprep.subr.mxu1 %v5827_v49  ;;  %5880 = vmatprep.subr.mxu0 %v5813_v57  ;;  %v6172_v48 = vld [vmem:[#allocation4 + $0x2d8] sm:$0xff]  ;;  %v6171_v49 = vld [vmem:[#allocation4 + $0x2d0] sm:$0xff]  ;;  %v6173_v57 = vld [vmem:[#allocation4 + $0x2e0] sm:$0xff] }
 0x3c0   : > { %5956 = vmatpush1.msra.mxu1 %v5826_v41  ;;  %5881 = vmatpush2.msra.mxu0 %v5812_v19  ;;  %v6169_v41 = vld [vmem:[#allocation4 + $0x2c0] sm:$0xff]  ;;  %v6168_v19 = vld [vmem:[#allocation4 + $0x2b8] sm:$0xff] }
 0x3c1   : > { %5957 = vmatprep.subr.mxu1 %v5825_v27  ;;  %5882 = vmatprep.subr.mxu0 %v5811_v12  ;;  %v6170_v27 = vld [vmem:[#allocation4 + $0x2c8] sm:$0xff] }
 0x3c2   : > { %5958 = vmatpush1.msra.mxu1 %v5824_v53  ;;  %5883 = vmatpush2.msra.mxu0 %v5810_v47  ;;  %v6166_v12 = vld [vmem:[#allocation4 + $0x2a8] sm:$0xff]  ;;  %v6165_v53 = vld [vmem:[#allocation4 + $0x2a0] sm:$0xff]  ;;  %v6167_v47 = vld [vmem:[#allocation4 + $0x2b0] sm:$0xff] }
 0x3c3   : > { %5959 = vmatprep.subr.mxu1 %v5823_v45  ;;  %5884 = vmatprep.subr.mxu0 %v5809_v42  ;;  %v6163_v45 = vld [vmem:[#allocation4 + $0x290] sm:$0xff]  ;;  %v6162_v42 = vld [vmem:[#allocation4 + $0x288] sm:$0xff] }
 0x3c4   : > { %5960 = vmatpush1.msra.mxu1 %v5822_v11  ;;  %5885 = vmatpush2.msra.mxu0 %v5808_v17  ;;  %v6164_v11 = vld [vmem:[#allocation4 + $0x298] sm:$0xff] }
 0x3c5   : > { %5961 = vmatprep.subr.mxu1 %v5821_v63  ;;  %5886 = vmatprep.subr.mxu0 %v5807_v18  ;;  %v6160_v17 = vld [vmem:[#allocation4 + $0x278] sm:$0xff]  ;;  %v6159_v63 = vld [vmem:[#allocation4 + $0x270] sm:$0xff]  ;;  %v6161_v18 = vld [vmem:[#allocation4 + $0x280] sm:$0xff] }
 0x3c6   : > { %5962 = vmatpush1.msra.mxu1 %v5820_v26  ;;  %5887 = vmatpush2.msra.mxu0 %v5806_v15  ;;  %v6157_v26 = vld [vmem:[#allocation4 + $0x260] sm:$0xff]  ;;  %v6156_v15 = vld [vmem:[#allocation4 + $0x258] sm:$0xff] }
 0x3c7   : > { %5963 = vmatprep.subr.mxu1 %v5819_v24  ;;  %5888 = vmatprep.subr.mxu0 %v5805_v7  ;;  %v6158_v24 = vld [vmem:[#allocation4 + $0x268] sm:$0xff] }
 0x3c8   : > { %5964 = vmatpush1.msra.mxu1 %v5818_v13  ;;  %5997 = vmatprep.mubr.f32.mxu1 %v17115_v23  ;;  %v6154_v7 = vld [vmem:[#allocation4 + $0x248] sm:$0xff]  ;;  %v6153_v13 = vld [vmem:[#allocation4 + $0x240] sm:$0xff] }
 0x3c9   : > { %5889 = vmatpush2.msra.mxu0 %v5804_v5  ;;  %10751 = vmatmul.mubr.msk.f32.vlgmr.msra.gmra.mxu1 %vm5563_vm3, %v15085_v29  ;;  %v5798_v29 = vld [vmem:[%s17116_s5 + $0x160] sm:$0xff]  ;;  %v6155_v5 = vld [vmem:[#allocation4 + $0x250] sm:$0xff] }
 0x3ca   : > { %5890 = vmatprep.subr.mxu0 %v5803_v59  ;;  %6003 = vmatprep.mubr.f32.mxu1 %v17115_v23  ;;  %v6151_v59 = vld [vmem:[#allocation4 + $0x230] sm:$0xff] }
 0x3cb   : > { %5891 = vmatpush2.msra.mxu0 %v5802_v9  ;;  %v6150_v9 = vld [vmem:[#allocation4 + $0x228] sm:$0xff] }
 0x3cc   : > { %5892 = vmatprep.subr.mxu0 %v5801_v44  ;;  %v6152_v44 = vld [vmem:[#allocation4 + $0x238] sm:$0xff] }
 0x3cd   : > { %5893 = vmatpush2.msra.mxu0 %v5800_v32  ;;  %10752 = vmatmul.mubr.msk.f32.gmra.mxu1 %vm5563_vm3, %v15104_v62  ;;  %v5794_v62 = vld [vmem:[%s17116_s5 + $0x140] sm:$0xff] }
 0x3ce   : > { %5894 = vmatprep.subr.mxu0 %v5799_v36  ;;  %6009 = vmatprep.mubr.f32.mxu1 %v17115_v23  ;;  %v6217_v32 = vld [vmem:[#allocation4 + $0x440] sm:$0xf]  ;;  %v6216_v36 = vld [vmem:[#allocation4 + $0x438] sm:$0xf] }
 0x3cf   : > { %5895 = vmatpush2.msra.mxu0 %v5798_v29  ;;  %v6218_v29 = vld [vmem:[#allocation4 + $0x448] sm:$0xf] }
 0x3d0   : > { %5896 = vmatprep.subr.mxu0 %v5797_v35  ;;  %v6214_v35 = vld [vmem:[#allocation4 + $0x428] sm:$0xff] }
 0x3d1   : > { %5897 = vmatpush2.msra.mxu0 %v5796_v10  ;;  %10753 = vmatmul.mubr.msk.f32.gmra.mxu1 %vm5563_vm3, %v15123_v1  ;;  %v5790_v1 = vld [vmem:[%s17116_s5 + $0x120] sm:$0xff]  ;;  %s11845_s5 = scalar_lea.vmem %s9979_s21, 128 }
 0x3d2   : > { %5898 = vmatprep.subr.mxu0 %v5795_v52  ;;  %6015 = vmatprep.mubr.f32.mxu1 %v17115_v23  ;;  %v6213_v10 = vld [vmem:[#allocation4 + $0x420] sm:$0xff]  ;;  %v6215_v52 = vld [vmem:[#allocation4 + $0x430] sm:$0xff]  ;;  %p11846_p10 = scmp.ne.s32.totalorder %s9979_s21, %s11845_s5  ;;  %p11853_p0 = scmp.lt.s32.totalorder %s11851_s24, %s11845_s5 }
 0x3d3   : > { %5899 = vmatpush2.msra.mxu0 %v5794_v62  ;;  %v6211_v62 = vld [vmem:[#allocation4 + $0x410] sm:$0xff] }
 0x3d4   : > { %5900 = vmatprep.subr.mxu0 %v5793_v20  ;;  %v6210_v20 = vld [vmem:[#allocation4 + $0x408] sm:$0xff]  ;;  %p11847_p7 = pnand %p11846_p10, %p12062_p5  ;;  %p11854_p1 = por %p11853_p0, %p11852_p11 }
 0x3d5   : > { %5901 = vmatpush2.msra.mxu0 %v5792_v33  ;;  %10754 = vmatmul.mubr.msk.f32.gmra.mxu1 %vm5563_vm3, %v15142_v51  ;;  %v6196_v51 = vld [vmem:[#allocation4 + $0x398] sm:$0xff] }
 0x3d6   : > { %5902 = vmatprep.subr.mxu0 %v5791_v31  ;;  %6263 = vmatprep.subr.mxu1 %v6196_v51  ;;  %v6212_v33 = vld [vmem:[#allocation4 + $0x418] sm:$0xff]  ;;  %v6202_v51 = vld [vmem:[#allocation4 + $0x3c8] sm:$0xff]  ;;  %p11848_p8 = pneg %p11847_p7 }
 0x3d7   : > { %5903 = vmatpush2.msra.mxu0 %v5790_v1  ;;  %6264 = vmatpush1.msra.mxu1 %v6195_v6  ;;  %v6208_v31 = vld [vmem:[#allocation4 + $0x3f8] sm:$0xff]  ;;  %v6207_v1 = vld [vmem:[#allocation4 + $0x3f0] sm:$0xff]  ;;  %v6201_v6 = vld [vmem:[#allocation4 + $0x3c0] sm:$0xff] }
 0x3d8   : > { %5904 = vmatprep.subr.mxu0 %v5789_v50  ;;  %6265 = vmatprep.subr.mxu1 %v6193_v46  ;;  %v6209_v50 = vld [vmem:[#allocation4 + $0x400] sm:$0xff]  ;;  %v6199_v46 = vld [vmem:[#allocation4 + $0x3b0] sm:$0xff]  ;;  %p11855_p3 = pnand %p11854_p1, %p11848_p8 }
 0x3d9   : > { %5905 = vmatpush2.msra.mxu0 %v5788_v16  ;;  %v6205_v16 = vld [vmem:[#allocation4 + $0x3e0] sm:$0xff] }
 0x3da   : > { %5906 = vmatprep.subr.mxu0 %v5787_v3  ;;  %v6204_v3 = vld [vmem:[#allocation4 + $0x3d8] sm:$0xff] }
 0x3db   : > { %5907 = vmatpush2.msra.mxu0 %v5786_v55  ;;  %v6206_v55 = vld [vmem:[#allocation4 + $0x3e8] sm:$0xff] }
 0x3dc   : > { %5909 = vmatmul.mubr.f32.vlgmr.msra.gmra.mxu0 %v15163_v2  ;;  %6352 = vmatprep.subr.mxu0 %v17115_v23  ;;  %v6192_v2 = vld [vmem:[#allocation4 + $0x378] sm:$0xff] }
 0x3dd   : > { %5914 = vmatprep.mubr.f32.mxu0 %v15193_v8  ;;  %6353 = vmatpush1.msra.mxu0 %v6197_v21  ;;  %v6190_v8 = vld [vmem:[#allocation4 + $0x368] sm:$0xff]  ;;  %v6203_v21 = vld [vmem:[#allocation4 + $0x3d0] sm:$0xff] }
 0x3de   : > { %6354 = vmatprep.subr.mxu0 %v17115_v23  ;;  %6266 = vmatpush1.msra.mxu1 %v6192_v2  ;;  %v6198_v2 = vld [vmem:[#allocation4 + $0x3a8] sm:$0xff] }
 0x3df   : > { %6267 = vmatprep.subr.mxu1 %v6190_v8  ;;  %v6122_v8 = vld [vmem:[#allocation4 + $0x170] sm:$0xff] }
 0x3e0   : > { %5915 = vmatmul.mubr.f32.gmra.mxu0 %v15191_v14  ;;  %v6194_v14 = vld [vmem:[#allocation4 + $0x388] sm:$0xff] }
 0x3e1   : > { %5920 = vmatprep.mubr.f32.mxu0 %v15214_v60  ;;  %6355 = vmatpush1.msra.mxu0 %v6194_v14  ;;  %v6189_v60 = vld [vmem:[#allocation4 + $0x360] sm:$0xff]  ;;  %v6200_v14 = vld [vmem:[#allocation4 + $0x3b8] sm:$0xff] }
 0x3e2   : > { %6356 = vmatprep.subr.mxu0 %v17115_v23  ;;  %6268 = vmatpush1.msra.mxu1 %v6189_v60 }
 0x3e3   : > { %6269 = vmatprep.subr.mxu1 %v6187_v54 }
 0x3e4   : > { %5921 = vmatmul.mubr.f32.gmra.mxu0 %v15224_v58  ;;  %v6191_v58 = vld [vmem:[#allocation4 + $0x370] sm:$0xff]  ;;  %6270 = vmatpush1.msra.mxu1 %v6186_v4 }
 0x3e5   : > { %5926 = vmatprep.mubr.f32.mxu0 %v15243_v37  ;;  %6357 = vmatpush1.msra.mxu0 %v6191_v58  ;;  %v6188_v37 = vld [vmem:[#allocation4 + $0x358] sm:$0xff] }
 0x3e6   : > { %6358 = vmatprep.subr.mxu0 %v17115_v23  ;;  %6271 = vmatprep.subr.mxu1 %v6184_v28 }
 0x3e7   : > { %6359 = vmatpush1.msra.mxu0 %v6188_v37  ;;  %6272 = vmatpush1.msra.mxu1 %v6183_v61 }
 0x3e8   : > { %5927 = vmatmul.mubr.f32.gmra.mxu0 %v15256_v39  ;;  %6360 = vmatprep.subr.mxu0 %v17115_v23  ;;  %v6181_v39 = vld [vmem:[#allocation4 + $0x320] sm:$0xff] }
 0x3e9   : > { %6361 = vmatpush1.msra.mxu0 %v6185_v43  ;;  %6273 = vmatprep.subr.mxu1 %v6181_v39 }
 0x3ea   : > { %6362 = vmatprep.subr.mxu0 %v17115_v23  ;;  %6274 = vmatpush1.msra.mxu1 %v6180_v25 }
 0x3eb   : > { %6363 = vmatpush1.msra.mxu0 %v6182_v22  ;;  %6275 = vmatprep.subr.mxu1 %v6178_v0 }
 0x3ec   : > { %6364 = vmatprep.subr.mxu0 %v17115_v23  ;;  %6276 = vmatpush1.msra.mxu1 %v6177_v40 }
 0x3ed   : > { %6365 = vmatpush1.msra.mxu0 %v6179_v30  ;;  %6277 = vmatprep.subr.mxu1 %v6175_v56  ;;  %v6032_v56 = vlaneseq }
 0x3ee   : > { %6366 = vmatprep.subr.mxu0 %v17115_v23  ;;  %6278 = vmatpush1.msra.mxu1 %v6174_v34 }
 0x3ef   : > { %6367 = vmatpush1.msra.mxu0 %v6176_v38  ;;  %6279 = vmatprep.subr.mxu1 %v6172_v48  ;;  %v6033_v48 = vshrl.u32 %v6032_v56, 7 }
 0x3f0   : > { %6368 = vmatprep.subr.mxu0 %v17115_v23  ;;  %6280 = vmatpush1.msra.mxu1 %v6171_v49 }
 0x3f1   : > { %6369 = vmatpush1.msra.mxu0 %v6173_v57  ;;  %6281 = vmatprep.subr.mxu1 %v6169_v41  ;;  %v15447_v41 = vsub.s32 0, %v6033_v48 }
 0x3f2   : > { %6370 = vmatprep.subr.mxu0 %v17115_v23  ;;  %6282 = vmatpush1.msra.mxu1 %v6168_v19 }
 0x3f3   : > { %6371 = vmatpush1.msra.mxu0 %v6170_v27  ;;  %6283 = vmatprep.subr.mxu1 %v6166_v12  ;;  %v6030_v12 = vld [vmem:[%s16817_s6] sm:$0x3] }
 0x3f4   : > { %6372 = vmatprep.subr.mxu0 %v17115_v23  ;;  %6284 = vmatpush1.msra.mxu1 %v6165_v53  ;;  %v15452_v53 = vsub.s32 1, %v6033_v48 }
 0x3f5   : > { %6373 = vmatpush1.msra.mxu0 %v6167_v47  ;;  %6285 = vmatprep.subr.mxu1 %v6163_v45 }
 0x3f6   : > { %6374 = vmatprep.subr.mxu0 %v17115_v23  ;;  %6286 = vmatpush1.msra.mxu1 %v6162_v42  ;;  %17117 = vst [vmem:[#allocation24_spill] sm:$0xff] %v15452_v53 }
 0x3f7   : > { %6375 = vmatpush1.msra.mxu0 %v6164_v11  ;;  %6287 = vmatprep.subr.mxu1 %v6160_v17  ;;  %v6035_v11 = vrot.slane %v6030_v12, %v15447_v41 }
 0x3f8   : > { %6376 = vmatprep.subr.mxu0 %v17115_v23  ;;  %6288 = vmatpush1.msra.mxu1 %v6159_v63 }
 0x3f9   : > { %6377 = vmatpush1.msra.mxu0 %v6161_v18  ;;  %6289 = vmatprep.subr.mxu1 %v6157_v26 }
 0x3fa   : > { %6378 = vmatprep.subr.mxu0 %v17115_v23  ;;  %6290 = vmatpush1.msra.mxu1 %v6156_v15 }
 0x3fb   : > { %6379 = vmatpush1.msra.mxu0 %v6158_v24  ;;  %6291 = vmatprep.subr.mxu1 %v6154_v7  ;;  %v6039_v24 = vrot.slane %v6030_v12, %v15452_v53 }
 0x3fc   : > { %6380 = vmatprep.subr.mxu0 %v17115_v23  ;;  %6292 = vmatpush1.msra.mxu1 %v6153_v13 }
 0x3fd   : > { %6381 = vmatpush1.msra.mxu0 %v6155_v5  ;;  %6293 = vmatprep.subr.mxu1 %v6151_v59 }
 0x3fe   : > { %6382 = vmatprep.subr.mxu0 %v17115_v23  ;;  %6294 = vmatpush1.msra.mxu1 %v6150_v9 }
 0x3ff   : > { %6383 = vmatpush1.msra.mxu0 %v6152_v44  ;;  %10755 = vmatprep.subr.msk.mxu1 %vm5087_vm2, %v6217_v32 }
 0x400   : > { %6402 = vmatprep.subr.mxu0 %v17115_v23  ;;  %10756 = vmatpush2.msk.msra.mxu1 %vm5087_vm2, %v6216_v36 }
 0x401   : > { %10761 = vmatpush2.msk.msra.mxu0 %vm5087_vm2, %v6218_v29  ;;  %6315 = vmatprep.subr.mxu1 %v6214_v35 }
 0x402   : > { %6404 = vmatprep.subr.mxu0 %v17115_v23  ;;  %6316 = vmatpush2.msra.mxu1 %v6213_v10 }
 0x403   : > { %6405 = vmatpush2.msra.mxu0 %v6215_v52  ;;  %6317 = vmatprep.subr.mxu1 %v6211_v62 }
 0x404   : > { %6406 = vmatprep.subr.mxu0 %v17115_v23  ;;  %6318 = vmatpush2.msra.mxu1 %v6210_v20 }
 0x405   : > { %6407 = vmatpush2.msra.mxu0 %v6212_v33  ;;  %6319 = vmatprep.subr.mxu1 %v6208_v31 }
 0x406   : > { %6408 = vmatprep.subr.mxu0 %v17115_v23  ;;  %6320 = vmatpush2.msra.mxu1 %v6207_v1 }
 0x407   : > { %6409 = vmatpush2.msra.mxu0 %v6209_v50  ;;  %6321 = vmatprep.subr.mxu1 %v6205_v16 }
 0x408   : > { %6410 = vmatprep.subr.mxu0 %v17115_v23  ;;  %6322 = vmatpush2.msra.mxu1 %v6204_v3 }
 0x409   : > { %6411 = vmatpush2.msra.mxu0 %v6206_v55  ;;  %6323 = vmatprep.subr.mxu1 %v6202_v51 }
 0x40a   : > { %6412 = vmatprep.subr.mxu0 %v17115_v23  ;;  %6324 = vmatpush2.msra.mxu1 %v6201_v6 }
 0x40b   : > { %6413 = vmatpush2.msra.mxu0 %v6203_v21  ;;  %6325 = vmatprep.subr.mxu1 %v6199_v46 }
 0x40c   : > { %6414 = vmatprep.subr.mxu0 %v17115_v23  ;;  %6326 = vmatpush2.msra.mxu1 %v6198_v2 }
 0x40d   : > { %6415 = vmatpush2.msra.mxu0 %v6200_v14  ;;  %6456 = vmatprep.subr.mxu1 %v6122_v8 }
 0x40e   : > { %6545 = vmatprep.subr.mxu0 %v17115_v23 }
 0x458   : > { %v5731_v37 = vpop.f32.mrf.mxu0 }
 0x45a   : > { %v5733_v61 = vpop.f32.mrf.mxu0 }
 0x45c   : > { %v5737_v39 = vpop.f32.mrf.mxu0 }
 0x45e   : > { %v5739_v22 = vpop.f32.mrf.mxu0 }
 0x460   : > { %v5743_v40 = vpop.f32.mrf.mxu0 }
 0x462   : > { %v5745_v34 = vpop.f32.mrf.mxu0 }
 0x464   : > { %v5749_v49 = vpop.f32.mrf.mxu0 }
 0x466   : > { %v5751_v19 = vpop.f32.mrf.mxu0 }
 0x46b   : > { %v5642_v60 = vpop.f32.mrf.mxu1 }
 0x46c   : > { %v5732_v45 = vadd.f32 %v5731_v37, %v5642_v60 }
 0x46d   : > { %v5644_v58 = vpop.f32.mrf.mxu1 }
 0x46e   : > { %v5734_v18 = vadd.f32 %v5733_v61, %v5644_v58 }
 0x470   : > { %v5648_v54 = vpop.f32.mrf.mxu1 }
 0x471   : > { %v5738_v13 = vadd.f32 %v5737_v39, %v5648_v54 }
 0x472   : > { %v5650_v4 = vpop.f32.mrf.mxu1 }
 0x473   : > { %v5740_v44 = vadd.f32 %v5739_v22, %v5650_v4 }
 0x475   : > { %v5654_v28 = vpop.f32.mrf.mxu1 }
 0x476   : > { %v5744_v62 = vadd.f32 %v5743_v40, %v5654_v28 }
 0x477   : > { %v5656_v43 = vpop.f32.mrf.mxu1 }
 0x478   : > { %v5746_v16 = vadd.f32 %v5745_v34, %v5656_v43 }
 0x47b   : > { %v5660_v25 = vpop.f32.mrf.mxu1 }
 0x47c   : > { %v5750_v2 = vadd.f32 %v5749_v49, %v5660_v25 }
 0x47d   : > { %v5662_v0 = vpop.f32.mrf.mxu1 }
 0x47e   : > { %v5752_v4 = vadd.f32 %v5751_v19, %v5662_v0 }
 0x489   : > { %v5999_v30 = vpop.f32.mrf.mxu1 }
 0x48b   : > { %v6001_v38 = vpop.f32.mrf.mxu1 }
 0x48d   : > { %v6005_v57 = vpop.f32.mrf.mxu1 }
 0x48f   : > { %v6007_v27 = vpop.f32.mrf.mxu1 }
 0x491   : > { %v6011_v17 = vpop.f32.mrf.mxu1 }
 0x493   : > { %v6013_v32 = vpop.f32.mrf.mxu1 }
 0x495   : > { %v6017_v3 = vpop.f32.mrf.mxu1 }
 0x497   : > { %v6019_v37 = vpop.f32.mrf.mxu1 }
 0x49c   : > { %v5910_v47 = vpop.f32.mrf.mxu0 }
 0x49d   : > { %v6000_v42 = vadd.f32 %v5999_v30, %v5910_v47 }
 0x49e   : > { %v5912_v63 = vpop.f32.mrf.mxu0 }
 0x49f   : > { %v6022_v26 = vmax.f32 %v5732_v45, %v6000_v42  ;;  %v6002_v15 = vadd.f32 %v6001_v38, %v5912_v63  ;;  %v6121_v45 = vld [vmem:[#allocation4 + $0x168] sm:$0xff]  ;;  %v6123_v42 = vld [vmem:[#allocation4 + $0x178] sm:$0xff] }
 0x4a0   : > { %v5916_v7 = vpop.f32.mrf.mxu0 }
 0x4a1   : > { %v6042_v5 = vadd.f32 %v6035_v11, %v6022_v26  ;;  %v6023_v59 = vmax.f32 %v5734_v18, %v6002_v15  ;;  %v6006_v9 = vadd.f32 %v6005_v57, %v5916_v7  ;;  %v6118_v26 = vld [vmem:[#allocation4 + $0x150] sm:$0xff]  ;;  %v6120_v15 = vld [vmem:[#allocation4 + $0x160] sm:$0xff] }
 0x4a2   : > { %v5918_v36 = vpop.f32.mrf.mxu0 }
 0x4a3   : > { %v15456_v29 = vmax.f32 %v6042_v5, 0.0  ;;  %v6043_v35 = vadd.f32 %v6039_v24, %v6023_v59  ;;  %v6024_v10 = vmax.f32 %v5738_v13, %v6006_v9  ;;  %v6008_v52 = vadd.f32 %v6007_v27, %v5918_v36  ;;  %v6116_v36 = vld [vmem:[#allocation4 + $0x140] sm:$0xff] }
 0x4a4   : > { %v5922_v20 = vpop.f32.mrf.mxu0 }
 0x4a5   : > { %6058 = vst [vmem:[#allocation2] sm:$0xff] %v15456_v29  ;;  %v6051_v33 = vmax.f32 %v6043_v35, 0.0  ;;  %v6044_v31 = vadd.f32 %v6035_v11, %v6024_v10  ;;  %v6025_v1 = vmax.f32 %v5740_v44, %v6008_v52  ;;  %v6012_v50 = vadd.f32 %v6011_v17, %v5922_v20  ;;  %v6119_v17 = vld [vmem:[#allocation4 + $0x158] sm:$0xff] }
 0x4a6   : > { %v5924_v55 = vpop.f32.mrf.mxu0  ;;  %v6115_v20 = vld [vmem:[#allocation4 + $0x138] sm:$0xff] }
 0x4a7   : > { %6060 = vst.msk [vmem:[#allocation2 + $0x8] sm:$0xff] %vm6059_vm4, %v6051_v33  ;;  %v15460_v51 = vmax.f32 %v6044_v31, 0.0  ;;  %v6045_v6 = vadd.f32 %v6039_v24, %v6025_v1  ;;  %v6026_v21 = vmax.f32 %v5744_v62, %v6012_v50  ;;  %v6014_v46 = vadd.f32 %v6013_v32, %v5924_v55  ;;  %v6117_v33 = vld [vmem:[#allocation4 + $0x148] sm:$0xff]  ;;  %v6114_v55 = vld [vmem:[#allocation4 + $0x130] sm:$0xff] }
 0x4a8   : > { %v5928_v14 = vpop.f32.mrf.mxu0 }
 0x4a9   : > { %6061 = vst [vmem:[#allocation2 + $0x10] sm:$0xff] %v15460_v51  ;;  %v6053_v8 = vmax.f32 %v6045_v6, 0.0  ;;  %v6046_v60 = vadd.f32 %v6035_v11, %v6026_v21  ;;  %v6027_v58 = vmax.f32 %v5746_v16, %v6014_v46  ;;  %v6018_v54 = vadd.f32 %v6017_v3, %v5928_v14  ;;  %v6113_v16 = vld [vmem:[#allocation4 + $0x128] sm:$0xff]  ;;  %v6112_v3 = vld [vmem:[#allocation4 + $0x120] sm:$0xff]  ;;  %v6110_v46 = vld [vmem:[#allocation4 + $0x110] sm:$0xff] }
 0x4aa   : > { %v5930_v28 = vpop.f32.mrf.mxu0  ;;  %v6229_v12 = vrot.slane %v15460_v51, 1  ;;  %v6111_v14 = vld [vmem:[#allocation4 + $0x118] sm:$0xff] }
 0x4ab   : > { %6062 = vst.msk [vmem:[#allocation2 + $0x18] sm:$0xff] %vm6059_vm4, %v6053_v8  ;;  %v15464_v61 = vmax.f32 %v6046_v60, 0.0  ;;  %v6047_v43 = vadd.f32 %v6039_v24, %v6027_v58  ;;  %v6028_v39 = vmax.f32 %v5750_v2, %v6018_v54  ;;  %v6020_v22 = vadd.f32 %v6019_v37, %v5930_v28  ;;  %v6109_v2 = vld [vmem:[#allocation4 + $0x108] sm:$0xff]  ;;  %v6107_v60 = vld [vmem:[#allocation4 + $0xf8] sm:$0xff]  ;;  %v6106_v58 = vld [vmem:[#allocation4 + $0xf0] sm:$0xff] }
 0x4ac   : > { %v6145_v38 = vld [vmem:[#allocation2] sm:$0xfe]  ;;  %v6103_v37 = vld [vmem:[#allocation4 + $0xd8] sm:$0xff]  ;;  %v6105_v28 = vld [vmem:[#allocation4 + $0xe8] sm:$0xff] }
 0x4ad   : > { %6063 = vst [vmem:[#allocation2 + $0x20] sm:$0xff] %v15464_v61  ;;  %v6055_v25 = vmax.f32 %v6047_v43, 0.0  ;;  %v6048_v40 = vadd.f32 %v6035_v11, %v6028_v39  ;;  %v6029_v30 = vmax.f32 %v5752_v4, %v6020_v22  ;;  %v6228_v57 = vrot.slane %v6145_v38, 1  ;;  %v6108_v54 = vld [vmem:[#allocation4 + $0x100] sm:$0xff]  ;;  %v6101_v43 = vld [vmem:[#allocation4 + $0xc8] sm:$0xff]  ;;  %v6094_v38 = vld [vmem:[#allocation4 + $0x90] sm:$0xff] }
 0x4ae   : > { %v6146_v0 = vld [vmem:[#allocation2 + $0x8] sm:$0xfe]  ;;  %v6234_v59 = vrot.slane %v15464_v61, 1  ;;  %v6104_v4 = vld [vmem:[#allocation4 + $0xe0] sm:$0xff] }
 0x4af   : > { %6064 = vst.msk [vmem:[#allocation2 + $0x28] sm:$0xff] %vm6059_vm4, %v6055_v25  ;;  %v6056_v56 = vmax.f32 %v6048_v40, 0.0  ;;  %v6049_v34 = vadd.f32 %v6039_v24, %v6029_v30  ;;  %v6231_v19 = vrot.slane %v6146_v0, 1  ;;  %v6230_v11 = vsel %vm6227_vm6, %v6228_v57, %v6229_v12  ;;  %v6069_v39 = vld [vmem:[#allocation2 + $0x8] sm:$0xff]  ;;  %v6100_v22 = vld [vmem:[#allocation4 + $0xc0] sm:$0xff]  ;;  %v6102_v25 = vld [vmem:[#allocation4 + $0xd0] sm:$0xff] }
 0x4b0   : > { %v6235_v50 = vsel %vm6227_vm6, %v6229_v12, %v6234_v59  ;;  %v6098_v40 = vld [vmem:[#allocation4 + $0xb0] sm:$0xff]  ;;  %v6097_v30 = vld [vmem:[#allocation4 + $0xa8] sm:$0xff]  ;;  %v6096_v0 = vld [vmem:[#allocation4 + $0xa0] sm:$0xff] }
 0x4b1   : > { %6065 = vst [vmem:[#allocation2 + $0x30] sm:$0x3f] %v6056_v56  ;;  %v6057_v48 = vmax.f32 %v6049_v34, 0.0  ;;  %v6099_v56 = vld [vmem:[#allocation4 + $0xb8] sm:$0xff]  ;;  %v6088_v12 = vld [vmem:[#allocation4 + $0x60] sm:$0xff] }
 0x4b2   : > { %v15468_v49 = vld [vmem:[#allocation2 + $0x18] sm:$0xff] }
 0x4b3   : > { %6067 = vst.msk [vmem:[#allocation2 + $0x38] sm:$0x3f] %vm6066_vm5, %v6057_v48  ;;  %v6232_v27 = vrot.slane %v15468_v49, 1  ;;  %v6713_v18 = vrot.slane %v15468_v49, 2  ;;  %v7013_v9 = vrot.slane %v15468_v49, 3  ;;  %v7312_v44 = vrot.slane %v15468_v49, 4 }
 0x4b4   : > { %v6095_v34 = vld [vmem:[#allocation4 + $0x98] sm:$0xff]  ;;  %v6092_v48 = vld [vmem:[#allocation4 + $0x80] sm:$0xff] }
 0x4b5   : > { %v6233_v47 = vsel %vm6227_vm6, %v6231_v19, %v6232_v27  ;;  %v6091_v57 = vld [vmem:[#allocation4 + $0x78] sm:$0xff]  ;;  %v6093_v19 = vld [vmem:[#allocation4 + $0x88] sm:$0xff] }
 0x4b6   : > { %10757 = vmatprep.mubr.msk.f32.mxu1 %vm6059_vm4, %v6233_v47  ;;  %10762 = vmatprep.mubr.msk.f32.mxu0 %vm6059_vm4, %v6233_v47  ;;  %v15476_v63 = vld [vmem:[#allocation2 + $0x28] sm:$0xff]  ;;  %v6090_v47 = vld [vmem:[#allocation4 + $0x70] sm:$0xff] }
 0x4b7   : > { %6328 = vmatmul.mubr.f32.vlgmr.msra.gmra.mxu1 %v6230_v11  ;;  %6417 = vmatmul.mubr.f32.vlgmr.msra.gmra.mxu0 %v6230_v11  ;;  %v6236_v24 = vrot.slane %v15476_v63, 1  ;;  %v6717_v7 = vrot.slane %v15476_v63, 2  ;;  %v7017_v13 = vrot.slane %v15476_v63, 3  ;;  %v7316_v5 = vrot.slane %v15476_v63, 4  ;;  %v6087_v11 = vld [vmem:[#allocation4 + $0x58] sm:$0xff] }
 0x4b8   : > { %6457 = vmatpush1.msra.mxu1 %v6121_v45  ;;  %6546 = vmatpush1.msra.mxu0 %v6123_v42  ;;  %v6147_v1 = vld [vmem:[#allocation2 + $0x30] sm:$0x7]  ;;  %v6085_v42 = vld [vmem:[#allocation4 + $0x48] sm:$0xff] }
 0x4b9   : > { %6458 = vmatprep.subr.mxu1 %v6119_v17  ;;  %6547 = vmatprep.subr.mxu0 %v17115_v23  ;;  %v6237_v32 = vsel %vm6227_vm6, %v6232_v27, %v6236_v24  ;;  %v15493_v35 = vsel %vm6708_vm7, %v6713_v18, %v6717_v7  ;;  %v15500_v52 = vsel %vm7008_vm8, %v7013_v9, %v7017_v13  ;;  %v6238_v21 = vrot.slane %v6147_v1, 1  ;;  %v6089_v27 = vld [vmem:[#allocation4 + $0x68] sm:$0xff]  ;;  %v6086_v45 = vld [vmem:[#allocation4 + $0x50] sm:$0xff]  ;;  %v6083_v17 = vld [vmem:[#allocation4 + $0x38] sm:$0xff] }
 0x4ba   : > { %6459 = vmatpush1.msra.mxu1 %v6118_v26  ;;  %6548 = vmatpush1.msra.mxu0 %v6120_v15  ;;  %v6148_v10 = vld [vmem:[#allocation2 + $0x38] sm:$0x7]  ;;  %v15507_v62 = vsel %vm5087_vm2, %v7312_v44, %v7316_v5  ;;  %v6082_v26 = vld [vmem:[#allocation4 + $0x30] sm:$0xff]  ;;  %v6084_v15 = vld [vmem:[#allocation4 + $0x40] sm:$0xff] }
 0x4bb   : > { %10758 = vmatprep.mubr.msk.f32.mxu1 %vm6059_vm4, %v6237_v32  ;;  %10763 = vmatprep.mubr.msk.f32.mxu0 %vm6059_vm4, %v6237_v32  ;;  %v6240_v31 = vrot.slane %v6148_v10, 1  ;;  %v6239_v8 = vsel %vm6227_vm6, %v6234_v59, %v6238_v21  ;;  %v6079_v59 = vld [vmem:[#allocation4 + $0x18] sm:$0xff]  ;;  %v6081_v32 = vld [vmem:[#allocation4 + $0x28] sm:$0xff]  ;;  %v6076_v10 = vld [vmem:[#allocation4] sm:$0xff] }
 0x4bc   : > { %6460 = vmatprep.subr.mxu1 %v6116_v36  ;;  %6549 = vmatprep.subr.mxu0 %v17115_v23  ;;  %v6077_v36 = vld [vmem:[#allocation4 + $0x8] sm:$0xff]  ;;  %v6144_v1 = vld [vmem:[#allocation4 + $0x220] sm:$0xf] }
 0x4bd   : > { %6334 = vmatmul.mubr.f32.gmra.mxu1 %v6235_v50  ;;  %6422 = vmatmul.mubr.f32.gmra.mxu0 %v6235_v50  ;;  %v6241_v6 = vsel %vm6227_vm6, %v6236_v24, %v6240_v31  ;;  %v6080_v24 = vld [vmem:[#allocation4 + $0x20] sm:$0xff] }
 0x4be   : > { %6461 = vmatpush1.msra.mxu1 %v6115_v20  ;;  %6550 = vmatpush1.msra.mxu0 %v6117_v33  ;;  %v6078_v20 = vld [vmem:[#allocation4 + $0x10] sm:$0xff]  ;;  %v6143_v33 = vld [vmem:[#allocation4 + $0x218] sm:$0xf]  ;;  %v6140_v50 = vld [vmem:[#allocation4 + $0x200] sm:$0xff] }
 0x4bf   : > { %6462 = vmatprep.subr.mxu1 %v6113_v16  ;;  %6551 = vmatprep.subr.mxu0 %v17115_v23  ;;  %v6139_v16 = vld [vmem:[#allocation4 + $0x1f8] sm:$0xff] }
 0x4c0   : > { %6463 = vmatpush1.msra.mxu1 %v6112_v3  ;;  %6552 = vmatpush1.msra.mxu0 %v6114_v55  ;;  %v6141_v3 = vld [vmem:[#allocation4 + $0x208] sm:$0xff] }
 0x4c1   : > { %10759 = vmatprep.mubr.msk.f32.mxu1 %vm6059_vm4, %v6241_v6  ;;  %10764 = vmatprep.mubr.msk.f32.mxu0 %vm6059_vm4, %v6241_v6  ;;  %v6137_v55 = vld [vmem:[#allocation4 + $0x1e8] sm:$0xff]  ;;  %v6136_v6 = vld [vmem:[#allocation4 + $0x1e0] sm:$0xff] }
 0x4c2   : > { %6464 = vmatprep.subr.mxu1 %v6110_v46  ;;  %6553 = vmatprep.subr.mxu0 %v17115_v23  ;;  %v6134_v46 = vld [vmem:[#allocation4 + $0x1d0] sm:$0xff] }
 0x4c3   : > { %6340 = vmatmul.mubr.f32.gmra.mxu1 %v6239_v8  ;;  %6427 = vmatmul.mubr.f32.gmra.mxu0 %v6239_v8  ;;  %v6131_v8 = vld [vmem:[#allocation4 + $0x1b8] sm:$0xff] }
 0x4c4   : > { %6465 = vmatpush1.msra.mxu1 %v6109_v2  ;;  %6554 = vmatpush1.msra.mxu0 %v6111_v14  ;;  %v6133_v2 = vld [vmem:[#allocation4 + $0x1c8] sm:$0xff]  ;;  %v6135_v14 = vld [vmem:[#allocation4 + $0x1d8] sm:$0xff] }
 0x4c5   : > { %10760 = vmatprep.mubr.msk.f32.mxu1 %vm6059_vm4, %v6240_v31  ;;  %10765 = vmatprep.mubr.msk.f32.mxu0 %vm6059_vm4, %v6240_v31  ;;  %v6142_v31 = vld [vmem:[#allocation4 + $0x210] sm:$0xf] }
 0x4c6   : > { %6466 = vmatprep.subr.mxu1 %v6107_v60  ;;  %6555 = vmatprep.subr.mxu0 %v17115_v23  ;;  %v6130_v60 = vld [vmem:[#allocation4 + $0x1b0] sm:$0xff] }
 0x4c7   : > { %6467 = vmatpush1.msra.mxu1 %v6106_v58  ;;  %6556 = vmatpush1.msra.mxu0 %v6108_v54  ;;  %v6132_v58 = vld [vmem:[#allocation4 + $0x1c0] sm:$0xff] }
 0x4c8   : > { %6468 = vmatprep.subr.mxu1 %v6104_v4  ;;  %6557 = vmatprep.subr.mxu0 %v17115_v23  ;;  %v6128_v54 = vld [vmem:[#allocation4 + $0x1a0] sm:$0xff]  ;;  %v6127_v4 = vld [vmem:[#allocation4 + $0x198] sm:$0xff] }
 0x4c9   : > { %6346 = vmatmul.mubr.f32.gmra.mxu1 %v6238_v21  ;;  %6432 = vmatmul.mubr.f32.gmra.mxu0 %v6238_v21  ;;  %v6138_v21 = vld [vmem:[#allocation4 + $0x1f0] sm:$0xff] }
 0x4ca   : > { %6469 = vmatpush1.msra.mxu1 %v6103_v37  ;;  %6558 = vmatpush1.msra.mxu0 %v6105_v28  ;;  %v6129_v37 = vld [vmem:[#allocation4 + $0x1a8] sm:$0xff] }
 0x4cb   : > { %6470 = vmatprep.subr.mxu1 %v6101_v43  ;;  %10768 = vmatprep.mubr.msk.f32.mxu1 %vm6059_vm4, %v6069_v39  ;;  %v6125_v28 = vld [vmem:[#allocation4 + $0x188] sm:$0xff]  ;;  %v6124_v43 = vld [vmem:[#allocation4 + $0x180] sm:$0xff] }
 0x4cc   : > { %6559 = vmatprep.subr.mxu0 %v17115_v23  ;;  %10773 = vmatprep.mubr.msk.f32.mxu0 %vm6059_vm4, %v6069_v39  ;;  %v6126_v39 = vld [vmem:[#allocation4 + $0x190] sm:$0xff] }
 0x4cd   : > { %6471 = vmatpush1.msra.mxu1 %v6100_v22  ;;  %6560 = vmatpush1.msra.mxu0 %v6102_v25  ;;  %v6681_v22 = vld [vmem:[#allocation4 + $0x5c0] sm:$0xff]  ;;  %v6680_v25 = vld [vmem:[#allocation4 + $0x5b8] sm:$0xff] }
 0x4ce   : > { %6472 = vmatprep.subr.mxu1 %v6098_v40  ;;  %6561 = vmatprep.subr.mxu0 %v17115_v23  ;;  %v6682_v40 = vld [vmem:[#allocation4 + $0x5c8] sm:$0xff] }
 0x4cf   : > { %6473 = vmatpush1.msra.mxu1 %v6097_v30  ;;  %6562 = vmatpush1.msra.mxu0 %v6099_v56  ;;  %v6678_v30 = vld [vmem:[#allocation4 + $0x5a8] sm:$0xff]  ;;  %v6677_v56 = vld [vmem:[#allocation4 + $0x5a0] sm:$0xff] }
 0x4d0   : > { %6474 = vmatprep.subr.mxu1 %v6095_v34  ;;  %6563 = vmatprep.subr.mxu0 %v17115_v23  ;;  %v6679_v34 = vld [vmem:[#allocation4 + $0x5b0] sm:$0xff] }
 0x4d1   : > { %6475 = vmatpush1.msra.mxu1 %v6094_v38  ;;  %6564 = vmatpush1.msra.mxu0 %v6096_v0  ;;  %v6674_v38 = vld [vmem:[#allocation4 + $0x588] sm:$0xff]  ;;  %v6676_v0 = vld [vmem:[#allocation4 + $0x598] sm:$0xff] }
 0x4d2   : > { %6476 = vmatprep.subr.mxu1 %v6092_v48  ;;  %6565 = vmatprep.subr.mxu0 %v17115_v23  ;;  %v6672_v48 = vld [vmem:[#allocation4 + $0x578] sm:$0xff] }
 0x4d3   : > { %6477 = vmatpush1.msra.mxu1 %v6091_v57  ;;  %6566 = vmatpush1.msra.mxu0 %v6093_v19  ;;  %v6671_v57 = vld [vmem:[#allocation4 + $0x570] sm:$0xff]  ;;  %v6673_v19 = vld [vmem:[#allocation4 + $0x580] sm:$0xff] }
 0x4d4   : > { %6478 = vmatprep.subr.mxu1 %v6089_v27  ;;  %6567 = vmatprep.subr.mxu0 %v17115_v23  ;;  %v6669_v27 = vld [vmem:[#allocation4 + $0x560] sm:$0xff] }
 0x4d5   : > { %6479 = vmatpush1.msra.mxu1 %v6088_v12  ;;  %6568 = vmatpush1.msra.mxu0 %v6090_v47  ;;  %v6668_v12 = vld [vmem:[#allocation4 + $0x558] sm:$0xff]  ;;  %v6670_v47 = vld [vmem:[#allocation4 + $0x568] sm:$0xff] }
 0x4d6   : > { %6480 = vmatprep.subr.mxu1 %v6086_v45  ;;  %6569 = vmatprep.subr.mxu0 %v17115_v23  ;;  %v6075_v45 = vld [vmem:[#allocation2 + $0x38] sm:$0x3] }
 0x4d7   : > { %6481 = vmatpush1.msra.mxu1 %v6085_v42  ;;  %6570 = vmatpush1.msra.mxu0 %v6087_v11  ;;  %v6666_v42 = vld [vmem:[#allocation4 + $0x548] sm:$0xff]  ;;  %v6665_v11 = vld [vmem:[#allocation4 + $0x540] sm:$0xff] }
 0x4d8   : > { %6482 = vmatprep.subr.mxu1 %v6083_v17  ;;  %6571 = vmatprep.subr.mxu0 %v17115_v23  ;;  %v6667_v17 = vld [vmem:[#allocation4 + $0x550] sm:$0xff] }
 0x4d9   : > { %6483 = vmatpush1.msra.mxu1 %v6082_v26  ;;  %6572 = vmatpush1.msra.mxu0 %v6084_v15  ;;  %v6631_v26 = vld [vmem:[#allocation2 + $0x8] sm:$0xfc]  ;;  %v6663_v15 = vld [vmem:[#allocation4 + $0x530] sm:$0xff] }
 0x4da   : > { %6484 = vmatprep.subr.mxu1 %v6080_v24  ;;  %6573 = vmatprep.subr.mxu0 %v17115_v23  ;;  %v6074_v24 = vld [vmem:[#allocation2 + $0x30] sm:$0x3] }
 0x4db   : > { %6485 = vmatpush1.msra.mxu1 %v6079_v59  ;;  %6574 = vmatpush1.msra.mxu0 %v6081_v32  ;;  %v6662_v59 = vld [vmem:[#allocation4 + $0x528] sm:$0xff]  ;;  %v6712_v32 = vrot.slane %v6631_v26, 2  ;;  %v6630_v26 = vld [vmem:[#allocation2] sm:$0xfc] }
 0x4dc   : > { %6486 = vmatprep.subr.mxu1 %v6077_v36  ;;  %6575 = vmatprep.subr.mxu0 %v17115_v23  ;;  %v6664_v36 = vld [vmem:[#allocation4 + $0x538] sm:$0xff] }
 0x4dd   : > { %6487 = vmatpush1.msra.mxu1 %v6076_v10  ;;  %6576 = vmatpush1.msra.mxu0 %v6078_v20  ;;  %v6714_v10 = vsel %vm6708_vm7, %v6712_v32, %v6713_v18  ;;  %v6660_v20 = vld [vmem:[#allocation4 + $0x518] sm:$0xff]  ;;  %v6653_v18 = vld [vmem:[#allocation4 + $0x4e0] sm:$0xff] }
 0x4de   : > { %10766 = vmatprep.subr.msk.mxu1 %vm5087_vm2, %v6143_v33  ;;  %6595 = vmatprep.subr.mxu0 %v17115_v23  ;;  %v6659_v33 = vld [vmem:[#allocation4 + $0x510] sm:$0xff]  ;;  %v6684_v32 = vld [vmem:[#allocation4 + $0x5d8] sm:$0xff] }
 0x4df   : > { %10767 = vmatpush2.msk.msra.mxu1 %vm5087_vm2, %v6142_v31  ;;  %10772 = vmatpush2.msk.msra.mxu0 %vm5087_vm2, %v6144_v1  ;;  %v6661_v31 = vld [vmem:[#allocation4 + $0x520] sm:$0xff] }
 0x4e0   : > { %6508 = vmatprep.subr.mxu1 %v6140_v50  ;;  %6597 = vmatprep.subr.mxu0 %v17115_v23  ;;  %v6657_v1 = vld [vmem:[#allocation4 + $0x500] sm:$0xff]  ;;  %v6656_v50 = vld [vmem:[#allocation4 + $0x4f8] sm:$0xff] }
 0x4e1   : > { %6509 = vmatpush2.msra.mxu1 %v6139_v16  ;;  %6598 = vmatpush2.msra.mxu0 %v6141_v3  ;;  %v6658_v16 = vld [vmem:[#allocation4 + $0x508] sm:$0xff] }
 0x4e2   : > { %6510 = vmatprep.subr.mxu1 %v6137_v55  ;;  %6599 = vmatprep.subr.mxu0 %v17115_v23  ;;  %v6654_v3 = vld [vmem:[#allocation4 + $0x4e8] sm:$0xff]  ;;  %v6655_v55 = vld [vmem:[#allocation4 + $0x4f0] sm:$0xff] }
 0x4e3   : > { %6511 = vmatpush2.msra.mxu1 %v6136_v6  ;;  %6600 = vmatpush2.msra.mxu0 %v6138_v21  ;;  %v6651_v6 = vld [vmem:[#allocation4 + $0x4d0] sm:$0xff]  ;;  %v6650_v21 = vld [vmem:[#allocation4 + $0x4c8] sm:$0xff] }
 0x4e4   : > { %6512 = vmatprep.subr.mxu1 %v6134_v46  ;;  %6601 = vmatprep.subr.mxu0 %v17115_v23  ;;  %v6652_v46 = vld [vmem:[#allocation4 + $0x4d8] sm:$0xff] }
 0x4e5   : > { %6513 = vmatpush2.msra.mxu1 %v6133_v2  ;;  %6602 = vmatpush2.msra.mxu0 %v6135_v14  ;;  %v6648_v2 = vld [vmem:[#allocation4 + $0x4b8] sm:$0xff]  ;;  %v6647_v14 = vld [vmem:[#allocation4 + $0x4b0] sm:$0xff] }
 0x4e6   : > { %6514 = vmatprep.subr.mxu1 %v6131_v8  ;;  %6603 = vmatprep.subr.mxu0 %v17115_v23  ;;  %v6649_v8 = vld [vmem:[#allocation4 + $0x4c0] sm:$0xff] }
 0x4e7   : > { %6515 = vmatpush2.msra.mxu1 %v6130_v60  ;;  %6604 = vmatpush2.msra.mxu0 %v6132_v58  ;;  %v6645_v60 = vld [vmem:[#allocation4 + $0x4a0] sm:$0xff]  ;;  %v6644_v58 = vld [vmem:[#allocation4 + $0x498] sm:$0xff] }
 0x4e8   : > { %6516 = vmatprep.subr.mxu1 %v6128_v54  ;;  %6605 = vmatprep.subr.mxu0 %v17115_v23  ;;  %v6646_v54 = vld [vmem:[#allocation4 + $0x4a8] sm:$0xff] }
 0x4e9   : > { %6517 = vmatpush2.msra.mxu1 %v6127_v4  ;;  %6606 = vmatpush2.msra.mxu0 %v6129_v37  ;;  %v6642_v4 = vld [vmem:[#allocation4 + $0x488] sm:$0xff]  ;;  %v6641_v37 = vld [vmem:[#allocation4 + $0x480] sm:$0xff] }
 0x4ea   : > { %6518 = vmatprep.subr.mxu1 %v6125_v28  ;;  %6607 = vmatprep.subr.mxu0 %v17115_v23  ;;  %v6643_v28 = vld [vmem:[#allocation4 + $0x490] sm:$0xff] }
 0x4eb   : > { %6519 = vmatpush2.msra.mxu1 %v6124_v43  ;;  %6608 = vmatpush2.msra.mxu0 %v6126_v39  ;;  %v6639_v43 = vld [vmem:[#allocation4 + $0x470] sm:$0xff]  ;;  %v6638_v39 = vld [vmem:[#allocation4 + $0x468] sm:$0xff] }
 0x4ec   : > { %6521 = vmatmul.mubr.f32.vlgmr.msra.gmra.mxu1 %v15456_v29  ;;  %6610 = vmatmul.mubr.f32.vlgmr.msra.gmra.mxu0 %v15456_v29  ;;  %v6675_v29 = vld [vmem:[#allocation4 + $0x590] sm:$0xff] }
 0x4ed   : > { %6744 = vmatprep.subr.mxu1 %v6681_v22  ;;  %6833 = vmatprep.subr.mxu0 %v17115_v23  ;;  %v6640_v22 = vld [vmem:[#allocation4 + $0x478] sm:$0xff] }
 0x4ee   : > { %10769 = vmatprep.mubr.msk.f32.mxu1 %vm6059_vm4, %v15468_v49  ;;  %10774 = vmatprep.mubr.msk.f32.mxu0 %vm6059_vm4, %v15468_v49  ;;  %v7254_v49 = vld [vmem:[#allocation4 + $0x938] sm:$0xff] }
 0x4ef   : > { %6745 = vmatpush1.msra.mxu1 %v6680_v25  ;;  %6834 = vmatpush1.msra.mxu0 %v6682_v40  ;;  %v6636_v25 = vld [vmem:[#allocation4 + $0x458] sm:$0xff]  ;;  %v6635_v40 = vld [vmem:[#allocation4 + $0x450] sm:$0xff] }
 0x4f0   : > { %6746 = vmatprep.subr.mxu1 %v6678_v30  ;;  %6835 = vmatprep.subr.mxu0 %v17115_v23  ;;  %v6637_v30 = vld [vmem:[#allocation4 + $0x460] sm:$0xff] }
 0x4f1   : > { %6747 = vmatpush1.msra.mxu1 %v6677_v56  ;;  %6836 = vmatpush1.msra.mxu0 %v6679_v34  ;;  %v6702_v56 = vld [vmem:[#allocation4 + $0x668] sm:$0xf]  ;;  %v6701_v34 = vld [vmem:[#allocation4 + $0x660] sm:$0xf] }
 0x4f2   : > { %6527 = vmatmul.mubr.f32.gmra.mxu1 %v15460_v51  ;;  %6615 = vmatmul.mubr.f32.gmra.mxu0 %v15460_v51 }
 0x4f3   : > { %6748 = vmatprep.subr.mxu1 %v6675_v29  ;;  %6837 = vmatprep.subr.mxu0 %v17115_v23  ;;  %v6703_v29 = vld [vmem:[#allocation4 + $0x670] sm:$0xf] }
 0x4f4   : > { %10770 = vmatprep.mubr.msk.f32.mxu1 %vm6059_vm4, %v15476_v63  ;;  %10775 = vmatprep.mubr.msk.f32.mxu0 %vm6059_vm4, %v15476_v63 }
 0x4f5   : > { %6749 = vmatpush1.msra.mxu1 %v6674_v38  ;;  %6838 = vmatpush1.msra.mxu0 %v6676_v0  ;;  %v6699_v38 = vld [vmem:[#allocation4 + $0x650] sm:$0xff]  ;;  %v6698_v0 = vld [vmem:[#allocation4 + $0x648] sm:$0xff] }
 0x4f6   : > { %6750 = vmatprep.subr.mxu1 %v6672_v48  ;;  %6839 = vmatprep.subr.mxu0 %v17115_v23  ;;  %v6700_v48 = vld [vmem:[#allocation4 + $0x658] sm:$0xff] }
 0x4f7   : > { %6751 = vmatpush1.msra.mxu1 %v6671_v57  ;;  %6840 = vmatpush1.msra.mxu0 %v6673_v19  ;;  %v6696_v57 = vld [vmem:[#allocation4 + $0x638] sm:$0xff]  ;;  %v6695_v19 = vld [vmem:[#allocation4 + $0x630] sm:$0xff] }
 0x4f8   : > { %6533 = vmatmul.mubr.f32.gmra.mxu1 %v15464_v61  ;;  %6620 = vmatmul.mubr.f32.gmra.mxu0 %v15464_v61 }
 0x4f9   : > { %6752 = vmatprep.subr.mxu1 %v6669_v27  ;;  %6841 = vmatprep.subr.mxu0 %v17115_v23  ;;  %v6697_v27 = vld [vmem:[#allocation4 + $0x640] sm:$0xff] }
 0x4fa   : > { %10771 = vmatprep.mubr.msk.f32.mxu1 %vm6059_vm4, %v6075_v45  ;;  %10776 = vmatprep.mubr.msk.f32.mxu0 %vm6059_vm4, %v6075_v45  ;;  %v6694_v45 = vld [vmem:[#allocation4 + $0x628] sm:$0xff] }
 0x4fb   : > { %6753 = vmatpush1.msra.mxu1 %v6668_v12  ;;  %6842 = vmatpush1.msra.mxu0 %v6670_v47  ;;  %v6693_v12 = vld [vmem:[#allocation4 + $0x620] sm:$0xff]  ;;  %v6692_v47 = vld [vmem:[#allocation4 + $0x618] sm:$0xff] }
 0x4fc   : > { %6754 = vmatprep.subr.mxu1 %v6666_v42  ;;  %6843 = vmatprep.subr.mxu0 %v17115_v23  ;;  %v6690_v42 = vld [vmem:[#allocation4 + $0x608] sm:$0xff] }
 0x4fd   : > { %6755 = vmatpush1.msra.mxu1 %v6665_v11  ;;  %6844 = vmatpush1.msra.mxu0 %v6667_v17  ;;  %v6689_v11 = vld [vmem:[#allocation4 + $0x600] sm:$0xff]  ;;  %v6691_v17 = vld [vmem:[#allocation4 + $0x610] sm:$0xff] }
 0x4fe   : > { %6539 = vmatmul.mubr.f32.gmra.mxu1 %v6074_v24  ;;  %6625 = vmatmul.mubr.f32.gmra.mxu0 %v6074_v24  ;;  %v6686_v24 = vld [vmem:[#allocation4 + $0x5e8] sm:$0xff] }
 0x4ff   : > { %6756 = vmatprep.subr.mxu1 %v6663_v15  ;;  %6845 = vmatprep.subr.mxu0 %v17115_v23  ;;  %v6687_v15 = vld [vmem:[#allocation4 + $0x5f0] sm:$0xff] }
 0x500   : > { %6757 = vmatpush1.msra.mxu1 %v6662_v59  ;;  %10779 = vmatprep.mubr.msk.f32.mxu1 %vm6059_vm4, %v6714_v10  ;;  %v6688_v59 = vld [vmem:[#allocation4 + $0x5f8] sm:$0xff] }
 0x501   : > { %6846 = vmatpush1.msra.mxu0 %v6664_v36  ;;  %10784 = vmatprep.mubr.msk.f32.mxu0 %vm6059_vm4, %v6714_v10  ;;  %v6709_v36 = vrot.slane %v6630_v26, 2  ;;  %v6683_v10 = vld [vmem:[#allocation4 + $0x5d0] sm:$0xff]  ;;  %v6948_v26 = vld [vmem:[#allocation4 + $0x6e0] sm:$0xff] }
 0x502   : > { %6758 = vmatprep.subr.mxu1 %v6660_v20  ;;  %6847 = vmatprep.subr.mxu0 %v17115_v23  ;;  %v6685_v20 = vld [vmem:[#allocation4 + $0x5e0] sm:$0xff] }
 0x503   : > { %6759 = vmatpush1.msra.mxu1 %v6659_v33  ;;  %6848 = vmatpush1.msra.mxu0 %v6661_v31  ;;  %v6710_v33 = vrot.slane %v15460_v51, 2  ;;  %v6981_v31 = vld [vmem:[#allocation4 + $0x7e8] sm:$0xff] }
 0x504   : > { %6760 = vmatprep.subr.mxu1 %v6657_v1  ;;  %6849 = vmatprep.subr.mxu0 %v17115_v23  ;;  %v6977_v51 = vld [vmem:[#allocation4 + $0x7c8] sm:$0xff] }
 0x505   : > { %6761 = vmatpush1.msra.mxu1 %v6656_v50  ;;  %6850 = vmatpush1.msra.mxu0 %v6658_v16  ;;  %v6711_v1 = vsel %vm6708_vm7, %v6709_v36, %v6710_v33  ;;  %v6980_v50 = vld [vmem:[#allocation4 + $0x7e0] sm:$0xff]  ;;  %v6982_v16 = vld [vmem:[#allocation4 + $0x7f0] sm:$0xff] }
 0x506   : > { %6762 = vmatprep.subr.mxu1 %v6654_v3  ;;  %6851 = vmatprep.subr.mxu0 %v17115_v23  ;;  %v6633_v3 = vld [vmem:[#allocation2 + $0x38] sm:$0xf]  ;;  %v6946_v36 = vld [vmem:[#allocation4 + $0x6d0] sm:$0xff] }
 0x507   : > { %6763 = vmatpush1.msra.mxu1 %v6653_v18  ;;  %6852 = vmatpush1.msra.mxu0 %v6655_v55  ;;  %v6978_v18 = vld [vmem:[#allocation4 + $0x7d0] sm:$0xff]  ;;  %v6715_v55 = vrot.slane %v15464_v61, 2 }
 0x508   : > { %6764 = vmatprep.subr.mxu1 %v6651_v6  ;;  %6853 = vmatprep.subr.mxu0 %v17115_v23  ;;  %v6979_v6 = vld [vmem:[#allocation4 + $0x7d8] sm:$0xff] }
 0x509   : > { %6765 = vmatpush1.msra.mxu1 %v6650_v21  ;;  %6854 = vmatpush1.msra.mxu0 %v6652_v46  ;;  %v6721_v21 = vrot.slane %v6633_v3, 2  ;;  %v6975_v46 = vld [vmem:[#allocation4 + $0x7b8] sm:$0xff]  ;;  %v6716_v61 = vsel %vm6708_vm7, %v6710_v33, %v6715_v55 }
 0x50a   : > { %6766 = vmatprep.subr.mxu1 %v6648_v2  ;;  %6855 = vmatprep.subr.mxu0 %v17115_v23  ;;  %v6632_v2 = vld [vmem:[#allocation2 + $0x30] sm:$0xf]  ;;  %v6943_v33 = vld [vmem:[#allocation4 + $0x6b8] sm:$0xff] }
 0x50b   : > { %6767 = vmatpush1.msra.mxu1 %v6647_v14  ;;  %6856 = vmatpush1.msra.mxu0 %v6649_v8  ;;  %v6974_v14 = vld [vmem:[#allocation4 + $0x7b0] sm:$0xff]  ;;  %v6976_v8 = vld [vmem:[#allocation4 + $0x7c0] sm:$0xff]  ;;  %v6935_v3 = vld [vmem:[#allocation4 + $0x678] sm:$0xff] }
 0x50c   : > { %6768 = vmatprep.subr.mxu1 %v6645_v60  ;;  %6857 = vmatprep.subr.mxu0 %v17115_v23  ;;  %v6972_v60 = vld [vmem:[#allocation4 + $0x7a0] sm:$0xff] }
 0x50d   : > { %6769 = vmatpush1.msra.mxu1 %v6644_v58  ;;  %6858 = vmatpush1.msra.mxu0 %v6646_v54  ;;  %v6719_v58 = vrot.slane %v6632_v2, 2  ;;  %v6971_v54 = vld [vmem:[#allocation4 + $0x798] sm:$0xff]  ;;  %v7000_v2 = vld [vmem:[#allocation4 + $0x880] sm:$0xff] }
 0x50e   : > { %6770 = vmatprep.subr.mxu1 %v6642_v4  ;;  %6859 = vmatprep.subr.mxu0 %v17115_v23  ;;  %v6973_v4 = vld [vmem:[#allocation4 + $0x7a8] sm:$0xff] }
 0x50f   : > { %6771 = vmatpush1.msra.mxu1 %v6641_v37  ;;  %6860 = vmatpush1.msra.mxu0 %v6643_v28  ;;  %v6969_v37 = vld [vmem:[#allocation4 + $0x788] sm:$0xff]  ;;  %v6720_v28 = vsel %vm6708_vm7, %v6715_v55, %v6719_v58  ;;  %v7002_v55 = vld [vmem:[#allocation4 + $0x890] sm:$0xf] }
 0x510   : > { %6772 = vmatprep.subr.mxu1 %v6639_v43  ;;  %6861 = vmatprep.subr.mxu0 %v17115_v23  ;;  %v6970_v43 = vld [vmem:[#allocation4 + $0x790] sm:$0xff] }
 0x511   : > { %6773 = vmatpush1.msra.mxu1 %v6638_v39  ;;  %6862 = vmatpush1.msra.mxu0 %v6640_v22  ;;  %v6966_v39 = vld [vmem:[#allocation4 + $0x770] sm:$0xff]  ;;  %v6965_v22 = vld [vmem:[#allocation4 + $0x768] sm:$0xff] }
 0x512   : > { %6774 = vmatprep.subr.mxu1 %v6636_v25  ;;  %6863 = vmatprep.subr.mxu0 %v17115_v23  ;;  %v6967_v25 = vld [vmem:[#allocation4 + $0x778] sm:$0xff] }
 0x513   : > { %6775 = vmatpush1.msra.mxu1 %v6635_v40  ;;  %6864 = vmatpush1.msra.mxu0 %v6637_v30  ;;  %v6931_v40 = vld [vmem:[#allocation2 + $0x8] sm:$0xf8]  ;;  %v6963_v30 = vld [vmem:[#allocation4 + $0x758] sm:$0xff] }
 0x514   : > { %10777 = vmatprep.subr.msk.mxu1 %vm5087_vm2, %v6702_v56  ;;  %6883 = vmatprep.subr.mxu0 %v17115_v23  ;;  %v6962_v56 = vld [vmem:[#allocation4 + $0x750] sm:$0xff] }
 0x515   : > { %10778 = vmatpush2.msk.msra.mxu1 %vm5087_vm2, %v6701_v34  ;;  %10783 = vmatpush2.msk.msra.mxu0 %vm5087_vm2, %v6703_v29  ;;  %v7012_v34 = vrot.slane %v6931_v40, 3  ;;  %v6964_v29 = vld [vmem:[#allocation4 + $0x760] sm:$0xff]  ;;  %v6983_v40 = vld [vmem:[#allocation4 + $0x7f8] sm:$0xff] }
 0x516   : > { %6796 = vmatprep.subr.mxu1 %v6699_v38  ;;  %6885 = vmatprep.subr.mxu0 %v17115_v23 }
 0x517   : > { %6797 = vmatpush2.msra.mxu1 %v6698_v0  ;;  %6886 = vmatpush2.msra.mxu0 %v6700_v48  ;;  %v7014_v38 = vsel %vm7008_vm8, %v7012_v34, %v7013_v9  ;;  %v6960_v0 = vld [vmem:[#allocation4 + $0x740] sm:$0xff]  ;;  %v6959_v48 = vld [vmem:[#allocation4 + $0x738] sm:$0xff]  ;;  %v6953_v9 = vld [vmem:[#allocation4 + $0x708] sm:$0xff] }
 0x518   : > { %6798 = vmatprep.subr.mxu1 %v6696_v57  ;;  %6887 = vmatprep.subr.mxu0 %v17115_v23  ;;  %v6961_v57 = vld [vmem:[#allocation4 + $0x748] sm:$0xff] }
 0x519   : > { %6799 = vmatpush2.msra.mxu1 %v6695_v19  ;;  %6888 = vmatpush2.msra.mxu0 %v6697_v27  ;;  %v6957_v19 = vld [vmem:[#allocation4 + $0x728] sm:$0xff]  ;;  %v6956_v27 = vld [vmem:[#allocation4 + $0x720] sm:$0xff] }
 0x51a   : > { %6800 = vmatprep.subr.mxu1 %v6693_v12  ;;  %6889 = vmatprep.subr.mxu0 %v17115_v23  ;;  %v6958_v12 = vld [vmem:[#allocation4 + $0x730] sm:$0xff] }
 0x51b   : > { %6801 = vmatpush2.msra.mxu1 %v6692_v47  ;;  %6890 = vmatpush2.msra.mxu0 %v6694_v45  ;;  %v6954_v47 = vld [vmem:[#allocation4 + $0x710] sm:$0xff]  ;;  %v6955_v45 = vld [vmem:[#allocation4 + $0x718] sm:$0xff] }
 0x51c   : > { %6802 = vmatprep.subr.mxu1 %v6690_v42  ;;  %6891 = vmatprep.subr.mxu0 %v17115_v23  ;;  %v6951_v42 = vld [vmem:[#allocation4 + $0x6f8] sm:$0xff] }
 0x51d   : > { %6803 = vmatpush2.msra.mxu1 %v6689_v11  ;;  %6892 = vmatpush2.msra.mxu0 %v6691_v17  ;;  %v6950_v11 = vld [vmem:[#allocation4 + $0x6f0] sm:$0xff]  ;;  %v6952_v17 = vld [vmem:[#allocation4 + $0x700] sm:$0xff] }
 0x51e   : > { %6804 = vmatprep.subr.mxu1 %v6687_v15  ;;  %6893 = vmatprep.subr.mxu0 %v17115_v23  ;;  %v6947_v15 = vld [vmem:[#allocation4 + $0x6d8] sm:$0xff] }
 0x51f   : > { %6805 = vmatpush2.msra.mxu1 %v6686_v24  ;;  %6894 = vmatpush2.msra.mxu0 %v6688_v59  ;;  %v6949_v24 = vld [vmem:[#allocation4 + $0x6e8] sm:$0xff] }
 0x520   : > { %6806 = vmatprep.subr.mxu1 %v6684_v32  ;;  %6895 = vmatprep.subr.mxu0 %v17115_v23  ;;  %v6945_v59 = vld [vmem:[#allocation4 + $0x6c8] sm:$0xff]  ;;  %v6944_v32 = vld [vmem:[#allocation4 + $0x6c0] sm:$0xff] }
 0x521   : > { %6807 = vmatpush2.msra.mxu1 %v6683_v10  ;;  %6896 = vmatpush2.msra.mxu0 %v6685_v20  ;;  %v6942_v10 = vld [vmem:[#allocation4 + $0x6b0] sm:$0xff]  ;;  %v6941_v20 = vld [vmem:[#allocation4 + $0x6a8] sm:$0xff] }
 0x522   : > { %6809 = vmatmul.mubr.f32.vlgmr.msra.gmra.mxu1 %v6711_v1  ;;  %6898 = vmatmul.mubr.f32.vlgmr.msra.gmra.mxu0 %v6711_v1  ;;  %v6938_v1 = vld [vmem:[#allocation4 + $0x690] sm:$0xff] }
 0x523   : > { %7044 = vmatprep.subr.mxu1 %v6981_v31  ;;  %7133 = vmatprep.subr.mxu0 %v17115_v23  ;;  %v6939_v31 = vld [vmem:[#allocation4 + $0x698] sm:$0xff] }
 0x524   : > { %10780 = vmatprep.mubr.msk.f32.mxu1 %vm6059_vm4, %v15493_v35  ;;  %10785 = vmatprep.mubr.msk.f32.mxu0 %vm6059_vm4, %v15493_v35  ;;  %v6722_v35 = vsel %vm6708_vm7, %v6717_v7, %v6721_v21  ;;  %v6968_v7 = vld [vmem:[#allocation4 + $0x780] sm:$0xff] }
 0x525   : > { %7045 = vmatpush1.msra.mxu1 %v6980_v50  ;;  %7134 = vmatpush1.msra.mxu0 %v6982_v16  ;;  %v6940_v50 = vld [vmem:[#allocation4 + $0x6a0] sm:$0xff] }
 0x526   : > { %7046 = vmatprep.subr.mxu1 %v6978_v18  ;;  %7135 = vmatprep.subr.mxu0 %v17115_v23  ;;  %v6936_v16 = vld [vmem:[#allocation4 + $0x680] sm:$0xff]  ;;  %v6937_v18 = vld [vmem:[#allocation4 + $0x688] sm:$0xff] }
 0x527   : > { %7047 = vmatpush1.msra.mxu1 %v6977_v51  ;;  %7136 = vmatpush1.msra.mxu0 %v6979_v6  ;;  %v7001_v51 = vld [vmem:[#allocation4 + $0x888] sm:$0xf]  ;;  %v7003_v6 = vld [vmem:[#allocation4 + $0x898] sm:$0xf] }
 0x528   : > { %6815 = vmatmul.mubr.f32.gmra.mxu1 %v6716_v61  ;;  %6903 = vmatmul.mubr.f32.gmra.mxu0 %v6716_v61  ;;  %v6996_v61 = vld [vmem:[#allocation4 + $0x860] sm:$0xff] }
 0x529   : > { %7048 = vmatprep.subr.mxu1 %v6975_v46  ;;  %7137 = vmatprep.subr.mxu0 %v17115_v23  ;;  %v6998_v46 = vld [vmem:[#allocation4 + $0x870] sm:$0xff] }
 0x52a   : > { %10781 = vmatprep.mubr.msk.f32.mxu1 %vm6059_vm4, %v6722_v35  ;;  %10786 = vmatprep.mubr.msk.f32.mxu0 %vm6059_vm4, %v6722_v35  ;;  %v6993_v35 = vld [vmem:[#allocation4 + $0x848] sm:$0xff] }
 0x52b   : > { %7049 = vmatpush1.msra.mxu1 %v6974_v14  ;;  %7138 = vmatpush1.msra.mxu0 %v6976_v8  ;;  %v6995_v14 = vld [vmem:[#allocation4 + $0x858] sm:$0xff]  ;;  %v6997_v8 = vld [vmem:[#allocation4 + $0x868] sm:$0xff] }
 0x52c   : > { %7050 = vmatprep.subr.mxu1 %v6972_v60  ;;  %7139 = vmatprep.subr.mxu0 %v17115_v23  ;;  %v6992_v60 = vld [vmem:[#allocation4 + $0x840] sm:$0xff] }
 0x52d   : > { %7051 = vmatpush1.msra.mxu1 %v6971_v54  ;;  %7140 = vmatpush1.msra.mxu0 %v6973_v4  ;;  %v6990_v54 = vld [vmem:[#allocation4 + $0x830] sm:$0xff]  ;;  %v6989_v4 = vld [vmem:[#allocation4 + $0x828] sm:$0xff] }
 0x52e   : > { %6821 = vmatmul.mubr.f32.gmra.mxu1 %v6720_v28  ;;  %6908 = vmatmul.mubr.f32.gmra.mxu0 %v6720_v28  ;;  %v6930_v28 = vld [vmem:[#allocation2] sm:$0xf8] }
 0x52f   : > { %7052 = vmatprep.subr.mxu1 %v6969_v37  ;;  %7141 = vmatprep.subr.mxu0 %v17115_v23  ;;  %v6991_v37 = vld [vmem:[#allocation4 + $0x838] sm:$0xff] }
 0x530   : > { %10782 = vmatprep.mubr.msk.f32.mxu1 %vm6059_vm4, %v6721_v21  ;;  %10787 = vmatprep.mubr.msk.f32.mxu0 %vm6059_vm4, %v6721_v21  ;;  %v6999_v21 = vld [vmem:[#allocation4 + $0x878] sm:$0xff] }
 0x531   : > { %7053 = vmatpush1.msra.mxu1 %v6968_v7  ;;  %7142 = vmatpush1.msra.mxu0 %v6970_v43  ;;  %v6987_v7 = vld [vmem:[#allocation4 + $0x818] sm:$0xff]  ;;  %v6986_v43 = vld [vmem:[#allocation4 + $0x810] sm:$0xff] }
 0x532   : > { %7054 = vmatprep.subr.mxu1 %v6966_v39  ;;  %7143 = vmatprep.subr.mxu0 %v17115_v23  ;;  %v6988_v39 = vld [vmem:[#allocation4 + $0x820] sm:$0xff] }
 0x533   : > { %7055 = vmatpush1.msra.mxu1 %v6965_v22  ;;  %7144 = vmatpush1.msra.mxu0 %v6967_v25  ;;  %v6984_v22 = vld [vmem:[#allocation4 + $0x800] sm:$0xff]  ;;  %v7009_v25 = vrot.slane %v6930_v28, 3  ;;  %v7249_v28 = vld [vmem:[#allocation4 + $0x910] sm:$0xff] }
 0x534   : > { %6827 = vmatmul.mubr.f32.gmra.mxu1 %v6719_v58  ;;  %6913 = vmatmul.mubr.f32.gmra.mxu0 %v6719_v58  ;;  %v6994_v58 = vld [vmem:[#allocation4 + $0x850] sm:$0xff] }
 0x535   : > { %7056 = vmatprep.subr.mxu1 %v6963_v30  ;;  %7145 = vmatprep.subr.mxu0 %v17115_v23  ;;  %v6985_v30 = vld [vmem:[#allocation4 + $0x808] sm:$0xff] }
 0x536   : > { %7057 = vmatpush1.msra.mxu1 %v6962_v56  ;;  %10790 = vmatprep.mubr.msk.f32.mxu1 %vm6059_vm4, %v7014_v38  ;;  %v15637_v56 = vld [vmem:[#allocation2 + $0x10] sm:$0xff] }
 0x537   : > { %7146 = vmatpush1.msra.mxu0 %v6964_v29  ;;  %10795 = vmatprep.mubr.msk.f32.mxu0 %vm6059_vm4, %v7014_v38  ;;  %v7010_v34 = vrot.slane %v15637_v56, 3  ;;  %v7281_v29 = vld [vmem:[#allocation4 + $0xa10] sm:$0xff] }
 0x538   : > { %7058 = vmatprep.subr.mxu1 %v6960_v0  ;;  %7147 = vmatprep.subr.mxu0 %v17115_v23  ;;  %v7280_v0 = vld [vmem:[#allocation4 + $0xa08] sm:$0xff] }
 0x539   : > { %7059 = vmatpush1.msra.mxu1 %v6959_v48  ;;  %7148 = vmatpush1.msra.mxu0 %v6961_v57  ;;  %v7011_v38 = vsel %vm7008_vm8, %v7009_v25, %v7010_v34  ;;  %v7282_v48 = vld [vmem:[#allocation4 + $0xa18] sm:$0xff] }
 0x53a   : > { %7060 = vmatprep.subr.mxu1 %v6957_v19  ;;  %7149 = vmatprep.subr.mxu0 %v17115_v23  ;;  %v6933_v57 = vld [vmem:[#allocation2 + $0x38] sm:$0x1f] }
 0x53b   : > { %7061 = vmatpush1.msra.mxu1 %v6956_v27  ;;  %7150 = vmatpush1.msra.mxu0 %v6958_v12  ;;  %v7278_v19 = vld [vmem:[#allocation4 + $0x9f8] sm:$0xff]  ;;  %v15643_v27 = vld [vmem:[#allocation2 + $0x20] sm:$0xff] }
 0x53c   : > { %7062 = vmatprep.subr.mxu1 %v6954_v47  ;;  %7151 = vmatprep.subr.mxu0 %v17115_v23  ;;  %v7015_v12 = vrot.slane %v15643_v27, 3  ;;  %v7277_v47 = vld [vmem:[#allocation4 + $0x9f0] sm:$0xff] }
 0x53d   : > { %7063 = vmatpush1.msra.mxu1 %v6953_v9  ;;  %7152 = vmatpush1.msra.mxu0 %v6955_v45  ;;  %v7279_v9 = vld [vmem:[#allocation4 + $0xa00] sm:$0xff]  ;;  %v7021_v45 = vrot.slane %v6933_v57, 3 }
 0x53e   : > { %7064 = vmatprep.subr.mxu1 %v6951_v42  ;;  %7153 = vmatprep.subr.mxu0 %v17115_v23  ;;  %v7275_v42 = vld [vmem:[#allocation4 + $0x9e0] sm:$0xff] }
 0x53f   : > { %7065 = vmatpush1.msra.mxu1 %v6950_v11  ;;  %7154 = vmatpush1.msra.mxu0 %v6952_v17  ;;  %v6932_v11 = vld [vmem:[#allocation2 + $0x30] sm:$0x1f]  ;;  %v7016_v17 = vsel %vm7008_vm8, %v7010_v34, %v7015_v12  ;;  %v7239_v34 = vld [vmem:[#allocation4 + $0x8c0] sm:$0xff] }
 0x540   : > { %7066 = vmatprep.subr.mxu1 %v6948_v26  ;;  %7155 = vmatprep.subr.mxu0 %v17115_v23  ;;  %v7274_v26 = vld [vmem:[#allocation4 + $0x9d8] sm:$0xff]  ;;  %v7235_v57 = vld [vmem:[#allocation4 + $0x8a0] sm:$0xff] }
 0x541   : > { %7067 = vmatpush1.msra.mxu1 %v6947_v15  ;;  %7156 = vmatpush1.msra.mxu0 %v6949_v24  ;;  %v7276_v15 = vld [vmem:[#allocation4 + $0x9e8] sm:$0xff] }
 0x542   : > { %7068 = vmatprep.subr.mxu1 %v6945_v59  ;;  %7157 = vmatprep.subr.mxu0 %v17115_v23  ;;  %v7272_v24 = vld [vmem:[#allocation4 + $0x9c8] sm:$0xff]  ;;  %v7019_v59 = vrot.slane %v6932_v11, 3 }
 0x543   : > { %7069 = vmatpush1.msra.mxu1 %v6944_v32  ;;  %7158 = vmatpush1.msra.mxu0 %v6946_v36  ;;  %v7271_v32 = vld [vmem:[#allocation4 + $0x9c0] sm:$0xff]  ;;  %v7273_v36 = vld [vmem:[#allocation4 + $0x9d0] sm:$0xff] }
 0x544   : > { %7070 = vmatprep.subr.mxu1 %v6942_v10  ;;  %7159 = vmatprep.subr.mxu0 %v17115_v23  ;;  %v7269_v10 = vld [vmem:[#allocation4 + $0x9b0] sm:$0xff] }
 0x545   : > { %7071 = vmatpush1.msra.mxu1 %v6941_v20  ;;  %7160 = vmatpush1.msra.mxu0 %v6943_v33  ;;  %v7020_v20 = vsel %vm7008_vm8, %v7015_v12, %v7019_v59  ;;  %v7270_v33 = vld [vmem:[#allocation4 + $0x9b8] sm:$0xff] }
 0x546   : > { %7072 = vmatprep.subr.mxu1 %v6939_v31  ;;  %7161 = vmatprep.subr.mxu0 %v17115_v23  ;;  %v7266_v31 = vld [vmem:[#allocation4 + $0x998] sm:$0xff] }
 0x547   : > { %7073 = vmatpush1.msra.mxu1 %v6938_v1  ;;  %7162 = vmatpush1.msra.mxu0 %v6940_v50  ;;  %v7265_v1 = vld [vmem:[#allocation4 + $0x990] sm:$0xff]  ;;  %v7267_v50 = vld [vmem:[#allocation4 + $0x9a0] sm:$0xff]  ;;  %v7302_v12 = vld [vmem:[#allocation4 + $0xab8] sm:$0xf] }
 0x548   : > { %7074 = vmatprep.subr.mxu1 %v6936_v16  ;;  %7163 = vmatprep.subr.mxu0 %v17115_v23  ;;  %v7231_v16 = vld [vmem:[#allocation2 + $0x8] sm:$0xf0] }
 0x549   : > { %7075 = vmatpush1.msra.mxu1 %v6935_v3  ;;  %7164 = vmatpush1.msra.mxu0 %v6937_v18  ;;  %v7263_v3 = vld [vmem:[#allocation4 + $0x980] sm:$0xff]  ;;  %v7262_v18 = vld [vmem:[#allocation4 + $0x978] sm:$0xff] }
 0x54a   : > { %10788 = vmatprep.subr.msk.mxu1 %vm5087_vm2, %v7002_v55  ;;  %7183 = vmatprep.subr.mxu0 %v17115_v23  ;;  %v7311_v55 = vrot.slane %v7231_v16, 4  ;;  %v7286_v16 = vld [vmem:[#allocation4 + $0xa38] sm:$0xff] }
 0x54b   : > { %10789 = vmatpush2.msk.msra.mxu1 %vm5087_vm2, %v7001_v51  ;;  %10794 = vmatpush2.msk.msra.mxu0 %vm5087_vm2, %v7003_v6  ;;  %v7264_v51 = vld [vmem:[#allocation4 + $0x988] sm:$0xff] }
 0x54c   : > { %7096 = vmatprep.subr.mxu1 %v6999_v21  ;;  %7185 = vmatprep.subr.mxu0 %v17115_v23  ;;  %v7313_v6 = vsel %vm5087_vm2, %v7311_v55, %v7312_v44  ;;  %v7260_v21 = vld [vmem:[#allocation4 + $0x968] sm:$0xff]  ;;  %v7253_v44 = vld [vmem:[#allocation4 + $0x930] sm:$0xff] }
 0x54d   : > { %7097 = vmatpush2.msra.mxu1 %v6998_v46  ;;  %7186 = vmatpush2.msra.mxu0 %v7000_v2  ;;  %v7259_v46 = vld [vmem:[#allocation4 + $0x960] sm:$0xff]  ;;  %v7261_v2 = vld [vmem:[#allocation4 + $0x970] sm:$0xff] }
 0x54e   : > { %7098 = vmatprep.subr.mxu1 %v6996_v61  ;;  %7187 = vmatprep.subr.mxu0 %v17115_v23  ;;  %v7257_v61 = vld [vmem:[#allocation4 + $0x950] sm:$0xff] }
 0x54f   : > { %7099 = vmatpush2.msra.mxu1 %v6995_v14  ;;  %7188 = vmatpush2.msra.mxu0 %v6997_v8  ;;  %v7256_v14 = vld [vmem:[#allocation4 + $0x948] sm:$0xff]  ;;  %v7258_v8 = vld [vmem:[#allocation4 + $0x958] sm:$0xff] }
 0x550   : > { %7100 = vmatprep.subr.mxu1 %v6993_v35  ;;  %7189 = vmatprep.subr.mxu0 %v17115_v23  ;;  %v7255_v35 = vld [vmem:[#allocation4 + $0x940] sm:$0xff] }
 0x551   : > { %7101 = vmatpush2.msra.mxu1 %v6992_v60  ;;  %7190 = vmatpush2.msra.mxu0 %v6994_v58  ;;  %v7251_v60 = vld [vmem:[#allocation4 + $0x920] sm:$0xff]  ;;  %v7250_v58 = vld [vmem:[#allocation4 + $0x918] sm:$0xff] }
 0x552   : > { %7102 = vmatprep.subr.mxu1 %v6990_v54  ;;  %7191 = vmatprep.subr.mxu0 %v17115_v23  ;;  %v7252_v54 = vld [vmem:[#allocation4 + $0x928] sm:$0xff] }
 0x553   : > { %7103 = vmatpush2.msra.mxu1 %v6989_v4  ;;  %7192 = vmatpush2.msra.mxu0 %v6991_v37  ;;  %v7248_v4 = vld [vmem:[#allocation4 + $0x908] sm:$0xff]  ;;  %v7247_v37 = vld [vmem:[#allocation4 + $0x900] sm:$0xff] }
 0x554   : > { %7104 = vmatprep.subr.mxu1 %v6987_v7  ;;  %7193 = vmatprep.subr.mxu0 %v17115_v23  ;;  %v7245_v7 = vld [vmem:[#allocation4 + $0x8f0] sm:$0xff] }
 0x555   : > { %7105 = vmatpush2.msra.mxu1 %v6986_v43  ;;  %7194 = vmatpush2.msra.mxu0 %v6988_v39  ;;  %v7244_v43 = vld [vmem:[#allocation4 + $0x8e8] sm:$0xff]  ;;  %v7246_v39 = vld [vmem:[#allocation4 + $0x8f8] sm:$0xff] }
 0x556   : > { %7106 = vmatprep.subr.mxu1 %v6984_v22  ;;  %7195 = vmatprep.subr.mxu0 %v17115_v23  ;;  %v7242_v22 = vld [vmem:[#allocation4 + $0x8d8] sm:$0xff] }
 0x557   : > { %7107 = vmatpush2.msra.mxu1 %v6983_v40  ;;  %7196 = vmatpush2.msra.mxu0 %v6985_v30  ;;  %v7241_v40 = vld [vmem:[#allocation4 + $0x8d0] sm:$0xff]  ;;  %v7243_v30 = vld [vmem:[#allocation4 + $0x8e0] sm:$0xff] }
 0x558   : > { %7109 = vmatmul.mubr.f32.vlgmr.msra.gmra.mxu1 %v7011_v38  ;;  %7198 = vmatmul.mubr.f32.vlgmr.msra.gmra.mxu0 %v7011_v38  ;;  %v7238_v38 = vld [vmem:[#allocation4 + $0x8b8] sm:$0xff] }
 0x559   : > { %7343 = vmatprep.subr.mxu1 %v7281_v29  ;;  %7432 = vmatprep.subr.mxu0 %v17115_v23 }
 0x55a   : > { %10791 = vmatprep.mubr.msk.f32.mxu1 %vm6059_vm4, %v15500_v52  ;;  %10796 = vmatprep.mubr.msk.f32.mxu0 %vm6059_vm4, %v15500_v52  ;;  %v7022_v52 = vsel %vm7008_vm8, %v7017_v13, %v7021_v45  ;;  %v7268_v13 = vld [vmem:[#allocation4 + $0x9a8] sm:$0xff] }
 0x55b   : > { %7344 = vmatpush1.msra.mxu1 %v7280_v0  ;;  %7433 = vmatpush1.msra.mxu0 %v7282_v48  ;;  %v7240_v0 = vld [vmem:[#allocation4 + $0x8c8] sm:$0xff] }
 0x55c   : > { %7345 = vmatprep.subr.mxu1 %v7278_v19  ;;  %7434 = vmatprep.subr.mxu0 %v17115_v23  ;;  %v7236_v48 = vld [vmem:[#allocation4 + $0x8a8] sm:$0xff]  ;;  %v7237_v19 = vld [vmem:[#allocation4 + $0x8b0] sm:$0xff] }
 0x55d   : > { %7346 = vmatpush1.msra.mxu1 %v7277_v47  ;;  %7435 = vmatpush1.msra.mxu0 %v7279_v9  ;;  %v7301_v9 = vld [vmem:[#allocation4 + $0xab0] sm:$0xf] }
 0x55e   : > { %7115 = vmatmul.mubr.f32.gmra.mxu1 %v7016_v17  ;;  %7203 = vmatmul.mubr.f32.gmra.mxu0 %v7016_v17  ;;  %v7298_v17 = vld [vmem:[#allocation4 + $0xa98] sm:$0xff] }
 0x55f   : > { %7347 = vmatprep.subr.mxu1 %v7275_v42  ;;  %7436 = vmatprep.subr.mxu0 %v17115_v23  ;;  %v7299_v42 = vld [vmem:[#allocation4 + $0xaa0] sm:$0xff] }
 0x560   : > { %10792 = vmatprep.mubr.msk.f32.mxu1 %vm6059_vm4, %v7022_v52  ;;  %10797 = vmatprep.mubr.msk.f32.mxu0 %vm6059_vm4, %v7022_v52  ;;  %v7295_v52 = vld [vmem:[#allocation4 + $0xa80] sm:$0xff] }
 0x561   : > { %7348 = vmatpush1.msra.mxu1 %v7274_v26  ;;  %7437 = vmatpush1.msra.mxu0 %v7276_v15  ;;  %v7300_v26 = vld [vmem:[#allocation4 + $0xaa8] sm:$0xff] }
 0x562   : > { %7349 = vmatprep.subr.mxu1 %v7272_v24  ;;  %7438 = vmatprep.subr.mxu0 %v17115_v23  ;;  %v7296_v15 = vld [vmem:[#allocation4 + $0xa88] sm:$0xff]  ;;  %v7297_v24 = vld [vmem:[#allocation4 + $0xa90] sm:$0xff] }
 0x563   : > { %7350 = vmatpush1.msra.mxu1 %v7271_v32  ;;  %7439 = vmatpush1.msra.mxu0 %v7273_v36  ;;  %v7292_v36 = vld [vmem:[#allocation4 + $0xa68] sm:$0xff] }
 0x564   : > { %7121 = vmatmul.mubr.f32.gmra.mxu1 %v7020_v20  ;;  %7208 = vmatmul.mubr.f32.gmra.mxu0 %v7020_v20  ;;  %v7290_v20 = vld [vmem:[#allocation4 + $0xa58] sm:$0xff] }
 0x565   : > { %7351 = vmatprep.subr.mxu1 %v7269_v10  ;;  %7440 = vmatprep.subr.mxu0 %v17115_v23  ;;  %v7294_v10 = vld [vmem:[#allocation4 + $0xa78] sm:$0xff] }
 0x566   : > { %10793 = vmatprep.mubr.msk.f32.mxu1 %vm6059_vm4, %v7021_v45  ;;  %10798 = vmatprep.mubr.msk.f32.mxu0 %vm6059_vm4, %v7021_v45  ;;  %v7303_v45 = vld [vmem:[#allocation4 + $0xac0] sm:$0xf] }
 0x567   : > { %7352 = vmatpush1.msra.mxu1 %v7268_v13  ;;  %7441 = vmatpush1.msra.mxu0 %v7270_v33  ;;  %v7289_v33 = vld [vmem:[#allocation4 + $0xa50] sm:$0xff] }
 0x568   : > { %7353 = vmatprep.subr.mxu1 %v7266_v31  ;;  %7442 = vmatprep.subr.mxu0 %v17115_v23  ;;  %v7291_v31 = vld [vmem:[#allocation4 + $0xa60] sm:$0xff] }
 0x569   : > { %7354 = vmatpush1.msra.mxu1 %v7265_v1  ;;  %7443 = vmatpush1.msra.mxu0 %v7267_v50  ;;  %v7230_v1 = vld [vmem:[#allocation2] sm:$0xf0] }
 0x56a   : > { %7127 = vmatmul.mubr.f32.gmra.mxu1 %v7019_v59  ;;  %7213 = vmatmul.mubr.f32.gmra.mxu0 %v7019_v59  ;;  %v7293_v59 = vld [vmem:[#allocation4 + $0xa70] sm:$0xff]  ;;  %v7287_v50 = vld [vmem:[#allocation4 + $0xa40] sm:$0xff]  ;;  %v7308_v55 = vrot.slane %v7230_v1, 4 }
 0x56b   : > { %7355 = vmatprep.subr.mxu1 %v7263_v3  ;;  %7444 = vmatprep.subr.mxu0 %v17115_v23  ;;  %v7288_v3 = vld [vmem:[#allocation4 + $0xa48] sm:$0xff] }
 0x56c   : > { %7356 = vmatpush1.msra.mxu1 %v7262_v18  ;;  %10801 = vmatprep.mubr.msk.f32.mxu1 %vm6059_vm4, %v7313_v6  ;;  %v7284_v18 = vld [vmem:[#allocation4 + $0xa28] sm:$0xff] }
 0x56d   : > { %7445 = vmatpush1.msra.mxu0 %v7264_v51  ;;  %10806 = vmatprep.mubr.msk.f32.mxu0 %vm6059_vm4, %v7313_v6  ;;  %v7283_v6 = vld [vmem:[#allocation4 + $0xa20] sm:$0xff] }
 0x56e   : > { %7357 = vmatprep.subr.mxu1 %v7260_v21  ;;  %7446 = vmatprep.subr.mxu0 %v17115_v23  ;;  %v7285_v21 = vld [vmem:[#allocation4 + $0xa30] sm:$0xff] }
 0x56f   : > { %7358 = vmatpush1.msra.mxu1 %v7259_v46  ;;  %7447 = vmatpush1.msra.mxu0 %v7261_v2  ;;  %v7309_v46 = vrot.slane %v15637_v56, 4  ;;  %v7233_v2 = vld [vmem:[#allocation2 + $0x38] sm:$0x3f] }
 0x570   : > { %7359 = vmatprep.subr.mxu1 %v7257_v61  ;;  %7448 = vmatprep.subr.mxu0 %v17115_v23 }
 0x571   : > { %7360 = vmatpush1.msra.mxu1 %v7256_v14  ;;  %7449 = vmatpush1.msra.mxu0 %v7258_v8  ;;  %v7310_v14 = vsel %vm5087_vm2, %v7308_v55, %v7309_v46  ;;  %v7314_v8 = vrot.slane %v15643_v27, 4 }
 0x572   : > { %7361 = vmatprep.subr.mxu1 %v7254_v49  ;;  %7450 = vmatprep.subr.mxu0 %v17115_v23  ;;  %v7320_v49 = vrot.slane %v7233_v2, 4 }
 0x573   : > { %7362 = vmatpush1.msra.mxu1 %v7253_v44  ;;  %7451 = vmatpush1.msra.mxu0 %v7255_v35  ;;  %v7232_v44 = vld [vmem:[#allocation2 + $0x30] sm:$0x3f]  ;;  %v7315_v56 = vsel %vm5087_vm2, %v7309_v46, %v7314_v8 }
 0x574   : > { %7363 = vmatprep.subr.mxu1 %v7251_v60  ;;  %7452 = vmatprep.subr.mxu0 %v17115_v23  ;;  %v7318_v35 = vrot.slane %v7232_v44, 4  ;;  %v7321_v60 = vsel %vm5087_vm2, %v7316_v5, %v7320_v49 }
 0x575   : > { %7364 = vmatpush1.msra.mxu1 %v7250_v58  ;;  %7453 = vmatpush1.msra.mxu0 %v7252_v54 }
 0x576   : > { %7365 = vmatprep.subr.mxu1 %v7248_v4  ;;  %7454 = vmatprep.subr.mxu0 %v17115_v23  ;;  %v7319_v27 = vsel %vm5087_vm2, %v7314_v8, %v7318_v35 }
 0x577   : > { %7366 = vmatpush1.msra.mxu1 %v7247_v37  ;;  %7455 = vmatpush1.msra.mxu0 %v7249_v28  ;;  %v15675_v25 = vpop.f32.mrf.mxu0 }
 0x578   : > { %7367 = vmatprep.subr.mxu1 %v7245_v7  ;;  %7456 = vmatprep.subr.mxu0 %v17115_v23 }
 0x579   : > { %7368 = vmatpush1.msra.mxu1 %v7244_v43  ;;  %7457 = vmatpush1.msra.mxu0 %v7246_v39  ;;  %v6420_v29 = vpop.f32.mrf.mxu0 }
 0x57a   : > { %7369 = vmatprep.subr.mxu1 %v7242_v22  ;;  %7458 = vmatprep.subr.mxu0 %v17115_v23 }
 0x57b   : > { %7370 = vmatpush1.msra.mxu1 %v7241_v40  ;;  %7459 = vmatpush1.msra.mxu0 %v7243_v30  ;;  %v15716_v40 = vpop.f32.mrf.mxu1 }
 0x57c   : > { %7371 = vmatprep.subr.mxu1 %v7239_v34  ;;  %7460 = vmatprep.subr.mxu0 %v17115_v23 }
 0x57d   : > { %7372 = vmatpush1.msra.mxu1 %v7238_v38  ;;  %7461 = vmatpush1.msra.mxu0 %v7240_v0  ;;  %v15680_v47 = vpop.f32.mrf.mxu0  ;;  %v15718_v30 = vpop.f32.mrf.mxu1 }
 0x57e   : > { %7373 = vmatprep.subr.mxu1 %v7236_v48  ;;  %7462 = vmatprep.subr.mxu0 %v17115_v23 }
 0x57f   : > { %7374 = vmatpush1.msra.mxu1 %v7235_v57  ;;  %7463 = vmatpush1.msra.mxu0 %v7237_v19  ;;  %v6425_v11 = vpop.f32.mrf.mxu0  ;;  %v15720_v34 = vpop.f32.mrf.mxu1 }
 0x580   : > { %10799 = vmatprep.subr.msk.mxu1 %vm5087_vm2, %v7302_v12  ;;  %7482 = vmatprep.subr.mxu0 %v17115_v23 }
 0x581   : > { %10800 = vmatpush2.msk.msra.mxu1 %vm5087_vm2, %v7301_v9  ;;  %10805 = vmatpush2.msk.msra.mxu0 %vm5087_vm2, %v7303_v45  ;;  %v15722_v29 = vpop.f32.mrf.mxu1 }
 0x582   : > { %7395 = vmatprep.subr.mxu1 %v7299_v42  ;;  %7484 = vmatprep.subr.mxu0 %v17115_v23 }
 0x583   : > { %7396 = vmatpush2.msra.mxu1 %v7298_v17  ;;  %7485 = vmatpush2.msra.mxu0 %v7300_v26  ;;  %v15688_v32 = vpop.f32.mrf.mxu0  ;;  %v15724_v48 = vpop.f32.mrf.mxu1 }
 0x584   : > { %7397 = vmatprep.subr.mxu1 %v7296_v15  ;;  %7486 = vmatprep.subr.mxu0 %v17115_v23 }
 0x585   : > { %7398 = vmatpush2.msra.mxu1 %v7295_v52  ;;  %7487 = vmatpush2.msra.mxu0 %v7297_v24  ;;  %v6430_v13 = vpop.f32.mrf.mxu0  ;;  %v6343_v12 = vpop.f32.mrf.mxu1 }
 0x586   : > { %7399 = vmatprep.subr.mxu1 %v7293_v59  ;;  %7488 = vmatprep.subr.mxu0 %v17115_v23 }
 0x587   : > { %7400 = vmatpush2.msra.mxu1 %v7292_v36  ;;  %7489 = vmatpush2.msra.mxu0 %v7294_v10 }
 0x588   : > { %7401 = vmatprep.subr.mxu1 %v7290_v20  ;;  %7490 = vmatprep.subr.mxu0 %v17115_v23 }
 0x589   : > { %7402 = vmatpush2.msra.mxu1 %v7289_v33  ;;  %7491 = vmatpush2.msra.mxu0 %v7291_v31  ;;  %v6433_v51 = vpop.f32.mrf.mxu0  ;;  %v6347_v9 = vpop.f32.mrf.mxu1 }
 0x58a   : > { %7403 = vmatprep.subr.mxu1 %v7287_v50  ;;  %7492 = vmatprep.subr.mxu0 %v17115_v23 }
 0x58b   : > { %7404 = vmatpush2.msra.mxu1 %v7286_v16  ;;  %7493 = vmatpush2.msra.mxu0 %v7288_v3  ;;  %v6435_v61 = vpop.f32.mrf.mxu0  ;;  %v6349_v17 = vpop.f32.mrf.mxu1 }
 0x58c   : > { %7405 = vmatprep.subr.mxu1 %v7284_v18  ;;  %7494 = vmatprep.subr.mxu0 %v17115_v23 }
 0x58d   : > { %7406 = vmatpush2.msra.mxu1 %v7283_v6  ;;  %7495 = vmatpush2.msra.mxu0 %v7285_v21 }
 0x58e   : > { %7408 = vmatmul.mubr.f32.vlgmr.msra.gmra.mxu1 %v7310_v14  ;;  %7497 = vmatmul.mubr.f32.vlgmr.msra.gmra.mxu0 %v7310_v14 }
 0x58f   : > { %10802 = vmatprep.mubr.msk.f32.mxu1 %vm6059_vm4, %v15507_v62  ;;  %10807 = vmatprep.mubr.msk.f32.mxu0 %vm6059_vm4, %v15507_v62 }
 0x592   : > { %7414 = vmatmul.mubr.f32.gmra.mxu1 %v7315_v56  ;;  %7502 = vmatmul.mubr.f32.gmra.mxu0 %v7315_v56 }
 0x593   : > { %10803 = vmatprep.mubr.msk.f32.mxu1 %vm6059_vm4, %v7321_v60  ;;  %10808 = vmatprep.mubr.msk.f32.mxu0 %vm6059_vm4, %v7321_v60 }
 0x596   : > { %7420 = vmatmul.mubr.f32.gmra.mxu1 %v7319_v27  ;;  %7507 = vmatmul.mubr.f32.gmra.mxu0 %v7319_v27 }
 0x597   : > { %10804 = vmatprep.mubr.msk.f32.mxu1 %vm6059_vm4, %v7320_v49  ;;  %10809 = vmatprep.mubr.msk.f32.mxu0 %vm6059_vm4, %v7320_v49 }
 0x59a   : > { %7426 = vmatmul.mubr.f32.gmra.mxu1 %v7318_v35  ;;  %7512 = vmatmul.mubr.f32.gmra.mxu0 %v7318_v35 }
 0x59b   : > { %7612 = vmatprep.mubr.f32.mxu1 %v17115_v23  ;;  %7772 = vmatprep.mubr.f32.mxu0 %v17115_v23 }
 0x5ac   : > { %v6611_v63 = vpop.f32.mrf.mxu0  ;;  %v15726_v26 = vpop.f32.mrf.mxu1 }
 0x5ad   : > { %v6612_v5 = vadd.f32 %v6611_v63, %v15675_v25 }
 0x5ae   : > { %v6613_v62 = vpop.f32.mrf.mxu0  ;;  %v15730_v59 = vpop.f32.mrf.mxu1 }
 0x5b2   : > { %v6616_v58 = vpop.f32.mrf.mxu0 }
 0x5b3   : > { %v6617_v54 = vadd.f32 %v6616_v58, %v15680_v47 }
 0x5b4   : > { %v6618_v4 = vpop.f32.mrf.mxu0 }
 0x5b8   : > { %v6621_v37 = vpop.f32.mrf.mxu0 }
 0x5b9   : > { %v6622_v28 = vadd.f32 %v6621_v37, %v15688_v32  ;;  %v6528_v32 = vpop.f32.mrf.mxu1 }
 0x5ba   : > { %v6623_v7 = vpop.f32.mrf.mxu0 }
 0x5bb   : > { %v6530_v36 = vpop.f32.mrf.mxu1 }
 0x5bd   : > { %v6534_v10 = vpop.f32.mrf.mxu1 }
 0x5be   : > { %v6626_v43 = vpop.f32.mrf.mxu0 }
 0x5bf   : > { %v6627_v39 = vadd.f32 %v6626_v43, %v6433_v51  ;;  %v6536_v20 = vpop.f32.mrf.mxu1 }
 0x5c0   : > { %v6628_v22 = vpop.f32.mrf.mxu0 }
 0x5c1   : > { %v6540_v13 = vpop.f32.mrf.mxu1 }
 0x5c3   : > { %v6542_v33 = vpop.f32.mrf.mxu1 }
 0x5e2   : > { %v6899_v25 = vpop.f32.mrf.mxu0  ;;  %v15732_v31 = vpop.f32.mrf.mxu1 }
 0x5e3   : > { %v6920_v38 = vadd.f32 %v6899_v25, %v6612_v5 }
 0x5e4   : > { %v6901_v0 = vpop.f32.mrf.mxu0  ;;  %v15734_v1 = vpop.f32.mrf.mxu1 }
 0x5e8   : > { %v6904_v57 = vpop.f32.mrf.mxu0  ;;  %v6816_v3 = vpop.f32.mrf.mxu1 }
 0x5e9   : > { %v6923_v19 = vadd.f32 %v6904_v57, %v6617_v54 }
 0x5ea   : > { %v6906_v47 = vpop.f32.mrf.mxu0  ;;  %v6818_v55 = vpop.f32.mrf.mxu1 }
 0x5eb   : > { %v6541_v47 = vadd.f32 %v6540_v13, %v6347_v9 }
 0x5ee   : > { %v6909_v45 = vpop.f32.mrf.mxu0  ;;  %v6822_v46 = vpop.f32.mrf.mxu1 }
 0x5ef   : > { %v6926_v42 = vadd.f32 %v6909_v45, %v6622_v28 }
 0x5f0   : > { %v6911_v11 = vpop.f32.mrf.mxu0  ;;  %v6824_v14 = vpop.f32.mrf.mxu1 }
 0x5f1   : > { %v6537_v11 = vadd.f32 %v6536_v20, %v6343_v12  ;;  %v6525_v12 = vadd.f32 %v15730_v59, %v15718_v30 }
 0x5f4   : > { %v6914_v15 = vpop.f32.mrf.mxu0  ;;  %v6828_v49 = vpop.f32.mrf.mxu1 }
 0x5f5   : > { %v15728_v52 = vadd.f32 %v6914_v15, %v6627_v39 }
 0x5f6   : > { %v6916_v24 = vpop.f32.mrf.mxu0  ;;  %v6830_v35 = vpop.f32.mrf.mxu1 }
 0x5f7   : > { %v6535_v24 = vadd.f32 %v6534_v10, %v15724_v48  ;;  %v6523_v10 = vadd.f32 %v15726_v26, %v15716_v40 }
 0x618   : > { %v7199_v50 = vpop.f32.mrf.mxu0  ;;  %v7110_v60 = vpop.f32.mrf.mxu1 }
 0x619   : > { %v15736_v16 = vadd.f32 %v7199_v50, %v6920_v38  ;;  %v6927_v50 = vadd.f32 %v6828_v49, %v6541_v47  ;;  %v8132_v47 = vld [vmem:[%s16822_s11 + $0xd8] sm:$0xff] }
 0x61a   : > { %v7201_v18 = vpop.f32.mrf.mxu0  ;;  %v7112_v27 = vpop.f32.mrf.mxu1 }
 0x61e   : > { %v7204_v51 = vpop.f32.mrf.mxu0  ;;  %v7116_v63 = vpop.f32.mrf.mxu1 }
 0x61f   : > { %v15738_v6 = vadd.f32 %v7204_v51, %v6923_v19  ;;  %v6543_v19 = vadd.f32 %v6542_v33, %v6349_v17  ;;  %v6919_v33 = vadd.f32 %v15734_v1, %v6525_v12  ;;  %v8124_v12 = vld [vmem:[%s16822_s11 + $0x98] sm:$0xff] }
 0x620   : > { %v7206_v21 = vpop.f32.mrf.mxu0  ;;  %v7118_v5 = vpop.f32.mrf.mxu1 }
 0x621   : > { %v6928_v15 = vadd.f32 %v6830_v35, %v6543_v19  ;;  %v6531_v21 = vadd.f32 %v6530_v36, %v15722_v29  ;;  %v7700_v35 = vld [vmem:[%s16820_s9] sm:$0xff]  ;;  %v7885_v19 = vld [vmem:[%s16821_s10 + $0x98] sm:$0xff] }
 0x623   : > { %v6922_v9 = vadd.f32 %v6818_v55, %v6531_v21  ;;  %v7880_v21 = vld [vmem:[%s16821_s10 + $0x70] sm:$0xff] }
 0x624   : > { %v7209_v2 = vpop.f32.mrf.mxu0  ;;  %v7122_v62 = vpop.f32.mrf.mxu1 }
 0x625   : > { %v15740_v61 = vadd.f32 %v7209_v2, %v6926_v42  ;;  %v6925_v2 = vadd.f32 %v6824_v14, %v6537_v11  ;;  %v7529_v14 = vld [vmem:[%s16819_s8] sm:$0xff]  ;;  %v7883_v11 = vld [vmem:[%s16821_s10 + $0x88] sm:$0xff] }
 0x626   : > { %v7211_v8 = vpop.f32.mrf.mxu0  ;;  %v7124_v58 = vpop.f32.mrf.mxu1 }
 0x627   : > { %v7225_v20 = vadd.f32 %v7124_v58, %v6925_v2  ;;  %v7892_v58 = vld [vmem:[%s16821_s10 + $0xd0] sm:$0xff] }
 0x628   : > { %v8127_v2 = vld [vmem:[%s16822_s11 + $0xb0] sm:$0xff] }
 0x62a   : > { %v15742_v44 = vpop.f32.mrf.mxu0  ;;  %v7128_v54 = vpop.f32.mrf.mxu1 }
 0x62c   : > { %v7216_v56 = vpop.f32.mrf.mxu0  ;;  %v7130_v4 = vpop.f32.mrf.mxu1 }
 0x62d   : > { %v7228_v8 = vadd.f32 %v7130_v4, %v6928_v15  ;;  %v6529_v56 = vadd.f32 %v6528_v32, %v15720_v34  ;;  %v7222_v34 = vadd.f32 %v7118_v5, %v6922_v9  ;;  %v7894_v5 = vld [vmem:[%s16821_s10 + $0xe0] sm:$0xff]  ;;  %v8130_v15 = vld [vmem:[%s16822_s11 + $0xc8] sm:$0xff]  ;;  %v7876_v9 = vld [vmem:[%s16821_s10 + $0x50] sm:$0xff] }
 0x62e   : > { %v7890_v4 = vld [vmem:[%s16821_s10 + $0xc0] sm:$0xff] }
 0x62f   : > { %v6921_v13 = vadd.f32 %v6816_v3, %v6529_v56  ;;  %v7229_v3 = vadd.f32 %v15742_v44, %v15728_v52  ;;  %v7530_v44 = vld [vmem:[%s16819_s8 + $0x8] sm:$0x1f] }
 0x630   : > { %v8126_v56 = vld [vmem:[%s16822_s11 + $0xa8] sm:$0xff] }
 0x631   : > { %v7221_v30 = vadd.f32 %v7116_v63, %v6921_v13  ;;  %v7896_v63 = vld [vmem:[%s16821_s10 + $0xf0] sm:$0xff]  ;;  %v7874_v13 = vld [vmem:[%s16821_s10 + $0x40] sm:$0xff] }
 0x64e   : > { %v7409_v37 = vpop.f32.mrf.mxu1  ;;  %v15744_v28 = vpop.f32.mrf.mxu0 }
 0x650   : > { %v7411_v7 = vpop.f32.mrf.mxu1  ;;  %v7500_v43 = vpop.f32.mrf.mxu0 }
 0x651   : > { %v6924_v43 = vadd.f32 %v6822_v46, %v6535_v24  ;;  %v6918_v46 = vadd.f32 %v15732_v31, %v6523_v10  ;;  %v7882_v24 = vld [vmem:[%s16821_s10 + $0x80] sm:$0xff]  ;;  %v8122_v10 = vld [vmem:[%s16822_s11 + $0x88] sm:$0xff] }
 0x652   : > { %v7415_v39 = vpop.f32.mrf.mxu1  ;;  %v15746_v22 = vpop.f32.mrf.mxu0 }
 0x653   : > { %v7224_v29 = vadd.f32 %v7122_v62, %v6924_v43  ;;  %v7218_v26 = vadd.f32 %v7110_v60, %v6918_v46  ;;  %v7520_v1 = vadd.f32 %v7415_v39, %v7221_v30  ;;  %v7522_v60 = vadd.f32 %v15746_v22, %v15738_v6  ;;  %v7897_v6 = vld [vmem:[%s16821_s10 + $0xf8] sm:$0xff]  ;;  %v8135_v39 = vld [vmem:[%s16822_s11 + $0xf0] sm:$0xff]  ;;  %v7887_v22 = vld [vmem:[%s16821_s10 + $0xa8] sm:$0xff] }
 0x654   : > { %v7417_v25 = vpop.f32.mrf.mxu1  ;;  %v7505_v38 = vpop.f32.mrf.mxu0  ;;  %v7893_v62 = vld [vmem:[%s16821_s10 + $0xd8] sm:$0xff]  ;;  %v7878_v43 = vld [vmem:[%s16821_s10 + $0x60] sm:$0xff]  ;;  %v7871_v46 = vld [vmem:[%s16821_s10 + $0x28] sm:$0xff] }
 0x655   : > { %v7227_v38 = vadd.f32 %v7128_v54, %v6927_v50  ;;  %v7521_v40 = vadd.f32 %v7417_v25, %v7222_v34  ;;  %v7517_v31 = vadd.f32 %v7409_v37, %v7218_v26  ;;  %v7891_v54 = vld [vmem:[%s16821_s10 + $0xc8] sm:$0xff]  ;;  %v7889_v37 = vld [vmem:[%s16821_s10 + $0xb8] sm:$0xff]  ;;  %v8129_v50 = vld [vmem:[%s16822_s11 + $0xc0] sm:$0xff] }
 0x656   : > { %v7421_v0 = vpop.f32.mrf.mxu1  ;;  %v7508_v57 = vpop.f32.mrf.mxu0  ;;  %v8134_v25 = vld [vmem:[%s16822_s11 + $0xe8] sm:$0xff]  ;;  %v7872_v34 = vld [vmem:[%s16821_s10 + $0x30] sm:$0xff]  ;;  %v8116_v26 = vld [vmem:[%s16822_s11 + $0x58] sm:$0xff] }
 0x657   : > { %v7523_v59 = vadd.f32 %v7421_v0, %v7224_v29  ;;  %v7525_v52 = vadd.f32 %v7508_v57, %v15740_v61  ;;  %v7701_v61 = vld [vmem:[%s16820_s9 + $0x8] sm:$0x1f]  ;;  %v7886_v0 = vld [vmem:[%s16821_s10 + $0xa0] sm:$0xff] }
 0x658   : > { %v7423_v45 = vpop.f32.mrf.mxu1  ;;  %v7510_v42 = vpop.f32.mrf.mxu0  ;;  %v8133_v57 = vld [vmem:[%s16822_s11 + $0xe0] sm:$0xff]  ;;  %v8118_v30 = vld [vmem:[%s16822_s11 + $0x68] sm:$0xff] }
 0x659   : > { %v7524_v32 = vadd.f32 %v7423_v45, %v7225_v20  ;;  %v7884_v45 = vld [vmem:[%s16821_s10 + $0x90] sm:$0xff]  ;;  %v8121_v29 = vld [vmem:[%s16822_s11 + $0x80] sm:$0xff] }
 0x65a   : > { %v7427_v18 = vpop.f32.mrf.mxu1  ;;  %v7513_v51 = vpop.f32.mrf.mxu0  ;;  %v8131_v42 = vld [vmem:[%s16822_s11 + $0xd0] sm:$0xff] }
 0x65b   : > { %v7526_v36 = vadd.f32 %v7427_v18, %v7227_v38  ;;  %v7528_v49 = vadd.f32 %v7513_v51, %v7229_v3  ;;  %v7881_v18 = vld [vmem:[%s16821_s10 + $0x78] sm:$0xff]  ;;  %v8125_v38 = vld [vmem:[%s16822_s11 + $0xa0] sm:$0xff]  ;;  %v8123_v20 = vld [vmem:[%s16822_s11 + $0x90] sm:$0xff] }
 0x65c   : > { %v7429_v53 = vpop.f32.mrf.mxu1  ;;  %v7515_v17 = vpop.f32.mrf.mxu0  ;;  %v8128_v51 = vld [vmem:[%s16822_s11 + $0xb8] sm:$0xff]  ;;  %v8115_v3 = vld [vmem:[%s16822_s11 + $0x50] sm:$0xff] }
 0x65d   : > { %v7527_v48 = vadd.f32 %v7429_v53, %v7228_v8  ;;  %v7219_v53 = vadd.f32 %v7112_v27, %v6919_v33  ;;  %v7519_v27 = vadd.f32 %v15744_v28, %v15736_v16  ;;  %v7895_v16 = vld [vmem:[%s16821_s10 + $0xe8] sm:$0xff]  ;;  %v8136_v28 = vld [vmem:[%s16822_s11 + $0xf8] sm:$0xff] }
 0x65e   : > { %v7879_v8 = vld [vmem:[%s16821_s10 + $0x68] sm:$0xff]  ;;  %v7877_v17 = vld [vmem:[%s16821_s10 + $0x58] sm:$0xff] }
 0x65f   : > { %10810 = vmatprep.subr.msk.mxu1 %vm7538_vm9, %v7527_v48  ;;  %10817 = vmatprep.subr.msk.mxu0 %vm7538_vm9, %v7527_v48  ;;  %v7518_v55 = vadd.f32 %v7411_v7, %v7219_v53  ;;  %v7888_v7 = vld [vmem:[%s16821_s10 + $0xb0] sm:$0xff]  ;;  %v7875_v48 = vld [vmem:[%s16821_s10 + $0x48] sm:$0xff]  ;;  %v8120_v33 = vld [vmem:[%s16822_s11 + $0x78] sm:$0xff] }
 0x660   : > { %10811 = vmatpush1.msk.msra.mxu1 %vm7538_vm9, %v7526_v36  ;;  %10818 = vmatpush1.msk.msra.mxu0 %vm7538_vm9, %v7526_v36  ;;  %v7873_v36 = vld [vmem:[%s16821_s10 + $0x38] sm:$0xff]  ;;  %v8117_v53 = vld [vmem:[%s16822_s11 + $0x60] sm:$0xff] }
 0x661   : > { %7574 = vmatprep.subr.mxu1 %v7524_v32  ;;  %7734 = vmatprep.subr.mxu0 %v7524_v32  ;;  %v8119_v32 = vld [vmem:[%s16822_s11 + $0x70] sm:$0xff] }
 0x662   : > { %7575 = vmatpush1.msra.mxu1 %v7523_v59  ;;  %7735 = vmatpush1.msra.mxu0 %v7523_v59  ;;  %v7870_v59 = vld [vmem:[%s16821_s10 + $0x20] sm:$0xff] }
 0x663   : > { %7576 = vmatprep.subr.mxu1 %v7521_v40  ;;  %7736 = vmatprep.subr.mxu0 %v7521_v40  ;;  %v7869_v40 = vld [vmem:[%s16821_s10 + $0x18] sm:$0xff] }
 0x664   : > { %7577 = vmatpush1.msra.mxu1 %v7520_v1  ;;  %7737 = vmatpush1.msra.mxu0 %v7520_v1  ;;  %v7868_v1 = vld [vmem:[%s16821_s10 + $0x10] sm:$0xff] }
 0x665   : > { %7578 = vmatprep.subr.mxu1 %v7518_v55  ;;  %7738 = vmatprep.subr.mxu0 %v7518_v55  ;;  %v7867_v55 = vld [vmem:[%s16821_s10 + $0x8] sm:$0xff] }
 0x666   : > { %7579 = vmatpush1.msra.mxu1 %v7517_v31  ;;  %7739 = vmatpush1.msra.mxu0 %v7517_v31  ;;  %v8114_v31 = vld [vmem:[%s16822_s11 + $0x48] sm:$0xff] }
 0x667   : > { %11632 = vmatprep.subr.msk.mxu1 %vm7538_vm9, %v7528_v49  ;;  %10812 = vmatmul.mubr.msk.f32.vlgmr.msra.gmra.mxu1 %vm7531_vm10, %v7529_v14 }
 0x668   : > { %11633 = vmatpush3.msk.msra.mxu1 %vm7538_vm9, %v7528_v49  ;;  %10819 = vmatmul.mubr.msk.f32.vlgmr.msra.gmra.mxu0 %vm7531_vm10, %v7700_v35 }
 0x669   : > { %11634 = vmatprep.subr.mxu1 %v7525_v52  ;;  %7618 = vmatprep.mubr.f32.mxu1 %v17115_v23 }
 0x66a   : > { %11635 = vmatpush3.msra.mxu1 %v7525_v52  ;;  %7778 = vmatprep.mubr.f32.mxu0 %v17115_v23 }
 0x66b   : > { %11636 = vmatprep.subr.mxu1 %v7522_v60  ;;  %10813 = vmatmul.mubr.msk.f32.gmra.mxu1 %vm7531_vm10, %v7530_v44 }
 0x66c   : > { %11637 = vmatpush3.msra.mxu1 %v7522_v60  ;;  %11640 = vmatprep.mubr.msk.f32.mxu1 %vm7531_vm10, %v7529_v14  ;;  %v7866_v14 = vld [vmem:[%s16821_s10] sm:$0xff] }
 0x66d   : > { %11638 = vmatprep.subr.mxu1 %v7519_v27  ;;  %10820 = vmatmul.mubr.msk.f32.gmra.mxu0 %vm7531_vm10, %v7701_v61 }
 0x66e   : > { %11639 = vmatpush3.msra.mxu1 %v7519_v27  ;;  %7951 = vmatprep.subr.mxu0 %v7897_v6  ;;  %v7926_v6 = vld [vmem:[%s16821_s10 + $0x1e0] sm:$0xff] }
 0x66f   : > { %11643 = vmatprep.subr.msk.mxu1 %vm7538_vm9, %v7528_v49  ;;  %11641 = vmatmul.mubr.msk.f32.vlgmr.msra.gmra.mxu1 %vm7531_vm10, %v7530_v44  ;;  %v7928_v44 = vld [vmem:[%s16821_s10 + $0x1f0] sm:$0xff] }
 0x670   : > { %11644 = vmatpush3.msk.msra.mxu1 %vm7538_vm9, %v7528_v49  ;;  %11651 = vmatprep.mubr.msk.f32.mxu1 %vm7531_vm10, %v7700_v35  ;;  %v8113_v49 = vld [vmem:[%s16822_s11 + $0x40] sm:$0xff]  ;;  %v7929_v35 = vld [vmem:[%s16821_s10 + $0x1f8] sm:$0xff] }
 0x671   : > { %11645 = vmatprep.subr.mxu1 %v7525_v52  ;;  %7952 = vmatpush1.msra.mxu0 %v7896_v63  ;;  %v8109_v63 = vld [vmem:[%s16822_s11 + $0x20] sm:$0xff] }
 0x672   : > { %11646 = vmatpush3.msra.mxu1 %v7525_v52  ;;  %7953 = vmatprep.subr.mxu0 %v7895_v16  ;;  %v8112_v52 = vld [vmem:[%s16822_s11 + $0x38] sm:$0xff] }
 0x673   : > { %11647 = vmatprep.subr.mxu1 %v7522_v60  ;;  %7954 = vmatpush1.msra.mxu0 %v7894_v5  ;;  %v7925_v16 = vld [vmem:[%s16821_s10 + $0x1d8] sm:$0xff] }
 0x674   : > { %11648 = vmatpush3.msra.mxu1 %v7522_v60  ;;  %7955 = vmatprep.subr.mxu0 %v7893_v62  ;;  %v8111_v60 = vld [vmem:[%s16822_s11 + $0x30] sm:$0xff]  ;;  %v8108_v5 = vld [vmem:[%s16822_s11 + $0x18] sm:$0xff] }
 0x675   : > { %11649 = vmatprep.subr.mxu1 %v7519_v27  ;;  %7956 = vmatpush1.msra.mxu0 %v7892_v58  ;;  %v7924_v62 = vld [vmem:[%s16821_s10 + $0x1d0] sm:$0xff] }
 0x676   : > { %11650 = vmatpush3.msra.mxu1 %v7519_v27  ;;  %7957 = vmatprep.subr.mxu0 %v7891_v54  ;;  %v8110_v27 = vld [vmem:[%s16822_s11 + $0x28] sm:$0xff]  ;;  %v8107_v58 = vld [vmem:[%s16822_s11 + $0x10] sm:$0xff] }
 0x677   : > { %11652 = vmatmul.mubr.msk.f32.vlgmr.msra.gmra.mxu1 %vm7531_vm10, %v7701_v61  ;;  %7958 = vmatpush1.msra.mxu0 %v7890_v4  ;;  %v7927_v61 = vld [vmem:[%s16821_s10 + $0x1e8] sm:$0xff] }
 0x678   : > { %7959 = vmatprep.subr.mxu0 %v7889_v37  ;;  %8183 = vmatprep.subr.mxu1 %v8136_v28  ;;  %v7923_v54 = vld [vmem:[%s16821_s10 + $0x1c8] sm:$0xff]  ;;  %v7922_v37 = vld [vmem:[%s16821_s10 + $0x1c0] sm:$0xff] }
 0x679   : > { %7960 = vmatpush1.msra.mxu0 %v7888_v7  ;;  %8184 = vmatpush1.msra.mxu1 %v8135_v39  ;;  %v8106_v4 = vld [vmem:[%s16822_s11 + $0x8] sm:$0xff]  ;;  %v8105_v28 = vld [vmem:[%s16822_s11] sm:$0xff]  ;;  %v7921_v7 = vld [vmem:[%s16821_s10 + $0x1b8] sm:$0xff] }
 0x67a   : > { %7961 = vmatprep.subr.mxu0 %v7887_v22  ;;  %8185 = vmatprep.subr.mxu1 %v8134_v25  ;;  %v8168_v39 = vld [vmem:[%s16822_s11 + $0x1f8] sm:$0xff]  ;;  %v7920_v22 = vld [vmem:[%s16821_s10 + $0x1b0] sm:$0xff] }
 0x67b   : > { %7962 = vmatpush1.msra.mxu0 %v7886_v0  ;;  %8186 = vmatpush1.msra.mxu1 %v8133_v57  ;;  %v8167_v25 = vld [vmem:[%s16822_s11 + $0x1f0] sm:$0xff]  ;;  %v7919_v0 = vld [vmem:[%s16821_s10 + $0x1a8] sm:$0xff] }
 0x67c   : > { %7963 = vmatprep.subr.mxu0 %v7885_v19  ;;  %8187 = vmatprep.subr.mxu1 %v8132_v47  ;;  %v8166_v57 = vld [vmem:[%s16822_s11 + $0x1e8] sm:$0xff]  ;;  %v7918_v19 = vld [vmem:[%s16821_s10 + $0x1a0] sm:$0xff] }
 0x67d   : > { %7964 = vmatpush1.msra.mxu0 %v7884_v45  ;;  %8188 = vmatpush1.msra.mxu1 %v8131_v42  ;;  %v8165_v47 = vld [vmem:[%s16822_s11 + $0x1e0] sm:$0xff]  ;;  %v7917_v45 = vld [vmem:[%s16821_s10 + $0x198] sm:$0xff] }
 0x67e   : > { %7965 = vmatprep.subr.mxu0 %v7883_v11  ;;  %8189 = vmatprep.subr.mxu1 %v8130_v15  ;;  %v8164_v42 = vld [vmem:[%s16822_s11 + $0x1d8] sm:$0xff]  ;;  %v7916_v11 = vld [vmem:[%s16821_s10 + $0x190] sm:$0xff] }
 0x67f   : > { %7966 = vmatpush1.msra.mxu0 %v7882_v24  ;;  %8190 = vmatpush1.msra.mxu1 %v8129_v50  ;;  %v8163_v15 = vld [vmem:[%s16822_s11 + $0x1d0] sm:$0xff]  ;;  %v7915_v24 = vld [vmem:[%s16821_s10 + $0x188] sm:$0xff] }
 0x680   : > { %7967 = vmatprep.subr.mxu0 %v7881_v18  ;;  %8191 = vmatprep.subr.mxu1 %v8128_v51  ;;  %v8162_v50 = vld [vmem:[%s16822_s11 + $0x1c8] sm:$0xff]  ;;  %v7914_v18 = vld [vmem:[%s16821_s10 + $0x180] sm:$0xff] }
 0x681   : > { %7968 = vmatpush1.msra.mxu0 %v7880_v21  ;;  %8192 = vmatpush1.msra.mxu1 %v8127_v2  ;;  %v8161_v51 = vld [vmem:[%s16822_s11 + $0x1c0] sm:$0xff]  ;;  %v7913_v21 = vld [vmem:[%s16821_s10 + $0x178] sm:$0xff] }
 0x682   : > { %7969 = vmatprep.subr.mxu0 %v7879_v8  ;;  %8193 = vmatprep.subr.mxu1 %v8126_v56  ;;  %v8160_v2 = vld [vmem:[%s16822_s11 + $0x1b8] sm:$0xff]  ;;  %v7912_v8 = vld [vmem:[%s16821_s10 + $0x170] sm:$0xff] }
 0x683   : > { %7970 = vmatpush1.msra.mxu0 %v7878_v43  ;;  %8194 = vmatpush1.msra.mxu1 %v8125_v38  ;;  %v8159_v56 = vld [vmem:[%s16822_s11 + $0x1b0] sm:$0xff]  ;;  %v7911_v43 = vld [vmem:[%s16821_s10 + $0x168] sm:$0xff] }
 0x684   : > { %7971 = vmatprep.subr.mxu0 %v7877_v17  ;;  %8195 = vmatprep.subr.mxu1 %v8124_v12  ;;  %v8158_v38 = vld [vmem:[%s16822_s11 + $0x1a8] sm:$0xff]  ;;  %v7910_v17 = vld [vmem:[%s16821_s10 + $0x160] sm:$0xff] }
 0x685   : > { %7972 = vmatpush1.msra.mxu0 %v7876_v9  ;;  %8196 = vmatpush1.msra.mxu1 %v8123_v20  ;;  %v8157_v12 = vld [vmem:[%s16822_s11 + $0x1a0] sm:$0xff]  ;;  %v7909_v9 = vld [vmem:[%s16821_s10 + $0x158] sm:$0xff] }
 0x686   : > { %7973 = vmatprep.subr.mxu0 %v7875_v48  ;;  %8197 = vmatprep.subr.mxu1 %v8122_v10  ;;  %v8156_v20 = vld [vmem:[%s16822_s11 + $0x198] sm:$0xff]  ;;  %v7908_v48 = vld [vmem:[%s16821_s10 + $0x150] sm:$0xff] }
 0x687   : > { %7974 = vmatpush1.msra.mxu0 %v7874_v13  ;;  %8198 = vmatpush1.msra.mxu1 %v8121_v29  ;;  %v8155_v10 = vld [vmem:[%s16822_s11 + $0x190] sm:$0xff]  ;;  %v7907_v13 = vld [vmem:[%s16821_s10 + $0x148] sm:$0xff] }
 0x688   : > { %7975 = vmatprep.subr.mxu0 %v7873_v36  ;;  %8199 = vmatprep.subr.mxu1 %v8120_v33  ;;  %v8154_v29 = vld [vmem:[%s16822_s11 + $0x188] sm:$0xff]  ;;  %v7906_v36 = vld [vmem:[%s16821_s10 + $0x140] sm:$0xff] }
 0x689   : > { %7976 = vmatpush1.msra.mxu0 %v7872_v34  ;;  %8200 = vmatpush1.msra.mxu1 %v8119_v32  ;;  %v8153_v33 = vld [vmem:[%s16822_s11 + $0x180] sm:$0xff]  ;;  %v7905_v34 = vld [vmem:[%s16821_s10 + $0x138] sm:$0xff] }
 0x68a   : > { %7977 = vmatprep.subr.mxu0 %v7871_v46  ;;  %8201 = vmatprep.subr.mxu1 %v8118_v30  ;;  %v8152_v32 = vld [vmem:[%s16822_s11 + $0x178] sm:$0xff]  ;;  %v7904_v46 = vld [vmem:[%s16821_s10 + $0x130] sm:$0xff] }
 0x68b   : > { %7978 = vmatpush1.msra.mxu0 %v7870_v59  ;;  %8202 = vmatpush1.msra.mxu1 %v8117_v53  ;;  %v8151_v30 = vld [vmem:[%s16822_s11 + $0x170] sm:$0xff]  ;;  %v7903_v59 = vld [vmem:[%s16821_s10 + $0x128] sm:$0xff] }
 0x68c   : > { %7979 = vmatprep.subr.mxu0 %v7869_v40  ;;  %8203 = vmatprep.subr.mxu1 %v8116_v26  ;;  %v8150_v53 = vld [vmem:[%s16822_s11 + $0x168] sm:$0xff]  ;;  %v8149_v40 = vld [vmem:[%s16822_s11 + $0x160] sm:$0xff] }
 0x68d   : > { %7980 = vmatpush1.msra.mxu0 %v7868_v1  ;;  %8204 = vmatpush1.msra.mxu1 %v8115_v3  ;;  %v7902_v26 = vld [vmem:[%s16821_s10 + $0x120] sm:$0xff]  ;;  %v7901_v1 = vld [vmem:[%s16821_s10 + $0x118] sm:$0xff] }
 0x68e   : > { %7981 = vmatprep.subr.mxu0 %v7867_v55  ;;  %8205 = vmatprep.subr.mxu1 %v8114_v31  ;;  %v8148_v3 = vld [vmem:[%s16822_s11 + $0x158] sm:$0xff]  ;;  %v8147_v55 = vld [vmem:[%s16822_s11 + $0x150] sm:$0xff] }
 0x68f   : > { %7982 = vmatpush1.msra.mxu0 %v7866_v14  ;;  %8206 = vmatpush1.msra.mxu1 %v8113_v49  ;;  %v7900_v31 = vld [vmem:[%s16821_s10 + $0x110] sm:$0xff]  ;;  %v7899_v14 = vld [vmem:[%s16821_s10 + $0x108] sm:$0xff] }
 0x690   : > { %7983 = vmatprep.subr.mxu0 %v7929_v35  ;;  %8207 = vmatprep.subr.mxu1 %v8112_v52  ;;  %v8146_v49 = vld [vmem:[%s16822_s11 + $0x148] sm:$0xff]  ;;  %v7898_v35 = vld [vmem:[%s16821_s10 + $0x100] sm:$0xff] }
 0x691   : > { %7984 = vmatpush2.msra.mxu0 %v7928_v44  ;;  %8208 = vmatpush1.msra.mxu1 %v8111_v60  ;;  %v8145_v52 = vld [vmem:[%s16822_s11 + $0x140] sm:$0xff]  ;;  %v7943_v44 = vld [vmem:[%s16821_s10 + $0x268] sm:$0xff]  ;;  %v8144_v60 = vld [vmem:[%s16822_s11 + $0x138] sm:$0xff] }
 0x692   : > { %7985 = vmatprep.subr.mxu0 %v7927_v61  ;;  %8209 = vmatprep.subr.mxu1 %v8110_v27  ;;  %v8143_v61 = vld [vmem:[%s16822_s11 + $0x130] sm:$0xff]  ;;  %v8142_v27 = vld [vmem:[%s16822_s11 + $0x128] sm:$0xff] }
 0x693   : > { %7986 = vmatpush2.msra.mxu0 %v7926_v6  ;;  %8210 = vmatpush1.msra.mxu1 %v8109_v63  ;;  %v8141_v6 = vld [vmem:[%s16822_s11 + $0x120] sm:$0xff]  ;;  %v8140_v63 = vld [vmem:[%s16822_s11 + $0x118] sm:$0xff] }
 0x694   : > { %7987 = vmatprep.subr.mxu0 %v7925_v16  ;;  %8211 = vmatprep.subr.mxu1 %v8108_v5  ;;  %v8139_v16 = vld [vmem:[%s16822_s11 + $0x110] sm:$0xff]  ;;  %v8138_v5 = vld [vmem:[%s16822_s11 + $0x108] sm:$0xff] }
 0x695   : > { %7988 = vmatpush2.msra.mxu0 %v7924_v62  ;;  %8212 = vmatpush1.msra.mxu1 %v8107_v58  ;;  %v8137_v62 = vld [vmem:[%s16822_s11 + $0x100] sm:$0xff] }
 0x696   : > { %7989 = vmatprep.subr.mxu0 %v7923_v54  ;;  %8213 = vmatprep.subr.mxu1 %v8106_v4 }
 0x697   : > { %7990 = vmatpush2.msra.mxu0 %v7922_v37  ;;  %8214 = vmatpush1.msra.mxu1 %v8105_v28 }
 0x698   : > { %7991 = vmatprep.subr.mxu0 %v7921_v7  ;;  %8215 = vmatprep.subr.mxu1 %v8168_v39 }
 0x699   : > { %7992 = vmatpush2.msra.mxu0 %v7920_v22  ;;  %8216 = vmatpush2.msra.mxu1 %v8167_v25  ;;  %v7942_v22 = vld [vmem:[%s16821_s10 + $0x260] sm:$0xff]  ;;  %v7941_v25 = vld [vmem:[%s16821_s10 + $0x258] sm:$0xff] }
 0x69a   : > { %7993 = vmatprep.subr.mxu0 %v7919_v0  ;;  %8217 = vmatprep.subr.mxu1 %v8166_v57 }
 0x69b   : > { %7994 = vmatpush2.msra.mxu0 %v7918_v19  ;;  %8218 = vmatpush2.msra.mxu1 %v8165_v47  ;;  %v7940_v19 = vld [vmem:[%s16821_s10 + $0x250] sm:$0xff]  ;;  %v7939_v47 = vld [vmem:[%s16821_s10 + $0x248] sm:$0xff] }
 0x69c   : > { %7995 = vmatprep.subr.mxu0 %v7917_v45  ;;  %8219 = vmatprep.subr.mxu1 %v8164_v42  ;;  %v7938_v42 = vld [vmem:[%s16821_s10 + $0x240] sm:$0xff] }
 0x69d   : > { %7996 = vmatpush2.msra.mxu0 %v7916_v11  ;;  %8220 = vmatpush2.msra.mxu1 %v8163_v15 }
 0x69e   : > { %7997 = vmatprep.subr.mxu0 %v7915_v24  ;;  %8221 = vmatprep.subr.mxu1 %v8162_v50  ;;  %v7937_v24 = vld [vmem:[%s16821_s10 + $0x238] sm:$0xff] }
 0x69f   : > { %7998 = vmatpush2.msra.mxu0 %v7914_v18  ;;  %8222 = vmatpush2.msra.mxu1 %v8161_v51  ;;  %v7936_v18 = vld [vmem:[%s16821_s10 + $0x230] sm:$0xff]  ;;  %v7935_v51 = vld [vmem:[%s16821_s10 + $0x228] sm:$0xff] }
 0x6a0   : > { %7999 = vmatprep.subr.mxu0 %v7913_v21  ;;  %8223 = vmatprep.subr.mxu1 %v8160_v2  ;;  %v7934_v21 = vld [vmem:[%s16821_s10 + $0x220] sm:$0xff] }
 0x6a1   : > { %8000 = vmatpush2.msra.mxu0 %v7912_v8  ;;  %8224 = vmatpush2.msra.mxu1 %v8159_v56  ;;  %v7933_v8 = vld [vmem:[%s16821_s10 + $0x218] sm:$0xff]  ;;  %v7932_v56 = vld [vmem:[%s16821_s10 + $0x210] sm:$0xff] }
 0x6a2   : > { %8001 = vmatprep.subr.mxu0 %v7911_v43  ;;  %8225 = vmatprep.subr.mxu1 %v8158_v38  ;;  %v7931_v38 = vld [vmem:[%s16821_s10 + $0x208] sm:$0xff] }
 0x6a3   : > { %8002 = vmatpush2.msra.mxu0 %v7910_v17  ;;  %8226 = vmatpush2.msra.mxu1 %v8157_v12  ;;  %v7930_v17 = vld [vmem:[%s16821_s10 + $0x200] sm:$0xff] }
 0x6a4   : > { %8003 = vmatprep.subr.mxu0 %v7909_v9  ;;  %8227 = vmatprep.subr.mxu1 %v8156_v20  ;;  %v8182_v9 = vld [vmem:[%s16822_s11 + $0x268] sm:$0xff] }
 0x6a5   : > { %8004 = vmatpush2.msra.mxu0 %v7908_v48  ;;  %8228 = vmatpush2.msra.mxu1 %v8155_v10  ;;  %v8181_v48 = vld [vmem:[%s16822_s11 + $0x260] sm:$0xff]  ;;  %v8180_v10 = vld [vmem:[%s16822_s11 + $0x258] sm:$0xff] }
 0x6a6   : > { %8005 = vmatprep.subr.mxu0 %v7907_v13  ;;  %8229 = vmatprep.subr.mxu1 %v8154_v29  ;;  %v8179_v13 = vld [vmem:[%s16822_s11 + $0x250] sm:$0xff]  ;;  %v8178_v29 = vld [vmem:[%s16822_s11 + $0x248] sm:$0xff] }
 0x6a7   : > { %8006 = vmatpush2.msra.mxu0 %v7906_v36  ;;  %8230 = vmatpush2.msra.mxu1 %v8153_v33  ;;  %v8177_v33 = vld [vmem:[%s16822_s11 + $0x240] sm:$0xff] }
 0x6a8   : > { %8007 = vmatprep.subr.mxu0 %v7905_v34  ;;  %8231 = vmatprep.subr.mxu1 %v8152_v32  ;;  %v8176_v34 = vld [vmem:[%s16822_s11 + $0x238] sm:$0xff]  ;;  %v8175_v32 = vld [vmem:[%s16822_s11 + $0x230] sm:$0xff] }
 0x6a9   : > { %8008 = vmatpush2.msra.mxu0 %v7904_v46  ;;  %8232 = vmatpush2.msra.mxu1 %v8151_v30  ;;  %v8174_v46 = vld [vmem:[%s16822_s11 + $0x228] sm:$0xff]  ;;  %v8173_v30 = vld [vmem:[%s16822_s11 + $0x220] sm:$0xff] }
 0x6aa   : > { %8009 = vmatprep.subr.mxu0 %v7903_v59  ;;  %8233 = vmatprep.subr.mxu1 %v8150_v53  ;;  %v8172_v59 = vld [vmem:[%s16822_s11 + $0x218] sm:$0xff]  ;;  %v8171_v53 = vld [vmem:[%s16822_s11 + $0x210] sm:$0xff] }
 0x6ab   : > { %8010 = vmatpush2.msra.mxu0 %v7902_v26  ;;  %8234 = vmatpush2.msra.mxu1 %v8149_v40  ;;  %v8170_v40 = vld [vmem:[%s16822_s11 + $0x208] sm:$0xff]  ;;  %v8169_v26 = vld [vmem:[%s16822_s11 + $0x200] sm:$0xff] }
 0x6ac   : > { %8011 = vmatprep.subr.mxu0 %v7901_v1  ;;  %8235 = vmatprep.subr.mxu1 %v8148_v3  ;;  %v8384_v1 = vld [vmem:[#allocation7 + $0x78] sm:$0xff] }
 0x6ad   : > { %8012 = vmatpush2.msra.mxu0 %v7900_v31  ;;  %8236 = vmatpush2.msra.mxu1 %v8147_v55  ;;  %v8493_v3 = vld [vmem:[#allocation7 + $0x118] sm:$0xff]  ;;  %v8383_v55 = vld [vmem:[#allocation7 + $0x70] sm:$0xff] }
 0x6ae   : > { %8013 = vmatprep.subr.mxu0 %v7899_v14  ;;  %8237 = vmatprep.subr.mxu1 %v8146_v49  ;;  %v8492_v31 = vld [vmem:[#allocation7 + $0x110] sm:$0xff]  ;;  %v8382_v14 = vld [vmem:[#allocation7 + $0x68] sm:$0xff] }
 0x6af   : > { %8014 = vmatpush2.msra.mxu0 %v7898_v35  ;;  %8238 = vmatpush2.msra.mxu1 %v8145_v52  ;;  %v8491_v49 = vld [vmem:[#allocation7 + $0x108] sm:$0xff]  ;;  %v8381_v35 = vld [vmem:[#allocation7 + $0x60] sm:$0xff] }
 0x6b0   : > { %8046 = vmatprep.subr.mxu0 %v7943_v44  ;;  %8239 = vmatprep.subr.mxu1 %v8144_v60  ;;  %v8490_v52 = vld [vmem:[#allocation7 + $0x100] sm:$0xff]  ;;  %v8380_v44 = vld [vmem:[#allocation7 + $0x58] sm:$0xff] }
 0x6b1   : > { %8240 = vmatpush2.msra.mxu1 %v8143_v61  ;;  %v8489_v60 = vld [vmem:[#allocation7 + $0xf8] sm:$0xff]  ;;  %v8379_v61 = vld [vmem:[#allocation7 + $0x50] sm:$0xff] }
 0x6b2   : > { %8241 = vmatprep.subr.mxu1 %v8142_v27  ;;  %v8488_v27 = vld [vmem:[#allocation7 + $0xf0] sm:$0xff] }
 0x6b3   : > { %8242 = vmatpush2.msra.mxu1 %v8141_v6  ;;  %v8378_v6 = vld [vmem:[#allocation7 + $0x48] sm:$0xff] }
 0x6b4   : > { %8243 = vmatprep.subr.mxu1 %v8140_v63  ;;  %v8487_v63 = vld [vmem:[#allocation7 + $0xe8] sm:$0xff] }
 0x6b5   : > { %8244 = vmatpush2.msra.mxu1 %v8139_v16  ;;  %v8377_v16 = vld [vmem:[#allocation7 + $0x40] sm:$0xff] }
 0x6b6   : > { %8245 = vmatprep.subr.mxu1 %v8138_v5  ;;  %v8486_v5 = vld [vmem:[#allocation7 + $0xe0] sm:$0xff] }
 0x6b7   : > { %8246 = vmatpush2.msra.mxu1 %v8137_v62  ;;  %v8376_v62 = vld [vmem:[#allocation7 + $0x38] sm:$0xff] }
 0x6b8   : > { %8513 = vmatprep.subr.mxu1 %v17115_v23 }
 0x727   : > { %v7614_v58 = vpop.f32.mrf.mxu1 }
 0x728   : > { %v7774_v54 = vpop.f32.mrf.mxu0 }
 0x729   : > { %v7616_v4 = vpop.f32.mrf.mxu1  ;;  %v7860_v39 = vmax.f32 %v7614_v58, %v7774_v54  ;;  %v8485_v58 = vld [vmem:[#allocation7 + $0xd8] sm:$0xff]  ;;  %v8375_v54 = vld [vmem:[#allocation7 + $0x30] sm:$0xff] }
 0x72a   : > { %v7776_v37 = vpop.f32.mrf.mxu0 }
 0x72b   : > { %v7861_v28 = vmax.f32 %v7616_v4, %v7776_v37  ;;  %v7620_v7 = vpop.f32.mrf.mxu1  ;;  %v8484_v4 = vld [vmem:[#allocation7 + $0xd0] sm:$0xff]  ;;  %v8374_v37 = vld [vmem:[#allocation7 + $0x28] sm:$0xff] }
 0x72d   : > { %8015 = vmatprep.mubr.f32.mxu0 %v7861_v28  ;;  %v7622_v0 = vpop.f32.mrf.mxu1  ;;  %v7780_v57 = vpop.f32.mrf.mxu0  ;;  %8247 = vmatprep.mubr.f32.mxu1 %v7861_v28  ;;  %v8483_v28 = vld [vmem:[#allocation7 + $0xc8] sm:$0xff] }
 0x72e   : > { %8016 = vmatmul.mubr.f32.vlgmr.msra.gmra.mxu0 %v7860_v39  ;;  %8248 = vmatmul.mubr.f32.vlgmr.msra.gmra.mxu1 %v7860_v39  ;;  %v7863_v50 = vmax.f32 %v7620_v7, %v7780_v57  ;;  %v8373_v7 = vld [vmem:[#allocation7 + $0x20] sm:$0xff]  ;;  %v8480_v57 = vld [vmem:[#allocation7 + $0xb0] sm:$0xff] }
 0x72f   : > { %8047 = vmatpush1.msra.mxu0 %v7942_v22  ;;  %v7782_v45 = vpop.f32.mrf.mxu0  ;;  %v11642_v15 = vpop.f32.mrf.mxu1  ;;  %8514 = vmatpush1.msra.mxu1 %v8493_v3  ;;  %v8482_v39 = vld [vmem:[#allocation7 + $0xc0] sm:$0xff]  ;;  %v8372_v22 = vld [vmem:[#allocation7 + $0x18] sm:$0xff] }
 0x730   : > { %8048 = vmatprep.subr.mxu0 %v7941_v25  ;;  %v7864_v11 = vmax.f32 %v7622_v0, %v7782_v45  ;;  %8515 = vmatprep.subr.mxu1 %v17115_v23  ;;  %v8481_v25 = vld [vmem:[#allocation7 + $0xb8] sm:$0xff]  ;;  %v8371_v0 = vld [vmem:[#allocation7 + $0x10] sm:$0xff]  ;;  %v8369_v45 = vld [vmem:[#allocation7] sm:$0xff] }
 0x731   : > { %8049 = vmatpush1.msra.mxu0 %v7940_v19  ;;  %v7691_v2 = vpop.f32.mrf.mxu1  ;;  %8516 = vmatpush1.msra.mxu1 %v8492_v31  ;;  %v8370_v19 = vld [vmem:[#allocation7 + $0x8] sm:$0xff] }
 0x732   : > { %8050 = vmatprep.subr.mxu0 %v7939_v47  ;;  %8021 = vmatprep.mubr.f32.mxu0 %v7864_v11  ;;  %v8479_v47 = vld [vmem:[#allocation7 + $0xa8] sm:$0xff] }
 0x733   : > { %8051 = vmatpush1.msra.mxu0 %v7938_v42  ;;  %8253 = vmatprep.mubr.f32.mxu1 %v7864_v11  ;;  %v8478_v42 = vld [vmem:[#allocation7 + $0xa0] sm:$0xff]  ;;  %v8388_v11 = vld [vmem:[#allocation7 + $0x98] sm:$0xf] }
 0x734   : > { %8052 = vmatprep.subr.mxu0 %v7937_v24  ;;  %8022 = vmatmul.mubr.f32.gmra.mxu0 %v7863_v50  ;;  %v8387_v24 = vld [vmem:[#allocation7 + $0x90] sm:$0xff] }
 0x735   : > { %8053 = vmatpush1.msra.mxu0 %v7936_v18  ;;  %8092 = vmatprep.mubr.f32.mxu0 %v17115_v23  ;;  %v8386_v18 = vld [vmem:[#allocation7 + $0x88] sm:$0xff] }
 0x736   : > { %8054 = vmatprep.subr.mxu0 %v7935_v51  ;;  %8254 = vmatmul.mubr.f32.gmra.mxu1 %v7863_v50  ;;  %v8496_v50 = vld [vmem:[#allocation7 + $0x130] sm:$0xff]  ;;  %v8495_v51 = vld [vmem:[#allocation7 + $0x128] sm:$0xff] }
 0x737   : > { %8055 = vmatpush1.msra.mxu0 %v7934_v21  ;;  %v11653_v43 = vpop.f32.mrf.mxu1  ;;  %8517 = vmatprep.subr.mxu1 %v17115_v23  ;;  %v8385_v21 = vld [vmem:[#allocation7 + $0x80] sm:$0xff] }
 0x738   : > { %8056 = vmatprep.subr.mxu0 %v7933_v8  ;;  %v7865_v36 = vmax.f32 %v11642_v15, %v11653_v43  ;;  %8518 = vmatpush1.msra.mxu1 %v8491_v49  ;;  %v8497_v15 = vld [vmem:[#allocation7 + $0x138] sm:$0xf] }
 0x739   : > { %8057 = vmatpush1.msra.mxu0 %v7932_v56  ;;  %v7851_v12 = vpop.f32.mrf.mxu1  ;;  %8519 = vmatprep.subr.mxu1 %v17115_v23 }
 0x73a   : > { %v7862_v20 = vmax.f32 %v7691_v2, %v7851_v12  ;;  %8058 = vmatprep.subr.mxu0 %v7931_v38  ;;  %8520 = vmatpush1.msra.mxu1 %v8490_v52  ;;  %v8494_v2 = vld [vmem:[#allocation7 + $0x120] sm:$0xff] }
 0x73b   : > { %8059 = vmatpush1.msra.mxu0 %v7930_v17  ;;  %8521 = vmatprep.subr.mxu1 %v17115_v23 }
 0x73c   : > { %8278 = vmatprep.subr.mxu0 %v8182_v9  ;;  %10824 = vmatmul.mubr.msk.f32.vlgmr.msra.gmra.mxu0 %vm7944_vm11, %v7862_v20 }
 0x73d   : > { %8279 = vmatpush1.msra.mxu0 %v8181_v48  ;;  %8098 = vmatprep.mubr.f32.mxu0 %v17115_v23 }
 0x73e   : > { %8280 = vmatprep.subr.mxu0 %v8180_v10  ;;  %8522 = vmatpush1.msra.mxu1 %v8489_v60 }
 0x73f   : > { %8281 = vmatpush1.msra.mxu0 %v8179_v13  ;;  %8523 = vmatprep.subr.mxu1 %v17115_v23  ;;  %v8341_v13 = vld [vmem:[%s16823_s12] sm:$0x3] }
 0x740   : > { %8282 = vmatprep.subr.mxu0 %v8178_v29  ;;  %10825 = vmatmul.mubr.msk.f32.gmra.mxu0 %vm7944_vm11, %v7865_v36 }
 0x741   : > { %8283 = vmatpush1.msra.mxu0 %v8177_v33  ;;  %8324 = vmatprep.mubr.f32.mxu0 %v17115_v23 }
 0x742   : > { %8284 = vmatprep.subr.mxu0 %v8176_v34  ;;  %8524 = vmatpush1.msra.mxu1 %v8488_v27  ;;  %v8346_v34 = vrot.slane %v8341_v13, %v15447_v41 }
 0x743   : > { %8285 = vmatpush1.msra.mxu0 %v8175_v32  ;;  %8525 = vmatprep.subr.mxu1 %v17115_v23 }
 0x744   : > { %8286 = vmatprep.subr.mxu0 %v8174_v46  ;;  %8526 = vmatpush1.msra.mxu1 %v8487_v63 }
 0x745   : > { %8287 = vmatpush1.msra.mxu0 %v8173_v30  ;;  %8527 = vmatprep.subr.mxu1 %v17115_v23 }
 0x746   : > { %8288 = vmatprep.subr.mxu0 %v8172_v59  ;;  %8528 = vmatpush1.msra.mxu1 %v8486_v5 }
 0x747   : > { %8289 = vmatpush1.msra.mxu0 %v8171_v53  ;;  %8529 = vmatprep.subr.mxu1 %v17115_v23 }
 0x748   : > { %8290 = vmatprep.subr.mxu0 %v8170_v40  ;;  %8530 = vmatpush1.msra.mxu1 %v8485_v58  ;;  %v17118_v40 = vld [vmem:[#allocation24_spill] sm:$0xff] }
 0x749   : > { %8291 = vmatpush1.msra.mxu0 %v8169_v26  ;;  %8531 = vmatprep.subr.mxu1 %v17115_v23  ;;  %v8350_v26 = vrot.slane %v8341_v13, %v17118_v40  ;;  %v8591_v13 = vld [vmem:[#allocation7 + $0x160] sm:$0xff] }
 0x74a   : > { %10826 = vmatmul.mubr.msk.f32.vlgmr.msra.gmra.mxu0 %vm7944_vm11, %v7862_v20  ;;  %8404 = vmatprep.subr.mxu0 %v17115_v23 }
 0x74b   : > { %8330 = vmatprep.mubr.f32.mxu0 %v17115_v23  ;;  %8405 = vmatpush1.msra.mxu0 %v8384_v1 }
 0x74c   : > { %8406 = vmatprep.subr.mxu0 %v17115_v23  ;;  %8532 = vmatpush1.msra.mxu1 %v8484_v4 }
 0x74d   : > { %8407 = vmatpush1.msra.mxu0 %v8383_v55  ;;  %8533 = vmatprep.subr.mxu1 %v17115_v23 }
 0x74e   : > { %10827 = vmatmul.mubr.msk.f32.gmra.mxu0 %vm7944_vm11, %v7865_v36  ;;  %8408 = vmatprep.subr.mxu0 %v17115_v23 }
 0x74f   : > { %8409 = vmatpush1.msra.mxu0 %v8382_v14  ;;  %8534 = vmatpush1.msra.mxu1 %v8483_v28 }
 0x750   : > { %8410 = vmatprep.subr.mxu0 %v17115_v23  ;;  %8535 = vmatprep.subr.mxu1 %v17115_v23 }
 0x751   : > { %8411 = vmatpush1.msra.mxu0 %v8381_v35  ;;  %8536 = vmatpush1.msra.mxu1 %v8482_v39 }
 0x752   : > { %8412 = vmatprep.subr.mxu0 %v17115_v23  ;;  %8537 = vmatprep.subr.mxu1 %v17115_v23 }
 0x753   : > { %8413 = vmatpush1.msra.mxu0 %v8380_v44  ;;  %8538 = vmatpush1.msra.mxu1 %v8481_v25  ;;  %v8602_v25 = vld [vmem:[#allocation7 + $0x1b8] sm:$0xff] }
 0x754   : > { %8414 = vmatprep.subr.mxu0 %v17115_v23  ;;  %8539 = vmatprep.subr.mxu1 %v17115_v23 }
 0x755   : > { %8415 = vmatpush1.msra.mxu0 %v8379_v61  ;;  %8540 = vmatpush1.msra.mxu1 %v8480_v57 }
 0x756   : > { %8416 = vmatprep.subr.mxu0 %v17115_v23  ;;  %8541 = vmatprep.subr.mxu1 %v17115_v23 }
 0x757   : > { %8417 = vmatpush1.msra.mxu0 %v8378_v6  ;;  %8542 = vmatpush1.msra.mxu1 %v8479_v47 }
 0x758   : > { %8418 = vmatprep.subr.mxu0 %v17115_v23  ;;  %8543 = vmatprep.subr.mxu1 %v17115_v23 }
 0x759   : > { %8419 = vmatpush1.msra.mxu0 %v8377_v16  ;;  %8544 = vmatpush1.msra.mxu1 %v8478_v42  ;;  %v8710_v42 = vld [vmem:[#allocation7 + $0x250] sm:$0xff] }
 0x75a   : > { %8420 = vmatprep.subr.mxu0 %v17115_v23  ;;  %8569 = vmatprep.subr.mxu1 %v17115_v23 }
 0x75b   : > { %8421 = vmatpush1.msra.mxu0 %v8376_v62  ;;  %10830 = vmatpush2.msk.msra.mxu1 %vm5087_vm2, %v8497_v15  ;;  %v8709_v15 = vld [vmem:[#allocation7 + $0x248] sm:$0xff] }
 0x75c   : > { %8422 = vmatprep.subr.mxu0 %v17115_v23  ;;  %8571 = vmatprep.subr.mxu1 %v17115_v23 }
 0x75d   : > { %8423 = vmatpush1.msra.mxu0 %v8375_v54  ;;  %8572 = vmatpush2.msra.mxu1 %v8496_v50  ;;  %v8708_v50 = vld [vmem:[#allocation7 + $0x240] sm:$0xff] }
 0x75e   : > { %8424 = vmatprep.subr.mxu0 %v17115_v23  ;;  %8573 = vmatprep.subr.mxu1 %v17115_v23 }
 0x75f   : > { %8425 = vmatpush1.msra.mxu0 %v8374_v37  ;;  %8574 = vmatpush2.msra.mxu1 %v8495_v51  ;;  %v8707_v51 = vld [vmem:[#allocation7 + $0x238] sm:$0xff] }
 0x760   : > { %8426 = vmatprep.subr.mxu0 %v17115_v23  ;;  %8575 = vmatprep.subr.mxu1 %v17115_v23 }
 0x761   : > { %8427 = vmatpush1.msra.mxu0 %v8373_v7  ;;  %8576 = vmatpush2.msra.mxu1 %v8494_v2  ;;  %v8706_v2 = vld [vmem:[#allocation7 + $0x230] sm:$0xff] }
 0x762   : > { %8428 = vmatprep.subr.mxu0 %v17115_v23  ;;  %8731 = vmatprep.subr.mxu1 %v17115_v23 }
 0x763   : > { %8429 = vmatpush1.msra.mxu0 %v8372_v22 }
 0x764   : > { %8430 = vmatprep.subr.mxu0 %v17115_v23 }
 0x765   : > { %8431 = vmatpush1.msra.mxu0 %v8371_v0  ;;  %v8711_v0 = vld [vmem:[#allocation7 + $0x258] sm:$0xff] }
 0x766   : > { %8432 = vmatprep.subr.mxu0 %v17115_v23 }
 0x767   : > { %8433 = vmatpush1.msra.mxu0 %v8370_v19 }
 0x768   : > { %8434 = vmatprep.subr.mxu0 %v17115_v23 }
 0x769   : > { %8435 = vmatpush1.msra.mxu0 %v8369_v45  ;;  %v8601_v45 = vld [vmem:[#allocation7 + $0x1b0] sm:$0xff] }
 0x76a   : > { %8460 = vmatprep.subr.mxu0 %v17115_v23 }
 0x76b   : > { %10828 = vmatpush2.msk.msra.mxu0 %vm5087_vm2, %v8388_v11  ;;  %v8600_v11 = vld [vmem:[#allocation7 + $0x1a8] sm:$0xff] }
 0x76c   : > { %8462 = vmatprep.subr.mxu0 %v17115_v23 }
 0x76d   : > { %8463 = vmatpush2.msra.mxu0 %v8387_v24  ;;  %v8599_v24 = vld [vmem:[#allocation7 + $0x1a0] sm:$0xff] }
 0x76e   : > { %8464 = vmatprep.subr.mxu0 %v17115_v23 }
 0x76f   : > { %8465 = vmatpush2.msra.mxu0 %v8386_v18  ;;  %v8598_v18 = vld [vmem:[#allocation7 + $0x198] sm:$0xff] }
 0x770   : > { %8466 = vmatprep.subr.mxu0 %v17115_v23 }
 0x771   : > { %8467 = vmatpush2.msra.mxu0 %v8385_v21  ;;  %v8597_v21 = vld [vmem:[#allocation7 + $0x190] sm:$0xff] }
 0x772   : > { %8622 = vmatprep.subr.mxu0 %v17115_v23 }
 0x7ee   : > { %v8017_v8 = vpop.f32.mrf.mxu0  ;;  %v8249_v9 = vpop.f32.mrf.mxu1 }
 0x7f0   : > { %v8019_v56 = vpop.f32.mrf.mxu0  ;;  %v8251_v48 = vpop.f32.mrf.mxu1 }
 0x7f4   : > { %v8023_v43 = vpop.f32.mrf.mxu0 }
 0x7f6   : > { %v8025_v38 = vpop.f32.mrf.mxu0  ;;  %v8255_v32 = vpop.f32.mrf.mxu1 }
 0x7f8   : > { %v8257_v49 = vpop.f32.mrf.mxu1 }
 0x7fc   : > { %v8094_v17 = vpop.f32.mrf.mxu0 }
 0x7fd   : > { %v8095_v36 = vadd.f32 %v8094_v17, %v8017_v8  ;;  %v8596_v8 = vld [vmem:[#allocation7 + $0x188] sm:$0xff]  ;;  %v8594_v17 = vld [vmem:[#allocation7 + $0x178] sm:$0xff] }
 0x7fe   : > { %v8096_v12 = vpop.f32.mrf.mxu0 }
 0x7ff   : > { %v8097_v30 = vadd.f32 %v8096_v12, %v8019_v56  ;;  %v8705_v56 = vld [vmem:[#allocation7 + $0x228] sm:$0xff]  ;;  %v8703_v12 = vld [vmem:[#allocation7 + $0x218] sm:$0xff] }
 0x800   : > { %v8100_v20 = vpop.f32.mrf.mxu0 }
 0x801   : > { %v8101_v3 = vadd.f32 %v8100_v20, %v8023_v43  ;;  %v8595_v43 = vld [vmem:[#allocation7 + $0x180] sm:$0xff]  ;;  %v8702_v20 = vld [vmem:[#allocation7 + $0x210] sm:$0xff] }
 0x802   : > { %v8102_v10 = vpop.f32.mrf.mxu0 }
 0x803   : > { %v8103_v35 = vadd.f32 %v8102_v10, %v8025_v38  ;;  %v8704_v38 = vld [vmem:[#allocation7 + $0x220] sm:$0xff]  ;;  %v8701_v10 = vld [vmem:[#allocation7 + $0x208] sm:$0xff] }
 0x80a   : > { %v8326_v29 = vpop.f32.mrf.mxu0 }
 0x80b   : > { %v8327_v33 = vadd.f32 %v8326_v29, %v8249_v9  ;;  %v8593_v9 = vld [vmem:[#allocation7 + $0x170] sm:$0xff]  ;;  %v8700_v29 = vld [vmem:[#allocation7 + $0x200] sm:$0xff] }
 0x80c   : > { %v8328_v46 = vpop.f32.mrf.mxu0 }
 0x80d   : > { %v8337_v59 = vmax.f32 %v8095_v36, %v8327_v33  ;;  %v8329_v53 = vadd.f32 %v8328_v46, %v8251_v48  ;;  %v8592_v48 = vld [vmem:[#allocation7 + $0x168] sm:$0xff]  ;;  %v8590_v36 = vld [vmem:[#allocation7 + $0x158] sm:$0xff] }
 0x80e   : > { %v8332_v1 = vpop.f32.mrf.mxu0  ;;  %v8699_v33 = vld [vmem:[#allocation7 + $0x1f8] sm:$0xff]  ;;  %v8588_v46 = vld [vmem:[#allocation7 + $0x148] sm:$0xff] }
 0x80f   : > { %v8353_v55 = vadd.f32 %v8346_v34, %v8337_v59  ;;  %v8338_v31 = vmax.f32 %v8097_v30, %v8329_v53  ;;  %v8333_v14 = vadd.f32 %v8332_v1, %v8255_v32  ;;  %v8698_v32 = vld [vmem:[#allocation7 + $0x1f0] sm:$0xff]  ;;  %v8697_v30 = vld [vmem:[#allocation7 + $0x1e8] sm:$0xff]  ;;  %v8587_v59 = vld [vmem:[#allocation7 + $0x140] sm:$0xff] }
 0x810   : > { %v8334_v52 = vpop.f32.mrf.mxu0  ;;  %v8696_v53 = vld [vmem:[#allocation7 + $0x1e0] sm:$0xff]  ;;  %v8715_v1 = vld [vmem:[#allocation7 + $0x278] sm:$0xf] }
 0x811   : > { %v8357_v44 = vmax.f32 %v8353_v55, 0.0  ;;  %v8354_v60 = vadd.f32 %v8350_v26, %v8338_v31  ;;  %v8339_v61 = vmax.f32 %v8101_v3, %v8333_v14  ;;  %v8335_v27 = vadd.f32 %v8334_v52, %v8257_v49  ;;  %v8605_v3 = vld [vmem:[#allocation7 + $0x1d0] sm:$0xff]  ;;  %v8604_v31 = vld [vmem:[#allocation7 + $0x1c8] sm:$0xff]  ;;  %v8603_v49 = vld [vmem:[#allocation7 + $0x1c0] sm:$0xff] }
 0x812   : > { %v8714_v55 = vld [vmem:[#allocation7 + $0x270] sm:$0xff]  ;;  %v8713_v14 = vld [vmem:[#allocation7 + $0x268] sm:$0xff] }
 0x813   : > { %8361 = vst [vmem:[#allocation3] sm:$0xff] %v8357_v44  ;;  %v8358_v6 = vmax.f32 %v8354_v60, 0.0  ;;  %v8355_v63 = vadd.f32 %v8346_v34, %v8339_v61  ;;  %v8340_v16 = vmax.f32 %v8103_v35, %v8335_v27  ;;  %v8589_v34 = vld [vmem:[#allocation7 + $0x150] sm:$0xff]  ;;  %v8712_v35 = vld [vmem:[#allocation7 + $0x260] sm:$0xff]  ;;  %v8820_v27 = vld [vmem:[#allocation7 + $0x2f8] sm:$0xff] }
 0x815   : > { %8363 = vst.msk [vmem:[#allocation3 + $0x8] sm:$0xff] %vm8362_vm12, %v8358_v6  ;;  %v8359_v5 = vmax.f32 %v8355_v63, 0.0  ;;  %v8356_v62 = vadd.f32 %v8350_v26, %v8340_v16  ;;  %v8606_v26 = vld [vmem:[#allocation7 + $0x1d8] sm:$0xf] }
 0x816   : > { %v8929_v63 = vld [vmem:[#allocation7 + $0x398] sm:$0xff] }
 0x817   : > { %8364 = vst [vmem:[#allocation3 + $0x10] sm:$0x1f] %v8359_v5  ;;  %v8360_v58 = vmax.f32 %v8356_v62, 0.0  ;;  %v8819_v5 = vld [vmem:[#allocation7 + $0x2f0] sm:$0xff] }
 0x818   : > { %v8928_v62 = vld [vmem:[#allocation7 + $0x390] sm:$0xff] }
 0x819   : > { %8366 = vst.msk [vmem:[#allocation3 + $0x18] sm:$0x1f] %vm8365_vm13, %v8360_v58  ;;  %v8818_v58 = vld [vmem:[#allocation7 + $0x2e8] sm:$0xff] }
 0x81c   : > { %v8368_v54 = vld [vmem:[#allocation3] ss:$8 sm:$0x3]  ;;  %v8476_v4 = vld [vmem:[#allocation3 + $0x1] ss:$8 sm:$0x3] }
 0x81d   : > { %v8393_v37 = vrot.slane %v8368_v54, %v15447_v41  ;;  %v8397_v28 = vrot.slane %v8368_v54, %v17118_v40  ;;  %v8502_v7 = vrot.slane %v8476_v4, %v15447_v41  ;;  %v8506_v39 = vrot.slane %v8476_v4, %v17118_v40  ;;  %v16324_v22 = vld [vmem:[#allocation3 + $0x2] ss:$8 sm:$0x3]  ;;  %v16326_v57 = vld [vmem:[#allocation3 + $0x3] ss:$8 sm:$0x3] }
 0x81e   : > { %v8615_v19 = vrot.slane %v16324_v22, %v17118_v40  ;;  %v8724_v47 = vrot.slane %v16326_v57, %v17118_v40  ;;  %v16374_v52 = vld [vmem:[#allocation3 + $0x4] ss:$8 sm:$0x3]  ;;  %v8611_v44 = vrot.slane %v16324_v22, %v15447_v41  ;;  %v8720_v60 = vrot.slane %v16326_v57, %v15447_v41  ;;  %v16382_v61 = vld [vmem:[#allocation3 + $0x5] ss:$8 sm:$0x3] }
 0x81f   : > { %10829 = vmatprep.mubr.msk.f32.mxu0 %vm8362_vm12, %v8397_v28  ;;  %10831 = vmatprep.mubr.msk.f32.mxu1 %vm8362_vm12, %v8506_v39  ;;  %v8833_v6 = vrot.slane %v16374_v52, %v17118_v40  ;;  %v8942_v16 = vrot.slane %v16382_v61, %v17118_v40  ;;  %v8927_v54 = vld [vmem:[#allocation7 + $0x388] sm:$0xff]  ;;  %v8817_v4 = vld [vmem:[#allocation7 + $0x2e0] sm:$0xff]  ;;  %v8816_v28 = vld [vmem:[#allocation7 + $0x2d8] sm:$0xff] }
 0x820   : > { %8469 = vmatmul.mubr.f32.vlgmr.msra.gmra.mxu0 %v8393_v37  ;;  %8578 = vmatmul.mubr.f32.vlgmr.msra.gmra.mxu1 %v8502_v7  ;;  %v8926_v37 = vld [vmem:[#allocation7 + $0x380] sm:$0xff]  ;;  %v8925_v7 = vld [vmem:[#allocation7 + $0x378] sm:$0xff]  ;;  %v8815_v39 = vld [vmem:[#allocation7 + $0x2d0] sm:$0xff] }
 0x821   : > { %8623 = vmatpush1.msra.mxu0 %v8602_v25  ;;  %8732 = vmatpush1.msra.mxu1 %v8711_v0  ;;  %v8924_v22 = vld [vmem:[#allocation7 + $0x370] sm:$0xff]  ;;  %v8814_v25 = vld [vmem:[#allocation7 + $0x2c8] sm:$0xff]  ;;  %v8813_v57 = vld [vmem:[#allocation7 + $0x2c0] sm:$0xff] }
 0x822   : > { %8624 = vmatprep.subr.mxu0 %v17115_v23  ;;  %10833 = vmatprep.mubr.msk.f32.mxu0 %vm8362_vm12, %v8615_v19  ;;  %v8923_v0 = vld [vmem:[#allocation7 + $0x368] sm:$0xff]  ;;  %v8922_v19 = vld [vmem:[#allocation7 + $0x360] sm:$0xff] }
 0x823   : > { %8733 = vmatprep.subr.mxu1 %v17115_v23  ;;  %10835 = vmatprep.mubr.msk.f32.mxu1 %vm8362_vm12, %v8724_v47  ;;  %v8812_v47 = vld [vmem:[#allocation7 + $0x2b8] sm:$0xff] }
 0x824   : > { %8625 = vmatpush1.msra.mxu0 %v8601_v45  ;;  %8734 = vmatpush1.msra.mxu1 %v8710_v42  ;;  %v8921_v45 = vld [vmem:[#allocation7 + $0x358] sm:$0xff]  ;;  %v8811_v42 = vld [vmem:[#allocation7 + $0x2b0] sm:$0xff] }
 0x825   : > { %8626 = vmatprep.subr.mxu0 %v17115_v23  ;;  %8735 = vmatprep.subr.mxu1 %v17115_v23 }
 0x826   : > { %8627 = vmatpush1.msra.mxu0 %v8600_v11  ;;  %8736 = vmatpush1.msra.mxu1 %v8709_v15  ;;  %v8920_v11 = vld [vmem:[#allocation7 + $0x350] sm:$0xff]  ;;  %v8810_v15 = vld [vmem:[#allocation7 + $0x2a8] sm:$0xff] }
 0x827   : > { %8628 = vmatprep.subr.mxu0 %v17115_v23  ;;  %8737 = vmatprep.subr.mxu1 %v17115_v23 }
 0x828   : > { %8629 = vmatpush1.msra.mxu0 %v8599_v24  ;;  %8738 = vmatpush1.msra.mxu1 %v8708_v50  ;;  %v8919_v24 = vld [vmem:[#allocation7 + $0x348] sm:$0xff]  ;;  %v8809_v50 = vld [vmem:[#allocation7 + $0x2a0] sm:$0xff] }
 0x829   : > { %8630 = vmatprep.subr.mxu0 %v17115_v23  ;;  %8739 = vmatprep.subr.mxu1 %v17115_v23 }
 0x82a   : > { %8631 = vmatpush1.msra.mxu0 %v8598_v18  ;;  %8740 = vmatpush1.msra.mxu1 %v8707_v51  ;;  %v8918_v18 = vld [vmem:[#allocation7 + $0x340] sm:$0xff]  ;;  %v8808_v51 = vld [vmem:[#allocation7 + $0x298] sm:$0xff] }
 0x82b   : > { %8632 = vmatprep.subr.mxu0 %v17115_v23  ;;  %8741 = vmatprep.subr.mxu1 %v17115_v23 }
 0x82c   : > { %8633 = vmatpush1.msra.mxu0 %v8597_v21  ;;  %8742 = vmatpush1.msra.mxu1 %v8706_v2  ;;  %v8917_v21 = vld [vmem:[#allocation7 + $0x338] sm:$0xff]  ;;  %v8807_v2 = vld [vmem:[#allocation7 + $0x290] sm:$0xff] }
 0x82d   : > { %8634 = vmatprep.subr.mxu0 %v17115_v23  ;;  %8743 = vmatprep.subr.mxu1 %v17115_v23 }
 0x82e   : > { %8635 = vmatpush1.msra.mxu0 %v8596_v8  ;;  %8744 = vmatpush1.msra.mxu1 %v8705_v56  ;;  %v8916_v8 = vld [vmem:[#allocation7 + $0x330] sm:$0xff]  ;;  %v8806_v56 = vld [vmem:[#allocation7 + $0x288] sm:$0xff] }
 0x82f   : > { %8636 = vmatprep.subr.mxu0 %v17115_v23  ;;  %8745 = vmatprep.subr.mxu1 %v17115_v23 }
 0x830   : > { %8637 = vmatpush1.msra.mxu0 %v8595_v43  ;;  %8746 = vmatpush1.msra.mxu1 %v8704_v38  ;;  %v8915_v43 = vld [vmem:[#allocation7 + $0x328] sm:$0xff]  ;;  %v8805_v38 = vld [vmem:[#allocation7 + $0x280] sm:$0xff] }
 0x831   : > { %8638 = vmatprep.subr.mxu0 %v17115_v23  ;;  %8747 = vmatprep.subr.mxu1 %v17115_v23 }
 0x832   : > { %8639 = vmatpush1.msra.mxu0 %v8594_v17  ;;  %8748 = vmatpush1.msra.mxu1 %v8703_v12  ;;  %v8914_v17 = vld [vmem:[#allocation7 + $0x320] sm:$0xff]  ;;  %v8824_v12 = vld [vmem:[#allocation7 + $0x318] sm:$0xf] }
 0x833   : > { %8640 = vmatprep.subr.mxu0 %v17115_v23  ;;  %8749 = vmatprep.subr.mxu1 %v17115_v23 }
 0x834   : > { %8641 = vmatpush1.msra.mxu0 %v8593_v9  ;;  %8750 = vmatpush1.msra.mxu1 %v8702_v20  ;;  %v8933_v9 = vld [vmem:[#allocation7 + $0x3b8] sm:$0xf]  ;;  %v8823_v20 = vld [vmem:[#allocation7 + $0x310] sm:$0xff] }
 0x835   : > { %8642 = vmatprep.subr.mxu0 %v17115_v23  ;;  %8751 = vmatprep.subr.mxu1 %v17115_v23 }
 0x836   : > { %8643 = vmatpush1.msra.mxu0 %v8592_v48  ;;  %8752 = vmatpush1.msra.mxu1 %v8701_v10  ;;  %v8932_v48 = vld [vmem:[#allocation7 + $0x3b0] sm:$0xff]  ;;  %v8822_v10 = vld [vmem:[#allocation7 + $0x308] sm:$0xff] }
 0x837   : > { %8644 = vmatprep.subr.mxu0 %v17115_v23  ;;  %8753 = vmatprep.subr.mxu1 %v17115_v23 }
 0x838   : > { %8645 = vmatpush1.msra.mxu0 %v8591_v13  ;;  %8754 = vmatpush1.msra.mxu1 %v8700_v29  ;;  %v8931_v13 = vld [vmem:[#allocation7 + $0x3a8] sm:$0xff]  ;;  %v8821_v29 = vld [vmem:[#allocation7 + $0x300] sm:$0xff] }
 0x839   : > { %8646 = vmatprep.subr.mxu0 %v17115_v23  ;;  %8755 = vmatprep.subr.mxu1 %v17115_v23 }
 0x83a   : > { %8647 = vmatpush1.msra.mxu0 %v8590_v36  ;;  %8756 = vmatpush1.msra.mxu1 %v8699_v33  ;;  %v8930_v36 = vld [vmem:[#allocation7 + $0x3a0] sm:$0xff] }
 0x83b   : > { %8648 = vmatprep.subr.mxu0 %v17115_v23  ;;  %8757 = vmatprep.subr.mxu1 %v17115_v23  ;;  %v16430_v33 = vld [vmem:[#allocation3 + $0x6] ss:$8 sm:$0x3] }
 0x83c   : > { %8649 = vmatpush1.msra.mxu0 %v8589_v34  ;;  %8758 = vmatpush1.msra.mxu1 %v8698_v32  ;;  %v8829_v34 = vrot.slane %v16374_v52, %v15447_v41  ;;  %v8938_v32 = vrot.slane %v16382_v61, %v15447_v41  ;;  %v9143_v52 = vld [vmem:[#allocation7 + $0x4b8] sm:$0xff]  ;;  %v9032_v61 = vld [vmem:[#allocation7 + $0x408] sm:$0xff] }
 0x83d   : > { %8650 = vmatprep.subr.mxu0 %v17115_v23  ;;  %8759 = vmatprep.subr.mxu1 %v17115_v23 }
 0x83e   : > { %8651 = vmatpush1.msra.mxu0 %v8588_v46  ;;  %8760 = vmatpush1.msra.mxu1 %v8697_v30  ;;  %v16438_v46 = vld [vmem:[#allocation3 + $0x7] ss:$8 sm:$0x3] }
 0x83f   : > { %8652 = vmatprep.subr.mxu0 %v17115_v23  ;;  %8761 = vmatprep.subr.mxu1 %v17115_v23  ;;  %v9038_v30 = vld [vmem:[#allocation7 + $0x438] sm:$0xff] }
 0x840   : > { %8653 = vmatpush1.msra.mxu0 %v8587_v59  ;;  %8762 = vmatpush1.msra.mxu1 %v8696_v53  ;;  %v9051_v59 = vrot.slane %v16430_v33, %v17118_v40  ;;  %v9147_v53 = vld [vmem:[#allocation7 + $0x4d8] sm:$0xff] }
 0x841   : > { %8678 = vmatprep.subr.mxu0 %v17115_v23  ;;  %8787 = vmatprep.subr.mxu1 %v17115_v23 }
 0x842   : > { %10832 = vmatpush2.msk.msra.mxu0 %vm5087_vm2, %v8606_v26  ;;  %10834 = vmatpush2.msk.msra.mxu1 %vm5087_vm2, %v8715_v1  ;;  %v9160_v26 = vrot.slane %v16438_v46, %v17118_v40  ;;  %v9037_v1 = vld [vmem:[#allocation7 + $0x430] sm:$0xff] }
 0x843   : > { %8680 = vmatprep.subr.mxu0 %v17115_v23  ;;  %8789 = vmatprep.subr.mxu1 %v17115_v23 }
 0x844   : > { %8681 = vmatpush2.msra.mxu0 %v8605_v3  ;;  %8790 = vmatpush2.msra.mxu1 %v8714_v55  ;;  %v9146_v3 = vld [vmem:[#allocation7 + $0x4d0] sm:$0xff]  ;;  %v9036_v55 = vld [vmem:[#allocation7 + $0x428] sm:$0xff] }
 0x845   : > { %8682 = vmatprep.subr.mxu0 %v17115_v23  ;;  %8791 = vmatprep.subr.mxu1 %v17115_v23 }
 0x846   : > { %8683 = vmatpush2.msra.mxu0 %v8604_v31  ;;  %8792 = vmatpush2.msra.mxu1 %v8713_v14  ;;  %v9145_v31 = vld [vmem:[#allocation7 + $0x4c8] sm:$0xff]  ;;  %v9035_v14 = vld [vmem:[#allocation7 + $0x420] sm:$0xff] }
 0x847   : > { %8684 = vmatprep.subr.mxu0 %v17115_v23  ;;  %8793 = vmatprep.subr.mxu1 %v17115_v23 }
 0x848   : > { %8685 = vmatpush2.msra.mxu0 %v8603_v49  ;;  %8794 = vmatpush2.msra.mxu1 %v8712_v35  ;;  %v9144_v49 = vld [vmem:[#allocation7 + $0x4c0] sm:$0xff]  ;;  %v9034_v35 = vld [vmem:[#allocation7 + $0x418] sm:$0xff] }
 0x849   : > { %8687 = vmatmul.mubr.f32.vlgmr.msra.gmra.mxu0 %v8611_v44  ;;  %8796 = vmatmul.mubr.f32.vlgmr.msra.gmra.mxu1 %v8720_v60  ;;  %v9033_v44 = vld [vmem:[#allocation7 + $0x410] sm:$0xff] }
 0x84a   : > { %8840 = vmatprep.subr.mxu0 %v17115_v23  ;;  %8949 = vmatprep.subr.mxu1 %v17115_v23  ;;  %v9142_v60 = vld [vmem:[#allocation7 + $0x4b0] sm:$0xff] }
 0x84b   : > { %8841 = vmatpush1.msra.mxu0 %v8820_v27  ;;  %10837 = vmatprep.mubr.msk.f32.mxu0 %vm8362_vm12, %v8833_v6  ;;  %v9141_v27 = vld [vmem:[#allocation7 + $0x4a8] sm:$0xff]  ;;  %v9031_v6 = vld [vmem:[#allocation7 + $0x400] sm:$0xff] }
 0x84c   : > { %8950 = vmatpush1.msra.mxu1 %v8929_v63  ;;  %10839 = vmatprep.mubr.msk.f32.mxu1 %vm8362_vm12, %v8942_v16  ;;  %v9140_v63 = vld [vmem:[#allocation7 + $0x4a0] sm:$0xff]  ;;  %v9030_v16 = vld [vmem:[#allocation7 + $0x3f8] sm:$0xff] }
 0x84d   : > { %8842 = vmatprep.subr.mxu0 %v17115_v23  ;;  %8951 = vmatprep.subr.mxu1 %v17115_v23 }
 0x84e   : > { %8843 = vmatpush1.msra.mxu0 %v8819_v5  ;;  %8952 = vmatpush1.msra.mxu1 %v8928_v62  ;;  %v9139_v5 = vld [vmem:[#allocation7 + $0x498] sm:$0xff]  ;;  %v9029_v62 = vld [vmem:[#allocation7 + $0x3f0] sm:$0xff] }
 0x84f   : > { %8844 = vmatprep.subr.mxu0 %v17115_v23  ;;  %8953 = vmatprep.subr.mxu1 %v17115_v23 }
 0x850   : > { %8845 = vmatpush1.msra.mxu0 %v8818_v58  ;;  %8954 = vmatpush1.msra.mxu1 %v8927_v54  ;;  %v9138_v58 = vld [vmem:[#allocation7 + $0x490] sm:$0xff]  ;;  %v9028_v54 = vld [vmem:[#allocation7 + $0x3e8] sm:$0xff] }
 0x851   : > { %8846 = vmatprep.subr.mxu0 %v17115_v23  ;;  %8955 = vmatprep.subr.mxu1 %v17115_v23 }
 0x852   : > { %8847 = vmatpush1.msra.mxu0 %v8817_v4  ;;  %8956 = vmatpush1.msra.mxu1 %v8926_v37  ;;  %v9137_v4 = vld [vmem:[#allocation7 + $0x488] sm:$0xff]  ;;  %v9027_v37 = vld [vmem:[#allocation7 + $0x3e0] sm:$0xff] }
 0x853   : > { %8848 = vmatprep.subr.mxu0 %v17115_v23  ;;  %8957 = vmatprep.subr.mxu1 %v17115_v23 }
 0x854   : > { %8849 = vmatpush1.msra.mxu0 %v8816_v28  ;;  %8958 = vmatpush1.msra.mxu1 %v8925_v7  ;;  %v9136_v28 = vld [vmem:[#allocation7 + $0x480] sm:$0xff]  ;;  %v9026_v7 = vld [vmem:[#allocation7 + $0x3d8] sm:$0xff] }
 0x855   : > { %8850 = vmatprep.subr.mxu0 %v17115_v23  ;;  %8959 = vmatprep.subr.mxu1 %v17115_v23 }
 0x856   : > { %8851 = vmatpush1.msra.mxu0 %v8815_v39  ;;  %8960 = vmatpush1.msra.mxu1 %v8924_v22  ;;  %v9135_v39 = vld [vmem:[#allocation7 + $0x478] sm:$0xff]  ;;  %v9025_v22 = vld [vmem:[#allocation7 + $0x3d0] sm:$0xff] }
 0x857   : > { %8852 = vmatprep.subr.mxu0 %v17115_v23  ;;  %8961 = vmatprep.subr.mxu1 %v17115_v23 }
 0x858   : > { %8853 = vmatpush1.msra.mxu0 %v8814_v25  ;;  %8962 = vmatpush1.msra.mxu1 %v8923_v0  ;;  %v9134_v25 = vld [vmem:[#allocation7 + $0x470] sm:$0xff]  ;;  %v9024_v0 = vld [vmem:[#allocation7 + $0x3c8] sm:$0xff] }
 0x859   : > { %8854 = vmatprep.subr.mxu0 %v17115_v23  ;;  %8963 = vmatprep.subr.mxu1 %v17115_v23 }
 0x85a   : > { %8855 = vmatpush1.msra.mxu0 %v8813_v57  ;;  %8964 = vmatpush1.msra.mxu1 %v8922_v19  ;;  %v9133_v57 = vld [vmem:[#allocation7 + $0x468] sm:$0xff]  ;;  %v9023_v19 = vld [vmem:[#allocation7 + $0x3c0] sm:$0xff] }
 0x85b   : > { %8856 = vmatprep.subr.mxu0 %v17115_v23  ;;  %8965 = vmatprep.subr.mxu1 %v17115_v23 }
 0x85c   : > { %8857 = vmatpush1.msra.mxu0 %v8812_v47  ;;  %8966 = vmatpush1.msra.mxu1 %v8921_v45  ;;  %v9132_v47 = vld [vmem:[#allocation7 + $0x460] sm:$0xff]  ;;  %v9042_v45 = vld [vmem:[#allocation7 + $0x458] sm:$0xf] }
 0x85d   : > { %8858 = vmatprep.subr.mxu0 %v17115_v23  ;;  %8967 = vmatprep.subr.mxu1 %v17115_v23 }
 0x85e   : > { %8859 = vmatpush1.msra.mxu0 %v8811_v42  ;;  %8968 = vmatpush1.msra.mxu1 %v8920_v11  ;;  %v9151_v42 = vld [vmem:[#allocation7 + $0x4f8] sm:$0xf]  ;;  %v9041_v11 = vld [vmem:[#allocation7 + $0x450] sm:$0xff] }
 0x85f   : > { %8860 = vmatprep.subr.mxu0 %v17115_v23  ;;  %8969 = vmatprep.subr.mxu1 %v17115_v23 }
 0x860   : > { %8861 = vmatpush1.msra.mxu0 %v8810_v15  ;;  %8970 = vmatpush1.msra.mxu1 %v8919_v24  ;;  %v9150_v15 = vld [vmem:[#allocation7 + $0x4f0] sm:$0xff]  ;;  %v9040_v24 = vld [vmem:[#allocation7 + $0x448] sm:$0xff] }
 0x861   : > { %8862 = vmatprep.subr.mxu0 %v17115_v23  ;;  %8971 = vmatprep.subr.mxu1 %v17115_v23 }
 0x862   : > { %8863 = vmatpush1.msra.mxu0 %v8809_v50  ;;  %8972 = vmatpush1.msra.mxu1 %v8918_v18  ;;  %v9149_v50 = vld [vmem:[#allocation7 + $0x4e8] sm:$0xff]  ;;  %v9039_v18 = vld [vmem:[#allocation7 + $0x440] sm:$0xff] }
 0x863   : > { %8864 = vmatprep.subr.mxu0 %v17115_v23  ;;  %8973 = vmatprep.subr.mxu1 %v17115_v23 }
 0x864   : > { %8865 = vmatpush1.msra.mxu0 %v8808_v51  ;;  %8974 = vmatpush1.msra.mxu1 %v8917_v21  ;;  %v9148_v51 = vld [vmem:[#allocation7 + $0x4e0] sm:$0xff]  ;;  %v16486_v21 = vld [vmem:[#allocation3 + $0x10] ss:$8 sm:$0x3] }
 0x865   : > { %8866 = vmatprep.subr.mxu0 %v17115_v23  ;;  %8975 = vmatprep.subr.mxu1 %v17115_v23 }
 0x866   : > { %8867 = vmatpush1.msra.mxu0 %v8807_v2  ;;  %8976 = vmatpush1.msra.mxu1 %v8916_v8  ;;  %v9047_v2 = vrot.slane %v16430_v33, %v15447_v41  ;;  %v9156_v8 = vrot.slane %v16438_v46, %v15447_v41  ;;  %v9361_v33 = vld [vmem:[#allocation7 + $0x5f8] sm:$0xff]  ;;  %v9250_v46 = vld [vmem:[#allocation7 + $0x548] sm:$0xff] }
 0x867   : > { %8868 = vmatprep.subr.mxu0 %v17115_v23  ;;  %8977 = vmatprep.subr.mxu1 %v17115_v23 }
 0x868   : > { %8869 = vmatpush1.msra.mxu0 %v8806_v56  ;;  %8978 = vmatpush1.msra.mxu1 %v8915_v43  ;;  %v16494_v56 = vld [vmem:[#allocation3 + $0x11] ss:$8 sm:$0x3]  ;;  %v9256_v43 = vld [vmem:[#allocation7 + $0x578] sm:$0xff] }
 0x869   : > { %8870 = vmatprep.subr.mxu0 %v17115_v23  ;;  %8979 = vmatprep.subr.mxu1 %v17115_v23 }
 0x86a   : > { %8871 = vmatpush1.msra.mxu0 %v8805_v38  ;;  %8980 = vmatpush1.msra.mxu1 %v8914_v17  ;;  %v9269_v38 = vrot.slane %v16486_v21, %v17118_v40  ;;  %v9365_v17 = vld [vmem:[#allocation7 + $0x618] sm:$0xff] }
 0x86b   : > { %8896 = vmatprep.subr.mxu0 %v17115_v23  ;;  %9005 = vmatprep.subr.mxu1 %v17115_v23 }
 0x86c   : > { %10836 = vmatpush2.msk.msra.mxu0 %vm5087_vm2, %v8824_v12  ;;  %10838 = vmatpush2.msk.msra.mxu1 %vm5087_vm2, %v8933_v9  ;;  %v9378_v12 = vrot.slane %v16494_v56, %v17118_v40  ;;  %v9255_v9 = vld [vmem:[#allocation7 + $0x570] sm:$0xff] }
 0x86d   : > { %8898 = vmatprep.subr.mxu0 %v17115_v23  ;;  %9007 = vmatprep.subr.mxu1 %v17115_v23 }
 0x86e   : > { %8899 = vmatpush2.msra.mxu0 %v8823_v20  ;;  %9008 = vmatpush2.msra.mxu1 %v8932_v48  ;;  %v9364_v20 = vld [vmem:[#allocation7 + $0x610] sm:$0xff]  ;;  %v9254_v48 = vld [vmem:[#allocation7 + $0x568] sm:$0xff] }
 0x86f   : > { %8900 = vmatprep.subr.mxu0 %v17115_v23  ;;  %9009 = vmatprep.subr.mxu1 %v17115_v23 }
 0x870   : > { %8901 = vmatpush2.msra.mxu0 %v8822_v10  ;;  %9010 = vmatpush2.msra.mxu1 %v8931_v13  ;;  %v9363_v10 = vld [vmem:[#allocation7 + $0x608] sm:$0xff]  ;;  %v9253_v13 = vld [vmem:[#allocation7 + $0x560] sm:$0xff] }
 0x871   : > { %8902 = vmatprep.subr.mxu0 %v17115_v23  ;;  %9011 = vmatprep.subr.mxu1 %v17115_v23 }
 0x872   : > { %8903 = vmatpush2.msra.mxu0 %v8821_v29  ;;  %9012 = vmatpush2.msra.mxu1 %v8930_v36  ;;  %v9362_v29 = vld [vmem:[#allocation7 + $0x600] sm:$0xff]  ;;  %v9252_v36 = vld [vmem:[#allocation7 + $0x558] sm:$0xff] }
 0x873   : > { %8905 = vmatmul.mubr.f32.vlgmr.msra.gmra.mxu0 %v8829_v34  ;;  %9014 = vmatmul.mubr.f32.vlgmr.msra.gmra.mxu1 %v8938_v32  ;;  %v9251_v34 = vld [vmem:[#allocation7 + $0x550] sm:$0xff] }
 0x874   : > { %9058 = vmatprep.subr.mxu0 %v17115_v23  ;;  %9167 = vmatprep.subr.mxu1 %v17115_v23  ;;  %v9360_v32 = vld [vmem:[#allocation7 + $0x5f0] sm:$0xff] }
 0x875   : > { %9059 = vmatpush1.msra.mxu0 %v9038_v30  ;;  %10841 = vmatprep.mubr.msk.f32.mxu0 %vm8362_vm12, %v9051_v59  ;;  %v9359_v30 = vld [vmem:[#allocation7 + $0x5e8] sm:$0xff]  ;;  %v9249_v59 = vld [vmem:[#allocation7 + $0x540] sm:$0xff] }
 0x876   : > { %9168 = vmatpush1.msra.mxu1 %v9147_v53  ;;  %10843 = vmatprep.mubr.msk.f32.mxu1 %vm8362_vm12, %v9160_v26  ;;  %v9358_v53 = vld [vmem:[#allocation7 + $0x5e0] sm:$0xff]  ;;  %v9248_v26 = vld [vmem:[#allocation7 + $0x538] sm:$0xff] }
 0x877   : > { %9060 = vmatprep.subr.mxu0 %v17115_v23  ;;  %9169 = vmatprep.subr.mxu1 %v17115_v23 }
 0x878   : > { %9061 = vmatpush1.msra.mxu0 %v9037_v1  ;;  %9170 = vmatpush1.msra.mxu1 %v9146_v3  ;;  %v9357_v1 = vld [vmem:[#allocation7 + $0x5d8] sm:$0xff]  ;;  %v9247_v3 = vld [vmem:[#allocation7 + $0x530] sm:$0xff] }
 0x879   : > { %9062 = vmatprep.subr.mxu0 %v17115_v23  ;;  %9171 = vmatprep.subr.mxu1 %v17115_v23 }
 0x87a   : > { %9063 = vmatpush1.msra.mxu0 %v9036_v55  ;;  %9172 = vmatpush1.msra.mxu1 %v9145_v31  ;;  %v9356_v55 = vld [vmem:[#allocation7 + $0x5d0] sm:$0xff]  ;;  %v9246_v31 = vld [vmem:[#allocation7 + $0x528] sm:$0xff] }
 0x87b   : > { %9064 = vmatprep.subr.mxu0 %v17115_v23  ;;  %9173 = vmatprep.subr.mxu1 %v17115_v23 }
 0x87c   : > { %9065 = vmatpush1.msra.mxu0 %v9035_v14  ;;  %9174 = vmatpush1.msra.mxu1 %v9144_v49  ;;  %v9355_v14 = vld [vmem:[#allocation7 + $0x5c8] sm:$0xff]  ;;  %v9245_v49 = vld [vmem:[#allocation7 + $0x520] sm:$0xff] }
 0x87d   : > { %9066 = vmatprep.subr.mxu0 %v17115_v23  ;;  %9175 = vmatprep.subr.mxu1 %v17115_v23 }
 0x87e   : > { %9067 = vmatpush1.msra.mxu0 %v9034_v35  ;;  %9176 = vmatpush1.msra.mxu1 %v9143_v52  ;;  %v9354_v35 = vld [vmem:[#allocation7 + $0x5c0] sm:$0xff]  ;;  %v9244_v52 = vld [vmem:[#allocation7 + $0x518] sm:$0xff] }
 0x87f   : > { %9068 = vmatprep.subr.mxu0 %v17115_v23  ;;  %9177 = vmatprep.subr.mxu1 %v17115_v23 }
 0x880   : > { %9069 = vmatpush1.msra.mxu0 %v9033_v44  ;;  %9178 = vmatpush1.msra.mxu1 %v9142_v60  ;;  %v9353_v44 = vld [vmem:[#allocation7 + $0x5b8] sm:$0xff]  ;;  %v9243_v60 = vld [vmem:[#allocation7 + $0x510] sm:$0xff] }
 0x881   : > { %9070 = vmatprep.subr.mxu0 %v17115_v23  ;;  %9179 = vmatprep.subr.mxu1 %v17115_v23 }
 0x882   : > { %9071 = vmatpush1.msra.mxu0 %v9032_v61  ;;  %9180 = vmatpush1.msra.mxu1 %v9141_v27  ;;  %v9352_v61 = vld [vmem:[#allocation7 + $0x5b0] sm:$0xff]  ;;  %v9242_v27 = vld [vmem:[#allocation7 + $0x508] sm:$0xff] }
 0x883   : > { %9072 = vmatprep.subr.mxu0 %v17115_v23  ;;  %9181 = vmatprep.subr.mxu1 %v17115_v23 }
 0x884   : > { %9073 = vmatpush1.msra.mxu0 %v9031_v6  ;;  %9182 = vmatpush1.msra.mxu1 %v9140_v63  ;;  %v9351_v6 = vld [vmem:[#allocation7 + $0x5a8] sm:$0xff]  ;;  %v9241_v63 = vld [vmem:[#allocation7 + $0x500] sm:$0xff] }
 0x885   : > { %9074 = vmatprep.subr.mxu0 %v17115_v23  ;;  %9183 = vmatprep.subr.mxu1 %v17115_v23 }
 0x886   : > { %9075 = vmatpush1.msra.mxu0 %v9030_v16  ;;  %9184 = vmatpush1.msra.mxu1 %v9139_v5  ;;  %v9350_v16 = vld [vmem:[#allocation7 + $0x5a0] sm:$0xff]  ;;  %v9260_v5 = vld [vmem:[#allocation7 + $0x598] sm:$0xf] }
 0x887   : > { %9076 = vmatprep.subr.mxu0 %v17115_v23  ;;  %9185 = vmatprep.subr.mxu1 %v17115_v23 }
 0x888   : > { %9077 = vmatpush1.msra.mxu0 %v9029_v62  ;;  %9186 = vmatpush1.msra.mxu1 %v9138_v58  ;;  %v9369_v62 = vld [vmem:[#allocation7 + $0x638] sm:$0xf]  ;;  %v9259_v58 = vld [vmem:[#allocation7 + $0x590] sm:$0xff] }
 0x889   : > { %9078 = vmatprep.subr.mxu0 %v17115_v23  ;;  %9187 = vmatprep.subr.mxu1 %v17115_v23 }
 0x88a   : > { %9079 = vmatpush1.msra.mxu0 %v9028_v54  ;;  %9188 = vmatpush1.msra.mxu1 %v9137_v4  ;;  %v9368_v54 = vld [vmem:[#allocation7 + $0x630] sm:$0xff]  ;;  %v9258_v4 = vld [vmem:[#allocation7 + $0x588] sm:$0xff] }
 0x88b   : > { %9080 = vmatprep.subr.mxu0 %v17115_v23  ;;  %9189 = vmatprep.subr.mxu1 %v17115_v23 }
 0x88c   : > { %9081 = vmatpush1.msra.mxu0 %v9027_v37  ;;  %9190 = vmatpush1.msra.mxu1 %v9136_v28  ;;  %v9367_v37 = vld [vmem:[#allocation7 + $0x628] sm:$0xff]  ;;  %v9257_v28 = vld [vmem:[#allocation7 + $0x580] sm:$0xff] }
 0x88d   : > { %9082 = vmatprep.subr.mxu0 %v17115_v23  ;;  %9191 = vmatprep.subr.mxu1 %v17115_v23 }
 0x88e   : > { %9083 = vmatpush1.msra.mxu0 %v9026_v7  ;;  %9192 = vmatpush1.msra.mxu1 %v9135_v39  ;;  %v9366_v7 = vld [vmem:[#allocation7 + $0x620] sm:$0xff]  ;;  %v16542_v39 = vld [vmem:[#allocation3 + $0x12] ss:$8 sm:$0x3] }
 0x88f   : > { %9084 = vmatprep.subr.mxu0 %v17115_v23  ;;  %9193 = vmatprep.subr.mxu1 %v17115_v23 }
 0x890   : > { %9085 = vmatpush1.msra.mxu0 %v9025_v22  ;;  %9194 = vmatpush1.msra.mxu1 %v9134_v25  ;;  %v9265_v22 = vrot.slane %v16486_v21, %v15447_v41  ;;  %v9374_v25 = vrot.slane %v16494_v56, %v15447_v41  ;;  %v9579_v21 = vld [vmem:[#allocation7 + $0x738] sm:$0xff]  ;;  %v9468_v56 = vld [vmem:[#allocation7 + $0x688] sm:$0xff] }
 0x891   : > { %9086 = vmatprep.subr.mxu0 %v17115_v23  ;;  %9195 = vmatprep.subr.mxu1 %v17115_v23 }
 0x892   : > { %9087 = vmatpush1.msra.mxu0 %v9024_v0  ;;  %9196 = vmatpush1.msra.mxu1 %v9133_v57  ;;  %v16550_v0 = vld [vmem:[#allocation3 + $0x13] ss:$8 sm:$0x3]  ;;  %v9474_v57 = vld [vmem:[#allocation7 + $0x6b8] sm:$0xff] }
 0x893   : > { %9088 = vmatprep.subr.mxu0 %v17115_v23  ;;  %9197 = vmatprep.subr.mxu1 %v17115_v23 }
 0x894   : > { %9089 = vmatpush1.msra.mxu0 %v9023_v19  ;;  %9198 = vmatpush1.msra.mxu1 %v9132_v47  ;;  %v9487_v19 = vrot.slane %v16542_v39, %v17118_v40  ;;  %v9583_v47 = vld [vmem:[#allocation7 + $0x758] sm:$0xff] }
 0x895   : > { %9114 = vmatprep.subr.mxu0 %v17115_v23  ;;  %9223 = vmatprep.subr.mxu1 %v17115_v23 }
 0x896   : > { %10840 = vmatpush2.msk.msra.mxu0 %vm5087_vm2, %v9042_v45  ;;  %10842 = vmatpush2.msk.msra.mxu1 %vm5087_vm2, %v9151_v42  ;;  %v9596_v45 = vrot.slane %v16550_v0, %v17118_v40  ;;  %v9473_v42 = vld [vmem:[#allocation7 + $0x6b0] sm:$0xff] }
 0x897   : > { %9116 = vmatprep.subr.mxu0 %v17115_v23  ;;  %9225 = vmatprep.subr.mxu1 %v17115_v23 }
 0x898   : > { %9117 = vmatpush2.msra.mxu0 %v9041_v11  ;;  %9226 = vmatpush2.msra.mxu1 %v9150_v15  ;;  %v9582_v11 = vld [vmem:[#allocation7 + $0x750] sm:$0xff]  ;;  %v9472_v15 = vld [vmem:[#allocation7 + $0x6a8] sm:$0xff] }
 0x899   : > { %9118 = vmatprep.subr.mxu0 %v17115_v23  ;;  %9227 = vmatprep.subr.mxu1 %v17115_v23 }
 0x89a   : > { %9119 = vmatpush2.msra.mxu0 %v9040_v24  ;;  %9228 = vmatpush2.msra.mxu1 %v9149_v50  ;;  %v9581_v24 = vld [vmem:[#allocation7 + $0x748] sm:$0xff]  ;;  %v9471_v50 = vld [vmem:[#allocation7 + $0x6a0] sm:$0xff] }
 0x89b   : > { %9120 = vmatprep.subr.mxu0 %v17115_v23  ;;  %9229 = vmatprep.subr.mxu1 %v17115_v23 }
 0x89c   : > { %9121 = vmatpush2.msra.mxu0 %v9039_v18  ;;  %9230 = vmatpush2.msra.mxu1 %v9148_v51  ;;  %v9580_v18 = vld [vmem:[#allocation7 + $0x740] sm:$0xff]  ;;  %v9470_v51 = vld [vmem:[#allocation7 + $0x698] sm:$0xff] }
 0x89d   : > { %9123 = vmatmul.mubr.f32.vlgmr.msra.gmra.mxu0 %v9047_v2  ;;  %9232 = vmatmul.mubr.f32.vlgmr.msra.gmra.mxu1 %v9156_v8  ;;  %v9469_v2 = vld [vmem:[#allocation7 + $0x690] sm:$0xff] }
 0x89e   : > { %9276 = vmatprep.subr.mxu0 %v17115_v23  ;;  %9385 = vmatprep.subr.mxu1 %v17115_v23  ;;  %v9578_v8 = vld [vmem:[#allocation7 + $0x730] sm:$0xff] }
 0x89f   : > { %9277 = vmatpush1.msra.mxu0 %v9256_v43  ;;  %10845 = vmatprep.mubr.msk.f32.mxu0 %vm8362_vm12, %v9269_v38  ;;  %v9577_v43 = vld [vmem:[#allocation7 + $0x728] sm:$0xff]  ;;  %v9467_v38 = vld [vmem:[#allocation7 + $0x680] sm:$0xff] }
 0x8a0   : > { %9386 = vmatpush1.msra.mxu1 %v9365_v17  ;;  %10847 = vmatprep.mubr.msk.f32.mxu1 %vm8362_vm12, %v9378_v12  ;;  %v9576_v17 = vld [vmem:[#allocation7 + $0x720] sm:$0xff]  ;;  %v9466_v12 = vld [vmem:[#allocation7 + $0x678] sm:$0xff] }
 0x8a1   : > { %9278 = vmatprep.subr.mxu0 %v17115_v23  ;;  %9387 = vmatprep.subr.mxu1 %v17115_v23 }
 0x8a2   : > { %9279 = vmatpush1.msra.mxu0 %v9255_v9  ;;  %9388 = vmatpush1.msra.mxu1 %v9364_v20  ;;  %v9575_v9 = vld [vmem:[#allocation7 + $0x718] sm:$0xff]  ;;  %v9465_v20 = vld [vmem:[#allocation7 + $0x670] sm:$0xff] }
 0x8a3   : > { %9280 = vmatprep.subr.mxu0 %v17115_v23  ;;  %9389 = vmatprep.subr.mxu1 %v17115_v23 }
 0x8a4   : > { %9281 = vmatpush1.msra.mxu0 %v9254_v48  ;;  %9390 = vmatpush1.msra.mxu1 %v9363_v10  ;;  %v9574_v48 = vld [vmem:[#allocation7 + $0x710] sm:$0xff]  ;;  %v9464_v10 = vld [vmem:[#allocation7 + $0x668] sm:$0xff] }
 0x8a5   : > { %9282 = vmatprep.subr.mxu0 %v17115_v23  ;;  %9391 = vmatprep.subr.mxu1 %v17115_v23 }
 0x8a6   : > { %9283 = vmatpush1.msra.mxu0 %v9253_v13  ;;  %9392 = vmatpush1.msra.mxu1 %v9362_v29  ;;  %v9573_v13 = vld [vmem:[#allocation7 + $0x708] sm:$0xff]  ;;  %v9463_v29 = vld [vmem:[#allocation7 + $0x660] sm:$0xff] }
 0x8a7   : > { %9284 = vmatprep.subr.mxu0 %v17115_v23  ;;  %9393 = vmatprep.subr.mxu1 %v17115_v23 }
 0x8a8   : > { %9285 = vmatpush1.msra.mxu0 %v9252_v36  ;;  %9394 = vmatpush1.msra.mxu1 %v9361_v33  ;;  %v9572_v36 = vld [vmem:[#allocation7 + $0x700] sm:$0xff]  ;;  %v8367_v33 = vld [vmem:[%s16825_s14] sm:$0x1] }
 0x8a9   : > { %9286 = vmatprep.subr.mxu0 %v17115_v23  ;;  %9395 = vmatprep.subr.mxu1 %v17115_v23 }
 0x8aa   : > { %9287 = vmatpush1.msra.mxu0 %v9251_v34  ;;  %9396 = vmatpush1.msra.mxu1 %v9360_v32  ;;  %v9462_v34 = vld [vmem:[#allocation7 + $0x658] sm:$0xff] }
 0x8ab   : > { %9288 = vmatprep.subr.mxu0 %v17115_v23  ;;  %9397 = vmatprep.subr.mxu1 %v17115_v23  ;;  %v9571_v32 = vld [vmem:[#allocation7 + $0x6f8] sm:$0xff] }
 0x8ac   : > { %9289 = vmatpush1.msra.mxu0 %v9250_v46  ;;  %9398 = vmatpush1.msra.mxu1 %v9359_v30 }
 0x8ad   : > { %9290 = vmatprep.subr.mxu0 %v17115_v23  ;;  %9399 = vmatprep.subr.mxu1 %v17115_v23 }
 0x8ae   : > { %9291 = vmatpush1.msra.mxu0 %v9249_v59  ;;  %9400 = vmatpush1.msra.mxu1 %v9358_v53  ;;  %v9461_v59 = vld [vmem:[#allocation7 + $0x650] sm:$0xff] }
 0x8af   : > { %9292 = vmatprep.subr.mxu0 %v17115_v23  ;;  %9401 = vmatprep.subr.mxu1 %v17115_v23  ;;  %v9570_v53 = vld [vmem:[#allocation7 + $0x6f0] sm:$0xff] }
 0x8b0   : > { %9293 = vmatpush1.msra.mxu0 %v9248_v26  ;;  %9402 = vmatpush1.msra.mxu1 %v9357_v1 }
 0x8b1   : > { %9294 = vmatprep.subr.mxu0 %v17115_v23  ;;  %9403 = vmatprep.subr.mxu1 %v17115_v23 }
 0x8b2   : > { %9295 = vmatpush1.msra.mxu0 %v9247_v3  ;;  %9404 = vmatpush1.msra.mxu1 %v9356_v55  ;;  %v9460_v55 = vld [vmem:[#allocation7 + $0x648] sm:$0xff] }
 0x8b3   : > { %9296 = vmatprep.subr.mxu0 %v17115_v23  ;;  %9405 = vmatprep.subr.mxu1 %v17115_v23 }
 0x8b4   : > { %9297 = vmatpush1.msra.mxu0 %v9246_v31  ;;  %9406 = vmatpush1.msra.mxu1 %v9355_v14  ;;  %v9569_v31 = vld [vmem:[#allocation7 + $0x6e8] sm:$0xff] }
 0x8b5   : > { %9298 = vmatprep.subr.mxu0 %v17115_v23  ;;  %9407 = vmatprep.subr.mxu1 %v17115_v23 }
 0x8b6   : > { %9299 = vmatpush1.msra.mxu0 %v9245_v49  ;;  %9408 = vmatpush1.msra.mxu1 %v9354_v35  ;;  %v9459_v49 = vld [vmem:[#allocation7 + $0x640] sm:$0xff] }
 0x8b7   : > { %9300 = vmatprep.subr.mxu0 %v17115_v23  ;;  %9409 = vmatprep.subr.mxu1 %v17115_v23  ;;  %v9568_v35 = vld [vmem:[#allocation7 + $0x6e0] sm:$0xff] }
 0x8b8   : > { %9301 = vmatpush1.msra.mxu0 %v9244_v52  ;;  %9410 = vmatpush1.msra.mxu1 %v9353_v44  ;;  %v9478_v52 = vld [vmem:[#allocation7 + $0x6d8] sm:$0xf] }
 0x8b9   : > { %9302 = vmatprep.subr.mxu0 %v17115_v23  ;;  %9411 = vmatprep.subr.mxu1 %v17115_v23  ;;  %v9587_v44 = vld [vmem:[#allocation7 + $0x778] sm:$0xf] }
 0x8ba   : > { %9303 = vmatpush1.msra.mxu0 %v9243_v60  ;;  %9412 = vmatpush1.msra.mxu1 %v9352_v61  ;;  %v9477_v60 = vld [vmem:[#allocation7 + $0x6d0] sm:$0xff] }
 0x8bb   : > { %9304 = vmatprep.subr.mxu0 %v17115_v23  ;;  %9413 = vmatprep.subr.mxu1 %v17115_v23  ;;  %v9586_v61 = vld [vmem:[#allocation7 + $0x770] sm:$0xff] }
 0x8bc   : > { %9305 = vmatpush1.msra.mxu0 %v9242_v27  ;;  %9414 = vmatpush1.msra.mxu1 %v9351_v6  ;;  %v9476_v27 = vld [vmem:[#allocation7 + $0x6c8] sm:$0xff] }
 0x8bd   : > { %9306 = vmatprep.subr.mxu0 %v17115_v23  ;;  %9415 = vmatprep.subr.mxu1 %v17115_v23  ;;  %v9585_v6 = vld [vmem:[#allocation7 + $0x768] sm:$0xff] }
 0x8be   : > { %9307 = vmatpush1.msra.mxu0 %v9241_v63  ;;  %9416 = vmatpush1.msra.mxu1 %v9350_v16  ;;  %v9475_v63 = vld [vmem:[#allocation7 + $0x6c0] sm:$0xff] }
 0x8bf   : > { %9332 = vmatprep.subr.mxu0 %v17115_v23  ;;  %9441 = vmatprep.subr.mxu1 %v17115_v23  ;;  %v9584_v16 = vld [vmem:[#allocation7 + $0x760] sm:$0xff] }
 0x8c0   : > { %10844 = vmatpush2.msk.msra.mxu0 %vm5087_vm2, %v9260_v5  ;;  %10846 = vmatpush2.msk.msra.mxu1 %vm5087_vm2, %v9369_v62  ;;  %v16603_v5 = vld [vmem:[#allocation3 + $0x14] ss:$8 sm:$0x3]  ;;  %v9483_v62 = vrot.slane %v16542_v39, %v15447_v41 }
 0x8c1   : > { %9334 = vmatprep.subr.mxu0 %v17115_v23  ;;  %9443 = vmatprep.subr.mxu1 %v17115_v23  ;;  %v9687_v39 = vld [vmem:[#allocation7 + $0x7d0] sm:$0xff] }
 0x8c2   : > { %9335 = vmatpush2.msra.mxu0 %v9259_v58  ;;  %9444 = vmatpush2.msra.mxu1 %v9368_v54  ;;  %v9592_v58 = vrot.slane %v16550_v0, %v15447_v41  ;;  %v9692_v54 = vld [vmem:[#allocation7 + $0x7f8] sm:$0xff] }
 0x8c3   : > { %9336 = vmatprep.subr.mxu0 %v17115_v23  ;;  %9445 = vmatprep.subr.mxu1 %v17115_v23  ;;  %v9684_v0 = vld [vmem:[#allocation7 + $0x7b8] sm:$0xff] }
 0x8c4   : > { %9337 = vmatpush2.msra.mxu0 %v9258_v4  ;;  %9446 = vmatpush2.msra.mxu1 %v9367_v37  ;;  %v9705_v4 = vrot.slane %v16603_v5, %v17118_v40  ;;  %v9691_v37 = vld [vmem:[#allocation7 + $0x7f0] sm:$0xff]  ;;  %v9688_v40 = vld [vmem:[#allocation7 + $0x7d8] sm:$0xff] }
 0x8c5   : > { %9338 = vmatprep.subr.mxu0 %v17115_v23  ;;  %9447 = vmatprep.subr.mxu1 %v17115_v23 }
 0x8c6   : > { %9339 = vmatpush2.msra.mxu0 %v9257_v28  ;;  %9448 = vmatpush2.msra.mxu1 %v9366_v7  ;;  %v9690_v28 = vld [vmem:[#allocation7 + $0x7e8] sm:$0xff]  ;;  %v9689_v7 = vld [vmem:[#allocation7 + $0x7e0] sm:$0xff] }
 0x8c7   : > { %9341 = vmatmul.mubr.f32.vlgmr.msra.gmra.mxu0 %v9265_v22  ;;  %9450 = vmatmul.mubr.f32.vlgmr.msra.gmra.mxu1 %v9374_v25  ;;  %v9686_v22 = vld [vmem:[#allocation7 + $0x7c8] sm:$0xff]  ;;  %v9685_v25 = vld [vmem:[#allocation7 + $0x7c0] sm:$0xff] }
 0x8c8   : > { %9494 = vmatprep.subr.mxu0 %v17115_v23  ;;  %9603 = vmatprep.subr.mxu1 %v17115_v23 }
 0x8c9   : > { %9495 = vmatpush1.msra.mxu0 %v9474_v57  ;;  %10849 = vmatprep.mubr.msk.f32.mxu0 %vm8362_vm12, %v9487_v19  ;;  %v9683_v57 = vld [vmem:[#allocation7 + $0x7b0] sm:$0xff]  ;;  %v9682_v19 = vld [vmem:[#allocation7 + $0x7a8] sm:$0xff] }
 0x8ca   : > { %9604 = vmatpush1.msra.mxu1 %v9583_v47  ;;  %10851 = vmatprep.mubr.msk.f32.mxu1 %vm8362_vm12, %v9596_v45  ;;  %v9681_v47 = vld [vmem:[#allocation7 + $0x7a0] sm:$0xff]  ;;  %v9680_v45 = vld [vmem:[#allocation7 + $0x798] sm:$0xff] }
 0x8cb   : > { %9496 = vmatprep.subr.mxu0 %v17115_v23  ;;  %9605 = vmatprep.subr.mxu1 %v17115_v23 }
 0x8cc   : > { %9497 = vmatpush1.msra.mxu0 %v9473_v42  ;;  %9606 = vmatpush1.msra.mxu1 %v9582_v11 }
 0x8cd   : > { %9498 = vmatprep.subr.mxu0 %v17115_v23  ;;  %9607 = vmatprep.subr.mxu1 %v17115_v23 }
 0x8ce   : > { %9499 = vmatpush1.msra.mxu0 %v9472_v15  ;;  %9608 = vmatpush1.msra.mxu1 %v9581_v24  ;;  %v9679_v15 = vld [vmem:[#allocation7 + $0x790] sm:$0xff] }
 0x8cf   : > { %9500 = vmatprep.subr.mxu0 %v17115_v23  ;;  %9609 = vmatprep.subr.mxu1 %v17115_v23 }
 0x8d0   : > { %9501 = vmatpush1.msra.mxu0 %v9471_v50  ;;  %9610 = vmatpush1.msra.mxu1 %v9580_v18 }
 0x8d1   : > { %9502 = vmatprep.subr.mxu0 %v17115_v23  ;;  %9611 = vmatprep.subr.mxu1 %v17115_v23 }
 0x8d2   : > { %9503 = vmatpush1.msra.mxu0 %v9470_v51  ;;  %9612 = vmatpush1.msra.mxu1 %v9579_v21  ;;  %v9678_v51 = vld [vmem:[#allocation7 + $0x788] sm:$0xff] }
 0x8d3   : > { %9504 = vmatprep.subr.mxu0 %v17115_v23  ;;  %9613 = vmatprep.subr.mxu1 %v17115_v23 }
 0x8d4   : > { %9505 = vmatpush1.msra.mxu0 %v9469_v2  ;;  %9614 = vmatpush1.msra.mxu1 %v9578_v8  ;;  %v9677_v2 = vld [vmem:[#allocation7 + $0x780] sm:$0xff]  ;;  %v9696_v8 = vld [vmem:[#allocation7 + $0x818] sm:$0xf] }
 0x8d5   : > { %9506 = vmatprep.subr.mxu0 %v17115_v23  ;;  %9615 = vmatprep.subr.mxu1 %v17115_v23 }
 0x8d6   : > { %9507 = vmatpush1.msra.mxu0 %v9468_v56  ;;  %9616 = vmatpush1.msra.mxu1 %v9577_v43  ;;  %v9695_v56 = vld [vmem:[#allocation7 + $0x810] sm:$0xff]  ;;  %v9694_v43 = vld [vmem:[#allocation7 + $0x808] sm:$0xff] }
 0x8d7   : > { %9508 = vmatprep.subr.mxu0 %v17115_v23  ;;  %9617 = vmatprep.subr.mxu1 %v17115_v23 }
 0x8d8   : > { %9509 = vmatpush1.msra.mxu0 %v9467_v38  ;;  %9618 = vmatpush1.msra.mxu1 %v9576_v17  ;;  %v9693_v38 = vld [vmem:[#allocation7 + $0x800] sm:$0xff]  ;;  %v9701_v17 = vrot.slane %v16603_v5, %v15447_v41 }
 0x8d9   : > { %9510 = vmatprep.subr.mxu0 %v17115_v23  ;;  %9619 = vmatprep.subr.mxu1 %v17115_v23 }
 0x8da   : > { %9511 = vmatpush1.msra.mxu0 %v9466_v12  ;;  %9620 = vmatpush1.msra.mxu1 %v9575_v9 }
 0x8db   : > { %9512 = vmatprep.subr.mxu0 %v17115_v23  ;;  %9621 = vmatprep.subr.mxu1 %v17115_v23 }
 0x8dc   : > { %9513 = vmatpush1.msra.mxu0 %v9465_v20  ;;  %9622 = vmatpush1.msra.mxu1 %v9574_v48  ;;  %v9799_v48 = vld [vmem:[%s16826_s15 + $0x78] sm:$0xff] }
 0x8dd   : > { %9514 = vmatprep.subr.mxu0 %v17115_v23  ;;  %9623 = vmatprep.subr.mxu1 %v17115_v23 }
 0x8de   : > { %9515 = vmatpush1.msra.mxu0 %v9464_v10  ;;  %9624 = vmatpush1.msra.mxu1 %v9573_v13  ;;  %v9798_v10 = vld [vmem:[%s16826_s15 + $0x70] sm:$0xff] }
 0x8df   : > { %9516 = vmatprep.subr.mxu0 %v17115_v23  ;;  %9625 = vmatprep.subr.mxu1 %v17115_v23 }
 0x8e0   : > { %9517 = vmatpush1.msra.mxu0 %v9463_v29  ;;  %9626 = vmatpush1.msra.mxu1 %v9572_v36  ;;  %v8470_v46 = vpop.f32.mrf.mxu0  ;;  %v8579_v30 = vpop.f32.mrf.mxu1 }
 0x8e1   : > { %9518 = vmatprep.subr.mxu0 %v17115_v23  ;;  %9627 = vmatprep.subr.mxu1 %v17115_v23  ;;  %v8474_v26 = vadd.f32 %v8470_v46, %v8367_v33  ;;  %v9797_v33 = vld [vmem:[%s16826_s15 + $0x68] sm:$0xff]  ;;  %v9794_v46 = vld [vmem:[%s16826_s15 + $0x50] sm:$0xff] }
 0x8e2   : > { %9519 = vmatpush1.msra.mxu0 %v9462_v34  ;;  %9628 = vmatpush1.msra.mxu1 %v9571_v32  ;;  %v8472_v1 = vpop.f32.mrf.mxu0  ;;  %v8581_v3 = vpop.f32.mrf.mxu1  ;;  %v9796_v34 = vld [vmem:[%s16826_s15 + $0x60] sm:$0xff]  ;;  %v9795_v32 = vld [vmem:[%s16826_s15 + $0x58] sm:$0xff] }
 0x8e3   : > { %9520 = vmatprep.subr.mxu0 %v17115_v23  ;;  %9629 = vmatprep.subr.mxu1 %v17115_v23  ;;  %v16589_v14 = vadd.f32 %v8579_v30, %v8474_v26  ;;  %v9793_v30 = vld [vmem:[%s16826_s15 + $0x48] sm:$0xff]  ;;  %v9790_v26 = vld [vmem:[%s16826_s15 + $0x30] sm:$0xff]  ;;  %v9788_v3 = vld [vmem:[%s16826_s15 + $0x20] sm:$0xff] }
 0x8e4   : > { %9521 = vmatpush1.msra.mxu0 %v9461_v59  ;;  %9630 = vmatpush1.msra.mxu1 %v9570_v53  ;;  %v9792_v59 = vld [vmem:[%s16826_s15 + $0x40] sm:$0xff]  ;;  %v9791_v53 = vld [vmem:[%s16826_s15 + $0x38] sm:$0xff]  ;;  %v9789_v1 = vld [vmem:[%s16826_s15 + $0x28] sm:$0xff] }
 0x8e5   : > { %9522 = vmatprep.subr.mxu0 %v17115_v23  ;;  %9631 = vmatprep.subr.mxu1 %v17115_v23 }
 0x8e6   : > { %9523 = vmatpush1.msra.mxu0 %v9460_v55  ;;  %9632 = vmatpush1.msra.mxu1 %v9569_v31  ;;  %v9787_v55 = vld [vmem:[%s16826_s15 + $0x18] sm:$0xff]  ;;  %v9786_v31 = vld [vmem:[%s16826_s15 + $0x10] sm:$0xff] }
 0x8e7   : > { %9524 = vmatprep.subr.mxu0 %v17115_v23  ;;  %9633 = vmatprep.subr.mxu1 %v17115_v23 }
 0x8e8   : > { %9525 = vmatpush1.msra.mxu0 %v9459_v49  ;;  %9634 = vmatpush1.msra.mxu1 %v9568_v35 }
 0x8e9   : > { %9550 = vmatprep.subr.mxu0 %v17115_v23  ;;  %9659 = vmatprep.subr.mxu1 %v17115_v23 }
 0x8ea   : > { %10848 = vmatpush2.msk.msra.mxu0 %vm5087_vm2, %v9478_v52  ;;  %10850 = vmatpush2.msk.msra.mxu1 %vm5087_vm2, %v9587_v44  ;;  %v9784_v52 = vld [vmem:[%s16826_s15] sm:$0xff] }
 0x8eb   : > { %9552 = vmatprep.subr.mxu0 %v17115_v23  ;;  %9661 = vmatprep.subr.mxu1 %v17115_v23 }
 0x8ec   : > { %9553 = vmatpush2.msra.mxu0 %v9477_v60  ;;  %9662 = vmatpush2.msra.mxu1 %v9586_v61 }
 0x8ed   : > { %9554 = vmatprep.subr.mxu0 %v17115_v23  ;;  %9663 = vmatprep.subr.mxu1 %v17115_v23 }
 0x8ee   : > { %9555 = vmatpush2.msra.mxu0 %v9476_v27  ;;  %9664 = vmatpush2.msra.mxu1 %v9585_v6 }
 0x8ef   : > { %9556 = vmatprep.subr.mxu0 %v17115_v23  ;;  %9665 = vmatprep.subr.mxu1 %v17115_v23 }
 0x8f0   : > { %9557 = vmatpush2.msra.mxu0 %v9475_v63  ;;  %9666 = vmatpush2.msra.mxu1 %v9584_v16 }
 0x8f1   : > { %9559 = vmatmul.mubr.f32.vlgmr.msra.gmra.mxu0 %v9483_v62  ;;  %9668 = vmatmul.mubr.f32.vlgmr.msra.gmra.mxu1 %v9592_v58 }
 0x8f2   : > { %9712 = vmatprep.subr.mxu0 %v17115_v23  ;;  %10853 = vmatprep.mubr.msk.f32.mxu0 %vm8362_vm12, %v9705_v4 }
 0x8f3   : > { %9713 = vmatpush1.msra.mxu0 %v9692_v54  ;;  %11654 = vmatprep.subr.mxu1 %v17115_v23 }
 0x8f4   : > { %9714 = vmatprep.subr.mxu0 %v17115_v23  ;;  %11655 = vmatpush3.msra.mxu1 %v9799_v48 }
 0x8f5   : > { %9715 = vmatpush1.msra.mxu0 %v9691_v37  ;;  %11656 = vmatprep.subr.mxu1 %v17115_v23 }
 0x8f6   : > { %9716 = vmatprep.subr.mxu0 %v17115_v23  ;;  %11657 = vmatpush3.msra.mxu1 %v9798_v10 }
 0x8f7   : > { %9717 = vmatpush1.msra.mxu0 %v9690_v28  ;;  %11658 = vmatprep.subr.mxu1 %v17115_v23 }
 0x8f8   : > { %9718 = vmatprep.subr.mxu0 %v17115_v23  ;;  %11659 = vmatpush3.msra.mxu1 %v9797_v33 }
 0x8f9   : > { %9719 = vmatpush1.msra.mxu0 %v9689_v7  ;;  %11660 = vmatprep.subr.mxu1 %v17115_v23 }
 0x8fa   : > { %9720 = vmatprep.subr.mxu0 %v17115_v23  ;;  %11661 = vmatpush3.msra.mxu1 %v9796_v34 }
 0x8fb   : > { %9721 = vmatpush1.msra.mxu0 %v9688_v40  ;;  %11662 = vmatprep.subr.mxu1 %v17115_v23 }
 0x8fc   : > { %9722 = vmatprep.subr.mxu0 %v17115_v23  ;;  %11663 = vmatpush3.msra.mxu1 %v9795_v32 }
 0x8fd   : > { %9723 = vmatpush1.msra.mxu0 %v9687_v39  ;;  %11664 = vmatprep.subr.mxu1 %v17115_v23 }
 0x8fe   : > { %9724 = vmatprep.subr.mxu0 %v17115_v23  ;;  %11665 = vmatpush3.msra.mxu1 %v9794_v46 }
 0x8ff   : > { %9725 = vmatpush1.msra.mxu0 %v9686_v22  ;;  %11666 = vmatprep.subr.mxu1 %v17115_v23 }
 0x900   : > { %9726 = vmatprep.subr.mxu0 %v17115_v23  ;;  %11667 = vmatpush3.msra.mxu1 %v9793_v30 }
 0x901   : > { %9727 = vmatpush1.msra.mxu0 %v9685_v25  ;;  %11668 = vmatprep.subr.mxu1 %v17115_v23 }
 0x902   : > { %9728 = vmatprep.subr.mxu0 %v17115_v23  ;;  %11669 = vmatpush3.msra.mxu1 %v9792_v59 }
 0x903   : > { %9729 = vmatpush1.msra.mxu0 %v9684_v0  ;;  %11670 = vmatprep.subr.mxu1 %v17115_v23 }
 0x904   : > { %9730 = vmatprep.subr.mxu0 %v17115_v23  ;;  %11671 = vmatpush3.msra.mxu1 %v9791_v53 }
 0x905   : > { %9731 = vmatpush1.msra.mxu0 %v9683_v57  ;;  %11672 = vmatprep.subr.mxu1 %v17115_v23  ;;  %v9887_v57 = vld [vmem:[%s16828_s17 + $0x78] sm:$0xff] }
 0x906   : > { %9732 = vmatprep.subr.mxu0 %v17115_v23  ;;  %11673 = vmatpush3.msra.mxu1 %v9790_v26 }
 0x907   : > { %9733 = vmatpush1.msra.mxu0 %v9682_v19  ;;  %11674 = vmatprep.subr.mxu1 %v17115_v23  ;;  %v9886_v19 = vld [vmem:[%s16828_s17 + $0x70] sm:$0xff] }
 0x908   : > { %9734 = vmatprep.subr.mxu0 %v17115_v23  ;;  %11675 = vmatpush3.msra.mxu1 %v9789_v1 }
 0x909   : > { %9735 = vmatpush1.msra.mxu0 %v9681_v47  ;;  %v8688_v42 = vpop.f32.mrf.mxu0  ;;  %v8797_v11 = vpop.f32.mrf.mxu1  ;;  %11676 = vmatprep.subr.mxu1 %v17115_v23  ;;  %v9885_v47 = vld [vmem:[%s16828_s17 + $0x68] sm:$0xff] }
 0x90a   : > { %9736 = vmatprep.subr.mxu0 %v17115_v23  ;;  %v8692_v24 = vadd.f32 %v8688_v42, %v16589_v14  ;;  %11677 = vmatpush3.msra.mxu1 %v9788_v3  ;;  %v9785_v14 = vld [vmem:[%s16826_s15 + $0x8] sm:$0xff]  ;;  %v9883_v42 = vld [vmem:[%s16828_s17 + $0x58] sm:$0xff] }
 0x90b   : > { %9737 = vmatpush1.msra.mxu0 %v9680_v45  ;;  %v8690_v50 = vpop.f32.mrf.mxu0  ;;  %v8799_v18 = vpop.f32.mrf.mxu1  ;;  %11678 = vmatprep.subr.mxu1 %v17115_v23  ;;  %v9884_v45 = vld [vmem:[%s16828_s17 + $0x60] sm:$0xff] }
 0x90c   : > { %9738 = vmatprep.subr.mxu0 %v17115_v23  ;;  %v8801_v21 = vadd.f32 %v8797_v11, %v8692_v24  ;;  %11679 = vmatpush3.msra.mxu1 %v9787_v55  ;;  %v9882_v11 = vld [vmem:[%s16828_s17 + $0x50] sm:$0xff]  ;;  %v9880_v24 = vld [vmem:[%s16828_s17 + $0x40] sm:$0xff]  ;;  %v9879_v50 = vld [vmem:[%s16828_s17 + $0x38] sm:$0xff] }
 0x90d   : > { %9739 = vmatpush1.msra.mxu0 %v9679_v15  ;;  %11680 = vmatprep.subr.mxu1 %v17115_v23  ;;  %v9881_v15 = vld [vmem:[%s16828_s17 + $0x48] sm:$0xff]  ;;  %v9878_v18 = vld [vmem:[%s16828_s17 + $0x30] sm:$0xff] }
 0x90e   : > { %9740 = vmatprep.subr.mxu0 %v17115_v23  ;;  %11681 = vmatpush3.msra.mxu1 %v9786_v31 }
 0x90f   : > { %9741 = vmatpush1.msra.mxu0 %v9678_v51  ;;  %11682 = vmatprep.subr.mxu1 %v17115_v23  ;;  %v9877_v51 = vld [vmem:[%s16828_s17 + $0x28] sm:$0xff] }
 0x910   : > { %9742 = vmatprep.subr.mxu0 %v17115_v23  ;;  %11683 = vmatpush3.msra.mxu1 %v9785_v14 }
 0x911   : > { %9743 = vmatpush1.msra.mxu0 %v9677_v2  ;;  %11684 = vmatprep.subr.mxu1 %v17115_v23  ;;  %v9875_v2 = vld [vmem:[%s16828_s17 + $0x18] sm:$0xff] }
 0x912   : > { %9768 = vmatprep.subr.mxu0 %v17115_v23  ;;  %11685 = vmatpush3.msra.mxu1 %v9784_v52 }
 0x913   : > { %10852 = vmatpush2.msk.msra.mxu0 %vm5087_vm2, %v9696_v8  ;;  %11686 = vmatprep.mubr.msk.f32.mxu1 %vm11922_vm14, %v17115_v23  ;;  %v9874_v8 = vld [vmem:[%s16828_s17 + $0x10] sm:$0xff] }
 0x914   : > { %9770 = vmatprep.subr.mxu0 %v17115_v23  ;;  %11689 = vmatprep.subr.mxu1 %v17115_v23 }
 0x915   : > { %9771 = vmatpush2.msra.mxu0 %v9695_v56  ;;  %v9873_v56 = vld [vmem:[%s16828_s17 + $0x8] sm:$0xff] }
 0x916   : > { %9772 = vmatprep.subr.mxu0 %v17115_v23 }
 0x917   : > { %9773 = vmatpush2.msra.mxu0 %v9694_v43  ;;  %v9872_v43 = vld [vmem:[%s16828_s17] sm:$0xff] }
 0x918   : > { %9774 = vmatprep.subr.mxu0 %v17115_v23 }
 0x919   : > { %9775 = vmatpush2.msra.mxu0 %v9693_v38  ;;  %v9800_v38 = vld [vmem:[%s16827_s16] sm:$0x1] }
 0x91a   : > { %9777 = vmatmul.mubr.f32.vlgmr.msra.gmra.mxu0 %v9701_v17 }
 0x933   : > { %v8906_v12 = vpop.f32.mrf.mxu0  ;;  %v9015_v9 = vpop.f32.mrf.mxu1 }
 0x934   : > { %v8910_v20 = vadd.f32 %v8906_v12, %v8801_v21  ;;  %v9876_v21 = vld [vmem:[%s16828_s17 + $0x20] sm:$0xff] }
 0x935   : > { %v8908_v13 = vpop.f32.mrf.mxu0  ;;  %v9017_v29 = vpop.f32.mrf.mxu1 }
 0x936   : > { %v9019_v36 = vadd.f32 %v9015_v9, %v8910_v20 }
 0x95d   : > { %v9124_v49 = vpop.f32.mrf.mxu0  ;;  %v9233_v35 = vpop.f32.mrf.mxu1 }
 0x95e   : > { %v9128_v44 = vadd.f32 %v9124_v49, %v9019_v36 }
 0x95f   : > { %v9126_v60 = vpop.f32.mrf.mxu0  ;;  %v9235_v61 = vpop.f32.mrf.mxu1 }
 0x960   : > { %v9237_v27 = vadd.f32 %v9233_v35, %v9128_v44 }
 0x987   : > { %v9342_v6 = vpop.f32.mrf.mxu0  ;;  %v9451_v63 = vpop.f32.mrf.mxu1 }
 0x988   : > { %v9346_v16 = vadd.f32 %v9342_v6, %v9237_v27 }
 0x989   : > { %v9344_v5 = vpop.f32.mrf.mxu0  ;;  %v9453_v62 = vpop.f32.mrf.mxu1 }
 0x98a   : > { %v9455_v58 = vadd.f32 %v9451_v63, %v9346_v16 }
 0x9b1   : > { %v9560_v54 = vpop.f32.mrf.mxu0  ;;  %v9669_v4 = vpop.f32.mrf.mxu1 }
 0x9b2   : > { %v9564_v7 = vadd.f32 %v9560_v54, %v9455_v58 }
 0x9b3   : > { %v9562_v37 = vpop.f32.mrf.mxu0  ;;  %v9671_v28 = vpop.f32.mrf.mxu1 }
 0x9b4   : > { %v9673_v40 = vadd.f32 %v9669_v4, %v9564_v7 }
 0x9da   : > { %v9778_v39 = vpop.f32.mrf.mxu0 }
 0x9db   : > { %v9782_v22 = vadd.f32 %v9778_v39, %v9673_v40 }
 0x9dc   : > { %v9780_v25 = vpop.f32.mrf.mxu0 }
 0x9dd   : > { %v9783_v0 = vmax.f32 %v9782_v22, 0.0 }
 0x9df   : > { %11687 = vmatmul.mubr.f32.vlgmr.msra.gmra.mxu1 %v9783_v0 }
 0x9e0   : > { %11690 = vmatpush3.msra.mxu1 %v9887_v57  ;;  %11721 = vmatprep.mubr.msk.f32.mxu1 %vm11922_vm14, %v17115_v23 }
 0x9e1   : > { %11691 = vmatprep.subr.mxu1 %v17115_v23 }
 0x9e2   : > { %11692 = vmatpush3.msra.mxu1 %v9886_v19 }
 0x9e3   : > { %11693 = vmatprep.subr.mxu1 %v17115_v23 }
 0x9e4   : > { %11694 = vmatpush3.msra.mxu1 %v9885_v47 }
 0x9e5   : > { %11695 = vmatprep.subr.mxu1 %v17115_v23 }
 0x9e6   : > { %11696 = vmatpush3.msra.mxu1 %v9884_v45 }
 0x9e7   : > { %11697 = vmatprep.subr.mxu1 %v17115_v23 }
 0x9e8   : > { %11698 = vmatpush3.msra.mxu1 %v9883_v42 }
 0x9e9   : > { %11699 = vmatprep.subr.mxu1 %v17115_v23 }
 0x9ea   : > { %11700 = vmatpush3.msra.mxu1 %v9882_v11 }
 0x9eb   : > { %11701 = vmatprep.subr.mxu1 %v17115_v23 }
 0x9ec   : > { %11702 = vmatpush3.msra.mxu1 %v9881_v15 }
 0x9ed   : > { %11703 = vmatprep.subr.mxu1 %v17115_v23 }
 0x9ee   : > { %11704 = vmatpush3.msra.mxu1 %v9880_v24 }
 0x9ef   : > { %11705 = vmatprep.subr.mxu1 %v17115_v23 }
 0x9f0   : > { %11706 = vmatpush3.msra.mxu1 %v9879_v50 }
 0x9f1   : > { %11707 = vmatprep.subr.mxu1 %v17115_v23 }
 0x9f2   : > { %11708 = vmatpush3.msra.mxu1 %v9878_v18 }
 0x9f3   : > { %11709 = vmatprep.subr.mxu1 %v17115_v23 }
 0x9f4   : > { %11710 = vmatpush3.msra.mxu1 %v9877_v51 }
 0x9f5   : > { %11711 = vmatprep.subr.mxu1 %v17115_v23 }
 0x9f6   : > { %11712 = vmatpush3.msra.mxu1 %v9876_v21 }
 0x9f7   : > { %11713 = vmatprep.subr.mxu1 %v17115_v23 }
 0x9f8   : > { %11714 = vmatpush3.msra.mxu1 %v9875_v2 }
 0x9f9   : > { %11715 = vmatprep.subr.mxu1 %v17115_v23 }
 0x9fa   : > { %11716 = vmatpush3.msra.mxu1 %v9874_v8 }
 0x9fb   : > { %11717 = vmatprep.subr.mxu1 %v17115_v23 }
 0x9fc   : > { %11718 = vmatpush3.msra.mxu1 %v9873_v56 }
 0x9fd   : > { %11719 = vmatprep.subr.mxu1 %v17115_v23  ;;  %v9888_v23 = vld [vmem:[%s16829_s18] sm:$0x1] }
 0x9fe   : > { %11720 = vmatpush3.msra.mxu1 %v9872_v43 }
 0xa9f   : > { %v9867_v17 = vpop.f32.mrf.mxu1 }
 0xaa0   : > { %v9868_v12 = vadd.f32 %v9867_v17, %v9800_v38 }
 0xaa1   : > { %v11688_v9 = vpop.f32.mrf.mxu1 }
 0xaa2   : > { %v9871_v20 = vmax.f32 %v9868_v12, 0.0 }
 0xaa4   : > { %11722 = vmatmul.mubr.f32.vlgmr.msra.gmra.mxu1 %v9871_v20 }
 0xb64   : > { %v9955_v48 = vpop.f32.mrf.mxu1 }
 0xb65   : > { %v9956_v10 = vadd.f32 %v9955_v48, %v9888_v23 }
 0xb66   : > { %v11723_v13 = vpop.f32.mrf.mxu1 }
 0xb67   : > { %v9962_v29 = vrot.slane %v9956_v10, %v15447_v41 }
 0xb69   : > { %9963 = vst [vmem:[%s625_s0] sm:$0xff] %v9962_v29 }
 0xb6a   : > { %11858 = shalt.err (!%p11855_p3)
}
 0xb6b   : > { %s11859_s23 = scalar_lea.hbm %s9976_s2, 128  ;;  %s11863_s0 = scalar_lea.hbm %s17119_s27, 256 }
 0xb6c   : > { %p11860_p2 = scmp.ne.s32.totalorder %s9976_s2, %s11859_s23  ;;  %p11864_p6 = scmp.lt.s32.totalorder %s9976_s2, %s17119_s27 }
 0xb6d   : > { %p11865_p9 = scmp.lt.s32.totalorder %s11863_s0, %s11859_s23 }
 0xb6e   : > { %p11861_p4 = pnand %p11860_p2, %p12062_p5 }
 0xb6f   : > { %p11866_p12 = por %p11865_p9, %p11864_p6 }
 0xb70   : > { %p11862_p13 = pneg %p11861_p4 }
 0xb72   : > { %p11867_p10 = pnand %p11866_p12, %p11862_p13 }
 0xb74   : > { %11870 = shalt.err (!%p11867_p10)
}
 0xb75   : > { %11733 = dma.vmem_to_hbm [thread:$0]  (%p12062_p5), %s9979_s21, 128, %s9976_s2, %s9965_s4  }
 0xb76 PF: > { %s17120_s5 = sld [smem:[#allocation15_spill]] }
 0xb77   : > { %s17121_s20 = sld [smem:[#allocation13_spill]] }
 0xb78   : > { %s17122_s1 = sld [smem:[#allocation18_spill]] }
 0xb7c   : > { %p11750_p7 = scmp.ge.s32.totalorder %s17120_s5, 2 }
 0xb7d   : > { %s9990_s24 = sand.u32 1, %s17121_s20  }
 0xb7e   : > { %p17123_p8 = scmp.ne.s32.totalorder %s17122_s1, 0  ;;  %s9991_s29 = scalar_lea.sflag [#allocation6], %s9990_s24 }
 0xb80   : > { %p11743_p11 = pnand %p11750_p7, %p17123_p8 }
 0xb82   : > { %p11744_p0 = pneg %p11743_p11 }
 0xb84   : > { %11896 = dma.done.wait (%p11744_p0), %s9991_s29, 128  }
 0xb85   : > { %11898 = vsyncadd (%p11744_p0), %s9991_s29, 4294967168  ;;  %s17124_s21 = sld [smem:[#allocation16_spill]]  ;;  %s17127_s0 = smov %s11905_s30 }
 0xb86   : > { %s17125_s23 = sld [smem:[#allocation14_spill]] }
 0xb87   : > { %s17126_s20 = sld [smem:[#allocation17_spill]] }
 0xb8b   : > { %p31_p1 = scmp.ge.s32.totalorder %s17124_s21, 4  }
 0xb8c   : > { %s17128_s30 = smov %s17125_s23 }
 0xb8d   :  { %33 = sbr.rel (!%p31_p1) target bundleno = 13 (0xd), region = 184 }
 0xb92   :  { %9996 = vsyncpa [#allocation5], 1 }
 0xb93   :  { %9998 = vsyncpa [#allocation5 + $0x1], 1 }
 0xb94   :  { %9999 = vsyncpa [#allocation8], 1 }
 0xb95   :  { %10000 = vsyncpa [#allocation6], 1 }
 0xb96   :  { %10002 = vsyncpa [#allocation6 + $0x1], 1 }

</bundles_post_ra>
